<compile_context>
chip_gen: v7x
topology: tpu7x:2x2x1
jax: 0.10.0
libtpu: 0.0.40
codegen_flags: <defaults>
</compile_context>

<pallas_src>
import functools

import jax
import jax.numpy as jnp
import numpy as np
from jax.experimental import pallas as pl
from jax.experimental.pallas import tpu as pltpu


def _dot(a, b):
    return jnp.dot(a, b, preferred_element_type=jnp.float32)


# ----------------------------------------------------------------------------
# Kernel 1: point-wise encoder MLP + per-batch global max pool (tile over N)
# Activations are feature-major: (C, tile) with points on lanes.
# ----------------------------------------------------------------------------
def stn_encoder_kernel(x_ref, w1t_ref, b1t_ref, w2t_ref, b2t_ref, w3t_ref,
                       b3t_ref, pooled_ref, *, tile_cols, valid_tail, has_tail):
    t = pl.program_id(1)
    last = pl.num_programs(1) - 1

    x = x_ref[0]                                              # (3, tc) f32

    # conv1 (K=3): three broadcast FMAs on the VPU (MXU would be ~2% utilized).
    w1t = w1t_ref[...]                                        # (64, 3)
    h = (w1t[:, 0:1] * x[0:1, :]
         + w1t[:, 1:2] * x[1:2, :]
         + w1t[:, 2:3] * x[2:3, :]
         + b1t_ref[...])                                      # (64, tc)
    h = jnp.maximum(h, 0.0)

    # conv2 / conv3 as W^T @ h on the MXU: bf16 operands, f32 accumulation.
    h = jnp.maximum(_dot(w2t_ref[...], h.astype(jnp.bfloat16)) + b2t_ref[...],
                    0.0)                                      # (128, tc)
    # conv3: no bias / no ReLU here — both are folded into the finalize step.
    h = _dot(w3t_ref[...], h.astype(jnp.bfloat16))            # (1024, tc) f32

    # Running per-batch max accumulator (output block constant along t axis).
    @pl.when(t == 0)
    def _():
        pooled_ref[...] = jnp.full(pooled_ref.shape, -jnp.inf, pooled_ref.dtype)

    def _accumulate(hv):
        pooled_ref[...] = jnp.maximum(
            pooled_ref[...], jnp.max(hv, axis=1, keepdims=True)[None])

    if has_tail:
        # Only the last tile contains out-of-bounds (garbage) point columns;
        # mask them to -inf (the max-accumulator's neutral element) there only.
        @pl.when(t == last)
        def _():
            col = jax.lax.broadcasted_iota(jnp.int32, (1, tile_cols), 1)
            _accumulate(jnp.where(col < valid_tail, h, -jnp.inf))

        @pl.when(t != last)
        def _():
            _accumulate(h)
    else:
        _accumulate(h)

    # Finalize: max_n ReLU(W3 h2(n) + b3) == ReLU(max_n(W3 h2(n)) + b3).
    @pl.when(t == last)
    def _():
        pooled_ref[...] = jnp.maximum(pooled_ref[...] + b3t_ref[...][None], 0.0)


# ----------------------------------------------------------------------------
# Kernel 2: fc1 -> fc2 -> fc3 head (bf16 weights, f32 accumulation; identity
# offset pre-folded into the lane-padded fc3 bias)
# ----------------------------------------------------------------------------
def stn_head_kernel(g_ref, wf1_ref, bf1_ref, wf2_ref, bf2_ref, wf3_ref,
                    bf3_ref, out_ref):
    h = jnp.maximum(_dot(g_ref[...], wf1_ref[...]) + bf1_ref[...], 0.0)        # (B, 512)
    h = jnp.maximum(_dot(h.astype(jnp.bfloat16), wf2_ref[...]) + bf2_ref[...],
                    0.0)                                                       # (B, 256)
    out_ref[...] = _dot(h.astype(jnp.bfloat16), wf3_ref[...]) + bf3_ref[...]   # (B, 128)


# ----------------------------------------------------------------------------
# Wrapper
# ----------------------------------------------------------------------------
@functools.partial(jax.jit, static_argnames=("tile_cols",))
def stn3d_forward(x, params, tile_cols=1024):
    B, C, N = x.shape
    assert C == 3

    # Point tile along the lane dimension: a multiple of 128, or the full
    # extent when N fits into a single tile.
    tc_req = 128 * max(1, -(-int(tile_cols) // 128))
    if N <= tc_req:
        tc, n_tiles, has_tail, valid_tail = N, 1, False, N
    else:
        tc = tc_req
        n_tiles = -(-N // tc)
        has_tail = (N % tc) != 0
        valid_tail = N - (n_tiles - 1) * tc

    # Feature-major weights; the big matmul weights are staged as bf16
    # (halves their DMA + VMEM footprint), biases stay f32.
    w1t = jnp.transpose(params["w1"])                         # (64, 3)    f32
    b1t = jnp.transpose(params["b1"])                         # (64, 1)    f32
    w2t = jnp.transpose(params["w2"]).astype(jnp.bfloat16)    # (128, 64)
    b2t = jnp.transpose(params["b2"])                         # (128, 1)   f32
    w3t = jnp.transpose(params["w3"]).astype(jnp.bfloat16)    # (1024, 128)
    b3t = jnp.transpose(params["b3"])                         # (1024, 1)  f32

    def const_spec(shape):
        # Weight/bias blocks: constant index map -> stays VMEM-resident.
        return pl.BlockSpec(shape, lambda b, t: (0, 0))

    pooled = pl.pallas_call(
        functools.partial(stn_encoder_kernel, tile_cols=tc,
                          valid_tail=valid_tail, has_tail=has_tail),
        out_shape=jax.ShapeDtypeStruct((B, 1024, 1), jnp.float32),
        grid=(B, n_tiles),
        in_specs=[
            pl.BlockSpec((1, 3, tc), lambda b, t: (b, 0, t)),   # points tile
            const_spec((64, 3)), const_spec((64, 1)),
            const_spec((128, 64)), const_spec((128, 1)),
            const_spec((1024, 128)), const_spec((1024, 1)),
        ],
        out_specs=pl.BlockSpec((1, 1024, 1), lambda b, t: (b, 0, 0)),
        compiler_params=pltpu.CompilerParams(
            dimension_semantics=("parallel", "arbitrary")),
    )(x, w1t, b1t, w2t, b2t, w3t, b3t)

    g = pooled[:, :, 0].astype(jnp.bfloat16)                  # (B, 1024)

    # Head weights: bf16, fc3 lane-padded to 128 columns, identity folded in.
    iden = jnp.array([1, 0, 0, 0, 1, 0, 0, 0, 1], jnp.float32)
    wf1 = params["wf1"].astype(jnp.bfloat16)
    wf2 = params["wf2"].astype(jnp.bfloat16)
    wf3 = jnp.zeros((256, 128), jnp.bfloat16).at[:, :9].set(
        params["wf3"].astype(jnp.bfloat16))
    bf3 = jnp.zeros((1, 128), jnp.float32).at[0, :9].set(params["bf3"][0] + iden)

    head_args = (g, wf1, params["bf1"], wf2, params["bf2"], wf3, bf3)
    head_in_specs = [pl.BlockSpec(a.shape, lambda i: (0, 0)) for a in head_args]

    out_pad = pl.pallas_call(
        stn_head_kernel,
        out_shape=jax.ShapeDtypeStruct((B, 128), jnp.float32),
        grid=(1,),
        in_specs=head_in_specs,
        out_specs=pl.BlockSpec((B, 128), lambda i: (0, 0)),
        compiler_params=pltpu.CompilerParams(dimension_semantics=("arbitrary",)),
    )(*head_args)

    return out_pad[:, :9].reshape(B, 3, 3)


# ----------------------------------------------------------------------------
# Synthetic parameters (shapes/init match the PyTorch module defaults)
# ----------------------------------------------------------------------------
PARAM_DIMS = {
    "w1": (3, 64), "w2": (64, 128), "w3": (128, 1024),        # conv1..3 (k=1)
    "wf1": (1024, 512), "wf2": (512, 256), "wf3": (256, 9),   # fc1..3
}


def init_params(key):
    p = {}
    keys = jax.random.split(key, len(PARAM_DIMS))
    for k, (name, (ci, co)) in zip(keys, PARAM_DIMS.items()):
        kw, kb = jax.random.split(k)
        bound = 1.0 / float(ci) ** 0.5
        p[name] = jax.random.uniform(kw, (ci, co), jnp.float32, -bound, bound)
        p["b" + name[1:]] = jax.random.uniform(kb, (1, co), jnp.float32, -bound, bound)
    return p


def reference_forward(x, p):
    """Pure-JAX f32 reference of the PyTorch STN3d forward."""
    B, _, N = x.shape
    h = jnp.transpose(x, (0, 2, 1)).reshape(B * N, 3)
    h = jax.nn.relu(h @ p["w1"] + p["b1"])
    h = jax.nn.relu(h @ p["w2"] + p["b2"])
    h = jax.nn.relu(h @ p["w3"] + p["b3"])
    g = h.reshape(B, N, 1024).max(axis=1)
    h = jax.nn.relu(g @ p["wf1"] + p["bf1"])
    h = jax.nn.relu(h @ p["wf2"] + p["bf2"])
    out = h @ p["wf3"] + p["bf3"]
    iden = jnp.array([1, 0, 0, 0, 1, 0, 0, 0, 1], jnp.float32)
    return (out + iden).reshape(B, 3, 3)


if __name__ == "__main__":
    B, N = 2, 200   # small shapes; N non-divisible by 128 to exercise masking
    key = jax.random.PRNGKey(0)
    kx, kp = jax.random.split(key)
    x = jax.random.normal(kx, (B, 3, N), jnp.float32)
    params = init_params(kp)

    ref = reference_forward(x, params)

    # Small tile -> exercises multi-tile accumulation + tail masking.
    out_small = stn3d_forward(x, params, tile_cols=128)
    # Default tile -> exercises the single-tile (tc == N) path.
    out_default = stn3d_forward(x, params)
    jax.block_until_ready((out_small, out_default))
    assert out_small.shape == (B, 3, 3) and out_default.shape == (B, 3, 3)

    np.testing.assert_allclose(np.asarray(out_small), np.asarray(ref),
                               rtol=2e-2, atol=2e-2)
    np.testing.assert_allclose(np.asarray(out_default), np.asarray(ref),
                               rtol=2e-2, atol=2e-2)

    print("KERNEL_OK")
</pallas_src>

<mosaic_0001>
module attributes {stable_mosaic.version = 11 : i64} {
  func.func @stn_encoder_kernel(%arg0: i32, %arg1: i32, %arg2: memref<1x3x128xf32, #tpu.memory_space<vmem>>, %arg3: memref<64x3xf32, #tpu.memory_space<vmem>>, %arg4: memref<64x1xf32, #tpu.memory_space<vmem>>, %arg5: memref<128x64xbf16, #tpu.memory_space<vmem>>, %arg6: memref<128x1xf32, #tpu.memory_space<vmem>>, %arg7: memref<1024x128xbf16, #tpu.memory_space<vmem>>, %arg8: memref<1024x1xf32, #tpu.memory_space<vmem>>, %arg9: memref<1x1024x1xf32, #tpu.memory_space<vmem>>) attributes {dimension_semantics = [#tpu.dimension_semantics<parallel>, #tpu.dimension_semantics<arbitrary>], iteration_bounds = array<i64: 2, 2>, scalar_prefetch = 0 : i64, scratch_operands = 0 : i64, tpu.core_type = #tpu.core_type<tc>, window_params = [{transform_indices = @transform_0, window_bounds = array<i64: 1, 3, 128>}, {pipeline_mode = #tpu.pipeline_mode<synchronous>, transform_indices = @transform_1, window_bounds = array<i64: 64, 3>}, {pipeline_mode = #tpu.pipeline_mode<synchronous>, transform_indices = @transform_2, window_bounds = array<i64: 64, 1>}, {pipeline_mode = #tpu.pipeline_mode<synchronous>, transform_indices = @transform_3, window_bounds = array<i64: 128, 64>}, {pipeline_mode = #tpu.pipeline_mode<synchronous>, transform_indices = @transform_4, window_bounds = array<i64: 128, 1>}, {pipeline_mode = #tpu.pipeline_mode<synchronous>, transform_indices = @transform_5, window_bounds = array<i64: 1024, 128>}, {pipeline_mode = #tpu.pipeline_mode<synchronous>, transform_indices = @transform_6, window_bounds = array<i64: 1024, 1>}, {transform_indices = @transform_7, window_bounds = array<i64: 1, 1024, 1>}]} {
    %c0 = arith.constant 0 : index
    %c0_0 = arith.constant 0 : index
    %c0_1 = arith.constant 0 : index
    %0 = vector.load %arg2[%c0, %c0_0, %c0_1] : memref<1x3x128xf32, #tpu.memory_space<vmem>>, vector<1x3x128xf32>
    %1 = vector.shape_cast %0 : vector<1x3x128xf32> to vector<3x128xf32>
    %c0_2 = arith.constant 0 : index
    %c0_3 = arith.constant 0 : index
    %2 = vector.load %arg3[%c0_2, %c0_3] : memref<64x3xf32, #tpu.memory_space<vmem>>, vector<64x3xf32>
    %3 = vector.extract_strided_slice %2 {offsets = [0, 0], sizes = [64, 1], strides = [1, 1]} : vector<64x3xf32> to vector<64x1xf32>
    %4 = vector.extract_strided_slice %1 {offsets = [0, 0], sizes = [1, 128], strides = [1, 1]} : vector<3x128xf32> to vector<1x128xf32>
    %5 = vector.broadcast %3 : vector<64x1xf32> to vector<64x128xf32>
    %6 = vector.broadcast %4 : vector<1x128xf32> to vector<64x128xf32>
    %7 = arith.mulf %5, %6 : vector<64x128xf32>
    %8 = vector.extract_strided_slice %2 {offsets = [0, 1], sizes = [64, 1], strides = [1, 1]} : vector<64x3xf32> to vector<64x1xf32>
    %9 = vector.extract_strided_slice %1 {offsets = [1, 0], sizes = [1, 128], strides = [1, 1]} : vector<3x128xf32> to vector<1x128xf32>
    %10 = vector.broadcast %8 : vector<64x1xf32> to vector<64x128xf32>
    %11 = vector.broadcast %9 : vector<1x128xf32> to vector<64x128xf32>
    %12 = arith.mulf %10, %11 : vector<64x128xf32>
    %13 = arith.addf %7, %12 : vector<64x128xf32>
    %14 = vector.extract_strided_slice %2 {offsets = [0, 2], sizes = [64, 1], strides = [1, 1]} : vector<64x3xf32> to vector<64x1xf32>
    %15 = vector.extract_strided_slice %1 {offsets = [2, 0], sizes = [1, 128], strides = [1, 1]} : vector<3x128xf32> to vector<1x128xf32>
    %16 = vector.broadcast %14 : vector<64x1xf32> to vector<64x128xf32>
    %17 = vector.broadcast %15 : vector<1x128xf32> to vector<64x128xf32>
    %18 = arith.mulf %16, %17 : vector<64x128xf32>
    %19 = arith.addf %13, %18 : vector<64x128xf32>
    %c0_4 = arith.constant 0 : index
    %c0_5 = arith.constant 0 : index
    %20 = vector.load %arg4[%c0_4, %c0_5] : memref<64x1xf32, #tpu.memory_space<vmem>>, vector<64x1xf32>
    %21 = vector.broadcast %20 : vector<64x1xf32> to vector<64x128xf32>
    %22 = arith.addf %19, %21 : vector<64x128xf32>
    %cst = arith.constant 0.000000e+00 : f32
    %23 = vector.broadcast %cst : f32 to vector<64x128xf32>
    %24 = arith.maximumf %22, %23 : vector<64x128xf32>
    %c0_6 = arith.constant 0 : index
    %c0_7 = arith.constant 0 : index
    %25 = vector.load %arg5[%c0_6, %c0_7] : memref<128x64xbf16, #tpu.memory_space<vmem>>, vector<128x64xbf16>
    %26 = arith.truncf %24 : vector<64x128xf32> to vector<64x128xbf16>
    %cst_8 = arith.constant dense<0.000000e+00> : vector<128x128xf32>
    %27 = tpu.matmul %25, %26, %cst_8 {dimension_numbers = #tpu.dot_dimension_numbers<[1], [0], [0], [1], [0, 0, 1, 1], [], []>} : vector<128x64xbf16>, vector<64x128xbf16>, vector<128x128xf32> -> vector<128x128xf32>
    %c0_9 = arith.constant 0 : index
    %c0_10 = arith.constant 0 : index
    %28 = vector.load %arg6[%c0_9, %c0_10] : memref<128x1xf32, #tpu.memory_space<vmem>>, vector<128x1xf32>
    %29 = vector.broadcast %28 : vector<128x1xf32> to vector<128x128xf32>
    %30 = arith.addf %27, %29 : vector<128x128xf32>
    %cst_11 = arith.constant 0.000000e+00 : f32
    %31 = vector.broadcast %cst_11 : f32 to vector<128x128xf32>
    %32 = arith.maximumf %30, %31 : vector<128x128xf32>
    %c0_12 = arith.constant 0 : index
    %c0_13 = arith.constant 0 : index
    %33 = vector.load %arg7[%c0_12, %c0_13] : memref<1024x128xbf16, #tpu.memory_space<vmem>>, vector<1024x128xbf16>
    %34 = arith.truncf %32 : vector<128x128xf32> to vector<128x128xbf16>
    %cst_14 = arith.constant dense<0.000000e+00> : vector<1024x128xf32>
    %35 = tpu.matmul %33, %34, %cst_14 {dimension_numbers = #tpu.dot_dimension_numbers<[1], [0], [0], [1], [0, 0, 1, 1], [], []>} : vector<1024x128xbf16>, vector<128x128xbf16>, vector<1024x128xf32> -> vector<1024x128xf32>
    %c0_i32 = arith.constant 0 : i32
    %36 = arith.cmpi eq, %arg1, %c0_i32 : i32
    %37 = arith.extui %36 : i1 to i32
    %c0_i32_15 = arith.constant 0 : i32
    %38 = arith.cmpi ne, %37, %c0_i32_15 : i32
    scf.if %38 {
      %cst_21 = arith.constant 0xFF800000 : f32
      %48 = vector.broadcast %cst_21 : f32 to vector<1x1024x1xf32>
      %c0_22 = arith.constant 0 : index
      %c0_23 = arith.constant 0 : index
      %c0_24 = arith.constant 0 : index
      %49 = vector.load %arg9[%c0_22, %c0_23, %c0_24] : memref<1x1024x1xf32, #tpu.memory_space<vmem>>, vector<1x1024x1xf32>
      tpu.vector_store %arg9[%c0_22, %c0_23, %c0_24], %48 {strides = array<i32>} : memref<1x1024x1xf32, #tpu.memory_space<vmem>>, vector<1x1024x1xf32>,
    } else {
    }
    %c1_i32 = arith.constant 1 : i32
    %39 = arith.cmpi eq, %arg1, %c1_i32 : i32
    %40 = arith.extui %39 : i1 to i32
    %c0_i32_16 = arith.constant 0 : i32
    %41 = arith.cmpi ne, %40, %c0_i32_16 : i32
    scf.if %41 {
      %48 = tpu.iota {dimensions = array<i32: 1>} : vector<1x128xi32>
      %c72_i32 = arith.constant 72 : i32
      %49 = vector.broadcast %c72_i32 : i32 to vector<1x128xi32>
      %50 = arith.cmpi slt, %48, %49 : vector<1x128xi32>
      %cst_21 = arith.constant 0xFF800000 : f32
      %51 = vector.shape_cast %50 : vector<1x128xi1> to vector<1x128xi1>
      %52 = vector.broadcast %51 : vector<1x128xi1> to vector<1024x128xi1>
      %53 = vector.broadcast %cst_21 : f32 to vector<1024x128xf32>
      %54 = arith.select %52, %35, %53 : vector<1024x128xi1>, vector<1024x128xf32>
      %c0_22 = arith.constant 0 : index
      %c0_23 = arith.constant 0 : index
      %c0_24 = arith.constant 0 : index
      %55 = vector.load %arg9[%c0_22, %c0_23, %c0_24] : memref<1x1024x1xf32, #tpu.memory_space<vmem>>, vector<1x1024x1xf32>
      %cst_25 = arith.constant dense<0xFF800000> : vector<1024xf32>
      %56 = vector.multi_reduction <maximumf>, %54, %cst_25 [1] : vector<1024x128xf32> to vector<1024xf32>
      %57 = vector.shape_cast %56 : vector<1024xf32> to vector<1024x1xf32>
      %58 = vector.shape_cast %57 : vector<1024x1xf32> to vector<1x1024x1xf32>
      %59 = arith.maximumf %55, %58 : vector<1x1024x1xf32>
      %c0_26 = arith.constant 0 : index
      %c0_27 = arith.constant 0 : index
      %c0_28 = arith.constant 0 : index
      %60 = vector.load %arg9[%c0_26, %c0_27, %c0_28] : memref<1x1024x1xf32, #tpu.memory_space<vmem>>, vector<1x1024x1xf32>
      tpu.vector_store %arg9[%c0_26, %c0_27, %c0_28], %59 {strides = array<i32>} : memref<1x1024x1xf32, #tpu.memory_space<vmem>>, vector<1x1024x1xf32>,
    } else {
    }
    %c1_i32_17 = arith.constant 1 : i32
    %42 = arith.cmpi ne, %arg1, %c1_i32_17 : i32
    %43 = arith.extui %42 : i1 to i32
    %c0_i32_18 = arith.constant 0 : i32
    %44 = arith.cmpi ne, %43, %c0_i32_18 : i32
    scf.if %44 {
      %c0_21 = arith.constant 0 : index
      %c0_22 = arith.constant 0 : index
      %c0_23 = arith.constant 0 : index
      %48 = vector.load %arg9[%c0_21, %c0_22, %c0_23] : memref<1x1024x1xf32, #tpu.memory_space<vmem>>, vector<1x1024x1xf32>
      %cst_24 = arith.constant dense<0xFF800000> : vector<1024xf32>
      %49 = vector.multi_reduction <maximumf>, %35, %cst_24 [1] : vector<1024x128xf32> to vector<1024xf32>
      %50 = vector.shape_cast %49 : vector<1024xf32> to vector<1024x1xf32>
      %51 = vector.shape_cast %50 : vector<1024x1xf32> to vector<1x1024x1xf32>
      %52 = arith.maximumf %48, %51 : vector<1x1024x1xf32>
      %c0_25 = arith.constant 0 : index
      %c0_26 = arith.constant 0 : index
      %c0_27 = arith.constant 0 : index
      %53 = vector.load %arg9[%c0_25, %c0_26, %c0_27] : memref<1x1024x1xf32, #tpu.memory_space<vmem>>, vector<1x1024x1xf32>
      tpu.vector_store %arg9[%c0_25, %c0_26, %c0_27], %52 {strides = array<i32>} : memref<1x1024x1xf32, #tpu.memory_space<vmem>>, vector<1x1024x1xf32>,
    } else {
    }
    %c1_i32_19 = arith.constant 1 : i32
    %45 = arith.cmpi eq, %arg1, %c1_i32_19 : i32
    %46 = arith.extui %45 : i1 to i32
    %c0_i32_20 = arith.constant 0 : i32
    %47 = arith.cmpi ne, %46, %c0_i32_20 : i32
    scf.if %47 {
      %c0_21 = arith.constant 0 : index
      %c0_22 = arith.constant 0 : index
      %c0_23 = arith.constant 0 : index
      %48 = vector.load %arg9[%c0_21, %c0_22, %c0_23] : memref<1x1024x1xf32, #tpu.memory_space<vmem>>, vector<1x1024x1xf32>
      %c0_24 = arith.constant 0 : index
      %c0_25 = arith.constant 0 : index
      %49 = vector.load %arg8[%c0_24, %c0_25] : memref<1024x1xf32, #tpu.memory_space<vmem>>, vector<1024x1xf32>
      %50 = vector.shape_cast %49 : vector<1024x1xf32> to vector<1x1024x1xf32>
      %51 = arith.addf %48, %50 : vector<1x1024x1xf32>
      %cst_26 = arith.constant 0.000000e+00 : f32
      %52 = vector.broadcast %cst_26 : f32 to vector<1x1024x1xf32>
      %53 = arith.maximumf %51, %52 : vector<1x1024x1xf32>
      %c0_27 = arith.constant 0 : index
      %c0_28 = arith.constant 0 : index
      %c0_29 = arith.constant 0 : index
      %54 = vector.load %arg9[%c0_27, %c0_28, %c0_29] : memref<1x1024x1xf32, #tpu.memory_space<vmem>>, vector<1x1024x1xf32>
      tpu.vector_store %arg9[%c0_27, %c0_28, %c0_29], %53 {strides = array<i32>} : memref<1x1024x1xf32, #tpu.memory_space<vmem>>, vector<1x1024x1xf32>,
    } else {
    }
    return
  }
  func.func @transform_0(%arg0: i32, %arg1: i32) -> (i32, i32, i32) {
    %c0_i32 = arith.constant 0 : i32
    %c0_i32_0 = arith.constant 0 : i32
    return %arg0, %c0_i32, %arg1 : i32, i32, i32
  }
  func.func @transform_1(%arg0: i32, %arg1: i32) -> (i32, i32) {
    %c0_i32 = arith.constant 0 : i32
    %c0_i32_0 = arith.constant 0 : i32
    %c0_i32_1 = arith.constant 0 : i32
    return %c0_i32, %c0_i32_0 : i32, i32
  }
  func.func @transform_2(%arg0: i32, %arg1: i32) -> (i32, i32) {
    %c0_i32 = arith.constant 0 : i32
    %c0_i32_0 = arith.constant 0 : i32
    %c0_i32_1 = arith.constant 0 : i32
    return %c0_i32, %c0_i32_0 : i32, i32
  }
  func.func @transform_3(%arg0: i32, %arg1: i32) -> (i32, i32) {
    %c0_i32 = arith.constant 0 : i32
    %c0_i32_0 = arith.constant 0 : i32
    %c0_i32_1 = arith.constant 0 : i32
    return %c0_i32, %c0_i32_0 : i32, i32
  }
  func.func @transform_4(%arg0: i32, %arg1: i32) -> (i32, i32) {
    %c0_i32 = arith.constant 0 : i32
    %c0_i32_0 = arith.constant 0 : i32
    %c0_i32_1 = arith.constant 0 : i32
    return %c0_i32, %c0_i32_0 : i32, i32
  }
  func.func @transform_5(%arg0: i32, %arg1: i32) -> (i32, i32) {
    %c0_i32 = arith.constant 0 : i32
    %c0_i32_0 = arith.constant 0 : i32
    %c0_i32_1 = arith.constant 0 : i32
    return %c0_i32, %c0_i32_0 : i32, i32
  }
  func.func @transform_6(%arg0: i32, %arg1: i32) -> (i32, i32) {
    %c0_i32 = arith.constant 0 : i32
    %c0_i32_0 = arith.constant 0 : i32
    %c0_i32_1 = arith.constant 0 : i32
    return %c0_i32, %c0_i32_0 : i32, i32
  }
  func.func @transform_7(%arg0: i32, %arg1: i32) -> (i32, i32, i32) {
    %c0_i32 = arith.constant 0 : i32
    %c0_i32_0 = arith.constant 0 : i32
    %c0_i32_1 = arith.constant 0 : i32
    return %arg0, %c0_i32, %c0_i32_0 : i32, i32, i32
  }
}

module attributes {stable_mosaic.version = 11 : i64} {
  func.func @stn_head_kernel(%arg0: i32, %arg1: memref<2x1024xbf16, #tpu.memory_space<vmem>>, %arg2: memref<1024x512xbf16, #tpu.memory_space<vmem>>, %arg3: memref<1x512xf32, #tpu.memory_space<vmem>>, %arg4: memref<512x256xbf16, #tpu.memory_space<vmem>>, %arg5: memref<1x256xf32, #tpu.memory_space<vmem>>, %arg6: memref<256x128xbf16, #tpu.memory_space<vmem>>, %arg7: memref<1x128xf32, #tpu.memory_space<vmem>>, %arg8: memref<2x128xf32, #tpu.memory_space<vmem>>) attributes {dimension_semantics = [#tpu.dimension_semantics<arbitrary>], iteration_bounds = array<i64: 1>, scalar_prefetch = 0 : i64, scratch_operands = 0 : i64, tpu.core_type = #tpu.core_type<tc>, window_params = [{pipeline_mode = #tpu.pipeline_mode<synchronous>, transform_indices = @transform_0, window_bounds = array<i64: 2, 1024>}, {pipeline_mode = #tpu.pipeline_mode<synchronous>, transform_indices = @transform_1, window_bounds = array<i64: 1024, 512>}, {pipeline_mode = #tpu.pipeline_mode<synchronous>, transform_indices = @transform_2, window_bounds = array<i64: 1, 512>}, {pipeline_mode = #tpu.pipeline_mode<synchronous>, transform_indices = @transform_3, window_bounds = array<i64: 512, 256>}, {pipeline_mode = #tpu.pipeline_mode<synchronous>, transform_indices = @transform_4, window_bounds = array<i64: 1, 256>}, {pipeline_mode = #tpu.pipeline_mode<synchronous>, transform_indices = @transform_5, window_bounds = array<i64: 256, 128>}, {pipeline_mode = #tpu.pipeline_mode<synchronous>, transform_indices = @transform_6, window_bounds = array<i64: 1, 128>}, {pipeline_mode = #tpu.pipeline_mode<synchronous>, transform_indices = @transform_7, window_bounds = array<i64: 2, 128>}]} {
    %c0 = arith.constant 0 : index
    %c0_0 = arith.constant 0 : index
    %0 = vector.load %arg1[%c0, %c0_0] : memref<2x1024xbf16, #tpu.memory_space<vmem>>, vector<2x1024xbf16>
    %c0_1 = arith.constant 0 : index
    %c0_2 = arith.constant 0 : index
    %1 = vector.load %arg2[%c0_1, %c0_2] : memref<1024x512xbf16, #tpu.memory_space<vmem>>, vector<1024x512xbf16>
    %cst = arith.constant dense<0.000000e+00> : vector<2x512xf32>
    %2 = tpu.matmul %0, %1, %cst {dimension_numbers = #tpu.dot_dimension_numbers<[1], [0], [0], [1], [0, 0, 1, 1], [], []>} : vector<2x1024xbf16>, vector<1024x512xbf16>, vector<2x512xf32> -> vector<2x512xf32>
    %c0_3 = arith.constant 0 : index
    %c0_4 = arith.constant 0 : index
    %3 = vector.load %arg3[%c0_3, %c0_4] : memref<1x512xf32, #tpu.memory_space<vmem>>, vector<1x512xf32>
    %4 = vector.broadcast %3 : vector<1x512xf32> to vector<2x512xf32>
    %5 = arith.addf %2, %4 : vector<2x512xf32>
    %cst_5 = arith.constant 0.000000e+00 : f32
    %6 = vector.broadcast %cst_5 : f32 to vector<2x512xf32>
    %7 = arith.maximumf %5, %6 : vector<2x512xf32>
    %8 = arith.truncf %7 : vector<2x512xf32> to vector<2x512xbf16>
    %c0_6 = arith.constant 0 : index
    %c0_7 = arith.constant 0 : index
    %9 = vector.load %arg4[%c0_6, %c0_7] : memref<512x256xbf16, #tpu.memory_space<vmem>>, vector<512x256xbf16>
    %cst_8 = arith.constant dense<0.000000e+00> : vector<2x256xf32>
    %10 = tpu.matmul %8, %9, %cst_8 {dimension_numbers = #tpu.dot_dimension_numbers<[1], [0], [0], [1], [0, 0, 1, 1], [], []>} : vector<2x512xbf16>, vector<512x256xbf16>, vector<2x256xf32> -> vector<2x256xf32>
    %c0_9 = arith.constant 0 : index
    %c0_10 = arith.constant 0 : index
    %11 = vector.load %arg5[%c0_9, %c0_10] : memref<1x256xf32, #tpu.memory_space<vmem>>, vector<1x256xf32>
    %12 = vector.broadcast %11 : vector<1x256xf32> to vector<2x256xf32>
    %13 = arith.addf %10, %12 : vector<2x256xf32>
    %cst_11 = arith.constant 0.000000e+00 : f32
    %14 = vector.broadcast %cst_11 : f32 to vector<2x256xf32>
    %15 = arith.maximumf %13, %14 : vector<2x256xf32>
    %16 = arith.truncf %15 : vector<2x256xf32> to vector<2x256xbf16>
    %c0_12 = arith.constant 0 : index
    %c0_13 = arith.constant 0 : index
    %17 = vector.load %arg6[%c0_12, %c0_13] : memref<256x128xbf16, #tpu.memory_space<vmem>>, vector<256x128xbf16>
    %cst_14 = arith.constant dense<0.000000e+00> : vector<2x128xf32>
    %18 = tpu.matmul %16, %17, %cst_14 {dimension_numbers = #tpu.dot_dimension_numbers<[1], [0], [0], [1], [0, 0, 1, 1], [], []>} : vector<2x256xbf16>, vector<256x128xbf16>, vector<2x128xf32> -> vector<2x128xf32>
    %c0_15 = arith.constant 0 : index
    %c0_16 = arith.constant 0 : index
    %19 = vector.load %arg7[%c0_15, %c0_16] : memref<1x128xf32, #tpu.memory_space<vmem>>, vector<1x128xf32>
    %20 = vector.broadcast %19 : vector<1x128xf32> to vector<2x128xf32>
    %21 = arith.addf %18, %20 : vector<2x128xf32>
    %c0_17 = arith.constant 0 : index
    %c0_18 = arith.constant 0 : index
    %22 = vector.load %arg8[%c0_17, %c0_18] : memref<2x128xf32, #tpu.memory_space<vmem>>, vector<2x128xf32>
    tpu.vector_store %arg8[%c0_17, %c0_18], %21 {strides = array<i32>} : memref<2x128xf32, #tpu.memory_space<vmem>>, vector<2x128xf32>,
    return
  }
  func.func @transform_0(%arg0: i32) -> (i32, i32) {
    %c0_i32 = arith.constant 0 : i32
    %c0_i32_0 = arith.constant 0 : i32
    %c0_i32_1 = arith.constant 0 : i32
    return %c0_i32, %c0_i32_0 : i32, i32
  }
  func.func @transform_1(%arg0: i32) -> (i32, i32) {
    %c0_i32 = arith.constant 0 : i32
    %c0_i32_0 = arith.constant 0 : i32
    %c0_i32_1 = arith.constant 0 : i32
    return %c0_i32, %c0_i32_0 : i32, i32
  }
  func.func @transform_2(%arg0: i32) -> (i32, i32) {
    %c0_i32 = arith.constant 0 : i32
    %c0_i32_0 = arith.constant 0 : i32
    %c0_i32_1 = arith.constant 0 : i32
    return %c0_i32, %c0_i32_0 : i32, i32
  }
  func.func @transform_3(%arg0: i32) -> (i32, i32) {
    %c0_i32 = arith.constant 0 : i32
    %c0_i32_0 = arith.constant 0 : i32
    %c0_i32_1 = arith.constant 0 : i32
    return %c0_i32, %c0_i32_0 : i32, i32
  }
  func.func @transform_4(%arg0: i32) -> (i32, i32) {
    %c0_i32 = arith.constant 0 : i32
    %c0_i32_0 = arith.constant 0 : i32
    %c0_i32_1 = arith.constant 0 : i32
    return %c0_i32, %c0_i32_0 : i32, i32
  }
  func.func @transform_5(%arg0: i32) -> (i32, i32) {
    %c0_i32 = arith.constant 0 : i32
    %c0_i32_0 = arith.constant 0 : i32
    %c0_i32_1 = arith.constant 0 : i32
    return %c0_i32, %c0_i32_0 : i32, i32
  }
  func.func @transform_6(%arg0: i32) -> (i32, i32) {
    %c0_i32 = arith.constant 0 : i32
    %c0_i32_0 = arith.constant 0 : i32
    %c0_i32_1 = arith.constant 0 : i32
    return %c0_i32, %c0_i32_0 : i32, i32
  }
  func.func @transform_7(%arg0: i32) -> (i32, i32) {
    %c0_i32 = arith.constant 0 : i32
    %c0_i32_0 = arith.constant 0 : i32
    %c0_i32_1 = arith.constant 0 : i32
    return %c0_i32, %c0_i32_0 : i32, i32
  }
}

</mosaic_0001>

<bundles_post_ra>
// kernel: stn3d_forward.2
= control target key start
LH: loop header
LB: loop body
LE: loop exit
PB: predicated region body
PF: predicated region fallthrough
CT: control target
= control target key end

     0   :  { %s4742_s24 = smov 0   ;;  %s4744_s25 = smov 0   ;;  %s7869_s0 = inlined_call_operand.vmem [shape: f32[2,3,200], index: 0, kind: input, shape index: {}]   ;;  %s7870_s1 = inlined_call_operand.vmem [shape: f32[64,3], index: 1, kind: input, shape index: {}]   ;;  %s7871_s2 = inlined_call_operand.vmem [shape: f32[64,1], index: 2, kind: input, shape index: {}]   ;;  %s7872_s3 = inlined_call_operand.vmem [shape: bf16[128,64], index: 3, kind: input, shape index: {}]   ;;  %s7873_s4 = inlined_call_operand.vmem [shape: f32[128,1], index: 4, kind: input, shape index: {}]   ;;  %s7874_s5 = inlined_call_operand.vmem [shape: bf16[1024,128], index: 5, kind: input, shape index: {}]   ;;  %s7875_s6 = inlined_call_operand.vmem [shape: f32[1024,1], index: 6, kind: input, shape index: {}]   ;;  %s7876_s7 = inlined_call_operand.vmem [shape: f32[2,1024,1], index: 7, kind: output, shape index: {}]  }
   0x1   :  { %s4746_s26 = smov 0   ;;  %s4748_s27 = smov 0  }
   0x2   :  { %s4750_s28 = smov 0  }
   0x3 LB: > { %s26_s29 = sadd.s32 1, %s4688_s26  ;;  %s29_s30 = sadd.s32 1, %s4692_s27  ;;  %s4696_s28 = sphi %s4750_s28, %s17_s28   ;;  %s4692_s27 = sphi %s4748_s27, %s8122_s27   ;;  %s4688_s26 = sphi %s4746_s26, %s8121_s26   ;;  %s4684_s25 = sphi %s4744_s25, %s8120_s25   ;;  %s4680_s24 = sphi %s4742_s24, %s8119_s24  }
   0x4   : > { %p27_p0 = scmp.ge.s32.totalorder %s26_s29, 2  ;;  %p4167_p1 = scmp.ge.s32.totalorder %s4696_s28, 1 }
   0x5   : > { %p254_p2 = scmp.lt.s32.totalorder %s4696_s28, 5 }
   0x6   : > { %s8124_s29 = smov (%p27_p0, %s26_s29), 0  ;;  %s8126_s30 = smov (!%p27_p0, %s29_s30), %s4692_s27 }
   0x7   : > { %p255_p3 = pnand %p4167_p1, %p254_p2  ;;  %p31_p4 = scmp.ge.s32.totalorder %s8126_s30, 2 }
   0x9   : > { %s8128_s30 = smov (%p31_p4, %s8126_s30), 0  ;;  %258 = sbr.rel (%p255_p3) target bundleno = 1810 (0x712), region = 48 }
  0x10   : > { %v304_v0 = vld [vmem:[%s7870_s1] sm:$0xff]  ;;  %v4698_v1 = vmov 2   ;;  %v4699_v2 = vmov 1   ;;  %p289_p5 = scmp.lt.s32.totalorder %s4684_s25, 1  ;;  %v306_v3 = vld [vmem:[%s7870_s1 + $0x10] sm:$0xff]  ;;  %v305_v4 = vld [vmem:[%s7870_s1 + $0x8] sm:$0xff]  ;;  %v7877_v42 = vlaneseq }
  0x11   : > { %4572 = vset.pattern.permute.xlu0 %v4698_v1  ;;  %4571 = vset.pattern.permute.xlu1 %v4699_v2  ;;  %v309_v5 = vld [vmem:[%s7870_s1 + $0x28] sm:$0xff]  ;;  %v308_v6 = vld [vmem:[%s7870_s1 + $0x20] sm:$0xff]  ;;  %v311_v7 = vld [vmem:[%s7870_s1 + $0x38] sm:$0xff]  ;;  %v4700_v8 = vmov 0   ;;  %vm688_vm0 = vcmask 523264   ;;  %p291_p6 = scmp.lt.s32.totalorder %s4680_s24, 1 }
  0x12   : > { %417 = vperm.xlu0 %4572, %v304_v0   ;;  %365 = vperm.xlu1 %4571, %v304_v0   ;;  %s8130_s25 = smov (!%p289_p5, %s4684_s25), 1  ;;  %v307_v9 = vld [vmem:[%s7870_s1 + $0x18] sm:$0xff]  ;;  %v468_v10 = vld [vmem:[%s7871_s2] sm:$0xff]  ;;  %v469_v11 = vld [vmem:[%s7871_s2 + $0x8] sm:$0xff]  ;;  %v353_v44 = vshrl.u32 %v7877_v42, 7  ;;  %p4252_p7 = scmp.ne.s32.totalorder %s4680_s24, 0 }
  0x13   : > { %s4258_s14 = sshll.u32 %s8130_s25, 10  ;;  %v310_v12 = vld [vmem:[%s7870_s1 + $0x30] sm:$0xff]  ;;  %v472_v13 = vld [vmem:[%s7871_s2 + $0x20] sm:$0xff]  ;;  %v475_v14 = vld [vmem:[%s7871_s2 + $0x38] sm:$0xff]  ;;  %s4168_s19 = sshll.u32 %s8130_s25, 1  ;;  %vm1895_vm1 = vcmask (!%p4252_p7), 7168  }
  0x14   : > { %s4791_s17 = scalar_lea.vmem %s7876_s7, %s4258_s14  ;;  %v553_v15 = vld [vmem:[%s7873_s4 + $0x8] sm:$0xff]  ;;  %v555_v16 = vld [vmem:[%s7873_s4 + $0x18] sm:$0xff]  ;;  %v470_v17 = vld [vmem:[%s7871_s2 + $0x10] sm:$0xff]  ;;  %v398_v47 = vsub.s32 1, %v353_v44  ;;  %v354_v48 = vsub.s32 0, %v353_v44  ;;  %v450_v52 = vsub.s32 2, %v353_v44 }
  0x15   : > { %v557_v18 = vld [vmem:[%s7873_s4 + $0x28] sm:$0xff]  ;;  %v471_v19 = vld [vmem:[%s7871_s2 + $0x18] sm:$0xff]  ;;  %v474_v26 = vld [vmem:[%s7871_s2 + $0x30] sm:$0xff]  ;;  %s292_s18 = scalar_select %p291_p6, %s4680_s24, 1 }
  0x16   : > { %425 = vperm.xlu0 %4572, %v306_v3   ;;  %369 = vperm.xlu1 %4571, %v305_v4   ;;  %v559_v20 = vld [vmem:[%s7873_s4 + $0x38] sm:$0xff]  ;;  %v561_v21 = vld [vmem:[%s7873_s4 + $0x48] sm:$0xff]  ;;  %v552_v27 = vld [vmem:[%s7873_s4] sm:$0xff] }
  0x17   : > { %v563_v22 = vld [vmem:[%s7873_s4 + $0x58] sm:$0xff]  ;;  %v565_v23 = vld [vmem:[%s7873_s4 + $0x68] sm:$0xff]  ;;  %v554_v28 = vld [vmem:[%s7873_s4 + $0x10] sm:$0xff]  ;;  %s294_s20 = sadd.s32 %s4168_s19, %s292_s18 }
  0x18   : > { %v567_v24 = vld [vmem:[%s7873_s4 + $0x78] sm:$0xff]  ;;  %v473_v25 = vld [vmem:[%s7871_s2 + $0x28] sm:$0xff]  ;;  %v4586_v29 = vld [vmem:[%s7872_s3] sm:$0xff]   ;;  %s4169_s21 = sshll.u32 %s294_s20, 2 }
  0x19   : > { %v556_v30 = vld [vmem:[%s7873_s4 + $0x20] sm:$0xff]  ;;  %4351 = vmatprep.mubr.msk.bf16.mxu0 %vm688_vm0, %v4586_v29  ;;  %v558_v31 = vld [vmem:[%s7873_s4 + $0x30] sm:$0xff]  ;;  %s296_s8 = scalar_lea.vmem %s7869_s0, %s4169_s21 }
  0x1a   : > { %437 = vperm.xlu0 %4572, %v309_v5   ;;  %4573 = vset.pattern.permute.xlu1 %v4698_v1  ;;  %v560_v32 = vld [vmem:[%s7873_s4 + $0x40] sm:$0xff]  ;;  %v562_v33 = vld [vmem:[%s7873_s4 + $0x50] sm:$0xff] }
  0x1b   : > { %421 = vperm.xlu1 %4573, %v305_v4   ;;  %v564_v34 = vld [vmem:[%s7873_s4 + $0x60] sm:$0xff]  ;;  %v566_v35 = vld [vmem:[%s7873_s4 + $0x70] sm:$0xff] }
  0x1c   : > { %v303_v49 = vld [vmem:[%s296_s8] sm:$0x7] }
  0x1d   : > { %v4903_v51 = vrot.slane %v303_v49, %v398_v47  ;;  %v4905_v53 = vrot.slane %v303_v49, %v354_v48  ;;  %v4909_v58 = vrot.slane %v303_v49, %v450_v52 }
  0x1e   : > { %4580 = vset.pattern.permute.xlu0 %v4699_v2 }
  0x1f   : > { %381 = vperm.xlu0 %4580, %v308_v6   ;;  %4574 = vset.pattern.permute.xlu1 %v4700_v8 }
  0x20   : > { %324 = vperm.xlu1 %4574, %v306_v3  }
  0x23   : > { %393 = vperm.xlu0 %4580, %v311_v7  }
  0x24   : > { %4575 = vset.pattern.permute.xlu1 %v4699_v2 }
  0x25   : > { %373 = vperm.xlu1 %4575, %v306_v3  }
  0x27   : > { %4583 = vset.pattern.permute.xlu0 %v4700_v8 }
  0x28   : > { %314 = vperm.xlu0 %4583, %v304_v0  }
  0x29   : > { %377 = vperm.xlu1 %4575, %v307_v9  }
  0x2c   : > { %319 = vperm.xlu0 %4583, %v305_v4  }
  0x2d   : > { %4576 = vset.pattern.permute.xlu1 %v4698_v1 }
  0x2e   : > { %429 = vperm.xlu1 %4576, %v307_v9  }
  0x30   : > { %329 = vperm.xlu0 %4583, %v307_v9  }
  0x32   : > { %4577 = vset.pattern.permute.xlu1 %v4700_v8 }
  0x33   : > { %478 = vperm.xlu1 %4577, %v468_v10  }
  0x34   : > { %483 = vperm.xlu0 %4583, %v469_v11  }
  0x37   : > { %334 = vperm.xlu1 %4577, %v308_v6  }
  0x38   : > { %344 = vperm.xlu0 %4583, %v310_v12  }
  0x3b   : > { %339 = vperm.xlu1 %4577, %v309_v5  }
  0x3c   : > { %498 = vperm.xlu0 %4583, %v472_v13  }
  0x3f   : > { %4578 = vset.pattern.permute.xlu1 %v4699_v2 }
  0x40   : > { %513 = vperm.xlu0 %4583, %v475_v14   ;;  %385 = vperm.xlu1 %4578, %v309_v5  }
  0x44   : > { %575 = vperm.xlu0 %4583, %v553_v15   ;;  %4579 = vset.pattern.permute.xlu1 %v4698_v1 }
  0x45   : > { %433 = vperm.xlu1 %4579, %v308_v6  }
  0x48   : > { %585 = vperm.xlu0 %4583, %v555_v16  }
  0x49   : > { %4581 = vset.pattern.permute.xlu1 %v4700_v8 }
  0x4a   : > { %488 = vperm.xlu1 %4581, %v470_v17  }
  0x4c   : > { %595 = vperm.xlu0 %4583, %v557_v18  }
  0x4e   : > { %493 = vperm.xlu1 %4581, %v471_v19  }
  0x50   : > { %605 = vperm.xlu0 %4583, %v559_v20  }
  0x52   : > { %349 = vperm.xlu1 %4581, %v311_v7  }
  0x54   : > { %615 = vperm.xlu0 %4583, %v561_v21  }
  0x56   : > { %4582 = vset.pattern.permute.xlu1 %v4699_v2 }
  0x57   : > { %389 = vperm.xlu1 %4582, %v310_v12  }
  0x58   : > { %625 = vperm.xlu0 %4583, %v563_v22  }
  0x5b   : > { %4584 = vset.pattern.permute.xlu1 %v4698_v1 }
  0x5c   : > { %635 = vperm.xlu0 %4583, %v565_v23   ;;  %441 = vperm.xlu1 %4584, %v310_v12  }
  0x60   : > { %645 = vperm.xlu0 %4583, %v567_v24   ;;  %445 = vperm.xlu1 %4584, %v311_v7  }
  0x64   : > { %4585 = vset.pattern.permute.xlu1 %v4700_v8 }
  0x65   : > { %503 = vperm.xlu1 %4585, %v473_v25  }
  0x69   : > { %508 = vperm.xlu1 %4585, %v474_v26  }
  0x6d   : > { %570 = vperm.xlu1 %4585, %v552_v27  }
  0x71   : > { %580 = vperm.xlu1 %4585, %v554_v28  }
  0x75   : > { %590 = vperm.xlu1 %4585, %v556_v30  }
  0x79   : > { %600 = vperm.xlu1 %4585, %v558_v31  }
  0x7d   : > { %610 = vperm.xlu1 %4585, %v560_v32  }
  0x81   : > { %620 = vperm.xlu1 %4585, %v562_v33  }
  0x85   : > { %630 = vperm.xlu1 %4585, %v564_v34  }
  0x89   : > { %640 = vperm.xlu1 %4585, %v566_v35  }
  0x91   : > { %v366_v36 = vpop.permute.xlu1 %365  ;;  %v418_v37 = vpop.permute.xlu0 %417 }
  0x92   : > { %v400_v57 = vmul.f32 %v4903_v51, %v366_v36  ;;  %v452_v62 = vmul.f32 %v4909_v58, %v418_v37 }
  0x95   : > { %v370_v38 = vpop.permute.xlu1 %369  ;;  %v426_v39 = vpop.permute.xlu0 %425 }
  0x96   : > { %v401_v60 = vmul.f32 %v4903_v51, %v370_v38  ;;  %v454_v20 = vmul.f32 %v4909_v58, %v426_v39 }
  0x99   : > { %v4895_v40 = vpop.permute.xlu0 %437 }
  0x9a   : > { %v422_v41 = vpop.permute.xlu1 %421 }
  0x9b   : > { %v453_v3 = vmul.f32 %v4909_v58, %v422_v41 }
  0x9e   : > { %v382_v43 = vpop.permute.xlu0 %381 }
  0x9f   : > { %v325_v45 = vpop.permute.xlu1 %324  ;;  %v404_v36 = vmul.f32 %v4903_v51, %v382_v43 }
  0xa0   : > { %v358_v17 = vmul.f32 %v4905_v53, %v325_v45 }
  0xa2   : > { %v4901_v46 = vpop.permute.xlu0 %393 }
  0xa3   : > { %v407_v49 = vmul.f32 %v4903_v51, %v4901_v46 }
  0xa4   : > { %v374_v50 = vpop.permute.xlu1 %373 }
  0xa5   : > { %v402_v16 = vmul.f32 %v4903_v51, %v374_v50 }
  0xa7   : > { %v315_v54 = vpop.permute.xlu0 %314  ;;  %v410_v21 = vadd.f32 %v402_v16, %v358_v17  ;;  %v4593_v16 = vld [vmem:[%s7872_s3 + $0x38] sm:$0xff]   ;;  %v4594_v17 = vld [vmem:[%s7874_s5 + $0xf0] sm:$0xff]  }
  0xa8   : > { %v378_v55 = vpop.permute.xlu1 %377  ;;  %v356_v56 = vmul.f32 %v4905_v53, %v315_v54  ;;  %4443 = vmatprep.mubr.bf16.mxu1 %v4594_v17 }
  0xa9   : > { %v403_v22 = vmul.f32 %v4903_v51, %v378_v55  ;;  %v462_v26 = vadd.f32 %v454_v20, %v410_v21 }
  0xaa   : > { %v408_v63 = vadd.f32 %v400_v57, %v356_v56  ;;  %v457_v56 = vmul.f32 %v4909_v58, %v4895_v40 }
  0xab   : > { %v320_v59 = vpop.permute.xlu0 %319 }
  0xac   : > { %v357_v61 = vmul.f32 %v4905_v53, %v320_v59  ;;  %v460_v4 = vadd.f32 %v452_v62, %v408_v63 }
  0xad   : > { %v430_v0 = vpop.permute.xlu1 %429 }
  0xae   : > { %v409_v1 = vadd.f32 %v401_v60, %v357_v61  ;;  %v455_v25 = vmul.f32 %v4909_v58, %v430_v0 }
  0xaf   : > { %v330_v2 = vpop.permute.xlu0 %329 }
  0xb0   : > { %v461_v6 = vadd.f32 %v453_v3, %v409_v1  ;;  %v359_v18 = vmul.f32 %v4905_v53, %v330_v2 }
  0xb2   : > { %v479_v5 = vpop.permute.xlu1 %478  ;;  %v411_v23 = vadd.f32 %v403_v22, %v359_v18  ;;  %v4598_v18 = vld [vmem:[%s7874_s5] sm:$0xff]  }
  0xb3   : > { %v516_v7 = vadd.f32 %v479_v5, %v460_v4  ;;  %v484_v8 = vpop.permute.xlu0 %483 }
  0xb4   : > { %v517_v9 = vadd.f32 %v484_v8, %v461_v6  ;;  %v463_v28 = vadd.f32 %v455_v25, %v411_v23 }
  0xb5   : > { %v524_v10 = vmax.f32 %v516_v7, 0.0 }
  0xb6   : > { %v525_v11 = vmax.f32 %v517_v9, 0.0  ;;  %v335_v12 = vpop.permute.xlu1 %334 }
  0xb7   : > { %v360_v37 = vmul.f32 %v4905_v53, %v335_v12  ;;  %v345_v38 = vpop.permute.xlu0 %344  ;;  %v4589_v12 = vld [vmem:[%s7872_s3 + $0x18] sm:$0xff]  }
  0xb8   : > { %v548_v13 = vpack.c.bf16 %v525_v11, %v524_v10  ;;  %v362_v60 = vmul.f32 %v4905_v53, %v345_v38  ;;  %v4588_v11 = vld [vmem:[%s7872_s3 + $0x10] sm:$0xff]  }
  0xb9   : > { %v412_v45 = vadd.f32 %v404_v36, %v360_v37 }
  0xba   : > { %v340_v14 = vpop.permute.xlu1 %339  ;;  %4343 = vmatprep.subr.bf16.mxu0 %v548_v13 }
  0xbb   : > { %4344 = vmatpush3.bf16.msra.mxu0 %v548_v13  ;;  %v361_v47 = vmul.f32 %v4905_v53, %v340_v14  ;;  %v499_v43 = vpop.permute.xlu0 %498  ;;  %v4590_v13 = vld [vmem:[%s7872_s3 + $0x20] sm:$0xff]   ;;  %v4591_v14 = vld [vmem:[%s7872_s3 + $0x28] sm:$0xff]  }
  0xbf   : > { %v386_v15 = vpop.permute.xlu1 %385  ;;  %v514_v3 = vpop.permute.xlu0 %513 }
  0xc0   : > { %v405_v39 = vmul.f32 %v4903_v51, %v386_v15  ;;  %v4592_v15 = vld [vmem:[%s7872_s3 + $0x30] sm:$0xff]  }
  0xc2   : > { %v413_v50 = vadd.f32 %v405_v39, %v361_v47 }
  0xc3   : > { %v576_v20 = vpop.permute.xlu0 %575 }
  0xc4   : > { %v434_v19 = vpop.permute.xlu1 %433  ;;  %v465_v0 = vadd.f32 %v457_v56, %v413_v50 }
  0xc5   : > { %v456_v41 = vmul.f32 %v4909_v58, %v434_v19 }
  0xc7   : > { %v464_v52 = vadd.f32 %v456_v41, %v412_v45  ;;  %v586_v22 = vpop.permute.xlu0 %585 }
  0xc9   : > { %v489_v24 = vpop.permute.xlu1 %488  ;;  %v520_v61 = vadd.f32 %v499_v43, %v464_v52 }
  0xca   : > { %v518_v27 = vadd.f32 %v489_v24, %v462_v26 }
  0xcb   : > { %v528_v5 = vmax.f32 %v520_v61, 0.0  ;;  %v596_v24 = vpop.permute.xlu0 %595 }
  0xcc   : > { %v526_v31 = vmax.f32 %v518_v27, 0.0 }
  0xcd   : > { %v494_v29 = vpop.permute.xlu1 %493 }
  0xce   : > { %v519_v30 = vadd.f32 %v494_v29, %v463_v28 }
  0xcf   : > { %v606_v29 = vpop.permute.xlu0 %605 }
  0xd0   : > { %v527_v32 = vmax.f32 %v519_v30, 0.0 }
  0xd1   : > { %v350_v33 = vpop.permute.xlu1 %349 }
  0xd2   : > { %v549_v34 = vpack.c.bf16 %v527_v32, %v526_v31  ;;  %v363_v48 = vmul.f32 %v4905_v53, %v350_v33 }
  0xd4   : > { %4345 = vmatprep.subr.bf16.mxu0 %v549_v34  ;;  %v415_v57 = vadd.f32 %v407_v49, %v363_v48 }
  0xd5   : > { %4346 = vmatpush3.bf16.msra.mxu0 %v549_v34 }
  0xd6   : > { %v390_v35 = vpop.permute.xlu1 %389 }
  0xd7   : > { %v406_v59 = vmul.f32 %v4903_v51, %v390_v35 }
  0xd9   : > { %v414_v1 = vadd.f32 %v406_v59, %v362_v60 }
  0xdb   : > { %v442_v44 = vpop.permute.xlu1 %441 }
  0xdc   : > { %v458_v62 = vmul.f32 %v4909_v58, %v442_v44  ;;  %v616_v44 = vpop.permute.xlu0 %615 }
  0xde   : > { %v466_v7 = vadd.f32 %v458_v62, %v414_v1 }
  0xdf   : > { %v446_v54 = vpop.permute.xlu1 %445 }
  0xe0   : > { %v459_v55 = vmul.f32 %v4909_v58, %v446_v54  ;;  %v4587_v58 = vld [vmem:[%s7872_s3 + $0x8] sm:$0xff]   ;;  %v626_v60 = vpop.permute.xlu0 %625 }
  0xe2   : > { %v467_v63 = vadd.f32 %v459_v55, %v415_v57 }
  0xe4   : > { %v504_v46 = vpop.permute.xlu1 %503  ;;  %v523_v4 = vadd.f32 %v514_v3, %v467_v63 }
  0xe5   : > { %v521_v2 = vadd.f32 %v504_v46, %v465_v0 }
  0xe6   : > { %v531_v51 = vmax.f32 %v523_v4, 0.0 }
  0xe7   : > { %v529_v6 = vmax.f32 %v521_v2, 0.0 }
  0xe8   : > { %v509_v8 = vpop.permute.xlu1 %508 }
  0xe9   : > { %v550_v40 = vpack.c.bf16 %v529_v6, %v528_v5  ;;  %v522_v9 = vadd.f32 %v509_v8, %v466_v7  ;;  %v636_v8 = vpop.permute.xlu0 %635 }
  0xeb   : > { %v530_v10 = vmax.f32 %v522_v9, 0.0  ;;  %4347 = vmatprep.subr.bf16.mxu0 %v550_v40 }
  0xec   : > { %4348 = vmatpush3.bf16.msra.mxu0 %v550_v40  ;;  %v571_v19 = vpop.permute.xlu1 %570 }
  0xed   : > { %v551_v53 = vpack.c.bf16 %v531_v51, %v530_v10 }
  0xef   : > { %4349 = vmatprep.subr.bf16.mxu0 %v551_v53 }
  0xf0   : > { %4350 = vmatpush3.bf16.msra.mxu0 %v551_v53  ;;  %v581_v21 = vpop.permute.xlu1 %580 }
  0xf3   : > { %4352 = vmatmul.mubr.msk.bf16.vlgmr.msra.gmra.mrb[0].mxu0 %vm688_vm0, %v4587_v58 }
  0xf4   : > { %4355 = vmatprep.mubr.msk.bf16.mxu0 %vm688_vm0, %v4588_v11  ;;  %v591_v23 = vpop.permute.xlu1 %590 }
  0xf8   : > { %v601_v25 = vpop.permute.xlu1 %600 }
  0xfb   : > { %4356 = vmatmul.mubr.msk.bf16.gmra.mrb[4].mxu0 %vm688_vm0, %v4589_v12 }
  0xfc   : > { %4359 = vmatprep.mubr.msk.bf16.mxu0 %vm688_vm0, %v4590_v13  ;;  %v611_v37 = vpop.permute.xlu1 %610 }
 0x100   : > { %v621_v55 = vpop.permute.xlu1 %620 }
 0x103   : > { %4360 = vmatmul.mubr.msk.bf16.gmra.mrb[8].mxu0 %vm688_vm0, %v4591_v14 }
 0x104   : > { %4363 = vmatprep.mubr.msk.bf16.mxu0 %vm688_vm0, %v4592_v15  ;;  %v631_v3 = vpop.permute.xlu1 %630 }
 0x108   : > { %v641_v11 = vpop.permute.xlu1 %640 }
 0x10b   : > { %4364 = vmatmul.mubr.msk.bf16.gmra.mrb[12].mxu0 %vm688_vm0, %v4593_v16  ;;  %v646_v16 = vpop.permute.xlu0 %645 }
 0x10c   : > { %4383 = vmatprep.mubr.bf16.mxu0 %v4598_v18 }
 0x1c6   : > { %v4353_v26 = vpop.f32.mrb[0].mxu0 }
 0x1c7   : > { %v756_v27 = vadd.f32 %v4353_v26, %v581_v21  ;;  %v747_v28 = vpop.f32.mrb[1].mxu0 }
 0x1c8   : > { %v748_v30 = vadd.f32 %v747_v28, %v571_v19  ;;  %v4354_v31 = vpop.f32.mrb[2].mxu0  ;;  %v4595_v28 = vld [vmem:[%s7874_s5 + $0xf8] sm:$0xff]  }
 0x1c9   : > { %v759_v32 = vadd.f32 %v4354_v31, %v586_v22  ;;  %v750_v33 = vpop.f32.mrb[3].mxu0  ;;  %v812_v35 = vmax.f32 %v756_v27, 0.0  ;;  %v4602_v31 = vld [vmem:[%s7874_s5 + $0x10] sm:$0xff]  }
 0x1ca   : > { %v751_v34 = vadd.f32 %v750_v33, %v576_v20  ;;  %v810_v38 = vmax.f32 %v748_v30, 0.0  ;;  %v4596_v30 = vld [vmem:[%s7874_s5 + $0x100] sm:$0xff]   ;;  %v4603_v33 = vld [vmem:[%s7874_s5 + $0x18] sm:$0xff]  }
 0x1cb   : > { %v813_v36 = vmax.f32 %v759_v32, 0.0  ;;  %v4597_v32 = vld [vmem:[%s7874_s5 + $0x108] sm:$0xff]  }
 0x1cc   : > { %v811_v39 = vmax.f32 %v751_v34, 0.0  ;;  %v4600_v34 = vld [vmem:[%s7874_s5 + $0x110] sm:$0xff]  }
 0x1cd   : > { %v955_v41 = vpack.c.bf16 %v813_v36, %v812_v35  ;;  %v4606_v35 = vld [vmem:[%s7874_s5 + $0x20] sm:$0xff]   ;;  %v4601_v36 = vld [vmem:[%s7874_s5 + $0x118] sm:$0xff]  }
 0x1ce   : > { %v954_v45 = vpack.c.bf16 %v811_v39, %v810_v38  ;;  %v4357_v47 = vpop.f32.mrb[4].mxu0  ;;  %v4604_v38 = vld [vmem:[%s7874_s5 + $0x120] sm:$0xff]   ;;  %v4610_v39 = vld [vmem:[%s7874_s5 + $0x30] sm:$0xff]  }
 0x1cf   : > { %v772_v48 = vadd.f32 %v4357_v47, %v601_v25  ;;  %v763_v49 = vpop.f32.mrb[5].mxu0  ;;  %v4614_v47 = vld [vmem:[%s7874_s5 + $0x40] sm:$0xff]  }
 0x1d0   : > { %v764_v50 = vadd.f32 %v763_v49, %v591_v23  ;;  %v4358_v52 = vpop.f32.mrb[6].mxu0  ;;  %4367 = vmatprep.subr.bf16.mxu0 %v954_v45  ;;  %4511 = vmatprep.subr.bf16.mxu1 %v954_v45  ;;  %v4615_v49 = vld [vmem:[%s7874_s5 + $0x48] sm:$0xff]  }
 0x1d1   : > { %v775_v54 = vadd.f32 %v4358_v52, %v606_v29  ;;  %v766_v43 = vpop.f32.mrb[7].mxu0  ;;  %4368 = vmatpush3.bf16.msra.mxu0 %v954_v45  ;;  %4519 = vmatpush3.bf16.msra.mxu1 %v954_v45  ;;  %v816_v57 = vmax.f32 %v772_v48, 0.0  ;;  %v4599_v29 = vld [vmem:[%s7874_s5 + $0x8] sm:$0xff]   ;;  %v4608_v45 = vld [vmem:[%s7874_s5 + $0x130] sm:$0xff]   ;;  %v4609_v48 = vld [vmem:[%s7874_s5 + $0x138] sm:$0xff]  }
 0x1d2   : > { %v767_v56 = vadd.f32 %v766_v43, %v596_v24  ;;  %4369 = vmatprep.subr.bf16.mxu0 %v955_v41  ;;  %4512 = vmatprep.subr.bf16.mxu1 %v955_v41  ;;  %v814_v61 = vmax.f32 %v764_v50, 0.0  ;;  %v4612_v50 = vld [vmem:[%s7874_s5 + $0x140] sm:$0xff]   ;;  %v4618_v52 = vld [vmem:[%s7874_s5 + $0x50] sm:$0xff]   ;;  %v4619_v43 = vld [vmem:[%s7874_s5 + $0x58] sm:$0xff]  }
 0x1d3   : > { %v817_v59 = vmax.f32 %v775_v54, 0.0  ;;  %v4613_v54 = vld [vmem:[%s7874_s5 + $0x148] sm:$0xff]  }
 0x1d4   : > { %v815_v62 = vmax.f32 %v767_v56, 0.0  ;;  %v4622_v56 = vld [vmem:[%s7874_s5 + $0x60] sm:$0xff]  }
 0x1d5   : > { %v957_v63 = vpack.c.bf16 %v817_v59, %v816_v57  ;;  %4370 = vmatpush3.bf16.msra.mxu0 %v955_v41  ;;  %4520 = vmatpush3.bf16.msra.mxu1 %v955_v41  ;;  %v4605_v41 = vld [vmem:[%s7874_s5 + $0x128] sm:$0xff]   ;;  %v4617_v57 = vld [vmem:[%s7874_s5 + $0x158] sm:$0xff]  }
 0x1d6   : > { %v956_v0 = vpack.c.bf16 %v815_v62, %v814_v61  ;;  %v4361_v46 = vpop.f32.mrb[8].mxu0  ;;  %v4623_v59 = vld [vmem:[%s7874_s5 + $0x68] sm:$0xff]   ;;  %v4626_v61 = vld [vmem:[%s7874_s5 + $0x70] sm:$0xff]  }
 0x1d7   : > { %v788_v1 = vadd.f32 %v4361_v46, %v621_v55  ;;  %v779_v2 = vpop.f32.mrb[9].mxu0  ;;  %v4616_v55 = vld [vmem:[%s7874_s5 + $0x150] sm:$0xff]   ;;  %v4621_v62 = vld [vmem:[%s7874_s5 + $0x168] sm:$0xff]   ;;  %v4630_v46 = vld [vmem:[%s7874_s5 + $0x80] sm:$0xff]  }
 0x1d8   : > { %v780_v4 = vadd.f32 %v779_v2, %v611_v37  ;;  %v4362_v5 = vpop.f32.mrb[10].mxu0  ;;  %4371 = vmatprep.subr.bf16.mxu0 %v956_v0  ;;  %4513 = vmatprep.subr.bf16.mxu1 %v956_v0  ;;  %v4607_v37 = vld [vmem:[%s7874_s5 + $0x28] sm:$0xff]  }
 0x1d9   : > { %v791_v6 = vadd.f32 %v4362_v5, %v626_v60  ;;  %v782_v7 = vpop.f32.mrb[11].mxu0  ;;  %4372 = vmatpush3.bf16.msra.mxu0 %v956_v0  ;;  %4521 = vmatpush3.bf16.msra.mxu1 %v956_v0  ;;  %v820_v9 = vmax.f32 %v788_v1, 0.0  ;;  %v4620_v60 = vld [vmem:[%s7874_s5 + $0x160] sm:$0xff]   ;;  %v4624_v0 = vld [vmem:[%s7874_s5 + $0x170] sm:$0xff]   ;;  %v4625_v1 = vld [vmem:[%s7874_s5 + $0x178] sm:$0xff]  }
 0x1da   : > { %v783_v40 = vadd.f32 %v782_v7, %v616_v44  ;;  %4373 = vmatprep.subr.bf16.mxu0 %v957_v63  ;;  %4514 = vmatprep.subr.bf16.mxu1 %v957_v63  ;;  %v818_v51 = vmax.f32 %v780_v4, 0.0  ;;  %v4611_v44 = vld [vmem:[%s7874_s5 + $0x38] sm:$0xff]   ;;  %v4631_v2 = vld [vmem:[%s7874_s5 + $0x88] sm:$0xff]   ;;  %v4634_v4 = vld [vmem:[%s7874_s5 + $0x90] sm:$0xff]  }
 0x1db   : > { %v821_v10 = vmax.f32 %v791_v6, 0.0  ;;  %v4629_v5 = vld [vmem:[%s7874_s5 + $0x188] sm:$0xff]   ;;  %v4635_v6 = vld [vmem:[%s7874_s5 + $0x98] sm:$0xff]   ;;  %v4632_v7 = vld [vmem:[%s7874_s5 + $0x190] sm:$0xff]  }
 0x1dc   : > { %v819_v53 = vmax.f32 %v783_v40, 0.0  ;;  %v4633_v40 = vld [vmem:[%s7874_s5 + $0x198] sm:$0xff]  }
 0x1dd   : > { %v959_v58 = vpack.c.bf16 %v821_v10, %v820_v9  ;;  %4374 = vmatpush3.bf16.msra.mxu0 %v957_v63  ;;  %4522 = vmatpush3.bf16.msra.mxu1 %v957_v63  ;;  %v4627_v63 = vld [vmem:[%s7874_s5 + $0x78] sm:$0xff]   ;;  %v4639_v9 = vld [vmem:[%s7874_s5 + $0xa8] sm:$0xff]   ;;  %v4636_v10 = vld [vmem:[%s7874_s5 + $0x1a0] sm:$0xff]  }
 0x1de   : > { %v958_v12 = vpack.c.bf16 %v819_v53, %v818_v51  ;;  %v4365_v13 = vpop.f32.mrb[12].mxu0  ;;  %v4642_v51 = vld [vmem:[%s7874_s5 + $0xb0] sm:$0xff]   ;;  %v4637_v53 = vld [vmem:[%s7874_s5 + $0x1a8] sm:$0xff]  }
 0x1df   : > { %v804_v14 = vadd.f32 %v4365_v13, %v641_v11  ;;  %v795_v15 = vpop.f32.mrb[13].mxu0  ;;  %v4640_v11 = vld [vmem:[%s7874_s5 + $0x1b0] sm:$0xff]   ;;  %v4641_v13 = vld [vmem:[%s7874_s5 + $0x1b8] sm:$0xff]  }
 0x1e0   : > { %v796_v17 = vadd.f32 %v795_v15, %v631_v3  ;;  %v4366_v18 = vpop.f32.mrb[14].mxu0  ;;  %4375 = vmatprep.subr.bf16.mxu0 %v958_v12  ;;  %4515 = vmatprep.subr.bf16.mxu1 %v958_v12  ;;  %v4628_v3 = vld [vmem:[%s7874_s5 + $0x180] sm:$0xff]  }
 0x1e1   : > { %v807_v19 = vadd.f32 %v4366_v18, %v646_v16  ;;  %v798_v20 = vpop.f32.mrb[15].mxu0  ;;  %4376 = vmatpush3.bf16.msra.mxu0 %v958_v12  ;;  %4523 = vmatpush3.bf16.msra.mxu1 %v958_v12  ;;  %v824_v22 = vmax.f32 %v804_v14, 0.0  ;;  %v4646_v12 = vld [vmem:[%s7874_s5 + $0xc0] sm:$0xff]   ;;  %v4647_v14 = vld [vmem:[%s7874_s5 + $0xc8] sm:$0xff]   ;;  %v4650_v16 = vld [vmem:[%s7874_s5 + $0xd0] sm:$0xff]  }
 0x1e2   : > { %v799_v21 = vadd.f32 %v798_v20, %v636_v8  ;;  %4377 = vmatprep.subr.bf16.mxu0 %v959_v58  ;;  %4516 = vmatprep.subr.bf16.mxu1 %v959_v58  ;;  %v822_v24 = vmax.f32 %v796_v17, 0.0  ;;  %v4638_v8 = vld [vmem:[%s7874_s5 + $0xa0] sm:$0xff]   ;;  %v4645_v17 = vld [vmem:[%s7874_s5 + $0x1c8] sm:$0xff]   ;;  %v4651_v18 = vld [vmem:[%s7874_s5 + $0xd8] sm:$0xff]  }
 0x1e3   : > { %v825_v23 = vmax.f32 %v807_v19, 0.0  ;;  %v4644_v15 = vld [vmem:[%s7874_s5 + $0x1c0] sm:$0xff]   ;;  %v4648_v19 = vld [vmem:[%s7874_s5 + $0x1d0] sm:$0xff]  }
 0x1e4   : > { %v823_v25 = vmax.f32 %v799_v21, 0.0  ;;  %v4654_v20 = vld [vmem:[%s7874_s5 + $0xe0] sm:$0xff]   ;;  %v4649_v21 = vld [vmem:[%s7874_s5 + $0x1d8] sm:$0xff]  }
 0x1e5   : > { %v961_v26 = vpack.c.bf16 %v825_v23, %v824_v22  ;;  %4378 = vmatpush3.bf16.msra.mxu0 %v959_v58  ;;  %4524 = vmatpush3.bf16.msra.mxu1 %v959_v58  ;;  %v4643_v58 = vld [vmem:[%s7874_s5 + $0xb8] sm:$0xff]   ;;  %v4655_v22 = vld [vmem:[%s7874_s5 + $0xe8] sm:$0xff]   ;;  %v4652_v23 = vld [vmem:[%s7874_s5 + $0x1e0] sm:$0xff]  }
 0x1e6   : > { %v960_v27 = vpack.c.bf16 %v823_v25, %v822_v24  ;;  %v4653_v24 = vld [vmem:[%s7874_s5 + $0x1e8] sm:$0xff]   ;;  %v4656_v25 = vld [vmem:[%s7874_s5 + $0x1f0] sm:$0xff]  }
 0x1e8   : > { %4379 = vmatprep.subr.bf16.mxu0 %v960_v27  ;;  %4517 = vmatprep.subr.bf16.mxu1 %v960_v27 }
 0x1e9   : > { %4380 = vmatpush3.bf16.msra.mxu0 %v960_v27  ;;  %4525 = vmatpush3.bf16.msra.mxu1 %v960_v27 }
 0x1ea   : > { %4381 = vmatprep.subr.bf16.mxu0 %v961_v26  ;;  %4518 = vmatprep.subr.bf16.mxu1 %v961_v26 }
 0x1ed   : > { %4382 = vmatpush3.bf16.msra.mxu0 %v961_v26  ;;  %4526 = vmatpush3.bf16.msra.mxu1 %v961_v26  ;;  %v4657_v26 = vld [vmem:[%s7874_s5 + $0x1f8] sm:$0xff]  }
 0x1f0   : > { %4444 = vmatmul.mubr.bf16.vlgmr.msra.gmra.mrb[0].mxu1 %v4595_v28  ;;  %4384 = vmatmul.mubr.bf16.vlgmr.msra.gmra.mrb[16].mxu0 %v4599_v29 }
 0x1f1   : > { %4447 = vmatprep.mubr.bf16.mxu1 %v4596_v30  ;;  %4387 = vmatprep.mubr.bf16.mxu0 %v4602_v31 }
 0x1f8   : > { %4448 = vmatmul.mubr.bf16.gmra.mrb[4].mxu1 %v4597_v32  ;;  %4388 = vmatmul.mubr.bf16.gmra.mrb[20].mxu0 %v4603_v33 }
 0x1f9   : > { %4451 = vmatprep.mubr.bf16.mxu1 %v4600_v34  ;;  %4391 = vmatprep.mubr.bf16.mxu0 %v4606_v35 }
 0x200   : > { %4452 = vmatmul.mubr.bf16.gmra.mrb[8].mxu1 %v4601_v36  ;;  %4392 = vmatmul.mubr.bf16.gmra.mrb[24].mxu0 %v4607_v37 }
 0x201   : > { %4455 = vmatprep.mubr.bf16.mxu1 %v4604_v38  ;;  %4395 = vmatprep.mubr.bf16.mxu0 %v4610_v39 }
 0x208   : > { %4456 = vmatmul.mubr.bf16.gmra.mrb[12].mxu1 %v4605_v41  ;;  %4396 = vmatmul.mubr.bf16.gmra.mrb[28].mxu0 %v4611_v44 }
 0x209   : > { %4459 = vmatprep.mubr.bf16.mxu1 %v4608_v45  ;;  %4399 = vmatprep.mubr.bf16.mxu0 %v4614_v47 }
 0x210   : > { %4460 = vmatmul.mubr.bf16.gmra.mrb[16].mxu1 %v4609_v48  ;;  %4400 = vmatmul.mubr.bf16.gmra.mrb[32].mxu0 %v4615_v49 }
 0x211   : > { %4463 = vmatprep.mubr.bf16.mxu1 %v4612_v50  ;;  %4403 = vmatprep.mubr.bf16.mxu0 %v4618_v52 }
 0x218   : > { %4464 = vmatmul.mubr.bf16.gmra.mrb[20].mxu1 %v4613_v54  ;;  %4404 = vmatmul.mubr.bf16.gmra.mrb[36].mxu0 %v4619_v43 }
 0x219   : > { %4467 = vmatprep.mubr.bf16.mxu1 %v4616_v55  ;;  %4407 = vmatprep.mubr.bf16.mxu0 %v4622_v56 }
 0x220   : > { %4468 = vmatmul.mubr.bf16.gmra.mrb[24].mxu1 %v4617_v57  ;;  %4408 = vmatmul.mubr.bf16.gmra.mrb[40].mxu0 %v4623_v59 }
 0x221   : > { %4471 = vmatprep.mubr.bf16.mxu1 %v4620_v60  ;;  %4411 = vmatprep.mubr.bf16.mxu0 %v4626_v61 }
 0x228   : > { %4472 = vmatmul.mubr.bf16.gmra.mrb[28].mxu1 %v4621_v62  ;;  %4412 = vmatmul.mubr.bf16.gmra.mrb[44].mxu0 %v4627_v63 }
 0x229   : > { %4475 = vmatprep.mubr.bf16.mxu1 %v4624_v0  ;;  %4415 = vmatprep.mubr.bf16.mxu0 %v4630_v46 }
 0x230   : > { %4476 = vmatmul.mubr.bf16.gmra.mrb[32].mxu1 %v4625_v1  ;;  %4416 = vmatmul.mubr.bf16.gmra.mrb[48].mxu0 %v4631_v2 }
 0x231   : > { %4479 = vmatprep.mubr.bf16.mxu1 %v4628_v3  ;;  %4419 = vmatprep.mubr.bf16.mxu0 %v4634_v4 }
 0x238   : > { %4480 = vmatmul.mubr.bf16.gmra.mrb[36].mxu1 %v4629_v5  ;;  %4420 = vmatmul.mubr.bf16.gmra.mrb[52].mxu0 %v4635_v6 }
 0x239   : > { %4483 = vmatprep.mubr.bf16.mxu1 %v4632_v7  ;;  %4423 = vmatprep.mubr.bf16.mxu0 %v4638_v8 }
 0x240   : > { %4484 = vmatmul.mubr.bf16.gmra.mrb[40].mxu1 %v4633_v40  ;;  %4424 = vmatmul.mubr.bf16.gmra.mrb[56].mxu0 %v4639_v9 }
 0x241   : > { %4487 = vmatprep.mubr.bf16.mxu1 %v4636_v10  ;;  %4427 = vmatprep.mubr.bf16.mxu0 %v4642_v51 }
 0x248   : > { %4488 = vmatmul.mubr.bf16.gmra.mrb[44].mxu1 %v4637_v53  ;;  %4428 = vmatmul.mubr.bf16.gmra.mrb[60].mxu0 %v4643_v58 }
 0x249   : > { %4491 = vmatprep.mubr.bf16.mxu1 %v4640_v11  ;;  %4431 = vmatprep.mubr.bf16.mxu0 %v4646_v12 }
 0x250   : > { %4492 = vmatmul.mubr.bf16.gmra.mrb[48].mxu1 %v4641_v13  ;;  %4432 = vmatmul.mubr.bf16.gmra.mrb[64].mxu0 %v4647_v14 }
 0x251   : > { %4495 = vmatprep.mubr.bf16.mxu1 %v4644_v15  ;;  %4435 = vmatprep.mubr.bf16.mxu0 %v4650_v16 }
 0x258   : > { %4496 = vmatmul.mubr.bf16.gmra.mrb[52].mxu1 %v4645_v17  ;;  %4436 = vmatmul.mubr.bf16.gmra.mrb[68].mxu0 %v4651_v18 }
 0x259   : > { %4499 = vmatprep.mubr.bf16.mxu1 %v4648_v19  ;;  %4439 = vmatprep.mubr.bf16.mxu0 %v4654_v20 }
 0x260   : > { %4500 = vmatmul.mubr.bf16.gmra.mrb[56].mxu1 %v4649_v21  ;;  %4440 = vmatmul.mubr.bf16.gmra.mrb[72].mxu0 %v4655_v22 }
 0x261   : > { %4503 = vmatprep.mubr.bf16.mxu1 %v4652_v23 }
 0x268   : > { %4504 = vmatmul.mubr.bf16.gmra.mrb[60].mxu1 %v4653_v24 }
 0x269   : > { %4507 = vmatprep.mubr.bf16.mxu1 %v4656_v25 }
 0x270   : > { %4508 = vmatmul.mubr.bf16.gmra.mrb[64].mxu1 %v4657_v26 }
 0x2c3   : > { %v5155_v27 = vpop.f32.mrb[0].mxu1  ;;  %v5157_v28 = vpop.f32.mrb[16].mxu0 }
 0x2c4   : > { %7889 = vst [vmem:[#allocation2_spill] sm:$0xff] %v5155_v27  ;;  %7890 = vst [vmem:[#allocation3_spill] sm:$0xff] %v5157_v28  ;;  %v5159_v29 = vpop.f32.mrb[1].mxu1  ;;  %v5161_v30 = vpop.f32.mrb[17].mxu0 }
 0x2c5   : > { %7891 = vst [vmem:[#allocation4_spill] sm:$0xff] %v5159_v29  ;;  %7892 = vst [vmem:[#allocation5_spill] sm:$0xff] %v5161_v30  ;;  %v5163_v31 = vpop.f32.mrb[2].mxu1  ;;  %v5165_v32 = vpop.f32.mrb[18].mxu0 }
 0x2c6   : > { %7893 = vst [vmem:[#allocation6_spill] sm:$0xff] %v5163_v31  ;;  %v5167_v33 = vpop.f32.mrb[3].mxu1  ;;  %v5169_v34 = vpop.f32.mrb[19].mxu0 }
 0x2c7   : > { %7894 = vst [vmem:[#allocation7_spill] sm:$0xff] %v5167_v33 }
 0x2cb   : > { %v5171_v35 = vpop.f32.mrb[4].mxu1  ;;  %v5173_v36 = vpop.f32.mrb[20].mxu0 }
 0x2cc   : > { %7895 = vst [vmem:[#allocation8_spill] sm:$0xff] %v5171_v35  ;;  %v5175_v37 = vpop.f32.mrb[5].mxu1  ;;  %v5177_v38 = vpop.f32.mrb[21].mxu0 }
 0x2cd   : > { %7896 = vst [vmem:[#allocation9_spill] sm:$0xff] %v5175_v37  ;;  %v5179_v39 = vpop.f32.mrb[6].mxu1  ;;  %v5181_v41 = vpop.f32.mrb[22].mxu0 }
 0x2ce   : > { %7897 = vst [vmem:[#allocation10_spill] sm:$0xff] %v5179_v39  ;;  %v5183_v44 = vpop.f32.mrb[7].mxu1  ;;  %v5185_v45 = vpop.f32.mrb[23].mxu0 }
 0x2cf   : > { %7898 = vst [vmem:[#allocation11_spill] sm:$0xff] %v5183_v44 }
 0x2d3   : > { %v5187_v47 = vpop.f32.mrb[8].mxu1  ;;  %v5189_v48 = vpop.f32.mrb[24].mxu0 }
 0x2d4   : > { %7899 = vst [vmem:[#allocation12_spill] sm:$0xff] %v5187_v47  ;;  %v5191_v49 = vpop.f32.mrb[9].mxu1  ;;  %v5193_v50 = vpop.f32.mrb[25].mxu0 }
 0x2d5   : > { %7900 = vst [vmem:[#allocation13_spill] sm:$0xff] %v5191_v49  ;;  %v5195_v52 = vpop.f32.mrb[10].mxu1  ;;  %v5197_v54 = vpop.f32.mrb[26].mxu0 }
 0x2d6   : > { %7901 = vst [vmem:[#allocation14_spill] sm:$0xff] %v5195_v52  ;;  %v5199_v43 = vpop.f32.mrb[11].mxu1  ;;  %v5201_v55 = vpop.f32.mrb[27].mxu0 }
 0x2d7   : > { %7902 = vst [vmem:[#allocation15_spill] sm:$0xff] %v5199_v43 }
 0x2db   : > { %v5203_v56 = vpop.f32.mrb[12].mxu1  ;;  %v5205_v57 = vpop.f32.mrb[28].mxu0 }
 0x2dc   : > { %7903 = vst [vmem:[#allocation16_spill] sm:$0xff] %v5203_v56  ;;  %v5207_v59 = vpop.f32.mrb[13].mxu1  ;;  %v5209_v60 = vpop.f32.mrb[29].mxu0 }
 0x2dd   : > { %7904 = vst [vmem:[#allocation17_spill] sm:$0xff] %v5207_v59  ;;  %v5211_v61 = vpop.f32.mrb[14].mxu1  ;;  %v5213_v62 = vpop.f32.mrb[30].mxu0 }
 0x2de   : > { %7905 = vst [vmem:[#allocation18_spill] sm:$0xff] %v5211_v61  ;;  %v5215_v63 = vpop.f32.mrb[15].mxu1  ;;  %v5217_v0 = vpop.f32.mrb[31].mxu0 }
 0x2df   : > { %7906 = vst [vmem:[#allocation19_spill] sm:$0xff] %v5215_v63 }
 0x2e3   : > { %v5219_v46 = vpop.f32.mrb[16].mxu1  ;;  %v5221_v1 = vpop.f32.mrb[32].mxu0 }
 0x2e4   : > { %7907 = vst [vmem:[#allocation20_spill] sm:$0xff] %v5219_v46  ;;  %v5223_v2 = vpop.f32.mrb[17].mxu1  ;;  %v5225_v3 = vpop.f32.mrb[33].mxu0 }
 0x2e5   : > { %7908 = vst [vmem:[#allocation21_spill] sm:$0xff] %v5223_v2  ;;  %v5227_v4 = vpop.f32.mrb[18].mxu1  ;;  %v5229_v5 = vpop.f32.mrb[34].mxu0 }
 0x2e6   : > { %7909 = vst [vmem:[#allocation22_spill] sm:$0xff] %v5227_v4  ;;  %v5231_v6 = vpop.f32.mrb[19].mxu1  ;;  %v5233_v7 = vpop.f32.mrb[35].mxu0 }
 0x2e7   : > { %7910 = vst [vmem:[#allocation23_spill] sm:$0xff] %v5231_v6 }
 0x2eb   : > { %v5235_v8 = vpop.f32.mrb[20].mxu1  ;;  %v5237_v40 = vpop.f32.mrb[36].mxu0 }
 0x2ec   : > { %7911 = vst [vmem:[#allocation24_spill] sm:$0xff] %v5235_v8  ;;  %v5239_v9 = vpop.f32.mrb[21].mxu1  ;;  %v5241_v10 = vpop.f32.mrb[37].mxu0 }
 0x2ed   : > { %7912 = vst [vmem:[#allocation25_spill] sm:$0xff] %v5239_v9  ;;  %v5243_v51 = vpop.f32.mrb[22].mxu1  ;;  %v5245_v53 = vpop.f32.mrb[38].mxu0 }
 0x2ee   : > { %7913 = vst [vmem:[#allocation26_spill] sm:$0xff] %v5243_v51  ;;  %v5247_v58 = vpop.f32.mrb[23].mxu1  ;;  %v5249_v11 = vpop.f32.mrb[39].mxu0 }
 0x2ef   : > { %7914 = vst [vmem:[#allocation27_spill] sm:$0xff] %v5247_v58 }
 0x2f3   : > { %v5251_v12 = vpop.f32.mrb[24].mxu1  ;;  %v5253_v13 = vpop.f32.mrb[40].mxu0 }
 0x2f4   : > { %7915 = vst [vmem:[#allocation28_spill] sm:$0xff] %v5251_v12  ;;  %v5255_v14 = vpop.f32.mrb[25].mxu1  ;;  %v5257_v15 = vpop.f32.mrb[41].mxu0 }
 0x2f5   : > { %7916 = vst [vmem:[#allocation29_spill] sm:$0xff] %v5255_v14  ;;  %v5259_v16 = vpop.f32.mrb[26].mxu1  ;;  %v5261_v17 = vpop.f32.mrb[42].mxu0 }
 0x2f6   : > { %7917 = vst [vmem:[#allocation30_spill] sm:$0xff] %v5259_v16  ;;  %v5263_v18 = vpop.f32.mrb[27].mxu1  ;;  %v5265_v19 = vpop.f32.mrb[43].mxu0 }
 0x2f7   : > { %7918 = vst [vmem:[#allocation31_spill] sm:$0xff] %v5263_v18 }
 0x2fb   : > { %v5267_v20 = vpop.f32.mrb[28].mxu1  ;;  %v5269_v21 = vpop.f32.mrb[44].mxu0 }
 0x2fc   : > { %7919 = vst [vmem:[#allocation32_spill] sm:$0xff] %v5267_v20  ;;  %v5271_v22 = vpop.f32.mrb[29].mxu1  ;;  %v5273_v23 = vpop.f32.mrb[45].mxu0 }
 0x2fd   : > { %7920 = vst [vmem:[#allocation33_spill] sm:$0xff] %v5271_v22  ;;  %v5275_v24 = vpop.f32.mrb[30].mxu1  ;;  %v5277_v25 = vpop.f32.mrb[46].mxu0 }
 0x2fe   : > { %7921 = vst [vmem:[#allocation34_spill] sm:$0xff] %v5275_v24  ;;  %v5279_v26 = vpop.f32.mrb[31].mxu1  ;;  %v5281_v42 = vpop.f32.mrb[47].mxu0 }
 0x2ff   : > { %7922 = vst [vmem:[#allocation35_spill] sm:$0xff] %v5279_v26 }
 0x303   : > { %v5283_v12 = vpop.f32.mrb[32].mxu1  ;;  %v5285_v16 = vpop.f32.mrb[48].mxu0 }
 0x304   : > { %7923 = vst [vmem:[#allocation36_spill] sm:$0xff] %v5283_v12  ;;  %v5287_v14 = vpop.f32.mrb[33].mxu1  ;;  %v5289_v20 = vpop.f32.mrb[49].mxu0 }
 0x305   : > { %7924 = vst [vmem:[#allocation37_spill] sm:$0xff] %v5287_v14  ;;  %v5291_v18 = vpop.f32.mrb[34].mxu1  ;;  %v5293_v22 = vpop.f32.mrb[50].mxu0 }
 0x306   : > { %7925 = vst [vmem:[#allocation38_spill] sm:$0xff] %v5291_v18  ;;  %v5295_v8 = vpop.f32.mrb[35].mxu1  ;;  %v5297_v24 = vpop.f32.mrb[51].mxu0 }
 0x307   : > { %7926 = vst [vmem:[#allocation39_spill] sm:$0xff] %v5295_v8 }
 0x30b   : > { %v5299_v51 = vpop.f32.mrb[36].mxu1  ;;  %v5301_v26 = vpop.f32.mrb[52].mxu0 }
 0x30c   : > { %7927 = vst [vmem:[#allocation40_spill] sm:$0xff] %v5299_v51  ;;  %v5303_v9 = vpop.f32.mrb[37].mxu1  ;;  %v5305_v12 = vpop.f32.mrb[53].mxu0 }
 0x30d   : > { %7928 = vst [vmem:[#allocation41_spill] sm:$0xff] %v5303_v9  ;;  %v5307_v58 = vpop.f32.mrb[38].mxu1  ;;  %v5309_v14 = vpop.f32.mrb[54].mxu0 }
 0x30e   : > { %7929 = vst [vmem:[#allocation42_spill] sm:$0xff] %v5307_v58  ;;  %v5311_v46 = vpop.f32.mrb[39].mxu1  ;;  %v5313_v18 = vpop.f32.mrb[55].mxu0 }
 0x30f   : > { %7930 = vst [vmem:[#allocation43_spill] sm:$0xff] %v5311_v46 }
 0x313   : > { %v5315_v4 = vpop.f32.mrb[40].mxu1  ;;  %v5317_v8 = vpop.f32.mrb[56].mxu0 }
 0x314   : > { %7931 = vst [vmem:[#allocation44_spill] sm:$0xff] %v5315_v4  ;;  %v5319_v2 = vpop.f32.mrb[41].mxu1  ;;  %v5321_v51 = vpop.f32.mrb[57].mxu0 }
 0x315   : > { %7932 = vst [vmem:[#allocation45_spill] sm:$0xff] %v5319_v2  ;;  %v5323_v6 = vpop.f32.mrb[42].mxu1  ;;  %v5325_v9 = vpop.f32.mrb[58].mxu0 }
 0x316   : > { %7933 = vst [vmem:[#allocation46_spill] sm:$0xff] %v5323_v6  ;;  %v5327_v56 = vpop.f32.mrb[43].mxu1  ;;  %v5329_v58 = vpop.f32.mrb[59].mxu0 }
 0x317   : > { %7934 = vst [vmem:[#allocation47_spill] sm:$0xff] %v5327_v56 }
 0x31b   : > { %v5331_v61 = vpop.f32.mrb[44].mxu1  ;;  %v5333_v46 = vpop.f32.mrb[60].mxu0 }
 0x31c   : > { %7935 = vst [vmem:[#allocation48_spill] sm:$0xff] %v5331_v61  ;;  %7936 = vst [vmem:[#allocation49_spill] sm:$0xff] %v5333_v46  ;;  %v5335_v59 = vpop.f32.mrb[45].mxu1  ;;  %v5337_v4 = vpop.f32.mrb[61].mxu0 }
 0x31d   : > { %7937 = vst [vmem:[#allocation50_spill] sm:$0xff] %v5335_v59  ;;  %v5339_v63 = vpop.f32.mrb[46].mxu1  ;;  %v5341_v2 = vpop.f32.mrb[62].mxu0 }
 0x31e   : > { %7938 = vst [vmem:[#allocation51_spill] sm:$0xff] %v5339_v63  ;;  %7939 = vst [vmem:[#allocation52_spill] sm:$0xff] %v5341_v2  ;;  %v5343_v47 = vpop.f32.mrb[47].mxu1  ;;  %v5345_v6 = vpop.f32.mrb[63].mxu0 }
 0x31f   : > { %7940 = vst [vmem:[#allocation53_spill] sm:$0xff] %v5343_v47 }
 0x323   : > { %v5347_v52 = vpop.f32.mrb[48].mxu1  ;;  %v5349_v56 = vpop.f32.mrb[64].mxu0 }
 0x324   : > { %7941 = vst [vmem:[#allocation54_spill] sm:$0xff] %v5347_v52  ;;  %7942 = vst [vmem:[#allocation55_spill] sm:$0xff] %v5349_v56  ;;  %v5351_v49 = vpop.f32.mrb[49].mxu1  ;;  %v5353_v61 = vpop.f32.mrb[65].mxu0 }
 0x325   : > { %7943 = vst [vmem:[#allocation56_spill] sm:$0xff] %v5351_v49  ;;  %7944 = vst [vmem:[#allocation57_spill] sm:$0xff] %v5353_v61  ;;  %v5355_v43 = vpop.f32.mrb[50].mxu1  ;;  %v5357_v59 = vpop.f32.mrb[66].mxu0 }
 0x326   : > { %7945 = vst [vmem:[#allocation58_spill] sm:$0xff] %v5355_v43  ;;  %7946 = vst [vmem:[#allocation59_spill] sm:$0xff] %v5357_v59  ;;  %v5359_v35 = vpop.f32.mrb[51].mxu1  ;;  %v5361_v63 = vpop.f32.mrb[67].mxu0 }
 0x327   : > { %7947 = vst [vmem:[#allocation60_spill] sm:$0xff] %v5359_v35  ;;  %7948 = vst [vmem:[#allocation61_spill] sm:$0xff] %v5361_v63 }
 0x32b   : > { %v5363_v39 = vpop.f32.mrb[52].mxu1  ;;  %v5365_v47 = vpop.f32.mrb[68].mxu0 }
 0x32c   : > { %7949 = vst [vmem:[#allocation62_spill] sm:$0xff] %v5363_v39  ;;  %7950 = vst [vmem:[#allocation63_spill] sm:$0xff] %v5365_v47  ;;  %v5367_v37 = vpop.f32.mrb[53].mxu1  ;;  %v5369_v52 = vpop.f32.mrb[69].mxu0 }
 0x32d   : > { %7951 = vst [vmem:[#allocation64_spill] sm:$0xff] %v5367_v37  ;;  %7952 = vst [vmem:[#allocation65_spill] sm:$0xff] %v5369_v52  ;;  %v5371_v44 = vpop.f32.mrb[54].mxu1  ;;  %v5373_v49 = vpop.f32.mrb[70].mxu0 }
 0x32e   : > { %7953 = vst [vmem:[#allocation66_spill] sm:$0xff] %v5371_v44  ;;  %7954 = vst [vmem:[#allocation67_spill] sm:$0xff] %v5373_v49  ;;  %v5375_v27 = vpop.f32.mrb[55].mxu1  ;;  %v5377_v43 = vpop.f32.mrb[71].mxu0 }
 0x32f   : > { %7955 = vst [vmem:[#allocation68_spill] sm:$0xff] %v5375_v27  ;;  %7956 = vst [vmem:[#allocation69_spill] sm:$0xff] %v5377_v43 }
 0x333   : > { %v5379_v31 = vpop.f32.mrb[56].mxu1  ;;  %v5381_v35 = vpop.f32.mrb[72].mxu0 }
 0x334   : > { %7957 = vst [vmem:[#allocation70_spill] sm:$0xff] %v5379_v31  ;;  %7958 = vst [vmem:[#allocation71_spill] sm:$0xff] %v5381_v35  ;;  %v5383_v29 = vpop.f32.mrb[57].mxu1  ;;  %v5385_v39 = vpop.f32.mrb[73].mxu0 }
 0x335   : > { %7959 = vst [vmem:[#allocation72_spill] sm:$0xff] %v5383_v29  ;;  %7960 = vst [vmem:[#allocation73_spill] sm:$0xff] %v5385_v39  ;;  %v5387_v33 = vpop.f32.mrb[58].mxu1  ;;  %v5389_v37 = vpop.f32.mrb[74].mxu0 }
 0x336   : > { %7961 = vst [vmem:[#allocation74_spill] sm:$0xff] %v5387_v33  ;;  %7962 = vst [vmem:[#allocation75_spill] sm:$0xff] %v5389_v37  ;;  %v5391_v47 = vpop.f32.mrb[59].mxu1  ;;  %v5393_v44 = vpop.f32.mrb[75].mxu0 }
 0x337   : > { %7963 = vst [vmem:[#allocation76_spill] sm:$0xff] %v5393_v44 }
 0x33b   : > { %v5395_v49 = vpop.f32.mrb[60].mxu1 }
 0x33c   : > { %7964 = vst [vmem:[#allocation77_spill] sm:$0xff] %v5395_v49  ;;  %v5397_v27 = vpop.f32.mrb[61].mxu1 }
 0x33d   : > { %v5399_v52 = vpop.f32.mrb[62].mxu1 }
 0x33e   : > { %v5401_v31 = vpop.f32.mrb[63].mxu1 }
 0x341   : > { %1894 = sbr.rel (%p4252_p7) target bundleno = 903 (0x387), region = 52 }
 0x343   : > { %v5403_v35 = vpop.f32.mrb[64].mxu1 }
 0x344   : > { %7965 = vst [vmem:[#allocation78_spill] sm:$0xff] %v5403_v35  ;;  %v5405_v29 = vpop.f32.mrb[65].mxu1  ;;  %v4701_v35 = vmov (!%p4252_p7), -inf  }
 0x345   : > { %7966 = vst [vmem:[#allocation79_spill] sm:$0xff] %v5405_v29  ;;  %v5407_v39 = vpop.f32.mrb[66].mxu1  ;;  %1896 = vst.msk [vmem:[%s4791_s17] sm:$0xff] (!%p4252_p7), %vm1895_vm1, %v4701_v35 }
 0x346   : > { %7967 = vst [vmem:[#allocation80_spill] sm:$0xff] %v5407_v39  ;;  %v5409_v33 = vpop.f32.mrb[67].mxu1  ;;  %1897 = vst.msk [vmem:[%s4791_s17 + $0x8] sm:$0xff] (!%p4252_p7), %vm1895_vm1, %v4701_v35 }
 0x347   : > { %7968 = vst [vmem:[#allocation81_spill] sm:$0xff] %v5409_v33  ;;  %1898 = vst.msk [vmem:[%s4791_s17 + $0x10] sm:$0xff] (!%p4252_p7), %vm1895_vm1, %v4701_v35 }
 0x348   : > { %1899 = vst.msk [vmem:[%s4791_s17 + $0x18] sm:$0xff] %vm1895_vm1, %v4701_v35  ;;  %1900 = vst.msk [vmem:[%s4791_s17 + $0x20] sm:$0xff] %vm1895_vm1, %v4701_v35 }
 0x349   : > { %1901 = vst.msk [vmem:[%s4791_s17 + $0x28] sm:$0xff] %vm1895_vm1, %v4701_v35  ;;  %1902 = vst.msk [vmem:[%s4791_s17 + $0x30] sm:$0xff] %vm1895_vm1, %v4701_v35 }
 0x34a   : > { %1903 = vst.msk [vmem:[%s4791_s17 + $0x38] sm:$0xff] %vm1895_vm1, %v4701_v35  ;;  %1904 = vst.msk [vmem:[%s4791_s17 + $0x40] sm:$0xff] %vm1895_vm1, %v4701_v35 }
 0x34b   : > { %1905 = vst.msk [vmem:[%s4791_s17 + $0x48] sm:$0xff] %vm1895_vm1, %v4701_v35  ;;  %1906 = vst.msk [vmem:[%s4791_s17 + $0x50] sm:$0xff] %vm1895_vm1, %v4701_v35 }
 0x34c   : > { %1907 = vst.msk [vmem:[%s4791_s17 + $0x58] sm:$0xff] %vm1895_vm1, %v4701_v35  ;;  %1908 = vst.msk [vmem:[%s4791_s17 + $0x60] sm:$0xff] %vm1895_vm1, %v4701_v35 }
 0x34d   : > { %1909 = vst.msk [vmem:[%s4791_s17 + $0x68] sm:$0xff] %vm1895_vm1, %v4701_v35  ;;  %1910 = vst.msk [vmem:[%s4791_s17 + $0x70] sm:$0xff] %vm1895_vm1, %v4701_v35 }
 0x34e   : > { %1911 = vst.msk [vmem:[%s4791_s17 + $0x78] sm:$0xff] %vm1895_vm1, %v4701_v35  ;;  %1912 = vst.msk [vmem:[%s4791_s17 + $0x80] sm:$0xff] %vm1895_vm1, %v4701_v35 }
 0x34f   : > { %1913 = vst.msk [vmem:[%s4791_s17 + $0x88] sm:$0xff] %vm1895_vm1, %v4701_v35  ;;  %1914 = vst.msk [vmem:[%s4791_s17 + $0x90] sm:$0xff] %vm1895_vm1, %v4701_v35 }
 0x350   : > { %1915 = vst.msk [vmem:[%s4791_s17 + $0x98] sm:$0xff] %vm1895_vm1, %v4701_v35  ;;  %1916 = vst.msk [vmem:[%s4791_s17 + $0xa0] sm:$0xff] %vm1895_vm1, %v4701_v35 }
 0x351   : > { %1917 = vst.msk [vmem:[%s4791_s17 + $0xa8] sm:$0xff] %vm1895_vm1, %v4701_v35  ;;  %1918 = vst.msk [vmem:[%s4791_s17 + $0xb0] sm:$0xff] %vm1895_vm1, %v4701_v35 }
 0x352   : > { %1919 = vst.msk [vmem:[%s4791_s17 + $0xb8] sm:$0xff] %vm1895_vm1, %v4701_v35  ;;  %1920 = vst.msk [vmem:[%s4791_s17 + $0xc0] sm:$0xff] %vm1895_vm1, %v4701_v35 }
 0x353   : > { %1921 = vst.msk [vmem:[%s4791_s17 + $0xc8] sm:$0xff] %vm1895_vm1, %v4701_v35  ;;  %1922 = vst.msk [vmem:[%s4791_s17 + $0xd0] sm:$0xff] %vm1895_vm1, %v4701_v35 }
 0x354   : > { %1923 = vst.msk [vmem:[%s4791_s17 + $0xd8] sm:$0xff] %vm1895_vm1, %v4701_v35  ;;  %1924 = vst.msk [vmem:[%s4791_s17 + $0xe0] sm:$0xff] %vm1895_vm1, %v4701_v35 }
 0x355   : > { %1925 = vst.msk [vmem:[%s4791_s17 + $0xe8] sm:$0xff] %vm1895_vm1, %v4701_v35  ;;  %1926 = vst.msk [vmem:[%s4791_s17 + $0xf0] sm:$0xff] %vm1895_vm1, %v4701_v35 }
 0x356   : > { %1927 = vst.msk [vmem:[%s4791_s17 + $0xf8] sm:$0xff] %vm1895_vm1, %v4701_v35  ;;  %1928 = vst.msk [vmem:[%s4791_s17 + $0x100] sm:$0xff] %vm1895_vm1, %v4701_v35 }
 0x357   : > { %1929 = vst.msk [vmem:[%s4791_s17 + $0x108] sm:$0xff] %vm1895_vm1, %v4701_v35  ;;  %1930 = vst.msk [vmem:[%s4791_s17 + $0x110] sm:$0xff] %vm1895_vm1, %v4701_v35 }
 0x358   : > { %1931 = vst.msk [vmem:[%s4791_s17 + $0x118] sm:$0xff] %vm1895_vm1, %v4701_v35  ;;  %1932 = vst.msk [vmem:[%s4791_s17 + $0x120] sm:$0xff] %vm1895_vm1, %v4701_v35 }
 0x359   : > { %1933 = vst.msk [vmem:[%s4791_s17 + $0x128] sm:$0xff] %vm1895_vm1, %v4701_v35  ;;  %1934 = vst.msk [vmem:[%s4791_s17 + $0x130] sm:$0xff] %vm1895_vm1, %v4701_v35 }
 0x35a   : > { %1935 = vst.msk [vmem:[%s4791_s17 + $0x138] sm:$0xff] %vm1895_vm1, %v4701_v35  ;;  %1936 = vst.msk [vmem:[%s4791_s17 + $0x140] sm:$0xff] %vm1895_vm1, %v4701_v35 }
 0x35b   : > { %1937 = vst.msk [vmem:[%s4791_s17 + $0x148] sm:$0xff] %vm1895_vm1, %v4701_v35  ;;  %1938 = vst.msk [vmem:[%s4791_s17 + $0x150] sm:$0xff] %vm1895_vm1, %v4701_v35 }
 0x35c   : > { %1939 = vst.msk [vmem:[%s4791_s17 + $0x158] sm:$0xff] %vm1895_vm1, %v4701_v35  ;;  %1940 = vst.msk [vmem:[%s4791_s17 + $0x160] sm:$0xff] %vm1895_vm1, %v4701_v35 }
 0x35d   : > { %1941 = vst.msk [vmem:[%s4791_s17 + $0x168] sm:$0xff] %vm1895_vm1, %v4701_v35  ;;  %1942 = vst.msk [vmem:[%s4791_s17 + $0x170] sm:$0xff] %vm1895_vm1, %v4701_v35 }
 0x35e   : > { %1943 = vst.msk [vmem:[%s4791_s17 + $0x178] sm:$0xff] %vm1895_vm1, %v4701_v35  ;;  %1944 = vst.msk [vmem:[%s4791_s17 + $0x180] sm:$0xff] %vm1895_vm1, %v4701_v35 }
 0x35f   : > { %1945 = vst.msk [vmem:[%s4791_s17 + $0x188] sm:$0xff] %vm1895_vm1, %v4701_v35  ;;  %1946 = vst.msk [vmem:[%s4791_s17 + $0x190] sm:$0xff] %vm1895_vm1, %v4701_v35 }
 0x360   : > { %1947 = vst.msk [vmem:[%s4791_s17 + $0x198] sm:$0xff] %vm1895_vm1, %v4701_v35  ;;  %1948 = vst.msk [vmem:[%s4791_s17 + $0x1a0] sm:$0xff] %vm1895_vm1, %v4701_v35 }
 0x361   : > { %1949 = vst.msk [vmem:[%s4791_s17 + $0x1a8] sm:$0xff] %vm1895_vm1, %v4701_v35  ;;  %1950 = vst.msk [vmem:[%s4791_s17 + $0x1b0] sm:$0xff] %vm1895_vm1, %v4701_v35 }
 0x362   : > { %1951 = vst.msk [vmem:[%s4791_s17 + $0x1b8] sm:$0xff] %vm1895_vm1, %v4701_v35  ;;  %1952 = vst.msk [vmem:[%s4791_s17 + $0x1c0] sm:$0xff] %vm1895_vm1, %v4701_v35 }
 0x363   : > { %1953 = vst.msk [vmem:[%s4791_s17 + $0x1c8] sm:$0xff] %vm1895_vm1, %v4701_v35  ;;  %1954 = vst.msk [vmem:[%s4791_s17 + $0x1d0] sm:$0xff] %vm1895_vm1, %v4701_v35 }
 0x364   : > { %1955 = vst.msk [vmem:[%s4791_s17 + $0x1d8] sm:$0xff] %vm1895_vm1, %v4701_v35  ;;  %1956 = vst.msk [vmem:[%s4791_s17 + $0x1e0] sm:$0xff] %vm1895_vm1, %v4701_v35 }
 0x365   : > { %1957 = vst.msk [vmem:[%s4791_s17 + $0x1e8] sm:$0xff] %vm1895_vm1, %v4701_v35  ;;  %1958 = vst.msk [vmem:[%s4791_s17 + $0x1f0] sm:$0xff] %vm1895_vm1, %v4701_v35 }
 0x366   : > { %1959 = vst.msk [vmem:[%s4791_s17 + $0x1f8] sm:$0xff] %vm1895_vm1, %v4701_v35  ;;  %1960 = vst.msk [vmem:[%s4791_s17 + $0x200] sm:$0xff] %vm1895_vm1, %v4701_v35 }
 0x367   : > { %1961 = vst.msk [vmem:[%s4791_s17 + $0x208] sm:$0xff] %vm1895_vm1, %v4701_v35  ;;  %1962 = vst.msk [vmem:[%s4791_s17 + $0x210] sm:$0xff] %vm1895_vm1, %v4701_v35 }
 0x368   : > { %1963 = vst.msk [vmem:[%s4791_s17 + $0x218] sm:$0xff] %vm1895_vm1, %v4701_v35  ;;  %1964 = vst.msk [vmem:[%s4791_s17 + $0x220] sm:$0xff] %vm1895_vm1, %v4701_v35 }
 0x369   : > { %1965 = vst.msk [vmem:[%s4791_s17 + $0x228] sm:$0xff] %vm1895_vm1, %v4701_v35  ;;  %1966 = vst.msk [vmem:[%s4791_s17 + $0x230] sm:$0xff] %vm1895_vm1, %v4701_v35 }
 0x36a   : > { %1967 = vst.msk [vmem:[%s4791_s17 + $0x238] sm:$0xff] %vm1895_vm1, %v4701_v35  ;;  %1968 = vst.msk [vmem:[%s4791_s17 + $0x240] sm:$0xff] %vm1895_vm1, %v4701_v35 }
 0x36b   : > { %1969 = vst.msk [vmem:[%s4791_s17 + $0x248] sm:$0xff] %vm1895_vm1, %v4701_v35  ;;  %1970 = vst.msk [vmem:[%s4791_s17 + $0x250] sm:$0xff] %vm1895_vm1, %v4701_v35 }
 0x36c   : > { %1971 = vst.msk [vmem:[%s4791_s17 + $0x258] sm:$0xff] %vm1895_vm1, %v4701_v35  ;;  %1972 = vst.msk [vmem:[%s4791_s17 + $0x260] sm:$0xff] %vm1895_vm1, %v4701_v35 }
 0x36d   : > { %1973 = vst.msk [vmem:[%s4791_s17 + $0x268] sm:$0xff] %vm1895_vm1, %v4701_v35  ;;  %1974 = vst.msk [vmem:[%s4791_s17 + $0x270] sm:$0xff] %vm1895_vm1, %v4701_v35 }
 0x36e   : > { %1975 = vst.msk [vmem:[%s4791_s17 + $0x278] sm:$0xff] %vm1895_vm1, %v4701_v35  ;;  %1976 = vst.msk [vmem:[%s4791_s17 + $0x280] sm:$0xff] %vm1895_vm1, %v4701_v35 }
 0x36f   : > { %1977 = vst.msk [vmem:[%s4791_s17 + $0x288] sm:$0xff] %vm1895_vm1, %v4701_v35  ;;  %1978 = vst.msk [vmem:[%s4791_s17 + $0x290] sm:$0xff] %vm1895_vm1, %v4701_v35 }
 0x370   : > { %1979 = vst.msk [vmem:[%s4791_s17 + $0x298] sm:$0xff] %vm1895_vm1, %v4701_v35  ;;  %1980 = vst.msk [vmem:[%s4791_s17 + $0x2a0] sm:$0xff] %vm1895_vm1, %v4701_v35 }
 0x371   : > { %1981 = vst.msk [vmem:[%s4791_s17 + $0x2a8] sm:$0xff] %vm1895_vm1, %v4701_v35  ;;  %1982 = vst.msk [vmem:[%s4791_s17 + $0x2b0] sm:$0xff] %vm1895_vm1, %v4701_v35 }
 0x372   : > { %1983 = vst.msk [vmem:[%s4791_s17 + $0x2b8] sm:$0xff] %vm1895_vm1, %v4701_v35  ;;  %1984 = vst.msk [vmem:[%s4791_s17 + $0x2c0] sm:$0xff] %vm1895_vm1, %v4701_v35 }
 0x373   : > { %1985 = vst.msk [vmem:[%s4791_s17 + $0x2c8] sm:$0xff] %vm1895_vm1, %v4701_v35  ;;  %1986 = vst.msk [vmem:[%s4791_s17 + $0x2d0] sm:$0xff] %vm1895_vm1, %v4701_v35 }
 0x374   : > { %1987 = vst.msk [vmem:[%s4791_s17 + $0x2d8] sm:$0xff] %vm1895_vm1, %v4701_v35  ;;  %1988 = vst.msk [vmem:[%s4791_s17 + $0x2e0] sm:$0xff] %vm1895_vm1, %v4701_v35 }
 0x375   : > { %1989 = vst.msk [vmem:[%s4791_s17 + $0x2e8] sm:$0xff] %vm1895_vm1, %v4701_v35  ;;  %1990 = vst.msk [vmem:[%s4791_s17 + $0x2f0] sm:$0xff] %vm1895_vm1, %v4701_v35 }
 0x376   : > { %1991 = vst.msk [vmem:[%s4791_s17 + $0x2f8] sm:$0xff] %vm1895_vm1, %v4701_v35  ;;  %1992 = vst.msk [vmem:[%s4791_s17 + $0x300] sm:$0xff] %vm1895_vm1, %v4701_v35 }
 0x377   : > { %1993 = vst.msk [vmem:[%s4791_s17 + $0x308] sm:$0xff] %vm1895_vm1, %v4701_v35  ;;  %1994 = vst.msk [vmem:[%s4791_s17 + $0x310] sm:$0xff] %vm1895_vm1, %v4701_v35 }
 0x378   : > { %1995 = vst.msk [vmem:[%s4791_s17 + $0x318] sm:$0xff] %vm1895_vm1, %v4701_v35  ;;  %1996 = vst.msk [vmem:[%s4791_s17 + $0x320] sm:$0xff] %vm1895_vm1, %v4701_v35 }
 0x379   : > { %1997 = vst.msk [vmem:[%s4791_s17 + $0x328] sm:$0xff] %vm1895_vm1, %v4701_v35  ;;  %1998 = vst.msk [vmem:[%s4791_s17 + $0x330] sm:$0xff] %vm1895_vm1, %v4701_v35 }
 0x37a   : > { %1999 = vst.msk [vmem:[%s4791_s17 + $0x338] sm:$0xff] %vm1895_vm1, %v4701_v35  ;;  %2000 = vst.msk [vmem:[%s4791_s17 + $0x340] sm:$0xff] %vm1895_vm1, %v4701_v35 }
 0x37b   : > { %2001 = vst.msk [vmem:[%s4791_s17 + $0x348] sm:$0xff] %vm1895_vm1, %v4701_v35  ;;  %2002 = vst.msk [vmem:[%s4791_s17 + $0x350] sm:$0xff] %vm1895_vm1, %v4701_v35 }
 0x37c   : > { %2003 = vst.msk [vmem:[%s4791_s17 + $0x358] sm:$0xff] %vm1895_vm1, %v4701_v35  ;;  %2004 = vst.msk [vmem:[%s4791_s17 + $0x360] sm:$0xff] %vm1895_vm1, %v4701_v35 }
 0x37d   : > { %2005 = vst.msk [vmem:[%s4791_s17 + $0x368] sm:$0xff] %vm1895_vm1, %v4701_v35  ;;  %2006 = vst.msk [vmem:[%s4791_s17 + $0x370] sm:$0xff] %vm1895_vm1, %v4701_v35 }
 0x37e   : > { %2007 = vst.msk [vmem:[%s4791_s17 + $0x378] sm:$0xff] %vm1895_vm1, %v4701_v35  ;;  %2008 = vst.msk [vmem:[%s4791_s17 + $0x380] sm:$0xff] %vm1895_vm1, %v4701_v35 }
 0x37f   : > { %2009 = vst.msk [vmem:[%s4791_s17 + $0x388] sm:$0xff] %vm1895_vm1, %v4701_v35  ;;  %2010 = vst.msk [vmem:[%s4791_s17 + $0x390] sm:$0xff] %vm1895_vm1, %v4701_v35 }
 0x380   : > { %2011 = vst.msk [vmem:[%s4791_s17 + $0x398] sm:$0xff] %vm1895_vm1, %v4701_v35  ;;  %2012 = vst.msk [vmem:[%s4791_s17 + $0x3a0] sm:$0xff] %vm1895_vm1, %v4701_v35 }
 0x381   : > { %2013 = vst.msk [vmem:[%s4791_s17 + $0x3a8] sm:$0xff] %vm1895_vm1, %v4701_v35  ;;  %2014 = vst.msk [vmem:[%s4791_s17 + $0x3b0] sm:$0xff] %vm1895_vm1, %v4701_v35 }
 0x382   : > { %2015 = vst.msk [vmem:[%s4791_s17 + $0x3b8] sm:$0xff] %vm1895_vm1, %v4701_v35  ;;  %2016 = vst.msk [vmem:[%s4791_s17 + $0x3c0] sm:$0xff] %vm1895_vm1, %v4701_v35 }
 0x383   : > { %2017 = vst.msk [vmem:[%s4791_s17 + $0x3c8] sm:$0xff] %vm1895_vm1, %v4701_v35  ;;  %2018 = vst.msk [vmem:[%s4791_s17 + $0x3d0] sm:$0xff] %vm1895_vm1, %v4701_v35 }
 0x384   : > { %2019 = vst.msk [vmem:[%s4791_s17 + $0x3d8] sm:$0xff] %vm1895_vm1, %v4701_v35  ;;  %2020 = vst.msk [vmem:[%s4791_s17 + $0x3e0] sm:$0xff] %vm1895_vm1, %v4701_v35 }
 0x385   : > { %2021 = vst.msk [vmem:[%s4791_s17 + $0x3e8] sm:$0xff] %vm1895_vm1, %v4701_v35  ;;  %2022 = vst.msk [vmem:[%s4791_s17 + $0x3f0] sm:$0xff] %vm1895_vm1, %v4701_v35 }
 0x386   : > { %2023 = vst.msk [vmem:[%s4791_s17 + $0x3f8] sm:$0xff] %vm1895_vm1, %v4701_v35 }
 0x387 PF: > { %p4253_p8 = scmp.ne.s32.totalorder %s4680_s24, 1 }
 0x388   : > { %v7969_v39 = vlaneseq (!%p4253_p8)  ;;  %vm2673_vm3 = vcmask (!%p4253_p8), 7168  }
 0x389   : > { %2027 = sbr.rel (%p4253_p8) target bundleno = 1307 (0x51b), region = 56 }
 0x38a   : > { %v5800_v29 = vand.u32 (!%p4253_p8), 127, %v7969_v39 }
 0x38c   : > { %vm2030_vm2 = vcmp.lt.s32.totalorder (!%p4253_p8), %v5800_v29, 72 }
 0x38d   : > { %v2035_v33 = vsel (!%p4253_p8), %vm2030_vm2, %v5157_v28, -inf  ;;  %v2033_v49 = vsel (!%p4253_p8), %vm2030_vm2, %v5161_v30, -inf  ;;  %v2036_v35 = vsel (!%p4253_p8), %vm2030_vm2, %v5165_v32, -inf  ;;  %v2034_v39 = vsel (!%p4253_p8), %vm2030_vm2, %v5169_v34, -inf }
 0x38e   : > { %2293 = vmax.xlane.f32.xlu1 (!%p4253_p8), %v2035_v33  ;;  %2289 = vmax.xlane.f32.xlu0 (!%p4253_p8), %v2033_v49  ;;  %v2038_v28 = vsel (!%p4253_p8), %vm2030_vm2, %v5185_v45, -inf  ;;  %v2037_v30 = vsel (!%p4253_p8), %vm2030_vm2, %v5177_v38, -inf  ;;  %v2040_v33 = vsel (!%p4253_p8), %vm2030_vm2, %v5181_v41, -inf  ;;  %v2039_v49 = vsel (!%p4253_p8), %vm2030_vm2, %v5173_v36, -inf }
 0x392   : > { %2295 = vmax.xlane.f32.xlu1 %v2036_v35  ;;  %2291 = vmax.xlane.f32.xlu0 %v2034_v39  ;;  %v2042_v35 = vsel %vm2030_vm2, %v5201_v55, -inf  ;;  %v2041_v39 = vsel %vm2030_vm2, %v5193_v50, -inf }
 0x396   : > { %2299 = vmax.xlane.f32.xlu1 %v2038_v28  ;;  %2297 = vmax.xlane.f32.xlu0 %v2037_v30  ;;  %v2044_v28 = vsel %vm2030_vm2, %v5197_v54, -inf  ;;  %v2043_v30 = vsel %vm2030_vm2, %v5189_v48, -inf }
 0x39a   : > { %2303 = vmax.xlane.f32.xlu1 %v2040_v33  ;;  %2301 = vmax.xlane.f32.xlu0 %v2039_v49  ;;  %v2046_v33 = vsel %vm2030_vm2, %v5217_v0, -inf  ;;  %v2045_v49 = vsel %vm2030_vm2, %v5209_v60, -inf }
 0x39e   : > { %2307 = vmax.xlane.f32.xlu1 %v2042_v35  ;;  %2305 = vmax.xlane.f32.xlu0 %v2041_v39  ;;  %v2048_v35 = vsel %vm2030_vm2, %v5213_v62, -inf  ;;  %v2047_v39 = vsel %vm2030_vm2, %v5205_v57, -inf }
 0x3a2   : > { %2311 = vmax.xlane.f32.xlu1 %v2044_v28  ;;  %2309 = vmax.xlane.f32.xlu0 %v2043_v30  ;;  %v2050_v28 = vsel %vm2030_vm2, %v5233_v7, -inf  ;;  %v2049_v30 = vsel %vm2030_vm2, %v5225_v3, -inf }
 0x3a6   : > { %2315 = vmax.xlane.f32.xlu1 %v2046_v33  ;;  %2313 = vmax.xlane.f32.xlu0 %v2045_v49  ;;  %v2052_v33 = vsel %vm2030_vm2, %v5229_v5, -inf  ;;  %v2051_v49 = vsel %vm2030_vm2, %v5221_v1, -inf }
 0x3aa   : > { %2319 = vmax.xlane.f32.xlu1 %v2048_v35  ;;  %2317 = vmax.xlane.f32.xlu0 %v2047_v39  ;;  %v2054_v35 = vsel %vm2030_vm2, %v5249_v11, -inf  ;;  %v2053_v39 = vsel %vm2030_vm2, %v5241_v10, -inf }
 0x3ae   : > { %2323 = vmax.xlane.f32.xlu1 %v2050_v28  ;;  %2321 = vmax.xlane.f32.xlu0 %v2049_v30  ;;  %v2056_v28 = vsel %vm2030_vm2, %v5245_v53, -inf  ;;  %v2055_v30 = vsel %vm2030_vm2, %v5237_v40, -inf }
 0x3b2   : > { %2327 = vmax.xlane.f32.xlu1 %v2052_v33  ;;  %2325 = vmax.xlane.f32.xlu0 %v2051_v49  ;;  %v2058_v33 = vsel %vm2030_vm2, %v5265_v19, -inf  ;;  %v2057_v49 = vsel %vm2030_vm2, %v5257_v15, -inf }
 0x3b6   : > { %2331 = vmax.xlane.f32.xlu1 %v2054_v35  ;;  %2329 = vmax.xlane.f32.xlu0 %v2053_v39  ;;  %v2060_v35 = vsel %vm2030_vm2, %v5261_v17, -inf  ;;  %v2059_v39 = vsel %vm2030_vm2, %v5253_v13, -inf }
 0x3ba   : > { %2335 = vmax.xlane.f32.xlu1 %v2056_v28  ;;  %2333 = vmax.xlane.f32.xlu0 %v2055_v30  ;;  %v2062_v28 = vsel %vm2030_vm2, %v5281_v42, -inf  ;;  %v2061_v30 = vsel %vm2030_vm2, %v5273_v23, -inf }
 0x3be   : > { %2339 = vmax.xlane.f32.xlu1 %v2058_v33  ;;  %2337 = vmax.xlane.f32.xlu0 %v2057_v49  ;;  %v2064_v33 = vsel %vm2030_vm2, %v5277_v25, -inf  ;;  %v2063_v49 = vsel %vm2030_vm2, %v5269_v21, -inf }
 0x3c2   : > { %2343 = vmax.xlane.f32.xlu1 %v2060_v35  ;;  %2341 = vmax.xlane.f32.xlu0 %v2059_v39  ;;  %v2066_v35 = vsel %vm2030_vm2, %v5297_v24, -inf  ;;  %v2065_v39 = vsel %vm2030_vm2, %v5289_v20, -inf }
 0x3c6   : > { %2347 = vmax.xlane.f32.xlu1 %v2062_v28  ;;  %2345 = vmax.xlane.f32.xlu0 %v2061_v30  ;;  %v2068_v28 = vsel %vm2030_vm2, %v5293_v22, -inf  ;;  %v2067_v30 = vsel %vm2030_vm2, %v5285_v16, -inf }
 0x3ca   : > { %2351 = vmax.xlane.f32.xlu1 %v2064_v33  ;;  %2349 = vmax.xlane.f32.xlu0 %v2063_v49  ;;  %v2070_v33 = vsel %vm2030_vm2, %v5313_v18, -inf  ;;  %v2069_v49 = vsel %vm2030_vm2, %v5305_v12, -inf }
 0x3ce   : > { %2355 = vmax.xlane.f32.xlu1 %v2066_v35  ;;  %2353 = vmax.xlane.f32.xlu0 %v2065_v39  ;;  %v2072_v35 = vsel %vm2030_vm2, %v5309_v14, -inf  ;;  %v2071_v39 = vsel %vm2030_vm2, %v5301_v26, -inf }
 0x3d2   : > { %2359 = vmax.xlane.f32.xlu1 %v2068_v28  ;;  %2357 = vmax.xlane.f32.xlu0 %v2067_v30  ;;  %v2074_v28 = vsel %vm2030_vm2, %v5329_v58, -inf  ;;  %v2073_v30 = vsel %vm2030_vm2, %v5321_v51, -inf }
 0x3d6   : > { %2363 = vmax.xlane.f32.xlu1 %v2070_v33  ;;  %2361 = vmax.xlane.f32.xlu0 %v2069_v49  ;;  %v2076_v33 = vsel %vm2030_vm2, %v5325_v9, -inf  ;;  %v2075_v49 = vsel %vm2030_vm2, %v5317_v8, -inf }
 0x3da   : > { %2367 = vmax.xlane.f32.xlu1 %v2072_v35  ;;  %2365 = vmax.xlane.f32.xlu0 %v2071_v39  ;;  %v2078_v35 = vsel %vm2030_vm2, %v5345_v6, -inf  ;;  %v2077_v39 = vsel %vm2030_vm2, %v5337_v4, -inf }
 0x3de   : > { %2371 = vmax.xlane.f32.xlu1 %v2074_v28  ;;  %2369 = vmax.xlane.f32.xlu0 %v2073_v30  ;;  %v2080_v28 = vsel %vm2030_vm2, %v5341_v2, -inf  ;;  %v2079_v30 = vsel %vm2030_vm2, %v5333_v46, -inf  ;;  %v7989_v46 = vld [vmem:[#allocation18_spill] sm:$0xff] }
 0x3df   : > { %v2108_v2 = vsel %vm2030_vm2, %v7989_v46, -inf }
 0x3e2   : > { %2375 = vmax.xlane.f32.xlu1 %v2076_v33  ;;  %2373 = vmax.xlane.f32.xlu0 %v2075_v49  ;;  %v2082_v33 = vsel %vm2030_vm2, %v5361_v63, -inf  ;;  %v2081_v49 = vsel %vm2030_vm2, %v5353_v61, -inf  ;;  %v2164_v63 = vld [vmem:[%s4791_s17 + $0x18] sm:$0xff] }
 0x3e6   : > { %2379 = vmax.xlane.f32.xlu1 %v2078_v35  ;;  %2377 = vmax.xlane.f32.xlu0 %v2077_v39  ;;  %v2084_v35 = vsel %vm2030_vm2, %v5357_v59, -inf  ;;  %v2083_v39 = vsel %vm2030_vm2, %v5349_v56, -inf  ;;  %v7972_v59 = vld [vmem:[#allocation63_spill] sm:$0xff] }
 0x3e7   : > { %v2087_v56 = vsel %vm2030_vm2, %v7972_v59, -inf }
 0x3ea   : > { %2383 = vmax.xlane.f32.xlu1 %v2080_v28  ;;  %2381 = vmax.xlane.f32.xlu0 %v2079_v30  ;;  %v2086_v28 = vsel %vm2030_vm2, %v5377_v43, -inf  ;;  %v7970_v30 = vld [vmem:[#allocation65_spill] sm:$0xff] }
 0x3eb   : > { %v2085_v61 = vsel %vm2030_vm2, %v7970_v30, -inf }
 0x3ee   : > { %2387 = vmax.xlane.f32.xlu1 %v2082_v33  ;;  %2385 = vmax.xlane.f32.xlu0 %v2081_v49  ;;  %v7971_v33 = vld [vmem:[#allocation67_spill] sm:$0xff] }
 0x3ef   : > { %v2088_v49 = vsel %vm2030_vm2, %v7971_v33, -inf }
 0x3f2   : > { %2391 = vmax.xlane.f32.xlu1 %v2084_v35  ;;  %2389 = vmax.xlane.f32.xlu0 %v2083_v39  ;;  %v2090_v35 = vsel %vm2030_vm2, %v5393_v44, -inf  ;;  %v7973_v39 = vld [vmem:[#allocation73_spill] sm:$0xff] }
 0x3f3   : > { %v2089_v30 = vsel %vm2030_vm2, %v7973_v39, -inf  ;;  %v7988_v44 = vld [vmem:[#allocation17_spill] sm:$0xff] }
 0x3f6   : > { %2395 = vmax.xlane.f32.xlu1 %v2086_v28  ;;  %2393 = vmax.xlane.f32.xlu0 %v2085_v61  ;;  %v2092_v61 = vsel %vm2030_vm2, %v5389_v37, -inf  ;;  %v7974_v28 = vld [vmem:[#allocation71_spill] sm:$0xff]  ;;  %v7978_v37 = vld [vmem:[#allocation2_spill] sm:$0xff] }
 0x3f7   : > { %v2091_v59 = vsel %vm2030_vm2, %v7974_v28, -inf  ;;  %v2095_v28 = vsel %vm2030_vm2, %v7978_v37, -inf }
 0x3fa   : > { %2399 = vmax.xlane.f32.xlu1 %v2088_v49  ;;  %2397 = vmax.xlane.f32.xlu0 %v2087_v56  ;;  %v7975_v56 = vld [vmem:[#allocation7_spill] sm:$0xff]  ;;  %v7976_v49 = vld [vmem:[#allocation4_spill] sm:$0xff] }
 0x3fb   : > { %v2094_v33 = vsel %vm2030_vm2, %v7975_v56, -inf  ;;  %v2093_v39 = vsel %vm2030_vm2, %v7976_v49, -inf  ;;  %v7980_v56 = vld [vmem:[#allocation9_spill] sm:$0xff]  ;;  %v7981_v49 = vld [vmem:[#allocation10_spill] sm:$0xff] }
 0x3fe   : > { %2403 = vmax.xlane.f32.xlu1 %v2090_v35  ;;  %2401 = vmax.xlane.f32.xlu0 %v2089_v30  ;;  %v7977_v35 = vld [vmem:[#allocation6_spill] sm:$0xff] }
 0x3ff   : > { %v2096_v30 = vsel %vm2030_vm2, %v7977_v35, -inf  ;;  %v7982_v35 = vld [vmem:[#allocation8_spill] sm:$0xff] }
 0x400   : > { %v2099_v37 = vsel %vm2030_vm2, %v7982_v35, -inf  ;;  %v2163_v35 = vld [vmem:[%s4791_s17 + $0x10] sm:$0xff] }
 0x402   : > { %2407 = vmax.xlane.f32.xlu1 %v2092_v61  ;;  %2405 = vmax.xlane.f32.xlu0 %v2091_v59  ;;  %v7979_v61 = vld [vmem:[#allocation11_spill] sm:$0xff] }
 0x403   : > { %v2098_v59 = vsel %vm2030_vm2, %v7979_v61, -inf  ;;  %v7984_v61 = vld [vmem:[#allocation13_spill] sm:$0xff] }
 0x406   : > { %2411 = vmax.xlane.f32.xlu1 %v2094_v33  ;;  %2409 = vmax.xlane.f32.xlu0 %v2093_v39  ;;  %v2097_v33 = vsel %vm2030_vm2, %v7980_v56, -inf  ;;  %v2100_v39 = vsel %vm2030_vm2, %v7981_v49, -inf  ;;  %v2101_v56 = vsel %vm2030_vm2, %v7984_v61, -inf  ;;  %v7986_v49 = vld [vmem:[#allocation12_spill] sm:$0xff] }
 0x40a   : > { %2415 = vmax.xlane.f32.xlu1 %v2096_v30  ;;  %2413 = vmax.xlane.f32.xlu0 %v2095_v28  ;;  %v7983_v30 = vld [vmem:[#allocation15_spill] sm:$0xff] }
 0x40b   : > { %v2102_v28 = vsel %vm2030_vm2, %v7983_v30, -inf }
 0x40e   : > { %2419 = vmax.xlane.f32.xlu1 %v2098_v59  ;;  %2417 = vmax.xlane.f32.xlu0 %v2097_v33  ;;  %v7985_v59 = vld [vmem:[#allocation14_spill] sm:$0xff] }
 0x40f   : > { %v2104_v33 = vsel %vm2030_vm2, %v7985_v59, -inf  ;;  %v2105_v59 = vsel %vm2030_vm2, %v7988_v44, -inf  ;;  %v7990_v44 = vld [vmem:[#allocation16_spill] sm:$0xff] }
 0x412   : > { %2423 = vmax.xlane.f32.xlu1 %v2100_v39  ;;  %2421 = vmax.xlane.f32.xlu0 %v2099_v37  ;;  %v2103_v39 = vsel %vm2030_vm2, %v7986_v49, -inf  ;;  %v2161_v37 = vld [vmem:[%s4791_s17] sm:$0xff] }
 0x416   : > { %2427 = vmax.xlane.f32.xlu1 %v2102_v28  ;;  %2425 = vmax.xlane.f32.xlu0 %v2101_v56  ;;  %v7987_v28 = vld [vmem:[#allocation19_spill] sm:$0xff] }
 0x417   : > { %v2106_v56 = vsel %vm2030_vm2, %v7987_v28, -inf }
 0x41a   : > { %2431 = vmax.xlane.f32.xlu1 %v2104_v33  ;;  %2429 = vmax.xlane.f32.xlu0 %v2103_v39  ;;  %v2162_v33 = vld [vmem:[%s4791_s17 + $0x8] sm:$0xff] }
 0x41b   : > { %v2294_v30 = vpop.xlane.xlu1 %2293  ;;  %v2290_v61 = vpop.xlane.xlu0 %2289 }
 0x41c   : > { %v2547_v43 = vmax.f32 %v2163_v35, %v2294_v30  ;;  %v2545_v49 = vmax.f32 %v2161_v37, %v2290_v61  ;;  %v2107_v35 = vsel %vm2030_vm2, %v7990_v44, -inf  ;;  %v2165_v61 = vld [vmem:[%s4791_s17 + $0x20] sm:$0xff]  ;;  %v7992_v44 = vld [vmem:[#allocation21_spill] sm:$0xff] }
 0x41e   : > { %2676 = vst.msk [vmem:[%s4791_s17 + $0x10] sm:$0xff] %vm2673_vm3, %v2547_v43  ;;  %2674 = vst.msk [vmem:[%s4791_s17] sm:$0xff] %vm2673_vm3, %v2545_v49  ;;  %2435 = vmax.xlane.f32.xlu1 %v2106_v56  ;;  %2433 = vmax.xlane.f32.xlu0 %v2105_v59  ;;  %v2166_v43 = vld [vmem:[%s4791_s17 + $0x28] sm:$0xff] }
 0x41f   : > { %v2296_v39 = vpop.xlane.xlu1 %2295  ;;  %v2292_v28 = vpop.xlane.xlu0 %2291  ;;  %v7991_v59 = vld [vmem:[#allocation23_spill] sm:$0xff] }
 0x420   : > { %v2548_v37 = vmax.f32 %v2164_v63, %v2296_v39  ;;  %v2546_v30 = vmax.f32 %v2162_v33, %v2292_v28  ;;  %v2110_v49 = vsel %vm2030_vm2, %v7991_v59, -inf  ;;  %v2109_v63 = vsel %vm2030_vm2, %v7992_v44, -inf  ;;  %v2168_v28 = vld [vmem:[%s4791_s17 + $0x38] sm:$0xff]  ;;  %v7994_v44 = vld [vmem:[#allocation20_spill] sm:$0xff] }
 0x422   : > { %2677 = vst.msk [vmem:[%s4791_s17 + $0x18] sm:$0xff] %vm2673_vm3, %v2548_v37  ;;  %2675 = vst.msk [vmem:[%s4791_s17 + $0x8] sm:$0xff] %vm2673_vm3, %v2546_v30  ;;  %2439 = vmax.xlane.f32.xlu1 %v2108_v2  ;;  %2437 = vmax.xlane.f32.xlu0 %v2107_v35  ;;  %v2167_v37 = vld [vmem:[%s4791_s17 + $0x30] sm:$0xff]  ;;  %v7993_v30 = vld [vmem:[#allocation22_spill] sm:$0xff] }
 0x423   : > { %v2300_v56 = vpop.xlane.xlu1 %2299  ;;  %v2298_v46 = vpop.xlane.xlu0 %2297  ;;  %v2112_v59 = vsel %vm2030_vm2, %v7993_v30, -inf }
 0x424   : > { %v2550_v33 = vmax.f32 %v2166_v43, %v2300_v56  ;;  %v2549_v39 = vmax.f32 %v2165_v61, %v2298_v46  ;;  %v2111_v43 = vsel %vm2030_vm2, %v7994_v44, -inf  ;;  %v2170_v46 = vld [vmem:[%s4791_s17 + $0x48] sm:$0xff]  ;;  %v7996_v44 = vld [vmem:[#allocation25_spill] sm:$0xff] }
 0x426   : > { %2679 = vst.msk [vmem:[%s4791_s17 + $0x28] sm:$0xff] %vm2673_vm3, %v2550_v33  ;;  %2678 = vst.msk [vmem:[%s4791_s17 + $0x20] sm:$0xff] %vm2673_vm3, %v2549_v39  ;;  %2443 = vmax.xlane.f32.xlu1 %v2110_v49  ;;  %2441 = vmax.xlane.f32.xlu0 %v2109_v63  ;;  %v2169_v33 = vld [vmem:[%s4791_s17 + $0x40] sm:$0xff]  ;;  %v7995_v39 = vld [vmem:[#allocation27_spill] sm:$0xff] }
 0x427   : > { %v2304_v2 = vpop.xlane.xlu1 %2303  ;;  %v2302_v35 = vpop.xlane.xlu0 %2301  ;;  %v2114_v30 = vsel %vm2030_vm2, %v7995_v39, -inf }
 0x428   : > { %v2552_v61 = vmax.f32 %v2168_v28, %v2304_v2  ;;  %v2551_v56 = vmax.f32 %v2167_v37, %v2302_v35  ;;  %v2113_v28 = vsel %vm2030_vm2, %v7996_v44, -inf  ;;  %v2172_v35 = vld [vmem:[%s4791_s17 + $0x58] sm:$0xff]  ;;  %v7998_v44 = vld [vmem:[#allocation24_spill] sm:$0xff] }
 0x42a   : > { %2681 = vst.msk [vmem:[%s4791_s17 + $0x38] sm:$0xff] %vm2673_vm3, %v2552_v61  ;;  %2680 = vst.msk [vmem:[%s4791_s17 + $0x30] sm:$0xff] %vm2673_vm3, %v2551_v56  ;;  %2447 = vmax.xlane.f32.xlu1 %v2112_v59  ;;  %2445 = vmax.xlane.f32.xlu0 %v2111_v43  ;;  %v2171_v61 = vld [vmem:[%s4791_s17 + $0x50] sm:$0xff]  ;;  %v7997_v56 = vld [vmem:[#allocation26_spill] sm:$0xff] }
 0x42b   : > { %v2308_v49 = vpop.xlane.xlu1 %2307  ;;  %v2306_v63 = vpop.xlane.xlu0 %2305  ;;  %v2116_v39 = vsel %vm2030_vm2, %v7997_v56, -inf }
 0x42c   : > { %v2554_v37 = vmax.f32 %v2170_v46, %v2308_v49  ;;  %v2553_v2 = vmax.f32 %v2169_v33, %v2306_v63  ;;  %v2115_v46 = vsel %vm2030_vm2, %v7998_v44, -inf  ;;  %v2174_v63 = vld [vmem:[%s4791_s17 + $0x68] sm:$0xff]  ;;  %v8000_v44 = vld [vmem:[#allocation29_spill] sm:$0xff] }
 0x42e   : > { %2683 = vst.msk [vmem:[%s4791_s17 + $0x48] sm:$0xff] %vm2673_vm3, %v2554_v37  ;;  %2682 = vst.msk [vmem:[%s4791_s17 + $0x40] sm:$0xff] %vm2673_vm3, %v2553_v2  ;;  %2451 = vmax.xlane.f32.xlu1 %v2114_v30  ;;  %2449 = vmax.xlane.f32.xlu0 %v2113_v28  ;;  %v2173_v37 = vld [vmem:[%s4791_s17 + $0x60] sm:$0xff]  ;;  %v7999_v2 = vld [vmem:[#allocation31_spill] sm:$0xff] }
 0x42f   : > { %v2312_v59 = vpop.xlane.xlu1 %2311  ;;  %v2310_v43 = vpop.xlane.xlu0 %2309  ;;  %v2118_v56 = vsel %vm2030_vm2, %v7999_v2, -inf }
 0x430   : > { %v2556_v33 = vmax.f32 %v2172_v35, %v2312_v59  ;;  %v2555_v49 = vmax.f32 %v2171_v61, %v2310_v43  ;;  %v2117_v35 = vsel %vm2030_vm2, %v8000_v44, -inf  ;;  %v2176_v43 = vld [vmem:[%s4791_s17 + $0x78] sm:$0xff]  ;;  %v8002_v44 = vld [vmem:[#allocation28_spill] sm:$0xff] }
 0x432   : > { %2685 = vst.msk [vmem:[%s4791_s17 + $0x58] sm:$0xff] %vm2673_vm3, %v2556_v33  ;;  %2684 = vst.msk [vmem:[%s4791_s17 + $0x50] sm:$0xff] %vm2673_vm3, %v2555_v49  ;;  %2455 = vmax.xlane.f32.xlu1 %v2116_v39  ;;  %2453 = vmax.xlane.f32.xlu0 %v2115_v46  ;;  %v2175_v33 = vld [vmem:[%s4791_s17 + $0x70] sm:$0xff]  ;;  %v8001_v49 = vld [vmem:[#allocation30_spill] sm:$0xff] }
 0x433   : > { %v2316_v30 = vpop.xlane.xlu1 %2315  ;;  %v2314_v28 = vpop.xlane.xlu0 %2313  ;;  %v2120_v2 = vsel %vm2030_vm2, %v8001_v49, -inf }
 0x434   : > { %v2558_v61 = vmax.f32 %v2174_v63, %v2316_v30  ;;  %v2557_v59 = vmax.f32 %v2173_v37, %v2314_v28  ;;  %v2119_v63 = vsel %vm2030_vm2, %v8002_v44, -inf  ;;  %v2178_v28 = vld [vmem:[%s4791_s17 + $0x88] sm:$0xff]  ;;  %v8004_v44 = vld [vmem:[#allocation33_spill] sm:$0xff] }
 0x436   : > { %2687 = vst.msk [vmem:[%s4791_s17 + $0x68] sm:$0xff] %vm2673_vm3, %v2558_v61  ;;  %2686 = vst.msk [vmem:[%s4791_s17 + $0x60] sm:$0xff] %vm2673_vm3, %v2557_v59  ;;  %2459 = vmax.xlane.f32.xlu1 %v2118_v56  ;;  %2457 = vmax.xlane.f32.xlu0 %v2117_v35  ;;  %v2177_v61 = vld [vmem:[%s4791_s17 + $0x80] sm:$0xff]  ;;  %v8003_v59 = vld [vmem:[#allocation35_spill] sm:$0xff] }
 0x437   : > { %v2320_v39 = vpop.xlane.xlu1 %2319  ;;  %v2318_v46 = vpop.xlane.xlu0 %2317  ;;  %v2122_v49 = vsel %vm2030_vm2, %v8003_v59, -inf }
 0x438   : > { %v2560_v37 = vmax.f32 %v2176_v43, %v2320_v39  ;;  %v2559_v30 = vmax.f32 %v2175_v33, %v2318_v46  ;;  %v2121_v43 = vsel %vm2030_vm2, %v8004_v44, -inf  ;;  %v2180_v46 = vld [vmem:[%s4791_s17 + $0x98] sm:$0xff]  ;;  %v8006_v44 = vld [vmem:[#allocation32_spill] sm:$0xff] }
 0x43a   : > { %2689 = vst.msk [vmem:[%s4791_s17 + $0x78] sm:$0xff] %vm2673_vm3, %v2560_v37  ;;  %2688 = vst.msk [vmem:[%s4791_s17 + $0x70] sm:$0xff] %vm2673_vm3, %v2559_v30  ;;  %2463 = vmax.xlane.f32.xlu1 %v2120_v2  ;;  %2461 = vmax.xlane.f32.xlu0 %v2119_v63  ;;  %v2179_v37 = vld [vmem:[%s4791_s17 + $0x90] sm:$0xff]  ;;  %v8005_v30 = vld [vmem:[#allocation34_spill] sm:$0xff] }
 0x43b   : > { %v2324_v56 = vpop.xlane.xlu1 %2323  ;;  %v2322_v35 = vpop.xlane.xlu0 %2321  ;;  %v2124_v59 = vsel %vm2030_vm2, %v8005_v30, -inf }
 0x43c   : > { %v2562_v33 = vmax.f32 %v2178_v28, %v2324_v56  ;;  %v2561_v39 = vmax.f32 %v2177_v61, %v2322_v35  ;;  %v2123_v28 = vsel %vm2030_vm2, %v8006_v44, -inf  ;;  %v2182_v35 = vld [vmem:[%s4791_s17 + $0xa8] sm:$0xff]  ;;  %v8008_v44 = vld [vmem:[#allocation37_spill] sm:$0xff] }
 0x43e   : > { %2691 = vst.msk [vmem:[%s4791_s17 + $0x88] sm:$0xff] %vm2673_vm3, %v2562_v33  ;;  %2690 = vst.msk [vmem:[%s4791_s17 + $0x80] sm:$0xff] %vm2673_vm3, %v2561_v39  ;;  %2467 = vmax.xlane.f32.xlu1 %v2122_v49  ;;  %2465 = vmax.xlane.f32.xlu0 %v2121_v43  ;;  %v2181_v33 = vld [vmem:[%s4791_s17 + $0xa0] sm:$0xff]  ;;  %v8007_v39 = vld [vmem:[#allocation39_spill] sm:$0xff] }
 0x43f   : > { %v2328_v2 = vpop.xlane.xlu1 %2327  ;;  %v2326_v63 = vpop.xlane.xlu0 %2325  ;;  %v2126_v30 = vsel %vm2030_vm2, %v8007_v39, -inf }
 0x440   : > { %v2564_v61 = vmax.f32 %v2180_v46, %v2328_v2  ;;  %v2563_v56 = vmax.f32 %v2179_v37, %v2326_v63  ;;  %v2125_v46 = vsel %vm2030_vm2, %v8008_v44, -inf  ;;  %v2184_v63 = vld [vmem:[%s4791_s17 + $0xb8] sm:$0xff]  ;;  %v8010_v44 = vld [vmem:[#allocation36_spill] sm:$0xff] }
 0x442   : > { %2693 = vst.msk [vmem:[%s4791_s17 + $0x98] sm:$0xff] %vm2673_vm3, %v2564_v61  ;;  %2692 = vst.msk [vmem:[%s4791_s17 + $0x90] sm:$0xff] %vm2673_vm3, %v2563_v56  ;;  %2471 = vmax.xlane.f32.xlu1 %v2124_v59  ;;  %2469 = vmax.xlane.f32.xlu0 %v2123_v28  ;;  %v2183_v61 = vld [vmem:[%s4791_s17 + $0xb0] sm:$0xff]  ;;  %v8009_v56 = vld [vmem:[#allocation38_spill] sm:$0xff] }
 0x443   : > { %v2332_v49 = vpop.xlane.xlu1 %2331  ;;  %v2330_v43 = vpop.xlane.xlu0 %2329  ;;  %v2128_v39 = vsel %vm2030_vm2, %v8009_v56, -inf }
 0x444   : > { %v2566_v37 = vmax.f32 %v2182_v35, %v2332_v49  ;;  %v2565_v2 = vmax.f32 %v2181_v33, %v2330_v43  ;;  %v2127_v35 = vsel %vm2030_vm2, %v8010_v44, -inf  ;;  %v2186_v43 = vld [vmem:[%s4791_s17 + $0xc8] sm:$0xff]  ;;  %v8012_v44 = vld [vmem:[#allocation41_spill] sm:$0xff] }
 0x446   : > { %2695 = vst.msk [vmem:[%s4791_s17 + $0xa8] sm:$0xff] %vm2673_vm3, %v2566_v37  ;;  %2694 = vst.msk [vmem:[%s4791_s17 + $0xa0] sm:$0xff] %vm2673_vm3, %v2565_v2  ;;  %2475 = vmax.xlane.f32.xlu1 %v2126_v30  ;;  %2473 = vmax.xlane.f32.xlu0 %v2125_v46  ;;  %v2185_v37 = vld [vmem:[%s4791_s17 + $0xc0] sm:$0xff]  ;;  %v8011_v2 = vld [vmem:[#allocation43_spill] sm:$0xff] }
 0x447   : > { %v2336_v59 = vpop.xlane.xlu1 %2335  ;;  %v2334_v28 = vpop.xlane.xlu0 %2333  ;;  %v2130_v56 = vsel %vm2030_vm2, %v8011_v2, -inf }
 0x448   : > { %v2568_v33 = vmax.f32 %v2184_v63, %v2336_v59  ;;  %v2567_v49 = vmax.f32 %v2183_v61, %v2334_v28  ;;  %v2129_v63 = vsel %vm2030_vm2, %v8012_v44, -inf  ;;  %v2188_v28 = vld [vmem:[%s4791_s17 + $0xd8] sm:$0xff]  ;;  %v8014_v44 = vld [vmem:[#allocation40_spill] sm:$0xff] }
 0x44a   : > { %2697 = vst.msk [vmem:[%s4791_s17 + $0xb8] sm:$0xff] %vm2673_vm3, %v2568_v33  ;;  %2696 = vst.msk [vmem:[%s4791_s17 + $0xb0] sm:$0xff] %vm2673_vm3, %v2567_v49  ;;  %2479 = vmax.xlane.f32.xlu1 %v2128_v39  ;;  %2477 = vmax.xlane.f32.xlu0 %v2127_v35  ;;  %v2187_v33 = vld [vmem:[%s4791_s17 + $0xd0] sm:$0xff]  ;;  %v8013_v49 = vld [vmem:[#allocation42_spill] sm:$0xff] }
 0x44b   : > { %v2340_v30 = vpop.xlane.xlu1 %2339  ;;  %v2338_v46 = vpop.xlane.xlu0 %2337  ;;  %v2132_v2 = vsel %vm2030_vm2, %v8013_v49, -inf }
 0x44c   : > { %v2570_v61 = vmax.f32 %v2186_v43, %v2340_v30  ;;  %v2569_v59 = vmax.f32 %v2185_v37, %v2338_v46  ;;  %v2131_v43 = vsel %vm2030_vm2, %v8014_v44, -inf  ;;  %v2190_v46 = vld [vmem:[%s4791_s17 + $0xe8] sm:$0xff]  ;;  %v8016_v44 = vld [vmem:[#allocation45_spill] sm:$0xff] }
 0x44e   : > { %2699 = vst.msk [vmem:[%s4791_s17 + $0xc8] sm:$0xff] %vm2673_vm3, %v2570_v61  ;;  %2698 = vst.msk [vmem:[%s4791_s17 + $0xc0] sm:$0xff] %vm2673_vm3, %v2569_v59  ;;  %2483 = vmax.xlane.f32.xlu1 %v2130_v56  ;;  %2481 = vmax.xlane.f32.xlu0 %v2129_v63  ;;  %v2189_v61 = vld [vmem:[%s4791_s17 + $0xe0] sm:$0xff]  ;;  %v8015_v59 = vld [vmem:[#allocation47_spill] sm:$0xff] }
 0x44f   : > { %v2344_v39 = vpop.xlane.xlu1 %2343  ;;  %v2342_v35 = vpop.xlane.xlu0 %2341  ;;  %v2134_v49 = vsel %vm2030_vm2, %v8015_v59, -inf }
 0x450   : > { %v2572_v37 = vmax.f32 %v2188_v28, %v2344_v39  ;;  %v2571_v30 = vmax.f32 %v2187_v33, %v2342_v35  ;;  %v2133_v28 = vsel %vm2030_vm2, %v8016_v44, -inf  ;;  %v2192_v35 = vld [vmem:[%s4791_s17 + $0xf8] sm:$0xff]  ;;  %v8018_v44 = vld [vmem:[#allocation44_spill] sm:$0xff] }
 0x452   : > { %2701 = vst.msk [vmem:[%s4791_s17 + $0xd8] sm:$0xff] %vm2673_vm3, %v2572_v37  ;;  %2700 = vst.msk [vmem:[%s4791_s17 + $0xd0] sm:$0xff] %vm2673_vm3, %v2571_v30  ;;  %2487 = vmax.xlane.f32.xlu1 %v2132_v2  ;;  %2485 = vmax.xlane.f32.xlu0 %v2131_v43  ;;  %v2191_v37 = vld [vmem:[%s4791_s17 + $0xf0] sm:$0xff]  ;;  %v8017_v30 = vld [vmem:[#allocation46_spill] sm:$0xff] }
 0x453   : > { %v2348_v56 = vpop.xlane.xlu1 %2347  ;;  %v2346_v63 = vpop.xlane.xlu0 %2345  ;;  %v2136_v59 = vsel %vm2030_vm2, %v8017_v30, -inf }
 0x454   : > { %v2574_v33 = vmax.f32 %v2190_v46, %v2348_v56  ;;  %v2573_v39 = vmax.f32 %v2189_v61, %v2346_v63  ;;  %v2135_v46 = vsel %vm2030_vm2, %v8018_v44, -inf  ;;  %v2194_v63 = vld [vmem:[%s4791_s17 + $0x108] sm:$0xff]  ;;  %v8020_v44 = vld [vmem:[#allocation50_spill] sm:$0xff] }
 0x456   : > { %2703 = vst.msk [vmem:[%s4791_s17 + $0xe8] sm:$0xff] %vm2673_vm3, %v2574_v33  ;;  %2702 = vst.msk [vmem:[%s4791_s17 + $0xe0] sm:$0xff] %vm2673_vm3, %v2573_v39  ;;  %2491 = vmax.xlane.f32.xlu1 %v2134_v49  ;;  %2489 = vmax.xlane.f32.xlu0 %v2133_v28  ;;  %v2193_v33 = vld [vmem:[%s4791_s17 + $0x100] sm:$0xff]  ;;  %v8019_v39 = vld [vmem:[#allocation53_spill] sm:$0xff] }
 0x457   : > { %v2352_v2 = vpop.xlane.xlu1 %2351  ;;  %v2350_v43 = vpop.xlane.xlu0 %2349  ;;  %v2138_v30 = vsel %vm2030_vm2, %v8019_v39, -inf }
 0x458   : > { %v2576_v61 = vmax.f32 %v2192_v35, %v2352_v2  ;;  %v2575_v56 = vmax.f32 %v2191_v37, %v2350_v43  ;;  %v2137_v35 = vsel %vm2030_vm2, %v8020_v44, -inf  ;;  %v2196_v43 = vld [vmem:[%s4791_s17 + $0x118] sm:$0xff]  ;;  %v8022_v44 = vld [vmem:[#allocation48_spill] sm:$0xff] }
 0x45a   : > { %2705 = vst.msk [vmem:[%s4791_s17 + $0xf8] sm:$0xff] %vm2673_vm3, %v2576_v61  ;;  %2704 = vst.msk [vmem:[%s4791_s17 + $0xf0] sm:$0xff] %vm2673_vm3, %v2575_v56  ;;  %2495 = vmax.xlane.f32.xlu1 %v2136_v59  ;;  %2493 = vmax.xlane.f32.xlu0 %v2135_v46  ;;  %v2195_v61 = vld [vmem:[%s4791_s17 + $0x110] sm:$0xff]  ;;  %v8021_v56 = vld [vmem:[#allocation51_spill] sm:$0xff] }
 0x45b   : > { %v2356_v49 = vpop.xlane.xlu1 %2355  ;;  %v2354_v28 = vpop.xlane.xlu0 %2353  ;;  %v2140_v39 = vsel %vm2030_vm2, %v8021_v56, -inf }
 0x45c   : > { %v2578_v37 = vmax.f32 %v2194_v63, %v2356_v49  ;;  %v2577_v2 = vmax.f32 %v2193_v33, %v2354_v28  ;;  %v2139_v63 = vsel %vm2030_vm2, %v8022_v44, -inf  ;;  %v2198_v28 = vld [vmem:[%s4791_s17 + $0x128] sm:$0xff]  ;;  %v8024_v44 = vld [vmem:[#allocation56_spill] sm:$0xff] }
 0x45e   : > { %2707 = vst.msk [vmem:[%s4791_s17 + $0x108] sm:$0xff] %vm2673_vm3, %v2578_v37  ;;  %2706 = vst.msk [vmem:[%s4791_s17 + $0x100] sm:$0xff] %vm2673_vm3, %v2577_v2  ;;  %2499 = vmax.xlane.f32.xlu1 %v2138_v30  ;;  %2497 = vmax.xlane.f32.xlu0 %v2137_v35  ;;  %v2197_v37 = vld [vmem:[%s4791_s17 + $0x120] sm:$0xff]  ;;  %v8023_v2 = vld [vmem:[#allocation60_spill] sm:$0xff] }
 0x45f   : > { %v2360_v59 = vpop.xlane.xlu1 %2359  ;;  %v2358_v46 = vpop.xlane.xlu0 %2357  ;;  %v2142_v56 = vsel %vm2030_vm2, %v8023_v2, -inf }
 0x460   : > { %v2580_v33 = vmax.f32 %v2196_v43, %v2360_v59  ;;  %v2579_v49 = vmax.f32 %v2195_v61, %v2358_v46  ;;  %v2141_v43 = vsel %vm2030_vm2, %v8024_v44, -inf  ;;  %v2200_v46 = vld [vmem:[%s4791_s17 + $0x138] sm:$0xff]  ;;  %v8026_v44 = vld [vmem:[#allocation54_spill] sm:$0xff] }
 0x462   : > { %2709 = vst.msk [vmem:[%s4791_s17 + $0x118] sm:$0xff] %vm2673_vm3, %v2580_v33  ;;  %2708 = vst.msk [vmem:[%s4791_s17 + $0x110] sm:$0xff] %vm2673_vm3, %v2579_v49  ;;  %2503 = vmax.xlane.f32.xlu1 %v2140_v39  ;;  %2501 = vmax.xlane.f32.xlu0 %v2139_v63  ;;  %v2199_v33 = vld [vmem:[%s4791_s17 + $0x130] sm:$0xff]  ;;  %v8025_v49 = vld [vmem:[#allocation58_spill] sm:$0xff] }
 0x463   : > { %v2364_v30 = vpop.xlane.xlu1 %2363  ;;  %v2362_v35 = vpop.xlane.xlu0 %2361  ;;  %v2144_v2 = vsel %vm2030_vm2, %v8025_v49, -inf }
 0x464   : > { %v2582_v61 = vmax.f32 %v2198_v28, %v2364_v30  ;;  %v2581_v59 = vmax.f32 %v2197_v37, %v2362_v35  ;;  %v2143_v28 = vsel %vm2030_vm2, %v8026_v44, -inf  ;;  %v2202_v35 = vld [vmem:[%s4791_s17 + $0x148] sm:$0xff]  ;;  %v8028_v44 = vld [vmem:[#allocation64_spill] sm:$0xff] }
 0x466   : > { %2711 = vst.msk [vmem:[%s4791_s17 + $0x128] sm:$0xff] %vm2673_vm3, %v2582_v61  ;;  %2710 = vst.msk [vmem:[%s4791_s17 + $0x120] sm:$0xff] %vm2673_vm3, %v2581_v59  ;;  %2507 = vmax.xlane.f32.xlu1 %v2142_v56  ;;  %2505 = vmax.xlane.f32.xlu0 %v2141_v43  ;;  %v2201_v61 = vld [vmem:[%s4791_s17 + $0x140] sm:$0xff]  ;;  %v8027_v59 = vld [vmem:[#allocation68_spill] sm:$0xff] }
 0x467   : > { %v2368_v39 = vpop.xlane.xlu1 %2367  ;;  %v2366_v63 = vpop.xlane.xlu0 %2365  ;;  %v2146_v49 = vsel %vm2030_vm2, %v8027_v59, -inf }
 0x468   : > { %v2584_v37 = vmax.f32 %v2200_v46, %v2368_v39  ;;  %v2583_v30 = vmax.f32 %v2199_v33, %v2366_v63  ;;  %v2145_v46 = vsel %vm2030_vm2, %v8028_v44, -inf  ;;  %v2204_v63 = vld [vmem:[%s4791_s17 + $0x158] sm:$0xff]  ;;  %v8030_v44 = vld [vmem:[#allocation62_spill] sm:$0xff] }
 0x46a   : > { %2713 = vst.msk [vmem:[%s4791_s17 + $0x138] sm:$0xff] %vm2673_vm3, %v2584_v37  ;;  %2712 = vst.msk [vmem:[%s4791_s17 + $0x130] sm:$0xff] %vm2673_vm3, %v2583_v30  ;;  %2511 = vmax.xlane.f32.xlu1 %v2144_v2  ;;  %2509 = vmax.xlane.f32.xlu0 %v2143_v28  ;;  %v2203_v37 = vld [vmem:[%s4791_s17 + $0x150] sm:$0xff]  ;;  %v8029_v30 = vld [vmem:[#allocation66_spill] sm:$0xff] }
 0x46b   : > { %v2372_v56 = vpop.xlane.xlu1 %2371  ;;  %v2370_v43 = vpop.xlane.xlu0 %2369  ;;  %v2148_v59 = vsel %vm2030_vm2, %v8029_v30, -inf  ;;  %v8031_v30 = vld [vmem:[#allocation72_spill] sm:$0xff] }
 0x46c   : > { %v2586_v33 = vmax.f32 %v2202_v35, %v2372_v56  ;;  %v2585_v39 = vmax.f32 %v2201_v61, %v2370_v43  ;;  %v2147_v35 = vsel %vm2030_vm2, %v8030_v44, -inf  ;;  %v2206_v43 = vld [vmem:[%s4791_s17 + $0x168] sm:$0xff]  ;;  %v2207_v44 = vld [vmem:[%s4791_s17 + $0x170] sm:$0xff] }
 0x46e   : > { %2715 = vst.msk [vmem:[%s4791_s17 + $0x148] sm:$0xff] %vm2673_vm3, %v2586_v33  ;;  %2714 = vst.msk [vmem:[%s4791_s17 + $0x140] sm:$0xff] %vm2673_vm3, %v2585_v39  ;;  %2515 = vmax.xlane.f32.xlu1 %v2146_v49  ;;  %2513 = vmax.xlane.f32.xlu0 %v2145_v46  ;;  %v2205_v33 = vld [vmem:[%s4791_s17 + $0x160] sm:$0xff]  ;;  %v2150_v39 = vsel %vm2030_vm2, %v5391_v47, -inf }
 0x46f   : > { %v2376_v2 = vpop.xlane.xlu1 %2375  ;;  %v2374_v28 = vpop.xlane.xlu0 %2373 }
 0x470   : > { %v2588_v61 = vmax.f32 %v2204_v63, %v2376_v2  ;;  %v2587_v56 = vmax.f32 %v2203_v37, %v2374_v28  ;;  %v2149_v63 = vsel %vm2030_vm2, %v8031_v30, -inf  ;;  %v2208_v28 = vld [vmem:[%s4791_s17 + $0x178] sm:$0xff]  ;;  %v8033_v30 = vld [vmem:[#allocation70_spill] sm:$0xff] }
 0x472   : > { %2717 = vst.msk [vmem:[%s4791_s17 + $0x158] sm:$0xff] %vm2673_vm3, %v2588_v61  ;;  %2716 = vst.msk [vmem:[%s4791_s17 + $0x150] sm:$0xff] %vm2673_vm3, %v2587_v56  ;;  %2519 = vmax.xlane.f32.xlu1 %v2148_v59  ;;  %2517 = vmax.xlane.f32.xlu0 %v2147_v35  ;;  %v8032_v61 = vld [vmem:[#allocation74_spill] sm:$0xff] }
 0x473   : > { %v2380_v49 = vpop.xlane.xlu1 %2379  ;;  %v2378_v46 = vpop.xlane.xlu0 %2377  ;;  %v2152_v56 = vsel %vm2030_vm2, %v8032_v61, -inf  ;;  %v2211_v61 = vld [vmem:[%s4791_s17 + $0x190] sm:$0xff] }
 0x474   : > { %v2590_v37 = vmax.f32 %v2206_v43, %v2380_v49  ;;  %v2589_v2 = vmax.f32 %v2205_v33, %v2378_v46  ;;  %v2151_v43 = vsel %vm2030_vm2, %v8033_v30, -inf  ;;  %v2210_v46 = vld [vmem:[%s4791_s17 + $0x188] sm:$0xff] }
 0x476   : > { %2719 = vst.msk [vmem:[%s4791_s17 + $0x168] sm:$0xff] %vm2673_vm3, %v2590_v37  ;;  %2718 = vst.msk [vmem:[%s4791_s17 + $0x160] sm:$0xff] %vm2673_vm3, %v2589_v2  ;;  %2523 = vmax.xlane.f32.xlu1 %v2150_v39  ;;  %2521 = vmax.xlane.f32.xlu0 %v2149_v63  ;;  %v2209_v37 = vld [vmem:[%s4791_s17 + $0x180] sm:$0xff]  ;;  %v2154_v2 = vsel %vm2030_vm2, %v5401_v31, -inf }
 0x477   : > { %v2384_v59 = vpop.xlane.xlu1 %2383  ;;  %v2382_v35 = vpop.xlane.xlu0 %2381 }
 0x478   : > { %v2592_v33 = vmax.f32 %v2208_v28, %v2384_v59  ;;  %v2591_v49 = vmax.f32 %v2207_v44, %v2382_v35  ;;  %v2153_v28 = vsel %vm2030_vm2, %v5397_v27, -inf  ;;  %v2212_v35 = vld [vmem:[%s4791_s17 + $0x198] sm:$0xff] }
 0x47a   : > { %2721 = vst.msk [vmem:[%s4791_s17 + $0x178] sm:$0xff] %vm2673_vm3, %v2592_v33  ;;  %2720 = vst.msk [vmem:[%s4791_s17 + $0x170] sm:$0xff] %vm2673_vm3, %v2591_v49  ;;  %2527 = vmax.xlane.f32.xlu1 %v2152_v56  ;;  %2525 = vmax.xlane.f32.xlu0 %v2151_v43  ;;  %v2156_v43 = vsel %vm2030_vm2, %v5399_v52, -inf  ;;  %v8034_v33 = vld [vmem:[#allocation77_spill] sm:$0xff] }
 0x47b   : > { %v2388_v39 = vpop.xlane.xlu1 %2387  ;;  %v2386_v63 = vpop.xlane.xlu0 %2385  ;;  %v2155_v49 = vsel %vm2030_vm2, %v8034_v33, -inf  ;;  %v8036_v33 = vld [vmem:[#allocation79_spill] sm:$0xff] }
 0x47c   : > { %v2594_v44 = vmax.f32 %v2210_v46, %v2388_v39  ;;  %v2593_v59 = vmax.f32 %v2209_v37, %v2386_v63  ;;  %v2214_v39 = vld [vmem:[%s4791_s17 + $0x1a8] sm:$0xff]  ;;  %v2213_v63 = vld [vmem:[%s4791_s17 + $0x1a0] sm:$0xff] }
 0x47e   : > { %2723 = vst.msk [vmem:[%s4791_s17 + $0x188] sm:$0xff] %vm2673_vm3, %v2594_v44  ;;  %2722 = vst.msk [vmem:[%s4791_s17 + $0x180] sm:$0xff] %vm2673_vm3, %v2593_v59  ;;  %2531 = vmax.xlane.f32.xlu1 %v2154_v2  ;;  %2529 = vmax.xlane.f32.xlu0 %v2153_v28  ;;  %v8035_v44 = vld [vmem:[#allocation81_spill] sm:$0xff] }
 0x47f   : > { %v2392_v56 = vpop.xlane.xlu1 %2391  ;;  %v2390_v30 = vpop.xlane.xlu0 %2389  ;;  %v2158_v59 = vsel %vm2030_vm2, %v8035_v44, -inf }
 0x480   : > { %v2596_v46 = vmax.f32 %v2212_v35, %v2392_v56  ;;  %v2595_v37 = vmax.f32 %v2211_v61, %v2390_v30  ;;  %v2157_v35 = vsel %vm2030_vm2, %v8036_v33, -inf  ;;  %v2216_v30 = vld [vmem:[%s4791_s17 + $0x1b8] sm:$0xff]  ;;  %v2218_v33 = vld [vmem:[%s4791_s17 + $0x1c8] sm:$0xff] }
 0x482   : > { %2725 = vst.msk [vmem:[%s4791_s17 + $0x198] sm:$0xff] %vm2673_vm3, %v2596_v46  ;;  %2724 = vst.msk [vmem:[%s4791_s17 + $0x190] sm:$0xff] %vm2673_vm3, %v2595_v37  ;;  %2535 = vmax.xlane.f32.xlu1 %v2156_v43  ;;  %2533 = vmax.xlane.f32.xlu0 %v2155_v49  ;;  %v2215_v46 = vld [vmem:[%s4791_s17 + $0x1b0] sm:$0xff] }
 0x483   : > { %v2396_v2 = vpop.xlane.xlu1 %2395  ;;  %v2394_v28 = vpop.xlane.xlu0 %2393  ;;  %v8037_v37 = vld [vmem:[#allocation80_spill] sm:$0xff] }
 0x484   : > { %v2598_v61 = vmax.f32 %v2214_v39, %v2396_v2  ;;  %v2597_v56 = vmax.f32 %v2213_v63, %v2394_v28  ;;  %v2160_v44 = vsel %vm2030_vm2, %v8037_v37, -inf  ;;  %v8038_v39 = vld [vmem:[#allocation78_spill] sm:$0xff]  ;;  %v2220_v37 = vld [vmem:[%s4791_s17 + $0x1d8] sm:$0xff] }
 0x485   : > { %v2159_v63 = vsel %vm2030_vm2, %v8038_v39, -inf  ;;  %v2222_v39 = vld [vmem:[%s4791_s17 + $0x1e8] sm:$0xff] }
 0x486   : > { %2727 = vst.msk [vmem:[%s4791_s17 + $0x1a8] sm:$0xff] %vm2673_vm3, %v2598_v61  ;;  %2726 = vst.msk [vmem:[%s4791_s17 + $0x1a0] sm:$0xff] %vm2673_vm3, %v2597_v56  ;;  %2539 = vmax.xlane.f32.xlu1 %v2158_v59  ;;  %2537 = vmax.xlane.f32.xlu0 %v2157_v35  ;;  %v2217_v61 = vld [vmem:[%s4791_s17 + $0x1c0] sm:$0xff] }
 0x487   : > { %v2400_v43 = vpop.xlane.xlu1 %2399  ;;  %v2398_v49 = vpop.xlane.xlu0 %2397 }
 0x488   : > { %v2600_v2 = vmax.f32 %v2216_v30, %v2400_v43  ;;  %v2599_v28 = vmax.f32 %v2215_v46, %v2398_v49  ;;  %v2219_v30 = vld [vmem:[%s4791_s17 + $0x1d0] sm:$0xff] }
 0x48a   : > { %2729 = vst.msk [vmem:[%s4791_s17 + $0x1b8] sm:$0xff] %vm2673_vm3, %v2600_v2  ;;  %2728 = vst.msk [vmem:[%s4791_s17 + $0x1b0] sm:$0xff] %vm2673_vm3, %v2599_v28  ;;  %2543 = vmax.xlane.f32.xlu1 %v2160_v44  ;;  %2541 = vmax.xlane.f32.xlu0 %v2159_v63  ;;  %v2221_v63 = vld [vmem:[%s4791_s17 + $0x1e0] sm:$0xff] }
 0x48b   : > { %v2404_v59 = vpop.xlane.xlu1 %2403  ;;  %v2402_v35 = vpop.xlane.xlu0 %2401 }
 0x48c   : > { %v2602_v29 = vmax.f32 %v2218_v33, %v2404_v59  ;;  %v2601_v56 = vmax.f32 %v2217_v61, %v2402_v35  ;;  %v2224_v59 = vld [vmem:[%s4791_s17 + $0x1f8] sm:$0xff]  ;;  %v2223_v35 = vld [vmem:[%s4791_s17 + $0x1f0] sm:$0xff] }
 0x48e   : > { %2731 = vst.msk [vmem:[%s4791_s17 + $0x1c8] sm:$0xff] %vm2673_vm3, %v2602_v29  ;;  %2730 = vst.msk [vmem:[%s4791_s17 + $0x1c0] sm:$0xff] %vm2673_vm3, %v2601_v56 }
 0x48f   : > { %v2408_v46 = vpop.xlane.xlu1 %2407  ;;  %v2406_v43 = vpop.xlane.xlu0 %2405 }
 0x490   : > { %v2604_v49 = vmax.f32 %v2220_v37, %v2408_v46  ;;  %v2603_v44 = vmax.f32 %v2219_v30, %v2406_v43  ;;  %v2226_v46 = vld [vmem:[%s4791_s17 + $0x208] sm:$0xff]  ;;  %v2225_v43 = vld [vmem:[%s4791_s17 + $0x200] sm:$0xff] }
 0x492   : > { %2733 = vst.msk [vmem:[%s4791_s17 + $0x1d8] sm:$0xff] %vm2673_vm3, %v2604_v49  ;;  %2732 = vst.msk [vmem:[%s4791_s17 + $0x1d0] sm:$0xff] %vm2673_vm3, %v2603_v44 }
 0x493   : > { %v2412_v2 = vpop.xlane.xlu1 %2411  ;;  %v2410_v28 = vpop.xlane.xlu0 %2409 }
 0x494   : > { %v2606_v33 = vmax.f32 %v2222_v39, %v2412_v2  ;;  %v2605_v61 = vmax.f32 %v2221_v63, %v2410_v28  ;;  %v2228_v2 = vld [vmem:[%s4791_s17 + $0x218] sm:$0xff]  ;;  %v2227_v28 = vld [vmem:[%s4791_s17 + $0x210] sm:$0xff] }
 0x496   : > { %2735 = vst.msk [vmem:[%s4791_s17 + $0x1e8] sm:$0xff] %vm2673_vm3, %v2606_v33  ;;  %2734 = vst.msk [vmem:[%s4791_s17 + $0x1e0] sm:$0xff] %vm2673_vm3, %v2605_v61 }
 0x497   : > { %v2416_v29 = vpop.xlane.xlu1 %2415  ;;  %v2414_v56 = vpop.xlane.xlu0 %2413 }
 0x498   : > { %v2608_v37 = vmax.f32 %v2224_v59, %v2416_v29  ;;  %v2607_v30 = vmax.f32 %v2223_v35, %v2414_v56  ;;  %v2230_v29 = vld [vmem:[%s4791_s17 + $0x228] sm:$0xff]  ;;  %v2229_v56 = vld [vmem:[%s4791_s17 + $0x220] sm:$0xff] }
 0x49a   : > { %2737 = vst.msk [vmem:[%s4791_s17 + $0x1f8] sm:$0xff] %vm2673_vm3, %v2608_v37  ;;  %2736 = vst.msk [vmem:[%s4791_s17 + $0x1f0] sm:$0xff] %vm2673_vm3, %v2607_v30 }
 0x49b   : > { %v2420_v49 = vpop.xlane.xlu1 %2419  ;;  %v2418_v44 = vpop.xlane.xlu0 %2417 }
 0x49c   : > { %v2610_v39 = vmax.f32 %v2226_v46, %v2420_v49  ;;  %v2609_v63 = vmax.f32 %v2225_v43, %v2418_v44  ;;  %v2232_v49 = vld [vmem:[%s4791_s17 + $0x238] sm:$0xff]  ;;  %v2231_v44 = vld [vmem:[%s4791_s17 + $0x230] sm:$0xff] }
 0x49e   : > { %2739 = vst.msk [vmem:[%s4791_s17 + $0x208] sm:$0xff] %vm2673_vm3, %v2610_v39  ;;  %2738 = vst.msk [vmem:[%s4791_s17 + $0x200] sm:$0xff] %vm2673_vm3, %v2609_v63 }
 0x49f   : > { %v2424_v33 = vpop.xlane.xlu1 %2423  ;;  %v2422_v61 = vpop.xlane.xlu0 %2421 }
 0x4a0   : > { %v2612_v59 = vmax.f32 %v2228_v2, %v2424_v33  ;;  %v2611_v35 = vmax.f32 %v2227_v28, %v2422_v61  ;;  %v2234_v33 = vld [vmem:[%s4791_s17 + $0x248] sm:$0xff]  ;;  %v2233_v61 = vld [vmem:[%s4791_s17 + $0x240] sm:$0xff] }
 0x4a2   : > { %2741 = vst.msk [vmem:[%s4791_s17 + $0x218] sm:$0xff] %vm2673_vm3, %v2612_v59  ;;  %2740 = vst.msk [vmem:[%s4791_s17 + $0x210] sm:$0xff] %vm2673_vm3, %v2611_v35 }
 0x4a3   : > { %v2428_v37 = vpop.xlane.xlu1 %2427  ;;  %v2426_v30 = vpop.xlane.xlu0 %2425 }
 0x4a4   : > { %v2614_v46 = vmax.f32 %v2230_v29, %v2428_v37  ;;  %v2613_v43 = vmax.f32 %v2229_v56, %v2426_v30  ;;  %v2236_v37 = vld [vmem:[%s4791_s17 + $0x258] sm:$0xff]  ;;  %v2235_v30 = vld [vmem:[%s4791_s17 + $0x250] sm:$0xff] }
 0x4a6   : > { %2743 = vst.msk [vmem:[%s4791_s17 + $0x228] sm:$0xff] %vm2673_vm3, %v2614_v46  ;;  %2742 = vst.msk [vmem:[%s4791_s17 + $0x220] sm:$0xff] %vm2673_vm3, %v2613_v43 }
 0x4a7   : > { %v2432_v39 = vpop.xlane.xlu1 %2431  ;;  %v2430_v63 = vpop.xlane.xlu0 %2429 }
 0x4a8   : > { %v2616_v2 = vmax.f32 %v2232_v49, %v2432_v39  ;;  %v2615_v28 = vmax.f32 %v2231_v44, %v2430_v63  ;;  %v2238_v39 = vld [vmem:[%s4791_s17 + $0x268] sm:$0xff]  ;;  %v2237_v63 = vld [vmem:[%s4791_s17 + $0x260] sm:$0xff] }
 0x4aa   : > { %2745 = vst.msk [vmem:[%s4791_s17 + $0x238] sm:$0xff] %vm2673_vm3, %v2616_v2  ;;  %2744 = vst.msk [vmem:[%s4791_s17 + $0x230] sm:$0xff] %vm2673_vm3, %v2615_v28 }
 0x4ab   : > { %v2436_v59 = vpop.xlane.xlu1 %2435  ;;  %v2434_v35 = vpop.xlane.xlu0 %2433 }
 0x4ac   : > { %v2618_v29 = vmax.f32 %v2234_v33, %v2436_v59  ;;  %v2617_v56 = vmax.f32 %v2233_v61, %v2434_v35  ;;  %v2240_v59 = vld [vmem:[%s4791_s17 + $0x278] sm:$0xff]  ;;  %v2239_v35 = vld [vmem:[%s4791_s17 + $0x270] sm:$0xff] }
 0x4ae   : > { %2747 = vst.msk [vmem:[%s4791_s17 + $0x248] sm:$0xff] %vm2673_vm3, %v2618_v29  ;;  %2746 = vst.msk [vmem:[%s4791_s17 + $0x240] sm:$0xff] %vm2673_vm3, %v2617_v56 }
 0x4af   : > { %v2440_v46 = vpop.xlane.xlu1 %2439  ;;  %v2438_v43 = vpop.xlane.xlu0 %2437 }
 0x4b0   : > { %v2620_v49 = vmax.f32 %v2236_v37, %v2440_v46  ;;  %v2619_v44 = vmax.f32 %v2235_v30, %v2438_v43  ;;  %v2242_v46 = vld [vmem:[%s4791_s17 + $0x288] sm:$0xff]  ;;  %v2241_v43 = vld [vmem:[%s4791_s17 + $0x280] sm:$0xff] }
 0x4b2   : > { %2749 = vst.msk [vmem:[%s4791_s17 + $0x258] sm:$0xff] %vm2673_vm3, %v2620_v49  ;;  %2748 = vst.msk [vmem:[%s4791_s17 + $0x250] sm:$0xff] %vm2673_vm3, %v2619_v44 }
 0x4b3   : > { %v2444_v2 = vpop.xlane.xlu1 %2443  ;;  %v2442_v28 = vpop.xlane.xlu0 %2441 }
 0x4b4   : > { %v2622_v33 = vmax.f32 %v2238_v39, %v2444_v2  ;;  %v2621_v61 = vmax.f32 %v2237_v63, %v2442_v28  ;;  %v2244_v2 = vld [vmem:[%s4791_s17 + $0x298] sm:$0xff]  ;;  %v2243_v28 = vld [vmem:[%s4791_s17 + $0x290] sm:$0xff] }
 0x4b6   : > { %2751 = vst.msk [vmem:[%s4791_s17 + $0x268] sm:$0xff] %vm2673_vm3, %v2622_v33  ;;  %2750 = vst.msk [vmem:[%s4791_s17 + $0x260] sm:$0xff] %vm2673_vm3, %v2621_v61 }
 0x4b7   : > { %v2448_v29 = vpop.xlane.xlu1 %2447  ;;  %v2446_v56 = vpop.xlane.xlu0 %2445 }
 0x4b8   : > { %v2624_v37 = vmax.f32 %v2240_v59, %v2448_v29  ;;  %v2623_v30 = vmax.f32 %v2239_v35, %v2446_v56  ;;  %v2246_v29 = vld [vmem:[%s4791_s17 + $0x2a8] sm:$0xff]  ;;  %v2245_v56 = vld [vmem:[%s4791_s17 + $0x2a0] sm:$0xff] }
 0x4ba   : > { %2753 = vst.msk [vmem:[%s4791_s17 + $0x278] sm:$0xff] %vm2673_vm3, %v2624_v37  ;;  %2752 = vst.msk [vmem:[%s4791_s17 + $0x270] sm:$0xff] %vm2673_vm3, %v2623_v30 }
 0x4bb   : > { %v2452_v49 = vpop.xlane.xlu1 %2451  ;;  %v2450_v44 = vpop.xlane.xlu0 %2449 }
 0x4bc   : > { %v2626_v39 = vmax.f32 %v2242_v46, %v2452_v49  ;;  %v2625_v63 = vmax.f32 %v2241_v43, %v2450_v44  ;;  %v2248_v49 = vld [vmem:[%s4791_s17 + $0x2b8] sm:$0xff]  ;;  %v2247_v44 = vld [vmem:[%s4791_s17 + $0x2b0] sm:$0xff] }
 0x4be   : > { %2755 = vst.msk [vmem:[%s4791_s17 + $0x288] sm:$0xff] %vm2673_vm3, %v2626_v39  ;;  %2754 = vst.msk [vmem:[%s4791_s17 + $0x280] sm:$0xff] %vm2673_vm3, %v2625_v63 }
 0x4bf   : > { %v2456_v33 = vpop.xlane.xlu1 %2455  ;;  %v2454_v61 = vpop.xlane.xlu0 %2453 }
 0x4c0   : > { %v2628_v59 = vmax.f32 %v2244_v2, %v2456_v33  ;;  %v2627_v35 = vmax.f32 %v2243_v28, %v2454_v61  ;;  %v2250_v33 = vld [vmem:[%s4791_s17 + $0x2c8] sm:$0xff]  ;;  %v2249_v61 = vld [vmem:[%s4791_s17 + $0x2c0] sm:$0xff] }
 0x4c2   : > { %2757 = vst.msk [vmem:[%s4791_s17 + $0x298] sm:$0xff] %vm2673_vm3, %v2628_v59  ;;  %2756 = vst.msk [vmem:[%s4791_s17 + $0x290] sm:$0xff] %vm2673_vm3, %v2627_v35 }
 0x4c3   : > { %v2460_v37 = vpop.xlane.xlu1 %2459  ;;  %v2458_v30 = vpop.xlane.xlu0 %2457 }
 0x4c4   : > { %v2630_v46 = vmax.f32 %v2246_v29, %v2460_v37  ;;  %v2629_v43 = vmax.f32 %v2245_v56, %v2458_v30  ;;  %v2252_v37 = vld [vmem:[%s4791_s17 + $0x2d8] sm:$0xff]  ;;  %v2251_v30 = vld [vmem:[%s4791_s17 + $0x2d0] sm:$0xff] }
 0x4c6   : > { %2759 = vst.msk [vmem:[%s4791_s17 + $0x2a8] sm:$0xff] %vm2673_vm3, %v2630_v46  ;;  %2758 = vst.msk [vmem:[%s4791_s17 + $0x2a0] sm:$0xff] %vm2673_vm3, %v2629_v43 }
 0x4c7   : > { %v2464_v39 = vpop.xlane.xlu1 %2463  ;;  %v2462_v63 = vpop.xlane.xlu0 %2461 }
 0x4c8   : > { %v2632_v2 = vmax.f32 %v2248_v49, %v2464_v39  ;;  %v2631_v28 = vmax.f32 %v2247_v44, %v2462_v63  ;;  %v2254_v39 = vld [vmem:[%s4791_s17 + $0x2e8] sm:$0xff]  ;;  %v2253_v63 = vld [vmem:[%s4791_s17 + $0x2e0] sm:$0xff] }
 0x4ca   : > { %2761 = vst.msk [vmem:[%s4791_s17 + $0x2b8] sm:$0xff] %vm2673_vm3, %v2632_v2  ;;  %2760 = vst.msk [vmem:[%s4791_s17 + $0x2b0] sm:$0xff] %vm2673_vm3, %v2631_v28 }
 0x4cb   : > { %v2468_v59 = vpop.xlane.xlu1 %2467  ;;  %v2466_v35 = vpop.xlane.xlu0 %2465 }
 0x4cc   : > { %v2634_v29 = vmax.f32 %v2250_v33, %v2468_v59  ;;  %v2633_v56 = vmax.f32 %v2249_v61, %v2466_v35  ;;  %v2256_v59 = vld [vmem:[%s4791_s17 + $0x2f8] sm:$0xff]  ;;  %v2255_v35 = vld [vmem:[%s4791_s17 + $0x2f0] sm:$0xff] }
 0x4ce   : > { %2763 = vst.msk [vmem:[%s4791_s17 + $0x2c8] sm:$0xff] %vm2673_vm3, %v2634_v29  ;;  %2762 = vst.msk [vmem:[%s4791_s17 + $0x2c0] sm:$0xff] %vm2673_vm3, %v2633_v56 }
 0x4cf   : > { %v2472_v46 = vpop.xlane.xlu1 %2471  ;;  %v2470_v43 = vpop.xlane.xlu0 %2469 }
 0x4d0   : > { %v2636_v49 = vmax.f32 %v2252_v37, %v2472_v46  ;;  %v2635_v44 = vmax.f32 %v2251_v30, %v2470_v43  ;;  %v2258_v46 = vld [vmem:[%s4791_s17 + $0x308] sm:$0xff]  ;;  %v2257_v43 = vld [vmem:[%s4791_s17 + $0x300] sm:$0xff] }
 0x4d2   : > { %2765 = vst.msk [vmem:[%s4791_s17 + $0x2d8] sm:$0xff] %vm2673_vm3, %v2636_v49  ;;  %2764 = vst.msk [vmem:[%s4791_s17 + $0x2d0] sm:$0xff] %vm2673_vm3, %v2635_v44 }
 0x4d3   : > { %v2476_v2 = vpop.xlane.xlu1 %2475  ;;  %v2474_v28 = vpop.xlane.xlu0 %2473 }
 0x4d4   : > { %v2638_v33 = vmax.f32 %v2254_v39, %v2476_v2  ;;  %v2637_v61 = vmax.f32 %v2253_v63, %v2474_v28  ;;  %v2260_v2 = vld [vmem:[%s4791_s17 + $0x318] sm:$0xff]  ;;  %v2259_v28 = vld [vmem:[%s4791_s17 + $0x310] sm:$0xff] }
 0x4d6   : > { %2767 = vst.msk [vmem:[%s4791_s17 + $0x2e8] sm:$0xff] %vm2673_vm3, %v2638_v33  ;;  %2766 = vst.msk [vmem:[%s4791_s17 + $0x2e0] sm:$0xff] %vm2673_vm3, %v2637_v61 }
 0x4d7   : > { %v2480_v29 = vpop.xlane.xlu1 %2479  ;;  %v2478_v56 = vpop.xlane.xlu0 %2477 }
 0x4d8   : > { %v2640_v37 = vmax.f32 %v2256_v59, %v2480_v29  ;;  %v2639_v30 = vmax.f32 %v2255_v35, %v2478_v56  ;;  %v2262_v29 = vld [vmem:[%s4791_s17 + $0x328] sm:$0xff]  ;;  %v2261_v56 = vld [vmem:[%s4791_s17 + $0x320] sm:$0xff] }
 0x4da   : > { %2769 = vst.msk [vmem:[%s4791_s17 + $0x2f8] sm:$0xff] %vm2673_vm3, %v2640_v37  ;;  %2768 = vst.msk [vmem:[%s4791_s17 + $0x2f0] sm:$0xff] %vm2673_vm3, %v2639_v30 }
 0x4db   : > { %v2484_v49 = vpop.xlane.xlu1 %2483  ;;  %v2482_v44 = vpop.xlane.xlu0 %2481 }
 0x4dc   : > { %v2642_v39 = vmax.f32 %v2258_v46, %v2484_v49  ;;  %v2641_v63 = vmax.f32 %v2257_v43, %v2482_v44  ;;  %v2264_v49 = vld [vmem:[%s4791_s17 + $0x338] sm:$0xff]  ;;  %v2263_v44 = vld [vmem:[%s4791_s17 + $0x330] sm:$0xff] }
 0x4de   : > { %2771 = vst.msk [vmem:[%s4791_s17 + $0x308] sm:$0xff] %vm2673_vm3, %v2642_v39  ;;  %2770 = vst.msk [vmem:[%s4791_s17 + $0x300] sm:$0xff] %vm2673_vm3, %v2641_v63 }
 0x4df   : > { %v2488_v33 = vpop.xlane.xlu1 %2487  ;;  %v2486_v61 = vpop.xlane.xlu0 %2485 }
 0x4e0   : > { %v2644_v59 = vmax.f32 %v2260_v2, %v2488_v33  ;;  %v2643_v35 = vmax.f32 %v2259_v28, %v2486_v61  ;;  %v2266_v33 = vld [vmem:[%s4791_s17 + $0x348] sm:$0xff]  ;;  %v2265_v61 = vld [vmem:[%s4791_s17 + $0x340] sm:$0xff] }
 0x4e2   : > { %2773 = vst.msk [vmem:[%s4791_s17 + $0x318] sm:$0xff] %vm2673_vm3, %v2644_v59  ;;  %2772 = vst.msk [vmem:[%s4791_s17 + $0x310] sm:$0xff] %vm2673_vm3, %v2643_v35 }
 0x4e3   : > { %v2492_v37 = vpop.xlane.xlu1 %2491  ;;  %v2490_v30 = vpop.xlane.xlu0 %2489 }
 0x4e4   : > { %v2646_v46 = vmax.f32 %v2262_v29, %v2492_v37  ;;  %v2645_v43 = vmax.f32 %v2261_v56, %v2490_v30  ;;  %v2268_v37 = vld [vmem:[%s4791_s17 + $0x358] sm:$0xff]  ;;  %v2267_v30 = vld [vmem:[%s4791_s17 + $0x350] sm:$0xff] }
 0x4e6   : > { %2775 = vst.msk [vmem:[%s4791_s17 + $0x328] sm:$0xff] %vm2673_vm3, %v2646_v46  ;;  %2774 = vst.msk [vmem:[%s4791_s17 + $0x320] sm:$0xff] %vm2673_vm3, %v2645_v43 }
 0x4e7   : > { %v2496_v39 = vpop.xlane.xlu1 %2495  ;;  %v2494_v63 = vpop.xlane.xlu0 %2493 }
 0x4e8   : > { %v2648_v2 = vmax.f32 %v2264_v49, %v2496_v39  ;;  %v2647_v28 = vmax.f32 %v2263_v44, %v2494_v63  ;;  %v2270_v39 = vld [vmem:[%s4791_s17 + $0x368] sm:$0xff]  ;;  %v2269_v63 = vld [vmem:[%s4791_s17 + $0x360] sm:$0xff] }
 0x4ea   : > { %2777 = vst.msk [vmem:[%s4791_s17 + $0x338] sm:$0xff] %vm2673_vm3, %v2648_v2  ;;  %2776 = vst.msk [vmem:[%s4791_s17 + $0x330] sm:$0xff] %vm2673_vm3, %v2647_v28 }
 0x4eb   : > { %v2500_v59 = vpop.xlane.xlu1 %2499  ;;  %v2498_v35 = vpop.xlane.xlu0 %2497 }
 0x4ec   : > { %v2650_v29 = vmax.f32 %v2266_v33, %v2500_v59  ;;  %v2649_v56 = vmax.f32 %v2265_v61, %v2498_v35  ;;  %v2272_v59 = vld [vmem:[%s4791_s17 + $0x378] sm:$0xff]  ;;  %v2271_v35 = vld [vmem:[%s4791_s17 + $0x370] sm:$0xff] }
 0x4ee   : > { %2779 = vst.msk [vmem:[%s4791_s17 + $0x348] sm:$0xff] %vm2673_vm3, %v2650_v29  ;;  %2778 = vst.msk [vmem:[%s4791_s17 + $0x340] sm:$0xff] %vm2673_vm3, %v2649_v56 }
 0x4ef   : > { %v2504_v46 = vpop.xlane.xlu1 %2503  ;;  %v2502_v43 = vpop.xlane.xlu0 %2501 }
 0x4f0   : > { %v2652_v49 = vmax.f32 %v2268_v37, %v2504_v46  ;;  %v2651_v44 = vmax.f32 %v2267_v30, %v2502_v43  ;;  %v2274_v46 = vld [vmem:[%s4791_s17 + $0x388] sm:$0xff]  ;;  %v2273_v43 = vld [vmem:[%s4791_s17 + $0x380] sm:$0xff] }
 0x4f2   : > { %2781 = vst.msk [vmem:[%s4791_s17 + $0x358] sm:$0xff] %vm2673_vm3, %v2652_v49  ;;  %2780 = vst.msk [vmem:[%s4791_s17 + $0x350] sm:$0xff] %vm2673_vm3, %v2651_v44 }
 0x4f3   : > { %v2508_v2 = vpop.xlane.xlu1 %2507  ;;  %v2506_v28 = vpop.xlane.xlu0 %2505 }
 0x4f4   : > { %v2654_v33 = vmax.f32 %v2270_v39, %v2508_v2  ;;  %v2653_v61 = vmax.f32 %v2269_v63, %v2506_v28  ;;  %v2276_v2 = vld [vmem:[%s4791_s17 + $0x398] sm:$0xff]  ;;  %v2275_v28 = vld [vmem:[%s4791_s17 + $0x390] sm:$0xff] }
 0x4f6   : > { %2783 = vst.msk [vmem:[%s4791_s17 + $0x368] sm:$0xff] %vm2673_vm3, %v2654_v33  ;;  %2782 = vst.msk [vmem:[%s4791_s17 + $0x360] sm:$0xff] %vm2673_vm3, %v2653_v61 }
 0x4f7   : > { %v2512_v29 = vpop.xlane.xlu1 %2511  ;;  %v2510_v56 = vpop.xlane.xlu0 %2509 }
 0x4f8   : > { %v2656_v37 = vmax.f32 %v2272_v59, %v2512_v29  ;;  %v2655_v30 = vmax.f32 %v2271_v35, %v2510_v56  ;;  %v2278_v29 = vld [vmem:[%s4791_s17 + $0x3a8] sm:$0xff]  ;;  %v2277_v56 = vld [vmem:[%s4791_s17 + $0x3a0] sm:$0xff] }
 0x4fa   : > { %2785 = vst.msk [vmem:[%s4791_s17 + $0x378] sm:$0xff] %vm2673_vm3, %v2656_v37  ;;  %2784 = vst.msk [vmem:[%s4791_s17 + $0x370] sm:$0xff] %vm2673_vm3, %v2655_v30 }
 0x4fb   : > { %v2516_v49 = vpop.xlane.xlu1 %2515  ;;  %v2514_v44 = vpop.xlane.xlu0 %2513 }
 0x4fc   : > { %v2658_v39 = vmax.f32 %v2274_v46, %v2516_v49  ;;  %v2657_v63 = vmax.f32 %v2273_v43, %v2514_v44  ;;  %v2280_v49 = vld [vmem:[%s4791_s17 + $0x3b8] sm:$0xff]  ;;  %v2279_v44 = vld [vmem:[%s4791_s17 + $0x3b0] sm:$0xff] }
 0x4fe   : > { %2787 = vst.msk [vmem:[%s4791_s17 + $0x388] sm:$0xff] %vm2673_vm3, %v2658_v39  ;;  %2786 = vst.msk [vmem:[%s4791_s17 + $0x380] sm:$0xff] %vm2673_vm3, %v2657_v63 }
 0x4ff   : > { %v2520_v33 = vpop.xlane.xlu1 %2519  ;;  %v2518_v61 = vpop.xlane.xlu0 %2517 }
 0x500   : > { %v2660_v59 = vmax.f32 %v2276_v2, %v2520_v33  ;;  %v2659_v35 = vmax.f32 %v2275_v28, %v2518_v61  ;;  %v2282_v33 = vld [vmem:[%s4791_s17 + $0x3c8] sm:$0xff]  ;;  %v2281_v61 = vld [vmem:[%s4791_s17 + $0x3c0] sm:$0xff] }
 0x502   : > { %2789 = vst.msk [vmem:[%s4791_s17 + $0x398] sm:$0xff] %vm2673_vm3, %v2660_v59  ;;  %2788 = vst.msk [vmem:[%s4791_s17 + $0x390] sm:$0xff] %vm2673_vm3, %v2659_v35 }
 0x503   : > { %v2524_v37 = vpop.xlane.xlu1 %2523  ;;  %v2522_v30 = vpop.xlane.xlu0 %2521 }
 0x504   : > { %v2662_v46 = vmax.f32 %v2278_v29, %v2524_v37  ;;  %v2661_v43 = vmax.f32 %v2277_v56, %v2522_v30  ;;  %v2284_v37 = vld [vmem:[%s4791_s17 + $0x3d8] sm:$0xff]  ;;  %v2283_v30 = vld [vmem:[%s4791_s17 + $0x3d0] sm:$0xff] }
 0x506   : > { %2791 = vst.msk [vmem:[%s4791_s17 + $0x3a8] sm:$0xff] %vm2673_vm3, %v2662_v46  ;;  %2790 = vst.msk [vmem:[%s4791_s17 + $0x3a0] sm:$0xff] %vm2673_vm3, %v2661_v43 }
 0x507   : > { %v2528_v39 = vpop.xlane.xlu1 %2527  ;;  %v2526_v63 = vpop.xlane.xlu0 %2525 }
 0x508   : > { %v2664_v2 = vmax.f32 %v2280_v49, %v2528_v39  ;;  %v2663_v28 = vmax.f32 %v2279_v44, %v2526_v63  ;;  %v2286_v39 = vld [vmem:[%s4791_s17 + $0x3e8] sm:$0xff]  ;;  %v2285_v63 = vld [vmem:[%s4791_s17 + $0x3e0] sm:$0xff] }
 0x50a   : > { %2793 = vst.msk [vmem:[%s4791_s17 + $0x3b8] sm:$0xff] %vm2673_vm3, %v2664_v2  ;;  %2792 = vst.msk [vmem:[%s4791_s17 + $0x3b0] sm:$0xff] %vm2673_vm3, %v2663_v28 }
 0x50b   : > { %v2532_v59 = vpop.xlane.xlu1 %2531  ;;  %v2530_v35 = vpop.xlane.xlu0 %2529 }
 0x50c   : > { %v2666_v29 = vmax.f32 %v2282_v33, %v2532_v59  ;;  %v2665_v56 = vmax.f32 %v2281_v61, %v2530_v35  ;;  %v2288_v59 = vld [vmem:[%s4791_s17 + $0x3f8] sm:$0xff]  ;;  %v2287_v35 = vld [vmem:[%s4791_s17 + $0x3f0] sm:$0xff] }
 0x50e   : > { %2795 = vst.msk [vmem:[%s4791_s17 + $0x3c8] sm:$0xff] %vm2673_vm3, %v2666_v29  ;;  %2794 = vst.msk [vmem:[%s4791_s17 + $0x3c0] sm:$0xff] %vm2673_vm3, %v2665_v56 }
 0x50f   : > { %v2536_v46 = vpop.xlane.xlu1 %2535  ;;  %v2534_v43 = vpop.xlane.xlu0 %2533 }
 0x510   : > { %v2668_v49 = vmax.f32 %v2284_v37, %v2536_v46  ;;  %v2667_v44 = vmax.f32 %v2283_v30, %v2534_v43 }
 0x512   : > { %2797 = vst.msk [vmem:[%s4791_s17 + $0x3d8] sm:$0xff] %vm2673_vm3, %v2668_v49  ;;  %2796 = vst.msk [vmem:[%s4791_s17 + $0x3d0] sm:$0xff] %vm2673_vm3, %v2667_v44 }
 0x513   : > { %v2540_v2 = vpop.xlane.xlu1 %2539  ;;  %v2538_v28 = vpop.xlane.xlu0 %2537 }
 0x514   : > { %v2670_v33 = vmax.f32 %v2286_v39, %v2540_v2  ;;  %v2669_v61 = vmax.f32 %v2285_v63, %v2538_v28 }
 0x516   : > { %2799 = vst.msk [vmem:[%s4791_s17 + $0x3e8] sm:$0xff] %vm2673_vm3, %v2670_v33  ;;  %2798 = vst.msk [vmem:[%s4791_s17 + $0x3e0] sm:$0xff] %vm2673_vm3, %v2669_v61 }
 0x517   : > { %v2544_v29 = vpop.xlane.xlu1 %2543  ;;  %v2542_v56 = vpop.xlane.xlu0 %2541 }
 0x518   : > { %v2672_v37 = vmax.f32 %v2288_v59, %v2544_v29  ;;  %v2671_v30 = vmax.f32 %v2287_v35, %v2542_v56 }
 0x51a   : > { %2801 = vst.msk [vmem:[%s4791_s17 + $0x3f8] sm:$0xff] %vm2673_vm3, %v2672_v37  ;;  %2800 = vst.msk [vmem:[%s4791_s17 + $0x3f0] sm:$0xff] %vm2673_vm3, %v2671_v30 }
 0x51b PF: > { %p4254_p9 = scmp.eq.s32.totalorder %s4680_s24, 1 }
 0x51c   : > { %v8039_v46 = vld [vmem:[#allocation3_spill] sm:$0xff] (!%p4254_p9)  ;;  %v8040_v43 = vld [vmem:[#allocation5_spill] sm:$0xff] (!%p4254_p9)  ;;  %vm3318_vm4 = vcmask (!%p4254_p9), 7168   ;;  %v2812_v28 = vld [vmem:[%s4791_s17 + $0x30] sm:$0xff] (!%p4254_p9) }
 0x51d   : > { %2805 = sbr.rel (%p4254_p9) target bundleno = 1706 (0x6aa), region = 60  ;;  %2938 = vmax.xlane.f32.xlu1 (!%p4254_p9), %v8039_v46  ;;  %2934 = vmax.xlane.f32.xlu0 (!%p4254_p9), %v8040_v43  ;;  %v2813_v2 = vld [vmem:[%s4791_s17 + $0x38] sm:$0xff] (!%p4254_p9)  ;;  %v8071_v33 = vld [vmem:[#allocation23_spill] sm:$0xff] (!%p4254_p9)  ;;  %v2814_v30 = vld [vmem:[%s4791_s17 + $0x40] sm:$0xff] (!%p4254_p9) }
 0x51e   : > { %v8072_v61 = vld [vmem:[#allocation21_spill] sm:$0xff] (!%p4254_p9)  ;;  %v2815_v37 = vld [vmem:[%s4791_s17 + $0x48] sm:$0xff] (!%p4254_p9)  ;;  %v8073_v46 = vld [vmem:[#allocation22_spill] sm:$0xff] (!%p4254_p9) }
 0x51f   : > { %v8074_v43 = vld [vmem:[#allocation20_spill] sm:$0xff] (!%p4254_p9) }
 0x521   : > { %2940 = vmax.xlane.f32.xlu1 (!%p4254_p9), %v5165_v32  ;;  %2936 = vmax.xlane.f32.xlu0 (!%p4254_p9), %v5169_v34  ;;  %v8042_v32 = vld [vmem:[#allocation49_spill] sm:$0xff] (!%p4254_p9) }
 0x522   : > { %v8043_v34 = vld [vmem:[#allocation61_spill] sm:$0xff] (!%p4254_p9) }
 0x525   : > { %2944 = vmax.xlane.f32.xlu1 %v5185_v45  ;;  %2942 = vmax.xlane.f32.xlu0 %v5177_v38  ;;  %v8045_v38 = vld [vmem:[#allocation59_spill] sm:$0xff]  ;;  %v8047_v45 = vld [vmem:[#allocation69_spill] sm:$0xff] }
 0x529   : > { %2948 = vmax.xlane.f32.xlu1 %v5181_v41  ;;  %2946 = vmax.xlane.f32.xlu0 %v5173_v36  ;;  %v8044_v36 = vld [vmem:[#allocation57_spill] sm:$0xff]  ;;  %v8046_v41 = vld [vmem:[#allocation55_spill] sm:$0xff] }
 0x52d   : > { %2952 = vmax.xlane.f32.xlu1 %v5201_v55  ;;  %2950 = vmax.xlane.f32.xlu0 %v5193_v50  ;;  %v8049_v50 = vld [vmem:[#allocation67_spill] sm:$0xff]  ;;  %v8051_v55 = vld [vmem:[#allocation76_spill] sm:$0xff] }
 0x531   : > { %2956 = vmax.xlane.f32.xlu1 %v5197_v54  ;;  %2954 = vmax.xlane.f32.xlu0 %v5189_v48  ;;  %v8048_v48 = vld [vmem:[#allocation65_spill] sm:$0xff]  ;;  %v8050_v54 = vld [vmem:[#allocation63_spill] sm:$0xff] }
 0x535   : > { %2960 = vmax.xlane.f32.xlu1 %v5217_v0  ;;  %2958 = vmax.xlane.f32.xlu0 %v5209_v60  ;;  %v8053_v60 = vld [vmem:[#allocation75_spill] sm:$0xff] }
 0x536   : > { %v8055_v0 = vld [vmem:[#allocation7_spill] sm:$0xff] }
 0x539   : > { %2964 = vmax.xlane.f32.xlu1 %v5213_v62  ;;  %2962 = vmax.xlane.f32.xlu0 %v5205_v57  ;;  %v8052_v57 = vld [vmem:[#allocation73_spill] sm:$0xff]  ;;  %v8054_v62 = vld [vmem:[#allocation71_spill] sm:$0xff] }
 0x53d   : > { %2968 = vmax.xlane.f32.xlu1 %v5233_v7  ;;  %2966 = vmax.xlane.f32.xlu0 %v5225_v3  ;;  %v8057_v3 = vld [vmem:[#allocation6_spill] sm:$0xff] }
 0x53e   : > { %v8061_v7 = vld [vmem:[#allocation10_spill] sm:$0xff] }
 0x541   : > { %2972 = vmax.xlane.f32.xlu1 %v5229_v5  ;;  %2970 = vmax.xlane.f32.xlu0 %v5221_v1  ;;  %v8056_v1 = vld [vmem:[#allocation4_spill] sm:$0xff]  ;;  %v8059_v5 = vld [vmem:[#allocation11_spill] sm:$0xff] }
 0x545   : > { %2976 = vmax.xlane.f32.xlu1 %v5249_v11  ;;  %2974 = vmax.xlane.f32.xlu0 %v5241_v10  ;;  %v2808_v10 = vld [vmem:[%s4791_s17 + $0x10] sm:$0xff] }
 0x549   : > { %2980 = vmax.xlane.f32.xlu1 %v5245_v53  ;;  %2978 = vmax.xlane.f32.xlu0 %v5237_v40  ;;  %v8063_v40 = vld [vmem:[#allocation15_spill] sm:$0xff]  ;;  %v8065_v53 = vld [vmem:[#allocation14_spill] sm:$0xff] }
 0x54d   : > { %2984 = vmax.xlane.f32.xlu1 %v5265_v19  ;;  %2982 = vmax.xlane.f32.xlu0 %v5257_v15  ;;  %v2809_v15 = vld [vmem:[%s4791_s17 + $0x18] sm:$0xff] }
 0x551   : > { %2988 = vmax.xlane.f32.xlu1 %v5261_v17  ;;  %2986 = vmax.xlane.f32.xlu0 %v5253_v13  ;;  %v8067_v17 = vld [vmem:[#allocation19_spill] sm:$0xff] }
 0x555   : > { %2992 = vmax.xlane.f32.xlu1 %v5281_v42  ;;  %2990 = vmax.xlane.f32.xlu0 %v5273_v23  ;;  %v8041_v42 = vld [vmem:[#allocation52_spill] sm:$0xff]  ;;  %v2811_v23 = vld [vmem:[%s4791_s17 + $0x28] sm:$0xff] }
 0x559   : > { %2996 = vmax.xlane.f32.xlu1 %v5277_v25  ;;  %2994 = vmax.xlane.f32.xlu0 %v5269_v21  ;;  %v8069_v25 = vld [vmem:[#allocation18_spill] sm:$0xff] }
 0x55d   : > { %3000 = vmax.xlane.f32.xlu1 %v5297_v24  ;;  %2998 = vmax.xlane.f32.xlu0 %v5289_v20  ;;  %v2810_v24 = vld [vmem:[%s4791_s17 + $0x20] sm:$0xff] }
 0x561   : > { %3004 = vmax.xlane.f32.xlu1 %v5293_v22  ;;  %3002 = vmax.xlane.f32.xlu0 %v5285_v16  ;;  %v2807_v16 = vld [vmem:[%s4791_s17 + $0x8] sm:$0xff] }
 0x565   : > { %3008 = vmax.xlane.f32.xlu1 %v5313_v18  ;;  %3006 = vmax.xlane.f32.xlu0 %v5305_v12  ;;  %v8068_v18 = vld [vmem:[#allocation17_spill] sm:$0xff] }
 0x569   : > { %3012 = vmax.xlane.f32.xlu1 %v5309_v14  ;;  %3010 = vmax.xlane.f32.xlu0 %v5301_v26  ;;  %v8070_v26 = vld [vmem:[#allocation16_spill] sm:$0xff] }
 0x56d   : > { %3016 = vmax.xlane.f32.xlu1 %v5329_v58  ;;  %3014 = vmax.xlane.f32.xlu0 %v5321_v51  ;;  %v2806_v51 = vld [vmem:[%s4791_s17] sm:$0xff]  ;;  %v8066_v58 = vld [vmem:[#allocation12_spill] sm:$0xff] }
 0x571   : > { %3020 = vmax.xlane.f32.xlu1 %v5325_v9  ;;  %3018 = vmax.xlane.f32.xlu0 %v5317_v8  ;;  %v8062_v8 = vld [vmem:[#allocation8_spill] sm:$0xff]  ;;  %v8064_v9 = vld [vmem:[#allocation13_spill] sm:$0xff] }
 0x575   : > { %3024 = vmax.xlane.f32.xlu1 %v5345_v6  ;;  %3022 = vmax.xlane.f32.xlu0 %v5337_v4  ;;  %v8058_v4 = vld [vmem:[#allocation2_spill] sm:$0xff]  ;;  %v8060_v6 = vld [vmem:[#allocation9_spill] sm:$0xff] }
 0x579   : > { %3028 = vmax.xlane.f32.xlu1 %v8041_v42  ;;  %3026 = vmax.xlane.f32.xlu0 %v8042_v32 }
 0x57d   : > { %3032 = vmax.xlane.f32.xlu1 %v8043_v34  ;;  %3030 = vmax.xlane.f32.xlu0 %v8044_v36 }
 0x581   : > { %3036 = vmax.xlane.f32.xlu1 %v8045_v38  ;;  %3034 = vmax.xlane.f32.xlu0 %v8046_v41  ;;  %v2817_v38 = vld [vmem:[%s4791_s17 + $0x58] sm:$0xff]  ;;  %v2816_v41 = vld [vmem:[%s4791_s17 + $0x50] sm:$0xff] }
 0x585   : > { %3040 = vmax.xlane.f32.xlu1 %v8047_v45  ;;  %3038 = vmax.xlane.f32.xlu0 %v8048_v48  ;;  %v8075_v45 = vld [vmem:[#allocation27_spill] sm:$0xff]  ;;  %v8076_v48 = vld [vmem:[#allocation25_spill] sm:$0xff] }
 0x589   : > { %3044 = vmax.xlane.f32.xlu1 %v8049_v50  ;;  %3042 = vmax.xlane.f32.xlu0 %v8050_v54 }
 0x58d   : > { %3048 = vmax.xlane.f32.xlu1 %v8051_v55  ;;  %3046 = vmax.xlane.f32.xlu0 %v8052_v57 }
 0x591   : > { %3052 = vmax.xlane.f32.xlu1 %v8053_v60  ;;  %3050 = vmax.xlane.f32.xlu0 %v8054_v62  ;;  %v2819_v60 = vld [vmem:[%s4791_s17 + $0x68] sm:$0xff]  ;;  %v2818_v62 = vld [vmem:[%s4791_s17 + $0x60] sm:$0xff] }
 0x595   : > { %3056 = vmax.xlane.f32.xlu1 %v8055_v0  ;;  %3054 = vmax.xlane.f32.xlu0 %v8056_v1  ;;  %v8077_v0 = vld [vmem:[#allocation26_spill] sm:$0xff]  ;;  %v8078_v1 = vld [vmem:[#allocation24_spill] sm:$0xff] }
 0x599   : > { %3060 = vmax.xlane.f32.xlu1 %v8057_v3  ;;  %3058 = vmax.xlane.f32.xlu0 %v8058_v4 }
 0x59d   : > { %3064 = vmax.xlane.f32.xlu1 %v8059_v5  ;;  %3062 = vmax.xlane.f32.xlu0 %v8060_v6 }
 0x5a1   : > { %3068 = vmax.xlane.f32.xlu1 %v8061_v7  ;;  %3066 = vmax.xlane.f32.xlu0 %v8062_v8  ;;  %v2821_v7 = vld [vmem:[%s4791_s17 + $0x78] sm:$0xff]  ;;  %v2820_v8 = vld [vmem:[%s4791_s17 + $0x70] sm:$0xff] }
 0x5a5   : > { %3072 = vmax.xlane.f32.xlu1 %v8063_v40  ;;  %3070 = vmax.xlane.f32.xlu0 %v8064_v9  ;;  %v8079_v40 = vld [vmem:[#allocation31_spill] sm:$0xff]  ;;  %v8080_v9 = vld [vmem:[#allocation29_spill] sm:$0xff] }
 0x5a9   : > { %3076 = vmax.xlane.f32.xlu1 %v8065_v53  ;;  %3074 = vmax.xlane.f32.xlu0 %v8066_v58 }
 0x5aa   : > { %v2939_v11 = vpop.xlane.xlu1 %2938  ;;  %v2935_v12 = vpop.xlane.xlu0 %2934 }
 0x5ab   : > { %v3192_v13 = vmax.f32 %v2808_v10, %v2939_v11  ;;  %v3190_v14 = vmax.f32 %v2806_v51, %v2935_v12  ;;  %v2823_v11 = vld [vmem:[%s4791_s17 + $0x88] sm:$0xff]  ;;  %v2822_v12 = vld [vmem:[%s4791_s17 + $0x80] sm:$0xff] }
 0x5ad   : > { %3321 = vst.msk [vmem:[%s4791_s17 + $0x10] sm:$0xff] %vm3318_vm4, %v3192_v13  ;;  %3319 = vst.msk [vmem:[%s4791_s17] sm:$0xff] %vm3318_vm4, %v3190_v14  ;;  %3080 = vmax.xlane.f32.xlu1 %v8067_v17  ;;  %3078 = vmax.xlane.f32.xlu0 %v8068_v18  ;;  %v8081_v13 = vld [vmem:[#allocation30_spill] sm:$0xff]  ;;  %v8082_v14 = vld [vmem:[#allocation28_spill] sm:$0xff] }
 0x5ae   : > { %v2941_v19 = vpop.xlane.xlu1 %2940  ;;  %v2937_v20 = vpop.xlane.xlu0 %2936 }
 0x5af   : > { %v3193_v21 = vmax.f32 %v2809_v15, %v2941_v19  ;;  %v3191_v22 = vmax.f32 %v2807_v16, %v2937_v20  ;;  %v2825_v19 = vld [vmem:[%s4791_s17 + $0x98] sm:$0xff]  ;;  %v2824_v20 = vld [vmem:[%s4791_s17 + $0x90] sm:$0xff] }
 0x5b1   : > { %3322 = vst.msk [vmem:[%s4791_s17 + $0x18] sm:$0xff] %vm3318_vm4, %v3193_v21  ;;  %3320 = vst.msk [vmem:[%s4791_s17 + $0x8] sm:$0xff] %vm3318_vm4, %v3191_v22  ;;  %3084 = vmax.xlane.f32.xlu1 %v8069_v25  ;;  %3082 = vmax.xlane.f32.xlu0 %v8070_v26  ;;  %v8083_v21 = vld [vmem:[#allocation35_spill] sm:$0xff]  ;;  %v8084_v22 = vld [vmem:[#allocation33_spill] sm:$0xff] }
 0x5b2   : > { %v2945_v49 = vpop.xlane.xlu1 %2944  ;;  %v2943_v44 = vpop.xlane.xlu0 %2942 }
 0x5b3   : > { %v3195_v39 = vmax.f32 %v2811_v23, %v2945_v49  ;;  %v3194_v63 = vmax.f32 %v2810_v24, %v2943_v44  ;;  %v2827_v49 = vld [vmem:[%s4791_s17 + $0xa8] sm:$0xff]  ;;  %v2826_v44 = vld [vmem:[%s4791_s17 + $0xa0] sm:$0xff] }
 0x5b5   : > { %3324 = vst.msk [vmem:[%s4791_s17 + $0x28] sm:$0xff] %vm3318_vm4, %v3195_v39  ;;  %3323 = vst.msk [vmem:[%s4791_s17 + $0x20] sm:$0xff] %vm3318_vm4, %v3194_v63  ;;  %3088 = vmax.xlane.f32.xlu1 %v8071_v33  ;;  %3086 = vmax.xlane.f32.xlu0 %v8072_v61  ;;  %v8085_v39 = vld [vmem:[#allocation34_spill] sm:$0xff]  ;;  %v8086_v63 = vld [vmem:[#allocation32_spill] sm:$0xff] }
 0x5b6   : > { %v2949_v59 = vpop.xlane.xlu1 %2948  ;;  %v2947_v35 = vpop.xlane.xlu0 %2946 }
 0x5b7   : > { %v3197_v29 = vmax.f32 %v2813_v2, %v2949_v59  ;;  %v3196_v56 = vmax.f32 %v2812_v28, %v2947_v35  ;;  %v2829_v59 = vld [vmem:[%s4791_s17 + $0xb8] sm:$0xff]  ;;  %v2828_v35 = vld [vmem:[%s4791_s17 + $0xb0] sm:$0xff] }
 0x5b9   : > { %3326 = vst.msk [vmem:[%s4791_s17 + $0x38] sm:$0xff] %vm3318_vm4, %v3197_v29  ;;  %3325 = vst.msk [vmem:[%s4791_s17 + $0x30] sm:$0xff] %vm3318_vm4, %v3196_v56  ;;  %3092 = vmax.xlane.f32.xlu1 %v8073_v46  ;;  %3090 = vmax.xlane.f32.xlu0 %v8074_v43  ;;  %v8087_v29 = vld [vmem:[#allocation39_spill] sm:$0xff]  ;;  %v8088_v56 = vld [vmem:[#allocation37_spill] sm:$0xff] }
 0x5ba   : > { %v2953_v42 = vpop.xlane.xlu1 %2952  ;;  %v2951_v32 = vpop.xlane.xlu0 %2950 }
 0x5bb   : > { %v3199_v34 = vmax.f32 %v2815_v37, %v2953_v42  ;;  %v3198_v36 = vmax.f32 %v2814_v30, %v2951_v32  ;;  %v2831_v42 = vld [vmem:[%s4791_s17 + $0xc8] sm:$0xff]  ;;  %v2830_v32 = vld [vmem:[%s4791_s17 + $0xc0] sm:$0xff] }
 0x5bd   : > { %3328 = vst.msk [vmem:[%s4791_s17 + $0x48] sm:$0xff] %vm3318_vm4, %v3199_v34  ;;  %3327 = vst.msk [vmem:[%s4791_s17 + $0x40] sm:$0xff] %vm3318_vm4, %v3198_v36  ;;  %3096 = vmax.xlane.f32.xlu1 %v8075_v45  ;;  %3094 = vmax.xlane.f32.xlu0 %v8076_v48  ;;  %v8089_v34 = vld [vmem:[#allocation38_spill] sm:$0xff]  ;;  %v8090_v36 = vld [vmem:[#allocation36_spill] sm:$0xff] }
 0x5be   : > { %v2957_v50 = vpop.xlane.xlu1 %2956  ;;  %v2955_v54 = vpop.xlane.xlu0 %2954 }
 0x5bf   : > { %v3201_v55 = vmax.f32 %v2817_v38, %v2957_v50  ;;  %v3200_v57 = vmax.f32 %v2816_v41, %v2955_v54  ;;  %v2833_v50 = vld [vmem:[%s4791_s17 + $0xd8] sm:$0xff]  ;;  %v2832_v54 = vld [vmem:[%s4791_s17 + $0xd0] sm:$0xff] }
 0x5c1   : > { %3330 = vst.msk [vmem:[%s4791_s17 + $0x58] sm:$0xff] %vm3318_vm4, %v3201_v55  ;;  %3329 = vst.msk [vmem:[%s4791_s17 + $0x50] sm:$0xff] %vm3318_vm4, %v3200_v57  ;;  %3100 = vmax.xlane.f32.xlu1 %v8077_v0  ;;  %3098 = vmax.xlane.f32.xlu0 %v8078_v1  ;;  %v8091_v55 = vld [vmem:[#allocation43_spill] sm:$0xff]  ;;  %v8092_v57 = vld [vmem:[#allocation41_spill] sm:$0xff] }
 0x5c2   : > { %v2961_v3 = vpop.xlane.xlu1 %2960  ;;  %v2959_v4 = vpop.xlane.xlu0 %2958 }
 0x5c3   : > { %v3203_v5 = vmax.f32 %v2819_v60, %v2961_v3  ;;  %v3202_v6 = vmax.f32 %v2818_v62, %v2959_v4  ;;  %v2835_v3 = vld [vmem:[%s4791_s17 + $0xe8] sm:$0xff]  ;;  %v2834_v4 = vld [vmem:[%s4791_s17 + $0xe0] sm:$0xff] }
 0x5c5   : > { %3332 = vst.msk [vmem:[%s4791_s17 + $0x68] sm:$0xff] %vm3318_vm4, %v3203_v5  ;;  %3331 = vst.msk [vmem:[%s4791_s17 + $0x60] sm:$0xff] %vm3318_vm4, %v3202_v6  ;;  %3104 = vmax.xlane.f32.xlu1 %v8079_v40  ;;  %3102 = vmax.xlane.f32.xlu0 %v8080_v9  ;;  %v8093_v5 = vld [vmem:[#allocation42_spill] sm:$0xff]  ;;  %v8094_v6 = vld [vmem:[#allocation40_spill] sm:$0xff] }
 0x5c6   : > { %v2965_v10 = vpop.xlane.xlu1 %2964  ;;  %v2963_v51 = vpop.xlane.xlu0 %2962 }
 0x5c7   : > { %v3205_v53 = vmax.f32 %v2821_v7, %v2965_v10  ;;  %v3204_v58 = vmax.f32 %v2820_v8, %v2963_v51  ;;  %v2837_v10 = vld [vmem:[%s4791_s17 + $0xf8] sm:$0xff]  ;;  %v2836_v51 = vld [vmem:[%s4791_s17 + $0xf0] sm:$0xff] }
 0x5c9   : > { %3334 = vst.msk [vmem:[%s4791_s17 + $0x78] sm:$0xff] %vm3318_vm4, %v3205_v53  ;;  %3333 = vst.msk [vmem:[%s4791_s17 + $0x70] sm:$0xff] %vm3318_vm4, %v3204_v58  ;;  %3108 = vmax.xlane.f32.xlu1 %v8081_v13  ;;  %3106 = vmax.xlane.f32.xlu0 %v8082_v14  ;;  %v8095_v53 = vld [vmem:[#allocation47_spill] sm:$0xff]  ;;  %v8096_v58 = vld [vmem:[#allocation45_spill] sm:$0xff] }
 0x5ca   : > { %v2969_v15 = vpop.xlane.xlu1 %2968  ;;  %v2967_v16 = vpop.xlane.xlu0 %2966 }
 0x5cb   : > { %v3207_v17 = vmax.f32 %v2823_v11, %v2969_v15  ;;  %v3206_v18 = vmax.f32 %v2822_v12, %v2967_v16  ;;  %v2839_v15 = vld [vmem:[%s4791_s17 + $0x108] sm:$0xff]  ;;  %v2838_v16 = vld [vmem:[%s4791_s17 + $0x100] sm:$0xff] }
 0x5cd   : > { %3336 = vst.msk [vmem:[%s4791_s17 + $0x88] sm:$0xff] %vm3318_vm4, %v3207_v17  ;;  %3335 = vst.msk [vmem:[%s4791_s17 + $0x80] sm:$0xff] %vm3318_vm4, %v3206_v18  ;;  %3112 = vmax.xlane.f32.xlu1 %v8083_v21  ;;  %3110 = vmax.xlane.f32.xlu0 %v8084_v22  ;;  %v8097_v17 = vld [vmem:[#allocation46_spill] sm:$0xff]  ;;  %v8098_v18 = vld [vmem:[#allocation44_spill] sm:$0xff] }
 0x5ce   : > { %v2973_v23 = vpop.xlane.xlu1 %2972  ;;  %v2971_v24 = vpop.xlane.xlu0 %2970 }
 0x5cf   : > { %v3209_v25 = vmax.f32 %v2825_v19, %v2973_v23  ;;  %v3208_v26 = vmax.f32 %v2824_v20, %v2971_v24  ;;  %v2841_v23 = vld [vmem:[%s4791_s17 + $0x118] sm:$0xff]  ;;  %v2840_v24 = vld [vmem:[%s4791_s17 + $0x110] sm:$0xff] }
 0x5d1   : > { %3338 = vst.msk [vmem:[%s4791_s17 + $0x98] sm:$0xff] %vm3318_vm4, %v3209_v25  ;;  %3337 = vst.msk [vmem:[%s4791_s17 + $0x90] sm:$0xff] %vm3318_vm4, %v3208_v26  ;;  %3116 = vmax.xlane.f32.xlu1 %v8085_v39  ;;  %3114 = vmax.xlane.f32.xlu0 %v8086_v63  ;;  %v8099_v25 = vld [vmem:[#allocation53_spill] sm:$0xff]  ;;  %v8100_v26 = vld [vmem:[#allocation50_spill] sm:$0xff] }
 0x5d2   : > { %v2977_v2 = vpop.xlane.xlu1 %2976  ;;  %v2975_v28 = vpop.xlane.xlu0 %2974 }
 0x5d3   : > { %v3211_v33 = vmax.f32 %v2827_v49, %v2977_v2  ;;  %v3210_v61 = vmax.f32 %v2826_v44, %v2975_v28  ;;  %v2843_v2 = vld [vmem:[%s4791_s17 + $0x128] sm:$0xff]  ;;  %v2842_v28 = vld [vmem:[%s4791_s17 + $0x120] sm:$0xff] }
 0x5d5   : > { %3340 = vst.msk [vmem:[%s4791_s17 + $0xa8] sm:$0xff] %vm3318_vm4, %v3211_v33  ;;  %3339 = vst.msk [vmem:[%s4791_s17 + $0xa0] sm:$0xff] %vm3318_vm4, %v3210_v61  ;;  %3120 = vmax.xlane.f32.xlu1 %v8087_v29  ;;  %3118 = vmax.xlane.f32.xlu0 %v8088_v56  ;;  %v8101_v33 = vld [vmem:[#allocation51_spill] sm:$0xff]  ;;  %v8102_v61 = vld [vmem:[#allocation48_spill] sm:$0xff] }
 0x5d6   : > { %v2981_v37 = vpop.xlane.xlu1 %2980  ;;  %v2979_v30 = vpop.xlane.xlu0 %2978 }
 0x5d7   : > { %v3213_v46 = vmax.f32 %v2829_v59, %v2981_v37  ;;  %v3212_v43 = vmax.f32 %v2828_v35, %v2979_v30  ;;  %v2845_v37 = vld [vmem:[%s4791_s17 + $0x138] sm:$0xff]  ;;  %v2844_v30 = vld [vmem:[%s4791_s17 + $0x130] sm:$0xff] }
 0x5d9   : > { %3342 = vst.msk [vmem:[%s4791_s17 + $0xb8] sm:$0xff] %vm3318_vm4, %v3213_v46  ;;  %3341 = vst.msk [vmem:[%s4791_s17 + $0xb0] sm:$0xff] %vm3318_vm4, %v3212_v43  ;;  %3124 = vmax.xlane.f32.xlu1 %v8089_v34  ;;  %3122 = vmax.xlane.f32.xlu0 %v8090_v36  ;;  %v8103_v46 = vld [vmem:[#allocation60_spill] sm:$0xff] }
 0x5da   : > { %v2985_v38 = vpop.xlane.xlu1 %2984  ;;  %v2983_v41 = vpop.xlane.xlu0 %2982  ;;  %v8104_v43 = vld [vmem:[#allocation56_spill] sm:$0xff] }
 0x5db   : > { %v3215_v45 = vmax.f32 %v2831_v42, %v2985_v38  ;;  %v3214_v48 = vmax.f32 %v2830_v32, %v2983_v41  ;;  %v2847_v38 = vld [vmem:[%s4791_s17 + $0x148] sm:$0xff]  ;;  %v2846_v41 = vld [vmem:[%s4791_s17 + $0x140] sm:$0xff] }
 0x5dd   : > { %3344 = vst.msk [vmem:[%s4791_s17 + $0xc8] sm:$0xff] %vm3318_vm4, %v3215_v45  ;;  %3343 = vst.msk [vmem:[%s4791_s17 + $0xc0] sm:$0xff] %vm3318_vm4, %v3214_v48  ;;  %3128 = vmax.xlane.f32.xlu1 %v8091_v55  ;;  %3126 = vmax.xlane.f32.xlu0 %v8092_v57  ;;  %v8105_v45 = vld [vmem:[#allocation58_spill] sm:$0xff] }
 0x5de   : > { %v2989_v60 = vpop.xlane.xlu1 %2988  ;;  %v2987_v62 = vpop.xlane.xlu0 %2986  ;;  %v8106_v48 = vld [vmem:[#allocation54_spill] sm:$0xff] }
 0x5df   : > { %v3217_v0 = vmax.f32 %v2833_v50, %v2989_v60  ;;  %v3216_v1 = vmax.f32 %v2832_v54, %v2987_v62  ;;  %v2849_v60 = vld [vmem:[%s4791_s17 + $0x158] sm:$0xff]  ;;  %v2848_v62 = vld [vmem:[%s4791_s17 + $0x150] sm:$0xff] }
 0x5e1   : > { %3346 = vst.msk [vmem:[%s4791_s17 + $0xd8] sm:$0xff] %vm3318_vm4, %v3217_v0  ;;  %3345 = vst.msk [vmem:[%s4791_s17 + $0xd0] sm:$0xff] %vm3318_vm4, %v3216_v1  ;;  %3132 = vmax.xlane.f32.xlu1 %v8093_v5  ;;  %3130 = vmax.xlane.f32.xlu0 %v8094_v6  ;;  %v8107_v0 = vld [vmem:[#allocation68_spill] sm:$0xff] }
 0x5e2   : > { %v2993_v7 = vpop.xlane.xlu1 %2992  ;;  %v2991_v8 = vpop.xlane.xlu0 %2990  ;;  %v8108_v1 = vld [vmem:[#allocation64_spill] sm:$0xff] }
 0x5e3   : > { %v3219_v40 = vmax.f32 %v2835_v3, %v2993_v7  ;;  %v3218_v9 = vmax.f32 %v2834_v4, %v2991_v8  ;;  %v2851_v7 = vld [vmem:[%s4791_s17 + $0x168] sm:$0xff]  ;;  %v2850_v8 = vld [vmem:[%s4791_s17 + $0x160] sm:$0xff] }
 0x5e5   : > { %3348 = vst.msk [vmem:[%s4791_s17 + $0xe8] sm:$0xff] %vm3318_vm4, %v3219_v40  ;;  %3347 = vst.msk [vmem:[%s4791_s17 + $0xe0] sm:$0xff] %vm3318_vm4, %v3218_v9  ;;  %3136 = vmax.xlane.f32.xlu1 %v8095_v53  ;;  %3134 = vmax.xlane.f32.xlu0 %v8096_v58  ;;  %v8109_v40 = vld [vmem:[#allocation66_spill] sm:$0xff] }
 0x5e6   : > { %v2997_v11 = vpop.xlane.xlu1 %2996  ;;  %v2995_v12 = vpop.xlane.xlu0 %2994  ;;  %v8110_v9 = vld [vmem:[#allocation62_spill] sm:$0xff] }
 0x5e7   : > { %v3221_v13 = vmax.f32 %v2837_v10, %v2997_v11  ;;  %v3220_v14 = vmax.f32 %v2836_v51, %v2995_v12  ;;  %v2853_v11 = vld [vmem:[%s4791_s17 + $0x178] sm:$0xff]  ;;  %v2852_v12 = vld [vmem:[%s4791_s17 + $0x170] sm:$0xff] }
 0x5e9   : > { %3350 = vst.msk [vmem:[%s4791_s17 + $0xf8] sm:$0xff] %vm3318_vm4, %v3221_v13  ;;  %3349 = vst.msk [vmem:[%s4791_s17 + $0xf0] sm:$0xff] %vm3318_vm4, %v3220_v14  ;;  %3140 = vmax.xlane.f32.xlu1 %v8097_v17  ;;  %3138 = vmax.xlane.f32.xlu0 %v8098_v18  ;;  %v8111_v13 = vld [vmem:[#allocation72_spill] sm:$0xff]  ;;  %v2855_v18 = vld [vmem:[%s4791_s17 + $0x188] sm:$0xff] }
 0x5ea   : > { %v3001_v19 = vpop.xlane.xlu1 %3000  ;;  %v2999_v20 = vpop.xlane.xlu0 %2998 }
 0x5eb   : > { %v3223_v21 = vmax.f32 %v2839_v15, %v3001_v19  ;;  %v3222_v22 = vmax.f32 %v2838_v16, %v2999_v20  ;;  %v2854_v19 = vld [vmem:[%s4791_s17 + $0x180] sm:$0xff] }
 0x5ec   : > { %v8112_v20 = vld [vmem:[#allocation74_spill] sm:$0xff] }
 0x5ed   : > { %3352 = vst.msk [vmem:[%s4791_s17 + $0x108] sm:$0xff] %vm3318_vm4, %v3223_v21  ;;  %3351 = vst.msk [vmem:[%s4791_s17 + $0x100] sm:$0xff] %vm3318_vm4, %v3222_v22  ;;  %3144 = vmax.xlane.f32.xlu1 %v8099_v25  ;;  %3142 = vmax.xlane.f32.xlu0 %v8100_v26  ;;  %v8113_v21 = vld [vmem:[#allocation70_spill] sm:$0xff]  ;;  %v2857_v25 = vld [vmem:[%s4791_s17 + $0x198] sm:$0xff] }
 0x5ee   : > { %v3005_v49 = vpop.xlane.xlu1 %3004  ;;  %v3003_v44 = vpop.xlane.xlu0 %3002  ;;  %v2856_v26 = vld [vmem:[%s4791_s17 + $0x190] sm:$0xff] }
 0x5ef   : > { %v3225_v39 = vmax.f32 %v2841_v23, %v3005_v49  ;;  %v3224_v63 = vmax.f32 %v2840_v24, %v3003_v44 }
 0x5f1   : > { %3354 = vst.msk [vmem:[%s4791_s17 + $0x118] sm:$0xff] %vm3318_vm4, %v3225_v39  ;;  %3353 = vst.msk [vmem:[%s4791_s17 + $0x110] sm:$0xff] %vm3318_vm4, %v3224_v63  ;;  %3148 = vmax.xlane.f32.xlu1 %v8101_v33  ;;  %3146 = vmax.xlane.f32.xlu0 %v8102_v61  ;;  %v8114_v33 = vld [vmem:[#allocation77_spill] sm:$0xff] }
 0x5f2   : > { %v3009_v59 = vpop.xlane.xlu1 %3008  ;;  %v3007_v35 = vpop.xlane.xlu0 %3006 }
 0x5f3   : > { %v3227_v29 = vmax.f32 %v2843_v2, %v3009_v59  ;;  %v3226_v56 = vmax.f32 %v2842_v28, %v3007_v35  ;;  %v2859_v2 = vld [vmem:[%s4791_s17 + $0x1a8] sm:$0xff]  ;;  %v2858_v28 = vld [vmem:[%s4791_s17 + $0x1a0] sm:$0xff]  ;;  %v2861_v35 = vld [vmem:[%s4791_s17 + $0x1b8] sm:$0xff] }
 0x5f5   : > { %3356 = vst.msk [vmem:[%s4791_s17 + $0x128] sm:$0xff] %vm3318_vm4, %v3227_v29  ;;  %3355 = vst.msk [vmem:[%s4791_s17 + $0x120] sm:$0xff] %vm3318_vm4, %v3226_v56  ;;  %3152 = vmax.xlane.f32.xlu1 %v8103_v46  ;;  %3150 = vmax.xlane.f32.xlu0 %v8104_v43  ;;  %v2860_v29 = vld [vmem:[%s4791_s17 + $0x1b0] sm:$0xff]  ;;  %v8115_v56 = vld [vmem:[#allocation81_spill] sm:$0xff] }
 0x5f6   : > { %v3013_v42 = vpop.xlane.xlu1 %3012  ;;  %v3011_v32 = vpop.xlane.xlu0 %3010 }
 0x5f7   : > { %v3229_v34 = vmax.f32 %v2845_v37, %v3013_v42  ;;  %v3228_v36 = vmax.f32 %v2844_v30, %v3011_v32  ;;  %v8116_v37 = vld [vmem:[#allocation79_spill] sm:$0xff]  ;;  %v2862_v32 = vld [vmem:[%s4791_s17 + $0x1c0] sm:$0xff] }
 0x5f8   : > { %v2863_v42 = vld [vmem:[%s4791_s17 + $0x1c8] sm:$0xff] }
 0x5f9   : > { %3358 = vst.msk [vmem:[%s4791_s17 + $0x138] sm:$0xff] %vm3318_vm4, %v3229_v34  ;;  %3357 = vst.msk [vmem:[%s4791_s17 + $0x130] sm:$0xff] %vm3318_vm4, %v3228_v36  ;;  %3156 = vmax.xlane.f32.xlu1 %v8105_v45  ;;  %3154 = vmax.xlane.f32.xlu0 %v8106_v48  ;;  %v8117_v34 = vld [vmem:[#allocation80_spill] sm:$0xff]  ;;  %v8118_v36 = vld [vmem:[#allocation78_spill] sm:$0xff] }
 0x5fa   : > { %v3017_v50 = vpop.xlane.xlu1 %3016  ;;  %v3015_v54 = vpop.xlane.xlu0 %3014 }
 0x5fb   : > { %v3231_v55 = vmax.f32 %v2847_v38, %v3017_v50  ;;  %v3230_v57 = vmax.f32 %v2846_v41, %v3015_v54  ;;  %v2865_v50 = vld [vmem:[%s4791_s17 + $0x1d8] sm:$0xff]  ;;  %v2864_v54 = vld [vmem:[%s4791_s17 + $0x1d0] sm:$0xff] }
 0x5fd   : > { %3360 = vst.msk [vmem:[%s4791_s17 + $0x148] sm:$0xff] %vm3318_vm4, %v3231_v55  ;;  %3359 = vst.msk [vmem:[%s4791_s17 + $0x140] sm:$0xff] %vm3318_vm4, %v3230_v57  ;;  %3160 = vmax.xlane.f32.xlu1 %v8107_v0  ;;  %3158 = vmax.xlane.f32.xlu0 %v8108_v1  ;;  %v2867_v0 = vld [vmem:[%s4791_s17 + $0x1e8] sm:$0xff]  ;;  %v2866_v1 = vld [vmem:[%s4791_s17 + $0x1e0] sm:$0xff] }
 0x5fe   : > { %v3021_v3 = vpop.xlane.xlu1 %3020  ;;  %v3019_v4 = vpop.xlane.xlu0 %3018 }
 0x5ff   : > { %v3233_v5 = vmax.f32 %v2849_v60, %v3021_v3  ;;  %v3232_v6 = vmax.f32 %v2848_v62, %v3019_v4 }
 0x601   : > { %3362 = vst.msk [vmem:[%s4791_s17 + $0x158] sm:$0xff] %vm3318_vm4, %v3233_v5  ;;  %3361 = vst.msk [vmem:[%s4791_s17 + $0x150] sm:$0xff] %vm3318_vm4, %v3232_v6  ;;  %3164 = vmax.xlane.f32.xlu1 %v8109_v40  ;;  %3162 = vmax.xlane.f32.xlu0 %v8110_v9 }
 0x602   : > { %v3025_v10 = vpop.xlane.xlu1 %3024  ;;  %v3023_v51 = vpop.xlane.xlu0 %3022 }
 0x603   : > { %v3235_v53 = vmax.f32 %v2851_v7, %v3025_v10  ;;  %v3234_v58 = vmax.f32 %v2850_v8, %v3023_v51  ;;  %v2869_v7 = vld [vmem:[%s4791_s17 + $0x1f8] sm:$0xff]  ;;  %v2868_v8 = vld [vmem:[%s4791_s17 + $0x1f0] sm:$0xff] }
 0x605   : > { %3364 = vst.msk [vmem:[%s4791_s17 + $0x168] sm:$0xff] %vm3318_vm4, %v3235_v53  ;;  %3363 = vst.msk [vmem:[%s4791_s17 + $0x160] sm:$0xff] %vm3318_vm4, %v3234_v58  ;;  %3168 = vmax.xlane.f32.xlu1 %v5391_v47  ;;  %3166 = vmax.xlane.f32.xlu0 %v8111_v13  ;;  %v2871_v53 = vld [vmem:[%s4791_s17 + $0x208] sm:$0xff]  ;;  %v2870_v58 = vld [vmem:[%s4791_s17 + $0x200] sm:$0xff] }
 0x606   : > { %v3029_v14 = vpop.xlane.xlu1 %3028  ;;  %v3027_v15 = vpop.xlane.xlu0 %3026 }
 0x607   : > { %v3237_v16 = vmax.f32 %v2853_v11, %v3029_v14  ;;  %v3236_v17 = vmax.f32 %v2852_v12, %v3027_v15  ;;  %v2873_v15 = vld [vmem:[%s4791_s17 + $0x218] sm:$0xff] }
 0x609   : > { %3366 = vst.msk [vmem:[%s4791_s17 + $0x178] sm:$0xff] %vm3318_vm4, %v3237_v16  ;;  %3365 = vst.msk [vmem:[%s4791_s17 + $0x170] sm:$0xff] %vm3318_vm4, %v3236_v17  ;;  %3172 = vmax.xlane.f32.xlu1 %v8112_v20  ;;  %3170 = vmax.xlane.f32.xlu0 %v8113_v21  ;;  %v2872_v16 = vld [vmem:[%s4791_s17 + $0x210] sm:$0xff]  ;;  %v2875_v21 = vld [vmem:[%s4791_s17 + $0x228] sm:$0xff] }
 0x60a   : > { %v3033_v47 = vpop.xlane.xlu1 %3032  ;;  %v3031_v22 = vpop.xlane.xlu0 %3030 }
 0x60b   : > { %v3239_v23 = vmax.f32 %v2855_v18, %v3033_v47  ;;  %v3238_v24 = vmax.f32 %v2854_v19, %v3031_v22  ;;  %v2874_v47 = vld [vmem:[%s4791_s17 + $0x220] sm:$0xff] }
 0x60d   : > { %3368 = vst.msk [vmem:[%s4791_s17 + $0x188] sm:$0xff] %vm3318_vm4, %v3239_v23  ;;  %3367 = vst.msk [vmem:[%s4791_s17 + $0x180] sm:$0xff] %vm3318_vm4, %v3238_v24  ;;  %3176 = vmax.xlane.f32.xlu1 %v5401_v31  ;;  %3174 = vmax.xlane.f32.xlu0 %v5397_v27 }
 0x60e   : > { %v3037_v49 = vpop.xlane.xlu1 %3036  ;;  %v3035_v44 = vpop.xlane.xlu0 %3034 }
 0x60f   : > { %v3241_v39 = vmax.f32 %v2857_v25, %v3037_v49  ;;  %v3240_v63 = vmax.f32 %v2856_v26, %v3035_v44  ;;  %v2877_v26 = vld [vmem:[%s4791_s17 + $0x238] sm:$0xff]  ;;  %v2876_v49 = vld [vmem:[%s4791_s17 + $0x230] sm:$0xff] }
 0x611   : > { %3370 = vst.msk [vmem:[%s4791_s17 + $0x198] sm:$0xff] %vm3318_vm4, %v3241_v39  ;;  %3369 = vst.msk [vmem:[%s4791_s17 + $0x190] sm:$0xff] %vm3318_vm4, %v3240_v63  ;;  %3180 = vmax.xlane.f32.xlu1 %v5399_v52  ;;  %3178 = vmax.xlane.f32.xlu0 %v8114_v33  ;;  %v2878_v33 = vld [vmem:[%s4791_s17 + $0x240] sm:$0xff] }
 0x612   : > { %v3041_v27 = vpop.xlane.xlu1 %3040  ;;  %v3039_v31 = vpop.xlane.xlu0 %3038 }
 0x613   : > { %v3243_v61 = vmax.f32 %v2859_v2, %v3041_v27  ;;  %v3242_v59 = vmax.f32 %v2858_v28, %v3039_v31  ;;  %v2879_v28 = vld [vmem:[%s4791_s17 + $0x248] sm:$0xff] }
 0x615   : > { %3372 = vst.msk [vmem:[%s4791_s17 + $0x1a8] sm:$0xff] %vm3318_vm4, %v3243_v61  ;;  %3371 = vst.msk [vmem:[%s4791_s17 + $0x1a0] sm:$0xff] %vm3318_vm4, %v3242_v59  ;;  %3184 = vmax.xlane.f32.xlu1 %v8115_v56  ;;  %3182 = vmax.xlane.f32.xlu0 %v8116_v37 }
 0x616   : > { %v3045_v52 = vpop.xlane.xlu1 %3044  ;;  %v3043_v30 = vpop.xlane.xlu0 %3042 }
 0x617   : > { %v3245_v46 = vmax.f32 %v2861_v35, %v3045_v52  ;;  %v3244_v43 = vmax.f32 %v2860_v29, %v3043_v30  ;;  %v2881_v35 = vld [vmem:[%s4791_s17 + $0x258] sm:$0xff]  ;;  %v2880_v29 = vld [vmem:[%s4791_s17 + $0x250] sm:$0xff] }
 0x619   : > { %3374 = vst.msk [vmem:[%s4791_s17 + $0x1b8] sm:$0xff] %vm3318_vm4, %v3245_v46  ;;  %3373 = vst.msk [vmem:[%s4791_s17 + $0x1b0] sm:$0xff] %vm3318_vm4, %v3244_v43  ;;  %3188 = vmax.xlane.f32.xlu1 %v8117_v34  ;;  %3186 = vmax.xlane.f32.xlu0 %v8118_v36  ;;  %v2883_v46 = vld [vmem:[%s4791_s17 + $0x268] sm:$0xff]  ;;  %v2882_v43 = vld [vmem:[%s4791_s17 + $0x260] sm:$0xff] }
 0x61a   : > { %v3049_v38 = vpop.xlane.xlu1 %3048  ;;  %v3047_v41 = vpop.xlane.xlu0 %3046 }
 0x61b   : > { %v3247_v45 = vmax.f32 %v2863_v42, %v3049_v38  ;;  %v3246_v48 = vmax.f32 %v2862_v32, %v3047_v41  ;;  %v2885_v38 = vld [vmem:[%s4791_s17 + $0x278] sm:$0xff]  ;;  %v2884_v41 = vld [vmem:[%s4791_s17 + $0x270] sm:$0xff] }
 0x61d   : > { %3376 = vst.msk [vmem:[%s4791_s17 + $0x1c8] sm:$0xff] %vm3318_vm4, %v3247_v45  ;;  %3375 = vst.msk [vmem:[%s4791_s17 + $0x1c0] sm:$0xff] %vm3318_vm4, %v3246_v48 }
 0x61e   : > { %v3053_v55 = vpop.xlane.xlu1 %3052  ;;  %v3051_v57 = vpop.xlane.xlu0 %3050 }
 0x61f   : > { %v3249_v60 = vmax.f32 %v2865_v50, %v3053_v55  ;;  %v3248_v62 = vmax.f32 %v2864_v54, %v3051_v57  ;;  %v2887_v55 = vld [vmem:[%s4791_s17 + $0x288] sm:$0xff]  ;;  %v2886_v57 = vld [vmem:[%s4791_s17 + $0x280] sm:$0xff] }
 0x621   : > { %3378 = vst.msk [vmem:[%s4791_s17 + $0x1d8] sm:$0xff] %vm3318_vm4, %v3249_v60  ;;  %3377 = vst.msk [vmem:[%s4791_s17 + $0x1d0] sm:$0xff] %vm3318_vm4, %v3248_v62 }
 0x622   : > { %v3057_v3 = vpop.xlane.xlu1 %3056  ;;  %v3055_v4 = vpop.xlane.xlu0 %3054 }
 0x623   : > { %v3251_v5 = vmax.f32 %v2867_v0, %v3057_v3  ;;  %v3250_v6 = vmax.f32 %v2866_v1, %v3055_v4  ;;  %v2889_v3 = vld [vmem:[%s4791_s17 + $0x298] sm:$0xff]  ;;  %v2888_v4 = vld [vmem:[%s4791_s17 + $0x290] sm:$0xff] }
 0x625   : > { %3380 = vst.msk [vmem:[%s4791_s17 + $0x1e8] sm:$0xff] %vm3318_vm4, %v3251_v5  ;;  %3379 = vst.msk [vmem:[%s4791_s17 + $0x1e0] sm:$0xff] %vm3318_vm4, %v3250_v6 }
 0x626   : > { %v3061_v40 = vpop.xlane.xlu1 %3060  ;;  %v3059_v9 = vpop.xlane.xlu0 %3058 }
 0x627   : > { %v3253_v10 = vmax.f32 %v2869_v7, %v3061_v40  ;;  %v3252_v51 = vmax.f32 %v2868_v8, %v3059_v9  ;;  %v2891_v40 = vld [vmem:[%s4791_s17 + $0x2a8] sm:$0xff]  ;;  %v2890_v9 = vld [vmem:[%s4791_s17 + $0x2a0] sm:$0xff] }
 0x629   : > { %3382 = vst.msk [vmem:[%s4791_s17 + $0x1f8] sm:$0xff] %vm3318_vm4, %v3253_v10  ;;  %3381 = vst.msk [vmem:[%s4791_s17 + $0x1f0] sm:$0xff] %vm3318_vm4, %v3252_v51 }
 0x62a   : > { %v3065_v11 = vpop.xlane.xlu1 %3064  ;;  %v3063_v12 = vpop.xlane.xlu0 %3062 }
 0x62b   : > { %v3255_v13 = vmax.f32 %v2871_v53, %v3065_v11  ;;  %v3254_v14 = vmax.f32 %v2870_v58, %v3063_v12  ;;  %v2893_v11 = vld [vmem:[%s4791_s17 + $0x2b8] sm:$0xff]  ;;  %v2892_v12 = vld [vmem:[%s4791_s17 + $0x2b0] sm:$0xff] }
 0x62d   : > { %3384 = vst.msk [vmem:[%s4791_s17 + $0x208] sm:$0xff] %vm3318_vm4, %v3255_v13  ;;  %3383 = vst.msk [vmem:[%s4791_s17 + $0x200] sm:$0xff] %vm3318_vm4, %v3254_v14 }
 0x62e   : > { %v3069_v17 = vpop.xlane.xlu1 %3068  ;;  %v3067_v18 = vpop.xlane.xlu0 %3066 }
 0x62f   : > { %v3257_v19 = vmax.f32 %v2873_v15, %v3069_v17  ;;  %v3256_v20 = vmax.f32 %v2872_v16, %v3067_v18  ;;  %v2895_v17 = vld [vmem:[%s4791_s17 + $0x2c8] sm:$0xff]  ;;  %v2894_v18 = vld [vmem:[%s4791_s17 + $0x2c0] sm:$0xff] }
 0x631   : > { %3386 = vst.msk [vmem:[%s4791_s17 + $0x218] sm:$0xff] %vm3318_vm4, %v3257_v19  ;;  %3385 = vst.msk [vmem:[%s4791_s17 + $0x210] sm:$0xff] %vm3318_vm4, %v3256_v20 }
 0x632   : > { %v3073_v22 = vpop.xlane.xlu1 %3072  ;;  %v3071_v23 = vpop.xlane.xlu0 %3070 }
 0x633   : > { %v3259_v24 = vmax.f32 %v2875_v21, %v3073_v22  ;;  %v3258_v25 = vmax.f32 %v2874_v47, %v3071_v23  ;;  %v2897_v22 = vld [vmem:[%s4791_s17 + $0x2d8] sm:$0xff]  ;;  %v2896_v23 = vld [vmem:[%s4791_s17 + $0x2d0] sm:$0xff] }
 0x635   : > { %3388 = vst.msk [vmem:[%s4791_s17 + $0x228] sm:$0xff] %vm3318_vm4, %v3259_v24  ;;  %3387 = vst.msk [vmem:[%s4791_s17 + $0x220] sm:$0xff] %vm3318_vm4, %v3258_v25 }
 0x636   : > { %v3077_v44 = vpop.xlane.xlu1 %3076  ;;  %v3075_v39 = vpop.xlane.xlu0 %3074 }
 0x637   : > { %v3261_v63 = vmax.f32 %v2877_v26, %v3077_v44  ;;  %v3260_v2 = vmax.f32 %v2876_v49, %v3075_v39  ;;  %v2899_v44 = vld [vmem:[%s4791_s17 + $0x2e8] sm:$0xff]  ;;  %v2898_v39 = vld [vmem:[%s4791_s17 + $0x2e0] sm:$0xff] }
 0x639   : > { %3390 = vst.msk [vmem:[%s4791_s17 + $0x238] sm:$0xff] %vm3318_vm4, %v3261_v63  ;;  %3389 = vst.msk [vmem:[%s4791_s17 + $0x230] sm:$0xff] %vm3318_vm4, %v3260_v2 }
 0x63a   : > { %v3081_v27 = vpop.xlane.xlu1 %3080  ;;  %v3079_v31 = vpop.xlane.xlu0 %3078 }
 0x63b   : > { %v3263_v61 = vmax.f32 %v2879_v28, %v3081_v27  ;;  %v3262_v59 = vmax.f32 %v2878_v33, %v3079_v31  ;;  %v2901_v27 = vld [vmem:[%s4791_s17 + $0x2f8] sm:$0xff]  ;;  %v2900_v31 = vld [vmem:[%s4791_s17 + $0x2f0] sm:$0xff] }
 0x63d   : > { %3392 = vst.msk [vmem:[%s4791_s17 + $0x248] sm:$0xff] %vm3318_vm4, %v3263_v61  ;;  %3391 = vst.msk [vmem:[%s4791_s17 + $0x240] sm:$0xff] %vm3318_vm4, %v3262_v59 }
 0x63e   : > { %v3085_v56 = vpop.xlane.xlu1 %3084  ;;  %v3083_v37 = vpop.xlane.xlu0 %3082 }
 0x63f   : > { %v3265_v52 = vmax.f32 %v2881_v35, %v3085_v56  ;;  %v3264_v30 = vmax.f32 %v2880_v29, %v3083_v37  ;;  %v2903_v56 = vld [vmem:[%s4791_s17 + $0x308] sm:$0xff]  ;;  %v2902_v37 = vld [vmem:[%s4791_s17 + $0x300] sm:$0xff] }
 0x641   : > { %3394 = vst.msk [vmem:[%s4791_s17 + $0x258] sm:$0xff] %vm3318_vm4, %v3265_v52  ;;  %3393 = vst.msk [vmem:[%s4791_s17 + $0x250] sm:$0xff] %vm3318_vm4, %v3264_v30 }
 0x642   : > { %v3089_v42 = vpop.xlane.xlu1 %3088  ;;  %v3087_v32 = vpop.xlane.xlu0 %3086 }
 0x643   : > { %v3267_v34 = vmax.f32 %v2883_v46, %v3089_v42  ;;  %v3266_v36 = vmax.f32 %v2882_v43, %v3087_v32  ;;  %v2905_v42 = vld [vmem:[%s4791_s17 + $0x318] sm:$0xff]  ;;  %v2904_v32 = vld [vmem:[%s4791_s17 + $0x310] sm:$0xff] }
 0x645   : > { %3396 = vst.msk [vmem:[%s4791_s17 + $0x268] sm:$0xff] %vm3318_vm4, %v3267_v34  ;;  %3395 = vst.msk [vmem:[%s4791_s17 + $0x260] sm:$0xff] %vm3318_vm4, %v3266_v36 }
 0x646   : > { %v3093_v45 = vpop.xlane.xlu1 %3092  ;;  %v3091_v48 = vpop.xlane.xlu0 %3090 }
 0x647   : > { %v3269_v50 = vmax.f32 %v2885_v38, %v3093_v45  ;;  %v3268_v54 = vmax.f32 %v2884_v41, %v3091_v48  ;;  %v2907_v45 = vld [vmem:[%s4791_s17 + $0x328] sm:$0xff]  ;;  %v2906_v48 = vld [vmem:[%s4791_s17 + $0x320] sm:$0xff] }
 0x649   : > { %3398 = vst.msk [vmem:[%s4791_s17 + $0x278] sm:$0xff] %vm3318_vm4, %v3269_v50  ;;  %3397 = vst.msk [vmem:[%s4791_s17 + $0x270] sm:$0xff] %vm3318_vm4, %v3268_v54 }
 0x64a   : > { %v3097_v60 = vpop.xlane.xlu1 %3096  ;;  %v3095_v62 = vpop.xlane.xlu0 %3094 }
 0x64b   : > { %v3271_v0 = vmax.f32 %v2887_v55, %v3097_v60  ;;  %v3270_v1 = vmax.f32 %v2886_v57, %v3095_v62  ;;  %v2909_v60 = vld [vmem:[%s4791_s17 + $0x338] sm:$0xff]  ;;  %v2908_v62 = vld [vmem:[%s4791_s17 + $0x330] sm:$0xff] }
 0x64d   : > { %3400 = vst.msk [vmem:[%s4791_s17 + $0x288] sm:$0xff] %vm3318_vm4, %v3271_v0  ;;  %3399 = vst.msk [vmem:[%s4791_s17 + $0x280] sm:$0xff] %vm3318_vm4, %v3270_v1 }
 0x64e   : > { %v3101_v5 = vpop.xlane.xlu1 %3100  ;;  %v3099_v6 = vpop.xlane.xlu0 %3098 }
 0x64f   : > { %v3273_v7 = vmax.f32 %v2889_v3, %v3101_v5  ;;  %v3272_v8 = vmax.f32 %v2888_v4, %v3099_v6  ;;  %v2911_v5 = vld [vmem:[%s4791_s17 + $0x348] sm:$0xff]  ;;  %v2910_v6 = vld [vmem:[%s4791_s17 + $0x340] sm:$0xff] }
 0x651   : > { %3402 = vst.msk [vmem:[%s4791_s17 + $0x298] sm:$0xff] %vm3318_vm4, %v3273_v7  ;;  %3401 = vst.msk [vmem:[%s4791_s17 + $0x290] sm:$0xff] %vm3318_vm4, %v3272_v8 }
 0x652   : > { %v3105_v10 = vpop.xlane.xlu1 %3104  ;;  %v3103_v51 = vpop.xlane.xlu0 %3102 }
 0x653   : > { %v3275_v53 = vmax.f32 %v2891_v40, %v3105_v10  ;;  %v3274_v58 = vmax.f32 %v2890_v9, %v3103_v51  ;;  %v2913_v10 = vld [vmem:[%s4791_s17 + $0x358] sm:$0xff]  ;;  %v2912_v51 = vld [vmem:[%s4791_s17 + $0x350] sm:$0xff] }
 0x655   : > { %3404 = vst.msk [vmem:[%s4791_s17 + $0x2a8] sm:$0xff] %vm3318_vm4, %v3275_v53  ;;  %3403 = vst.msk [vmem:[%s4791_s17 + $0x2a0] sm:$0xff] %vm3318_vm4, %v3274_v58 }
 0x656   : > { %v3109_v13 = vpop.xlane.xlu1 %3108  ;;  %v3107_v14 = vpop.xlane.xlu0 %3106 }
 0x657   : > { %v3277_v15 = vmax.f32 %v2893_v11, %v3109_v13  ;;  %v3276_v16 = vmax.f32 %v2892_v12, %v3107_v14  ;;  %v2915_v13 = vld [vmem:[%s4791_s17 + $0x368] sm:$0xff]  ;;  %v2914_v14 = vld [vmem:[%s4791_s17 + $0x360] sm:$0xff] }
 0x659   : > { %3406 = vst.msk [vmem:[%s4791_s17 + $0x2b8] sm:$0xff] %vm3318_vm4, %v3277_v15  ;;  %3405 = vst.msk [vmem:[%s4791_s17 + $0x2b0] sm:$0xff] %vm3318_vm4, %v3276_v16 }
 0x65a   : > { %v3113_v19 = vpop.xlane.xlu1 %3112  ;;  %v3111_v20 = vpop.xlane.xlu0 %3110 }
 0x65b   : > { %v3279_v21 = vmax.f32 %v2895_v17, %v3113_v19  ;;  %v3278_v47 = vmax.f32 %v2894_v18, %v3111_v20  ;;  %v2917_v19 = vld [vmem:[%s4791_s17 + $0x378] sm:$0xff]  ;;  %v2916_v20 = vld [vmem:[%s4791_s17 + $0x370] sm:$0xff] }
 0x65d   : > { %3408 = vst.msk [vmem:[%s4791_s17 + $0x2c8] sm:$0xff] %vm3318_vm4, %v3279_v21  ;;  %3407 = vst.msk [vmem:[%s4791_s17 + $0x2c0] sm:$0xff] %vm3318_vm4, %v3278_v47 }
 0x65e   : > { %v3117_v24 = vpop.xlane.xlu1 %3116  ;;  %v3115_v25 = vpop.xlane.xlu0 %3114 }
 0x65f   : > { %v3281_v26 = vmax.f32 %v2897_v22, %v3117_v24  ;;  %v3280_v49 = vmax.f32 %v2896_v23, %v3115_v25  ;;  %v2919_v24 = vld [vmem:[%s4791_s17 + $0x388] sm:$0xff]  ;;  %v2918_v25 = vld [vmem:[%s4791_s17 + $0x380] sm:$0xff] }
 0x661   : > { %3410 = vst.msk [vmem:[%s4791_s17 + $0x2d8] sm:$0xff] %vm3318_vm4, %v3281_v26  ;;  %3409 = vst.msk [vmem:[%s4791_s17 + $0x2d0] sm:$0xff] %vm3318_vm4, %v3280_v49 }
 0x662   : > { %v3121_v63 = vpop.xlane.xlu1 %3120  ;;  %v3119_v2 = vpop.xlane.xlu0 %3118 }
 0x663   : > { %v3283_v28 = vmax.f32 %v2899_v44, %v3121_v63  ;;  %v3282_v33 = vmax.f32 %v2898_v39, %v3119_v2  ;;  %v2921_v63 = vld [vmem:[%s4791_s17 + $0x398] sm:$0xff]  ;;  %v2920_v2 = vld [vmem:[%s4791_s17 + $0x390] sm:$0xff] }
 0x665   : > { %3412 = vst.msk [vmem:[%s4791_s17 + $0x2e8] sm:$0xff] %vm3318_vm4, %v3283_v28  ;;  %3411 = vst.msk [vmem:[%s4791_s17 + $0x2e0] sm:$0xff] %vm3318_vm4, %v3282_v33 }
 0x666   : > { %v3125_v61 = vpop.xlane.xlu1 %3124  ;;  %v3123_v59 = vpop.xlane.xlu0 %3122 }
 0x667   : > { %v3285_v35 = vmax.f32 %v2901_v27, %v3125_v61  ;;  %v3284_v29 = vmax.f32 %v2900_v31, %v3123_v59  ;;  %v2923_v61 = vld [vmem:[%s4791_s17 + $0x3a8] sm:$0xff]  ;;  %v2922_v59 = vld [vmem:[%s4791_s17 + $0x3a0] sm:$0xff] }
 0x669   : > { %3414 = vst.msk [vmem:[%s4791_s17 + $0x2f8] sm:$0xff] %vm3318_vm4, %v3285_v35  ;;  %3413 = vst.msk [vmem:[%s4791_s17 + $0x2f0] sm:$0xff] %vm3318_vm4, %v3284_v29 }
 0x66a   : > { %v3129_v52 = vpop.xlane.xlu1 %3128  ;;  %v3127_v30 = vpop.xlane.xlu0 %3126 }
 0x66b   : > { %v3287_v46 = vmax.f32 %v2903_v56, %v3129_v52  ;;  %v3286_v43 = vmax.f32 %v2902_v37, %v3127_v30  ;;  %v2925_v52 = vld [vmem:[%s4791_s17 + $0x3b8] sm:$0xff]  ;;  %v2924_v30 = vld [vmem:[%s4791_s17 + $0x3b0] sm:$0xff] }
 0x66d   : > { %3416 = vst.msk [vmem:[%s4791_s17 + $0x308] sm:$0xff] %vm3318_vm4, %v3287_v46  ;;  %3415 = vst.msk [vmem:[%s4791_s17 + $0x300] sm:$0xff] %vm3318_vm4, %v3286_v43 }
 0x66e   : > { %v3133_v34 = vpop.xlane.xlu1 %3132  ;;  %v3131_v36 = vpop.xlane.xlu0 %3130 }
 0x66f   : > { %v3289_v38 = vmax.f32 %v2905_v42, %v3133_v34  ;;  %v3288_v41 = vmax.f32 %v2904_v32, %v3131_v36  ;;  %v2927_v34 = vld [vmem:[%s4791_s17 + $0x3c8] sm:$0xff]  ;;  %v2926_v36 = vld [vmem:[%s4791_s17 + $0x3c0] sm:$0xff] }
 0x671   : > { %3418 = vst.msk [vmem:[%s4791_s17 + $0x318] sm:$0xff] %vm3318_vm4, %v3289_v38  ;;  %3417 = vst.msk [vmem:[%s4791_s17 + $0x310] sm:$0xff] %vm3318_vm4, %v3288_v41 }
 0x672   : > { %v3137_v50 = vpop.xlane.xlu1 %3136  ;;  %v3135_v54 = vpop.xlane.xlu0 %3134 }
 0x673   : > { %v3291_v55 = vmax.f32 %v2907_v45, %v3137_v50  ;;  %v3290_v57 = vmax.f32 %v2906_v48, %v3135_v54  ;;  %v2929_v50 = vld [vmem:[%s4791_s17 + $0x3d8] sm:$0xff]  ;;  %v2928_v54 = vld [vmem:[%s4791_s17 + $0x3d0] sm:$0xff] }
 0x675   : > { %3420 = vst.msk [vmem:[%s4791_s17 + $0x328] sm:$0xff] %vm3318_vm4, %v3291_v55  ;;  %3419 = vst.msk [vmem:[%s4791_s17 + $0x320] sm:$0xff] %vm3318_vm4, %v3290_v57 }
 0x676   : > { %v3141_v0 = vpop.xlane.xlu1 %3140  ;;  %v3139_v1 = vpop.xlane.xlu0 %3138 }
 0x677   : > { %v3293_v3 = vmax.f32 %v2909_v60, %v3141_v0  ;;  %v3292_v4 = vmax.f32 %v2908_v62, %v3139_v1  ;;  %v2931_v0 = vld [vmem:[%s4791_s17 + $0x3e8] sm:$0xff]  ;;  %v2930_v1 = vld [vmem:[%s4791_s17 + $0x3e0] sm:$0xff] }
 0x679   : > { %3422 = vst.msk [vmem:[%s4791_s17 + $0x338] sm:$0xff] %vm3318_vm4, %v3293_v3  ;;  %3421 = vst.msk [vmem:[%s4791_s17 + $0x330] sm:$0xff] %vm3318_vm4, %v3292_v4 }
 0x67a   : > { %v3145_v7 = vpop.xlane.xlu1 %3144  ;;  %v3143_v8 = vpop.xlane.xlu0 %3142 }
 0x67b   : > { %v3295_v40 = vmax.f32 %v2911_v5, %v3145_v7  ;;  %v3294_v9 = vmax.f32 %v2910_v6, %v3143_v8  ;;  %v2933_v7 = vld [vmem:[%s4791_s17 + $0x3f8] sm:$0xff]  ;;  %v2932_v8 = vld [vmem:[%s4791_s17 + $0x3f0] sm:$0xff] }
 0x67d   : > { %3424 = vst.msk [vmem:[%s4791_s17 + $0x348] sm:$0xff] %vm3318_vm4, %v3295_v40  ;;  %3423 = vst.msk [vmem:[%s4791_s17 + $0x340] sm:$0xff] %vm3318_vm4, %v3294_v9 }
 0x67e   : > { %v3149_v53 = vpop.xlane.xlu1 %3148  ;;  %v3147_v58 = vpop.xlane.xlu0 %3146 }
 0x67f   : > { %v3297_v11 = vmax.f32 %v2913_v10, %v3149_v53  ;;  %v3296_v12 = vmax.f32 %v2912_v51, %v3147_v58 }
 0x681   : > { %3426 = vst.msk [vmem:[%s4791_s17 + $0x358] sm:$0xff] %vm3318_vm4, %v3297_v11  ;;  %3425 = vst.msk [vmem:[%s4791_s17 + $0x350] sm:$0xff] %vm3318_vm4, %v3296_v12 }
 0x682   : > { %v3153_v15 = vpop.xlane.xlu1 %3152  ;;  %v3151_v16 = vpop.xlane.xlu0 %3150 }
 0x683   : > { %v3299_v17 = vmax.f32 %v2915_v13, %v3153_v15  ;;  %v3298_v18 = vmax.f32 %v2914_v14, %v3151_v16 }
 0x685   : > { %3428 = vst.msk [vmem:[%s4791_s17 + $0x368] sm:$0xff] %vm3318_vm4, %v3299_v17  ;;  %3427 = vst.msk [vmem:[%s4791_s17 + $0x360] sm:$0xff] %vm3318_vm4, %v3298_v18 }
 0x686   : > { %v3157_v21 = vpop.xlane.xlu1 %3156  ;;  %v3155_v47 = vpop.xlane.xlu0 %3154 }
 0x687   : > { %v3301_v22 = vmax.f32 %v2917_v19, %v3157_v21  ;;  %v3300_v23 = vmax.f32 %v2916_v20, %v3155_v47 }
 0x689   : > { %3430 = vst.msk [vmem:[%s4791_s17 + $0x378] sm:$0xff] %vm3318_vm4, %v3301_v22  ;;  %3429 = vst.msk [vmem:[%s4791_s17 + $0x370] sm:$0xff] %vm3318_vm4, %v3300_v23 }
 0x68a   : > { %v3161_v26 = vpop.xlane.xlu1 %3160  ;;  %v3159_v49 = vpop.xlane.xlu0 %3158 }
 0x68b   : > { %v3303_v44 = vmax.f32 %v2919_v24, %v3161_v26  ;;  %v3302_v39 = vmax.f32 %v2918_v25, %v3159_v49 }
 0x68d   : > { %3432 = vst.msk [vmem:[%s4791_s17 + $0x388] sm:$0xff] %vm3318_vm4, %v3303_v44  ;;  %3431 = vst.msk [vmem:[%s4791_s17 + $0x380] sm:$0xff] %vm3318_vm4, %v3302_v39 }
 0x68e   : > { %v3165_v28 = vpop.xlane.xlu1 %3164  ;;  %v3163_v33 = vpop.xlane.xlu0 %3162 }
 0x68f   : > { %v3305_v27 = vmax.f32 %v2921_v63, %v3165_v28  ;;  %v3304_v31 = vmax.f32 %v2920_v2, %v3163_v33 }
 0x691   : > { %3434 = vst.msk [vmem:[%s4791_s17 + $0x398] sm:$0xff] %vm3318_vm4, %v3305_v27  ;;  %3433 = vst.msk [vmem:[%s4791_s17 + $0x390] sm:$0xff] %vm3318_vm4, %v3304_v31 }
 0x692   : > { %v3169_v35 = vpop.xlane.xlu1 %3168  ;;  %v3167_v29 = vpop.xlane.xlu0 %3166 }
 0x693   : > { %v3307_v56 = vmax.f32 %v2923_v61, %v3169_v35  ;;  %v3306_v37 = vmax.f32 %v2922_v59, %v3167_v29 }
 0x695   : > { %3436 = vst.msk [vmem:[%s4791_s17 + $0x3a8] sm:$0xff] %vm3318_vm4, %v3307_v56  ;;  %3435 = vst.msk [vmem:[%s4791_s17 + $0x3a0] sm:$0xff] %vm3318_vm4, %v3306_v37 }
 0x696   : > { %v3173_v46 = vpop.xlane.xlu1 %3172  ;;  %v3171_v43 = vpop.xlane.xlu0 %3170 }
 0x697   : > { %v3309_v42 = vmax.f32 %v2925_v52, %v3173_v46  ;;  %v3308_v32 = vmax.f32 %v2924_v30, %v3171_v43 }
 0x699   : > { %3438 = vst.msk [vmem:[%s4791_s17 + $0x3b8] sm:$0xff] %vm3318_vm4, %v3309_v42  ;;  %3437 = vst.msk [vmem:[%s4791_s17 + $0x3b0] sm:$0xff] %vm3318_vm4, %v3308_v32 }
 0x69a   : > { %v3177_v38 = vpop.xlane.xlu1 %3176  ;;  %v3175_v41 = vpop.xlane.xlu0 %3174 }
 0x69b   : > { %v3311_v45 = vmax.f32 %v2927_v34, %v3177_v38  ;;  %v3310_v48 = vmax.f32 %v2926_v36, %v3175_v41 }
 0x69d   : > { %3440 = vst.msk [vmem:[%s4791_s17 + $0x3c8] sm:$0xff] %vm3318_vm4, %v3311_v45  ;;  %3439 = vst.msk [vmem:[%s4791_s17 + $0x3c0] sm:$0xff] %vm3318_vm4, %v3310_v48 }
 0x69e   : > { %v3181_v55 = vpop.xlane.xlu1 %3180  ;;  %v3179_v57 = vpop.xlane.xlu0 %3178 }
 0x69f   : > { %v3313_v60 = vmax.f32 %v2929_v50, %v3181_v55  ;;  %v3312_v62 = vmax.f32 %v2928_v54, %v3179_v57 }
 0x6a1   : > { %3442 = vst.msk [vmem:[%s4791_s17 + $0x3d8] sm:$0xff] %vm3318_vm4, %v3313_v60  ;;  %3441 = vst.msk [vmem:[%s4791_s17 + $0x3d0] sm:$0xff] %vm3318_vm4, %v3312_v62 }
 0x6a2   : > { %v3185_v3 = vpop.xlane.xlu1 %3184  ;;  %v3183_v4 = vpop.xlane.xlu0 %3182 }
 0x6a3   : > { %v3315_v5 = vmax.f32 %v2931_v0, %v3185_v3  ;;  %v3314_v6 = vmax.f32 %v2930_v1, %v3183_v4 }
 0x6a5   : > { %3444 = vst.msk [vmem:[%s4791_s17 + $0x3e8] sm:$0xff] %vm3318_vm4, %v3315_v5  ;;  %3443 = vst.msk [vmem:[%s4791_s17 + $0x3e0] sm:$0xff] %vm3318_vm4, %v3314_v6 }
 0x6a6   : > { %v3189_v40 = vpop.xlane.xlu1 %3188  ;;  %v3187_v9 = vpop.xlane.xlu0 %3186 }
 0x6a7   : > { %v3317_v10 = vmax.f32 %v2933_v7, %v3189_v40  ;;  %v3316_v51 = vmax.f32 %v2932_v8, %v3187_v9 }
 0x6a9   : > { %3446 = vst.msk [vmem:[%s4791_s17 + $0x3f8] sm:$0xff] %vm3318_vm4, %v3317_v10  ;;  %3445 = vst.msk [vmem:[%s4791_s17 + $0x3f0] sm:$0xff] %vm3318_vm4, %v3316_v51 }
 0x6aa PF: > { %3449 = sbr.rel (%p4253_p8) target bundleno = 1810 (0x712), region = 64  ;;  %v3450_v53 = vld [vmem:[%s4791_s17] sm:$0xff] (!%p4253_p8)  ;;  %v3451_v11 = vld [vmem:[%s4791_s17 + $0x8] sm:$0xff] (!%p4253_p8)  ;;  %v3452_v14 = vld [vmem:[%s4791_s17 + $0x10] sm:$0xff] (!%p4253_p8)  ;;  %vm3962_vm5 = vcmask (!%p4253_p8), 7168  }
 0x6ab   : > { %v3578_v58 = vld [vmem:[%s7875_s6] sm:$0xff] (!%p4253_p8)  ;;  %v3579_v13 = vld [vmem:[%s7875_s6 + $0x8] sm:$0xff] (!%p4253_p8)  ;;  %v3580_v15 = vld [vmem:[%s7875_s6 + $0x10] sm:$0xff] (!%p4253_p8) }
 0x6ac   : > { %v3706_v12 = vadd.f32 (!%p4253_p8), %v3578_v58, %v3450_v53  ;;  %v3707_v16 = vadd.f32 (!%p4253_p8), %v3579_v13, %v3451_v11  ;;  %v3708_v17 = vadd.f32 (!%p4253_p8), %v3580_v15, %v3452_v14  ;;  %v3453_v18 = vld [vmem:[%s4791_s17 + $0x18] sm:$0xff] (!%p4253_p8)  ;;  %v3454_v20 = vld [vmem:[%s4791_s17 + $0x20] sm:$0xff] (!%p4253_p8)  ;;  %v3455_v23 = vld [vmem:[%s4791_s17 + $0x28] sm:$0xff] (!%p4253_p8) }
 0x6ad   : > { %v3581_v19 = vld [vmem:[%s7875_s6 + $0x18] sm:$0xff] (!%p4253_p8)  ;;  %v3582_v22 = vld [vmem:[%s7875_s6 + $0x20] sm:$0xff] (!%p4253_p8)  ;;  %v3583_v24 = vld [vmem:[%s7875_s6 + $0x28] sm:$0xff] (!%p4253_p8) }
 0x6ae   : > { %v3834_v21 = vmax.f32 (!%p4253_p8), %v3706_v12, 0.0  ;;  %v3709_v47 = vadd.f32 (!%p4253_p8), %v3581_v19, %v3453_v18  ;;  %v3835_v25 = vmax.f32 (!%p4253_p8), %v3707_v16, 0.0  ;;  %v3836_v26 = vmax.f32 (!%p4253_p8), %v3708_v17, 0.0  ;;  %v3456_v39 = vld [vmem:[%s4791_s17 + $0x30] sm:$0xff] (!%p4253_p8)  ;;  %v3457_v2 = vld [vmem:[%s4791_s17 + $0x38] sm:$0xff] (!%p4253_p8)  ;;  %v3458_v31 = vld [vmem:[%s4791_s17 + $0x40] sm:$0xff] (!%p4253_p8) }
 0x6af   : > { %v3710_v49 = vadd.f32 (!%p4253_p8), %v3582_v22, %v3454_v20  ;;  %v3711_v44 = vadd.f32 (!%p4253_p8), %v3583_v24, %v3455_v23  ;;  %v3584_v63 = vld [vmem:[%s7875_s6 + $0x30] sm:$0xff] (!%p4253_p8)  ;;  %v3585_v27 = vld [vmem:[%s7875_s6 + $0x38] sm:$0xff] (!%p4253_p8)  ;;  %v3586_v61 = vld [vmem:[%s7875_s6 + $0x40] sm:$0xff] (!%p4253_p8) }
 0x6b0   : > { %3963 = vst.msk [vmem:[%s4791_s17] sm:$0xff] (!%p4253_p8), %vm3962_vm5, %v3834_v21  ;;  %v3837_v28 = vmax.f32 (!%p4253_p8), %v3709_v47, 0.0  ;;  %v3712_v33 = vadd.f32 (!%p4253_p8), %v3584_v63, %v3456_v39  ;;  %3964 = vst.msk [vmem:[%s4791_s17 + $0x8] sm:$0xff] (!%p4253_p8), %vm3962_vm5, %v3835_v25  ;;  %v3713_v29 = vadd.f32 (!%p4253_p8), %v3585_v27, %v3457_v2  ;;  %v3714_v56 = vadd.f32 (!%p4253_p8), %v3586_v61, %v3458_v31  ;;  %v3459_v37 = vld [vmem:[%s4791_s17 + $0x48] sm:$0xff] (!%p4253_p8)  ;;  %v3460_v30 = vld [vmem:[%s4791_s17 + $0x50] sm:$0xff] (!%p4253_p8) }
 0x6b1   : > { %3965 = vst.msk [vmem:[%s4791_s17 + $0x10] sm:$0xff] %vm3962_vm5, %v3836_v26  ;;  %v3838_v59 = vmax.f32 %v3710_v49, 0.0  ;;  %v3839_v35 = vmax.f32 %v3711_v44, 0.0  ;;  %v3587_v52 = vld [vmem:[%s7875_s6 + $0x48] sm:$0xff]  ;;  %v3588_v42 = vld [vmem:[%s7875_s6 + $0x50] sm:$0xff]  ;;  %v3461_v32 = vld [vmem:[%s4791_s17 + $0x58] sm:$0xff] }
 0x6b2   : > { %3966 = vst.msk [vmem:[%s4791_s17 + $0x18] sm:$0xff] %vm3962_vm5, %v3837_v28  ;;  %v3840_v46 = vmax.f32 %v3712_v33, 0.0  ;;  %v3715_v43 = vadd.f32 %v3587_v52, %v3459_v37  ;;  %v3589_v34 = vld [vmem:[%s7875_s6 + $0x58] sm:$0xff]  ;;  %v3841_v36 = vmax.f32 %v3713_v29, 0.0  ;;  %v3842_v38 = vmax.f32 %v3714_v56, 0.0  ;;  %v3462_v48 = vld [vmem:[%s4791_s17 + $0x60] sm:$0xff] }
 0x6b3   : > { %3967 = vst.msk [vmem:[%s4791_s17 + $0x20] sm:$0xff] %vm3962_vm5, %v3838_v59  ;;  %3968 = vst.msk [vmem:[%s4791_s17 + $0x28] sm:$0xff] %vm3962_vm5, %v3839_v35  ;;  %v3716_v41 = vadd.f32 %v3588_v42, %v3460_v30  ;;  %v3717_v45 = vadd.f32 %v3589_v34, %v3461_v32  ;;  %v3590_v50 = vld [vmem:[%s7875_s6 + $0x60] sm:$0xff]  ;;  %v3463_v54 = vld [vmem:[%s4791_s17 + $0x68] sm:$0xff] }
 0x6b4   : > { %3969 = vst.msk [vmem:[%s4791_s17 + $0x30] sm:$0xff] %vm3962_vm5, %v3840_v46  ;;  %v3843_v55 = vmax.f32 %v3715_v43, 0.0  ;;  %v3718_v57 = vadd.f32 %v3590_v50, %v3462_v48  ;;  %v3591_v60 = vld [vmem:[%s7875_s6 + $0x68] sm:$0xff]  ;;  %v3464_v62 = vld [vmem:[%s4791_s17 + $0x70] sm:$0xff]  ;;  %3970 = vst.msk [vmem:[%s4791_s17 + $0x38] sm:$0xff] %vm3962_vm5, %v3841_v36 }
 0x6b5   : > { %v3592_v0 = vld [vmem:[%s7875_s6 + $0x70] sm:$0xff]  ;;  %3971 = vst.msk [vmem:[%s4791_s17 + $0x40] sm:$0xff] %vm3962_vm5, %v3842_v38  ;;  %v3844_v1 = vmax.f32 %v3716_v41, 0.0  ;;  %v3845_v3 = vmax.f32 %v3717_v45, 0.0  ;;  %v3719_v4 = vadd.f32 %v3591_v60, %v3463_v54  ;;  %v3465_v6 = vld [vmem:[%s4791_s17 + $0x78] sm:$0xff]  ;;  %v3466_v8 = vld [vmem:[%s4791_s17 + $0x80] sm:$0xff] }
 0x6b6   : > { %v3720_v5 = vadd.f32 %v3592_v0, %v3464_v62  ;;  %v3593_v7 = vld [vmem:[%s7875_s6 + $0x78] sm:$0xff]  ;;  %3972 = vst.msk [vmem:[%s4791_s17 + $0x48] sm:$0xff] %vm3962_vm5, %v3843_v55  ;;  %v3846_v40 = vmax.f32 %v3718_v57, 0.0  ;;  %v3594_v10 = vld [vmem:[%s7875_s6 + $0x80] sm:$0xff]  ;;  %v3467_v51 = vld [vmem:[%s4791_s17 + $0x88] sm:$0xff] }
 0x6b7   : > { %v3721_v9 = vadd.f32 %v3593_v7, %v3465_v6  ;;  %v3595_v53 = vld [vmem:[%s7875_s6 + $0x88] sm:$0xff]  ;;  %3973 = vst.msk [vmem:[%s4791_s17 + $0x50] sm:$0xff] %vm3962_vm5, %v3844_v1  ;;  %3974 = vst.msk [vmem:[%s4791_s17 + $0x58] sm:$0xff] %vm3962_vm5, %v3845_v3  ;;  %v3847_v58 = vmax.f32 %v3719_v4, 0.0  ;;  %v3722_v12 = vadd.f32 %v3594_v10, %v3466_v8  ;;  %v3468_v14 = vld [vmem:[%s4791_s17 + $0x90] sm:$0xff] }
 0x6b8   : > { %v3848_v11 = vmax.f32 %v3720_v5, 0.0  ;;  %v3723_v13 = vadd.f32 %v3595_v53, %v3467_v51  ;;  %v3596_v15 = vld [vmem:[%s7875_s6 + $0x90] sm:$0xff]  ;;  %v3469_v16 = vld [vmem:[%s4791_s17 + $0x98] sm:$0xff]  ;;  %3975 = vst.msk [vmem:[%s4791_s17 + $0x60] sm:$0xff] %vm3962_vm5, %v3846_v40  ;;  %v3470_v20 = vld [vmem:[%s4791_s17 + $0xa0] sm:$0xff] }
 0x6b9   : > { %v3849_v17 = vmax.f32 %v3721_v9, 0.0  ;;  %v3724_v18 = vadd.f32 %v3596_v15, %v3468_v14  ;;  %v3597_v19 = vld [vmem:[%s7875_s6 + $0x98] sm:$0xff]  ;;  %v3598_v21 = vld [vmem:[%s7875_s6 + $0xa0] sm:$0xff]  ;;  %3976 = vst.msk [vmem:[%s4791_s17 + $0x68] sm:$0xff] %vm3962_vm5, %v3847_v58  ;;  %v3850_v47 = vmax.f32 %v3722_v12, 0.0  ;;  %v3471_v25 = vld [vmem:[%s4791_s17 + $0xa8] sm:$0xff] }
 0x6ba   : > { %3977 = vst.msk [vmem:[%s4791_s17 + $0x70] sm:$0xff] %vm3962_vm5, %v3848_v11  ;;  %v3851_v22 = vmax.f32 %v3723_v13, 0.0  ;;  %v3725_v23 = vadd.f32 %v3597_v19, %v3469_v16  ;;  %v3726_v24 = vadd.f32 %v3598_v21, %v3470_v20  ;;  %v3599_v26 = vld [vmem:[%s7875_s6 + $0xa8] sm:$0xff]  ;;  %v3472_v49 = vld [vmem:[%s4791_s17 + $0xb0] sm:$0xff]  ;;  %v3473_v2 = vld [vmem:[%s4791_s17 + $0xb8] sm:$0xff] }
 0x6bb   : > { %3978 = vst.msk [vmem:[%s4791_s17 + $0x78] sm:$0xff] %vm3962_vm5, %v3849_v17  ;;  %v3852_v44 = vmax.f32 %v3724_v18, 0.0  ;;  %v3727_v39 = vadd.f32 %v3599_v26, %v3471_v25  ;;  %v3600_v63 = vld [vmem:[%s7875_s6 + $0xb0] sm:$0xff]  ;;  %v3601_v28 = vld [vmem:[%s7875_s6 + $0xb8] sm:$0xff]  ;;  %3979 = vst.msk [vmem:[%s4791_s17 + $0x80] sm:$0xff] %vm3962_vm5, %v3850_v47 }
 0x6bc   : > { %3980 = vst.msk [vmem:[%s4791_s17 + $0x88] sm:$0xff] %vm3962_vm5, %v3851_v22  ;;  %v3853_v33 = vmax.f32 %v3725_v23, 0.0  ;;  %v3854_v27 = vmax.f32 %v3726_v24, 0.0  ;;  %v3728_v31 = vadd.f32 %v3600_v63, %v3472_v49  ;;  %v3729_v61 = vadd.f32 %v3601_v28, %v3473_v2  ;;  %v3474_v59 = vld [vmem:[%s4791_s17 + $0xc0] sm:$0xff]  ;;  %v3475_v29 = vld [vmem:[%s4791_s17 + $0xc8] sm:$0xff]  ;;  %v3476_v30 = vld [vmem:[%s4791_s17 + $0xd0] sm:$0xff] }
 0x6bd   : > { %v3602_v35 = vld [vmem:[%s7875_s6 + $0xc0] sm:$0xff]  ;;  %3981 = vst.msk [vmem:[%s4791_s17 + $0x90] sm:$0xff] %vm3962_vm5, %v3852_v44  ;;  %v3855_v56 = vmax.f32 %v3727_v39, 0.0  ;;  %v3603_v52 = vld [vmem:[%s7875_s6 + $0xc8] sm:$0xff]  ;;  %v3604_v46 = vld [vmem:[%s7875_s6 + $0xd0] sm:$0xff] }
 0x6be   : > { %v3730_v37 = vadd.f32 %v3602_v35, %v3474_v59  ;;  %3982 = vst.msk [vmem:[%s4791_s17 + $0x98] sm:$0xff] %vm3962_vm5, %v3853_v33  ;;  %3983 = vst.msk [vmem:[%s4791_s17 + $0xa0] sm:$0xff] %vm3962_vm5, %v3854_v27  ;;  %v3856_v43 = vmax.f32 %v3728_v31, 0.0  ;;  %v3857_v42 = vmax.f32 %v3729_v61, 0.0  ;;  %v3731_v32 = vadd.f32 %v3603_v52, %v3475_v29  ;;  %v3477_v36 = vld [vmem:[%s4791_s17 + $0xd8] sm:$0xff]  ;;  %v3478_v41 = vld [vmem:[%s4791_s17 + $0xe0] sm:$0xff] }
 0x6bf   : > { %v3732_v34 = vadd.f32 %v3604_v46, %v3476_v30  ;;  %v3605_v38 = vld [vmem:[%s7875_s6 + $0xd8] sm:$0xff]  ;;  %3984 = vst.msk [vmem:[%s4791_s17 + $0xa8] sm:$0xff] %vm3962_vm5, %v3855_v56  ;;  %v3606_v50 = vld [vmem:[%s7875_s6 + $0xe0] sm:$0xff]  ;;  %v3479_v54 = vld [vmem:[%s4791_s17 + $0xe8] sm:$0xff] }
 0x6c0   : > { %v3858_v45 = vmax.f32 %v3730_v37, 0.0  ;;  %v3733_v48 = vadd.f32 %v3605_v38, %v3477_v36  ;;  %v3607_v55 = vld [vmem:[%s7875_s6 + $0xe8] sm:$0xff]  ;;  %3985 = vst.msk [vmem:[%s4791_s17 + $0xb0] sm:$0xff] %vm3962_vm5, %v3856_v43  ;;  %3986 = vst.msk [vmem:[%s4791_s17 + $0xb8] sm:$0xff] %vm3962_vm5, %v3857_v42  ;;  %v3859_v57 = vmax.f32 %v3731_v32, 0.0  ;;  %v3734_v62 = vadd.f32 %v3606_v50, %v3478_v41  ;;  %v3480_v1 = vld [vmem:[%s4791_s17 + $0xf0] sm:$0xff] }
 0x6c1   : > { %v3860_v60 = vmax.f32 %v3732_v34, 0.0  ;;  %v3735_v0 = vadd.f32 %v3607_v55, %v3479_v54  ;;  %v3608_v3 = vld [vmem:[%s7875_s6 + $0xf0] sm:$0xff]  ;;  %v3481_v4 = vld [vmem:[%s4791_s17 + $0xf8] sm:$0xff]  ;;  %v3482_v8 = vld [vmem:[%s4791_s17 + $0x100] sm:$0xff] }
 0x6c2   : > { %3987 = vst.msk [vmem:[%s4791_s17 + $0xc0] sm:$0xff] %vm3962_vm5, %v3858_v45  ;;  %v3861_v5 = vmax.f32 %v3733_v48, 0.0  ;;  %v3736_v6 = vadd.f32 %v3608_v3, %v3480_v1  ;;  %v3609_v7 = vld [vmem:[%s7875_s6 + $0xf8] sm:$0xff]  ;;  %v3610_v40 = vld [vmem:[%s7875_s6 + $0x100] sm:$0xff]  ;;  %3988 = vst.msk [vmem:[%s4791_s17 + $0xc8] sm:$0xff] %vm3962_vm5, %v3859_v57  ;;  %v3862_v9 = vmax.f32 %v3734_v62, 0.0 }
 0x6c3   : > { %3989 = vst.msk [vmem:[%s4791_s17 + $0xd0] sm:$0xff] %vm3962_vm5, %v3860_v60  ;;  %v3863_v10 = vmax.f32 %v3735_v0, 0.0  ;;  %v3737_v51 = vadd.f32 %v3609_v7, %v3481_v4  ;;  %v3738_v53 = vadd.f32 %v3610_v40, %v3482_v8  ;;  %v3483_v58 = vld [vmem:[%s4791_s17 + $0x108] sm:$0xff]  ;;  %v3484_v12 = vld [vmem:[%s4791_s17 + $0x110] sm:$0xff]  ;;  %v3485_v16 = vld [vmem:[%s4791_s17 + $0x118] sm:$0xff] }
 0x6c4   : > { %v3611_v11 = vld [vmem:[%s7875_s6 + $0x108] sm:$0xff]  ;;  %3990 = vst.msk [vmem:[%s4791_s17 + $0xd8] sm:$0xff] %vm3962_vm5, %v3861_v5  ;;  %v3864_v13 = vmax.f32 %v3736_v6, 0.0  ;;  %v3612_v15 = vld [vmem:[%s7875_s6 + $0x110] sm:$0xff]  ;;  %v3613_v17 = vld [vmem:[%s7875_s6 + $0x118] sm:$0xff] }
 0x6c5   : > { %v3739_v14 = vadd.f32 %v3611_v11, %v3483_v58  ;;  %3991 = vst.msk [vmem:[%s4791_s17 + $0xe0] sm:$0xff] %vm3962_vm5, %v3862_v9  ;;  %3992 = vst.msk [vmem:[%s4791_s17 + $0xe8] sm:$0xff] %vm3962_vm5, %v3863_v10  ;;  %v3865_v18 = vmax.f32 %v3737_v51, 0.0  ;;  %v3866_v19 = vmax.f32 %v3738_v53, 0.0  ;;  %v3740_v20 = vadd.f32 %v3612_v15, %v3484_v12  ;;  %v3486_v47 = vld [vmem:[%s4791_s17 + $0x120] sm:$0xff]  ;;  %v3487_v23 = vld [vmem:[%s4791_s17 + $0x128] sm:$0xff] }
 0x6c6   : > { %v3741_v21 = vadd.f32 %v3613_v17, %v3485_v16  ;;  %v3614_v22 = vld [vmem:[%s7875_s6 + $0x120] sm:$0xff]  ;;  %3993 = vst.msk [vmem:[%s4791_s17 + $0xf0] sm:$0xff] %vm3962_vm5, %v3864_v13  ;;  %v3615_v26 = vld [vmem:[%s7875_s6 + $0x128] sm:$0xff]  ;;  %v3488_v49 = vld [vmem:[%s4791_s17 + $0x130] sm:$0xff] }
 0x6c7   : > { %v3867_v24 = vmax.f32 %v3739_v14, 0.0  ;;  %v3742_v25 = vadd.f32 %v3614_v22, %v3486_v47  ;;  %v3616_v44 = vld [vmem:[%s7875_s6 + $0x130] sm:$0xff]  ;;  %3994 = vst.msk [vmem:[%s4791_s17 + $0xf8] sm:$0xff] %vm3962_vm5, %v3865_v18  ;;  %3995 = vst.msk [vmem:[%s4791_s17 + $0x100] sm:$0xff] %vm3962_vm5, %v3866_v19  ;;  %v3868_v39 = vmax.f32 %v3740_v20, 0.0  ;;  %v3743_v2 = vadd.f32 %v3615_v26, %v3487_v23  ;;  %v3489_v33 = vld [vmem:[%s4791_s17 + $0x138] sm:$0xff] }
 0x6c8   : > { %v3869_v63 = vmax.f32 %v3741_v21, 0.0  ;;  %v3744_v28 = vadd.f32 %v3616_v44, %v3488_v49  ;;  %v3617_v27 = vld [vmem:[%s7875_s6 + $0x138] sm:$0xff]  ;;  %v3490_v31 = vld [vmem:[%s4791_s17 + $0x140] sm:$0xff]  ;;  %v3491_v29 = vld [vmem:[%s4791_s17 + $0x148] sm:$0xff] }
 0x6c9   : > { %3996 = vst.msk [vmem:[%s4791_s17 + $0x108] sm:$0xff] %vm3962_vm5, %v3867_v24  ;;  %v3870_v61 = vmax.f32 %v3742_v25, 0.0  ;;  %v3745_v59 = vadd.f32 %v3617_v27, %v3489_v33  ;;  %v3618_v35 = vld [vmem:[%s7875_s6 + $0x140] sm:$0xff]  ;;  %v3619_v56 = vld [vmem:[%s7875_s6 + $0x148] sm:$0xff]  ;;  %3997 = vst.msk [vmem:[%s4791_s17 + $0x110] sm:$0xff] %vm3962_vm5, %v3868_v39  ;;  %v3871_v37 = vmax.f32 %v3743_v2, 0.0 }
 0x6ca   : > { %3998 = vst.msk [vmem:[%s4791_s17 + $0x118] sm:$0xff] %vm3962_vm5, %v3869_v63  ;;  %v3872_v52 = vmax.f32 %v3744_v28, 0.0  ;;  %v3746_v30 = vadd.f32 %v3618_v35, %v3490_v31  ;;  %v3747_v46 = vadd.f32 %v3619_v56, %v3491_v29  ;;  %v3492_v43 = vld [vmem:[%s4791_s17 + $0x150] sm:$0xff]  ;;  %v3493_v32 = vld [vmem:[%s4791_s17 + $0x158] sm:$0xff]  ;;  %v3494_v41 = vld [vmem:[%s4791_s17 + $0x160] sm:$0xff] }
 0x6cb   : > { %v3620_v42 = vld [vmem:[%s7875_s6 + $0x150] sm:$0xff]  ;;  %3999 = vst.msk [vmem:[%s4791_s17 + $0x120] sm:$0xff] %vm3962_vm5, %v3870_v61  ;;  %v3873_v34 = vmax.f32 %v3745_v59, 0.0  ;;  %v3621_v38 = vld [vmem:[%s7875_s6 + $0x158] sm:$0xff]  ;;  %v3622_v45 = vld [vmem:[%s7875_s6 + $0x160] sm:$0xff] }
 0x6cc   : > { %v3748_v36 = vadd.f32 %v3620_v42, %v3492_v43  ;;  %4000 = vst.msk [vmem:[%s4791_s17 + $0x128] sm:$0xff] %vm3962_vm5, %v3871_v37  ;;  %4001 = vst.msk [vmem:[%s4791_s17 + $0x130] sm:$0xff] %vm3962_vm5, %v3872_v52  ;;  %v3874_v48 = vmax.f32 %v3746_v30, 0.0  ;;  %v3875_v50 = vmax.f32 %v3747_v46, 0.0  ;;  %v3749_v54 = vadd.f32 %v3621_v38, %v3493_v32  ;;  %v3495_v57 = vld [vmem:[%s4791_s17 + $0x168] sm:$0xff]  ;;  %v3496_v62 = vld [vmem:[%s4791_s17 + $0x170] sm:$0xff] }
 0x6cd   : > { %v3750_v55 = vadd.f32 %v3622_v45, %v3494_v41  ;;  %v3623_v60 = vld [vmem:[%s7875_s6 + $0x168] sm:$0xff]  ;;  %4002 = vst.msk [vmem:[%s4791_s17 + $0x138] sm:$0xff] %vm3962_vm5, %v3873_v34  ;;  %v3624_v3 = vld [vmem:[%s7875_s6 + $0x170] sm:$0xff]  ;;  %v3497_v4 = vld [vmem:[%s4791_s17 + $0x178] sm:$0xff] }
 0x6ce   : > { %v3876_v0 = vmax.f32 %v3748_v36, 0.0  ;;  %v3751_v1 = vadd.f32 %v3623_v60, %v3495_v57  ;;  %v3625_v5 = vld [vmem:[%s7875_s6 + $0x178] sm:$0xff]  ;;  %4003 = vst.msk [vmem:[%s4791_s17 + $0x140] sm:$0xff] %vm3962_vm5, %v3874_v48  ;;  %4004 = vst.msk [vmem:[%s4791_s17 + $0x148] sm:$0xff] %vm3962_vm5, %v3875_v50  ;;  %v3877_v6 = vmax.f32 %v3749_v54, 0.0  ;;  %v3752_v8 = vadd.f32 %v3624_v3, %v3496_v62  ;;  %v3498_v9 = vld [vmem:[%s4791_s17 + $0x180] sm:$0xff] }
 0x6cf   : > { %v3878_v7 = vmax.f32 %v3750_v55, 0.0  ;;  %v3753_v40 = vadd.f32 %v3625_v5, %v3497_v4  ;;  %v3626_v10 = vld [vmem:[%s7875_s6 + $0x180] sm:$0xff]  ;;  %v3499_v51 = vld [vmem:[%s4791_s17 + $0x188] sm:$0xff]  ;;  %v3500_v12 = vld [vmem:[%s4791_s17 + $0x190] sm:$0xff] }
 0x6d0   : > { %4005 = vst.msk [vmem:[%s4791_s17 + $0x150] sm:$0xff] %vm3962_vm5, %v3876_v0  ;;  %v3879_v53 = vmax.f32 %v3751_v1, 0.0  ;;  %v3754_v58 = vadd.f32 %v3626_v10, %v3498_v9  ;;  %v3627_v11 = vld [vmem:[%s7875_s6 + $0x188] sm:$0xff]  ;;  %v3628_v13 = vld [vmem:[%s7875_s6 + $0x190] sm:$0xff]  ;;  %4006 = vst.msk [vmem:[%s4791_s17 + $0x158] sm:$0xff] %vm3962_vm5, %v3877_v6  ;;  %v3880_v14 = vmax.f32 %v3752_v8, 0.0 }
 0x6d1   : > { %4007 = vst.msk [vmem:[%s4791_s17 + $0x160] sm:$0xff] %vm3962_vm5, %v3878_v7  ;;  %v3881_v15 = vmax.f32 %v3753_v40, 0.0  ;;  %v3755_v16 = vadd.f32 %v3627_v11, %v3499_v51  ;;  %v3756_v17 = vadd.f32 %v3628_v13, %v3500_v12  ;;  %v3501_v18 = vld [vmem:[%s4791_s17 + $0x198] sm:$0xff]  ;;  %v3502_v20 = vld [vmem:[%s4791_s17 + $0x1a0] sm:$0xff]  ;;  %v3503_v23 = vld [vmem:[%s4791_s17 + $0x1a8] sm:$0xff] }
 0x6d2   : > { %v3629_v19 = vld [vmem:[%s7875_s6 + $0x198] sm:$0xff]  ;;  %4008 = vst.msk [vmem:[%s4791_s17 + $0x168] sm:$0xff] %vm3962_vm5, %v3879_v53  ;;  %v3882_v21 = vmax.f32 %v3754_v58, 0.0  ;;  %v3630_v22 = vld [vmem:[%s7875_s6 + $0x1a0] sm:$0xff]  ;;  %v3631_v24 = vld [vmem:[%s7875_s6 + $0x1a8] sm:$0xff] }
 0x6d3   : > { %v3757_v47 = vadd.f32 %v3629_v19, %v3501_v18  ;;  %4009 = vst.msk [vmem:[%s4791_s17 + $0x170] sm:$0xff] %vm3962_vm5, %v3880_v14  ;;  %4010 = vst.msk [vmem:[%s4791_s17 + $0x178] sm:$0xff] %vm3962_vm5, %v3881_v15  ;;  %v3883_v25 = vmax.f32 %v3755_v16, 0.0  ;;  %v3884_v26 = vmax.f32 %v3756_v17, 0.0  ;;  %v3758_v49 = vadd.f32 %v3630_v22, %v3502_v20  ;;  %v3504_v39 = vld [vmem:[%s4791_s17 + $0x1b0] sm:$0xff]  ;;  %v3505_v2 = vld [vmem:[%s4791_s17 + $0x1b8] sm:$0xff] }
 0x6d4   : > { %v3759_v44 = vadd.f32 %v3631_v24, %v3503_v23  ;;  %v3632_v63 = vld [vmem:[%s7875_s6 + $0x1b0] sm:$0xff]  ;;  %4011 = vst.msk [vmem:[%s4791_s17 + $0x180] sm:$0xff] %vm3962_vm5, %v3882_v21  ;;  %v3633_v27 = vld [vmem:[%s7875_s6 + $0x1b8] sm:$0xff]  ;;  %v3506_v31 = vld [vmem:[%s4791_s17 + $0x1c0] sm:$0xff] }
 0x6d5   : > { %v3885_v28 = vmax.f32 %v3757_v47, 0.0  ;;  %v3760_v33 = vadd.f32 %v3632_v63, %v3504_v39  ;;  %v3634_v61 = vld [vmem:[%s7875_s6 + $0x1c0] sm:$0xff]  ;;  %4012 = vst.msk [vmem:[%s4791_s17 + $0x188] sm:$0xff] %vm3962_vm5, %v3883_v25  ;;  %4013 = vst.msk [vmem:[%s4791_s17 + $0x190] sm:$0xff] %vm3962_vm5, %v3884_v26  ;;  %v3886_v59 = vmax.f32 %v3758_v49, 0.0  ;;  %v3761_v29 = vadd.f32 %v3633_v27, %v3505_v2  ;;  %v3507_v37 = vld [vmem:[%s4791_s17 + $0x1c8] sm:$0xff] }
 0x6d6   : > { %v3887_v35 = vmax.f32 %v3759_v44, 0.0  ;;  %v3762_v56 = vadd.f32 %v3634_v61, %v3506_v31  ;;  %v3635_v52 = vld [vmem:[%s7875_s6 + $0x1c8] sm:$0xff]  ;;  %v3508_v30 = vld [vmem:[%s4791_s17 + $0x1d0] sm:$0xff]  ;;  %v3509_v32 = vld [vmem:[%s4791_s17 + $0x1d8] sm:$0xff] }
 0x6d7   : > { %4014 = vst.msk [vmem:[%s4791_s17 + $0x198] sm:$0xff] %vm3962_vm5, %v3885_v28  ;;  %v3888_v46 = vmax.f32 %v3760_v33, 0.0  ;;  %v3763_v43 = vadd.f32 %v3635_v52, %v3507_v37  ;;  %v3636_v42 = vld [vmem:[%s7875_s6 + $0x1d0] sm:$0xff]  ;;  %v3637_v34 = vld [vmem:[%s7875_s6 + $0x1d8] sm:$0xff]  ;;  %4015 = vst.msk [vmem:[%s4791_s17 + $0x1a0] sm:$0xff] %vm3962_vm5, %v3886_v59  ;;  %v3889_v36 = vmax.f32 %v3761_v29, 0.0 }
 0x6d8   : > { %4016 = vst.msk [vmem:[%s4791_s17 + $0x1a8] sm:$0xff] %vm3962_vm5, %v3887_v35  ;;  %v3890_v38 = vmax.f32 %v3762_v56, 0.0  ;;  %v3764_v41 = vadd.f32 %v3636_v42, %v3508_v30  ;;  %v3765_v45 = vadd.f32 %v3637_v34, %v3509_v32  ;;  %v3510_v48 = vld [vmem:[%s4791_s17 + $0x1e0] sm:$0xff]  ;;  %v3511_v54 = vld [vmem:[%s4791_s17 + $0x1e8] sm:$0xff]  ;;  %v3512_v62 = vld [vmem:[%s4791_s17 + $0x1f0] sm:$0xff] }
 0x6d9   : > { %v3638_v50 = vld [vmem:[%s7875_s6 + $0x1e0] sm:$0xff]  ;;  %4017 = vst.msk [vmem:[%s4791_s17 + $0x1b0] sm:$0xff] %vm3962_vm5, %v3888_v46  ;;  %v3891_v55 = vmax.f32 %v3763_v43, 0.0  ;;  %v3639_v60 = vld [vmem:[%s7875_s6 + $0x1e8] sm:$0xff]  ;;  %v3640_v0 = vld [vmem:[%s7875_s6 + $0x1f0] sm:$0xff] }
 0x6da   : > { %v3766_v57 = vadd.f32 %v3638_v50, %v3510_v48  ;;  %4018 = vst.msk [vmem:[%s4791_s17 + $0x1b8] sm:$0xff] %vm3962_vm5, %v3889_v36  ;;  %4019 = vst.msk [vmem:[%s4791_s17 + $0x1c0] sm:$0xff] %vm3962_vm5, %v3890_v38  ;;  %v3892_v1 = vmax.f32 %v3764_v41, 0.0  ;;  %v3893_v3 = vmax.f32 %v3765_v45, 0.0  ;;  %v3767_v4 = vadd.f32 %v3639_v60, %v3511_v54  ;;  %v3513_v6 = vld [vmem:[%s4791_s17 + $0x1f8] sm:$0xff]  ;;  %v3514_v8 = vld [vmem:[%s4791_s17 + $0x200] sm:$0xff] }
 0x6db   : > { %v3768_v5 = vadd.f32 %v3640_v0, %v3512_v62  ;;  %v3641_v7 = vld [vmem:[%s7875_s6 + $0x1f8] sm:$0xff]  ;;  %4020 = vst.msk [vmem:[%s4791_s17 + $0x1c8] sm:$0xff] %vm3962_vm5, %v3891_v55  ;;  %v3642_v10 = vld [vmem:[%s7875_s6 + $0x200] sm:$0xff]  ;;  %v3515_v51 = vld [vmem:[%s4791_s17 + $0x208] sm:$0xff] }
 0x6dc   : > { %v3894_v40 = vmax.f32 %v3766_v57, 0.0  ;;  %v3769_v9 = vadd.f32 %v3641_v7, %v3513_v6  ;;  %v3643_v53 = vld [vmem:[%s7875_s6 + $0x208] sm:$0xff]  ;;  %4021 = vst.msk [vmem:[%s4791_s17 + $0x1d0] sm:$0xff] %vm3962_vm5, %v3892_v1  ;;  %4022 = vst.msk [vmem:[%s4791_s17 + $0x1d8] sm:$0xff] %vm3962_vm5, %v3893_v3  ;;  %v3895_v58 = vmax.f32 %v3767_v4, 0.0  ;;  %v3770_v12 = vadd.f32 %v3642_v10, %v3514_v8  ;;  %v3516_v14 = vld [vmem:[%s4791_s17 + $0x210] sm:$0xff] }
 0x6dd   : > { %v3896_v11 = vmax.f32 %v3768_v5, 0.0  ;;  %v3771_v13 = vadd.f32 %v3643_v53, %v3515_v51  ;;  %v3644_v15 = vld [vmem:[%s7875_s6 + $0x210] sm:$0xff]  ;;  %v3517_v16 = vld [vmem:[%s4791_s17 + $0x218] sm:$0xff]  ;;  %v3518_v20 = vld [vmem:[%s4791_s17 + $0x220] sm:$0xff] }
 0x6de   : > { %4023 = vst.msk [vmem:[%s4791_s17 + $0x1e0] sm:$0xff] %vm3962_vm5, %v3894_v40  ;;  %v3897_v17 = vmax.f32 %v3769_v9, 0.0  ;;  %v3772_v18 = vadd.f32 %v3644_v15, %v3516_v14  ;;  %v3645_v19 = vld [vmem:[%s7875_s6 + $0x218] sm:$0xff]  ;;  %v3646_v21 = vld [vmem:[%s7875_s6 + $0x220] sm:$0xff]  ;;  %4024 = vst.msk [vmem:[%s4791_s17 + $0x1e8] sm:$0xff] %vm3962_vm5, %v3895_v58  ;;  %v3898_v47 = vmax.f32 %v3770_v12, 0.0 }
 0x6df   : > { %4025 = vst.msk [vmem:[%s4791_s17 + $0x1f0] sm:$0xff] %vm3962_vm5, %v3896_v11  ;;  %v3899_v22 = vmax.f32 %v3771_v13, 0.0  ;;  %v3773_v23 = vadd.f32 %v3645_v19, %v3517_v16  ;;  %v3774_v24 = vadd.f32 %v3646_v21, %v3518_v20  ;;  %v3519_v25 = vld [vmem:[%s4791_s17 + $0x228] sm:$0xff]  ;;  %v3520_v49 = vld [vmem:[%s4791_s17 + $0x230] sm:$0xff]  ;;  %v3521_v2 = vld [vmem:[%s4791_s17 + $0x238] sm:$0xff] }
 0x6e0   : > { %v3647_v26 = vld [vmem:[%s7875_s6 + $0x228] sm:$0xff]  ;;  %4026 = vst.msk [vmem:[%s4791_s17 + $0x1f8] sm:$0xff] %vm3962_vm5, %v3897_v17  ;;  %v3900_v44 = vmax.f32 %v3772_v18, 0.0  ;;  %v3648_v63 = vld [vmem:[%s7875_s6 + $0x230] sm:$0xff]  ;;  %v3649_v28 = vld [vmem:[%s7875_s6 + $0x238] sm:$0xff] }
 0x6e1   : > { %v3775_v39 = vadd.f32 %v3647_v26, %v3519_v25  ;;  %4027 = vst.msk [vmem:[%s4791_s17 + $0x200] sm:$0xff] %vm3962_vm5, %v3898_v47  ;;  %4028 = vst.msk [vmem:[%s4791_s17 + $0x208] sm:$0xff] %vm3962_vm5, %v3899_v22  ;;  %v3901_v33 = vmax.f32 %v3773_v23, 0.0  ;;  %v3902_v27 = vmax.f32 %v3774_v24, 0.0  ;;  %v3776_v31 = vadd.f32 %v3648_v63, %v3520_v49  ;;  %v3522_v59 = vld [vmem:[%s4791_s17 + $0x240] sm:$0xff]  ;;  %v3523_v29 = vld [vmem:[%s4791_s17 + $0x248] sm:$0xff] }
 0x6e2   : > { %v3777_v61 = vadd.f32 %v3649_v28, %v3521_v2  ;;  %v3650_v35 = vld [vmem:[%s7875_s6 + $0x240] sm:$0xff]  ;;  %4029 = vst.msk [vmem:[%s4791_s17 + $0x210] sm:$0xff] %vm3962_vm5, %v3900_v44  ;;  %v3651_v52 = vld [vmem:[%s7875_s6 + $0x248] sm:$0xff]  ;;  %v3524_v30 = vld [vmem:[%s4791_s17 + $0x250] sm:$0xff] }
 0x6e3   : > { %v3903_v56 = vmax.f32 %v3775_v39, 0.0  ;;  %v3778_v37 = vadd.f32 %v3650_v35, %v3522_v59  ;;  %v3652_v46 = vld [vmem:[%s7875_s6 + $0x250] sm:$0xff]  ;;  %4030 = vst.msk [vmem:[%s4791_s17 + $0x218] sm:$0xff] %vm3962_vm5, %v3901_v33  ;;  %4031 = vst.msk [vmem:[%s4791_s17 + $0x220] sm:$0xff] %vm3962_vm5, %v3902_v27  ;;  %v3904_v43 = vmax.f32 %v3776_v31, 0.0  ;;  %v3779_v32 = vadd.f32 %v3651_v52, %v3523_v29  ;;  %v3525_v36 = vld [vmem:[%s4791_s17 + $0x258] sm:$0xff] }
 0x6e4   : > { %v3905_v42 = vmax.f32 %v3777_v61, 0.0  ;;  %v3780_v34 = vadd.f32 %v3652_v46, %v3524_v30  ;;  %v3653_v38 = vld [vmem:[%s7875_s6 + $0x258] sm:$0xff]  ;;  %v3526_v41 = vld [vmem:[%s4791_s17 + $0x260] sm:$0xff]  ;;  %v3527_v54 = vld [vmem:[%s4791_s17 + $0x268] sm:$0xff] }
 0x6e5   : > { %4032 = vst.msk [vmem:[%s4791_s17 + $0x228] sm:$0xff] %vm3962_vm5, %v3903_v56  ;;  %v3906_v45 = vmax.f32 %v3778_v37, 0.0  ;;  %v3781_v48 = vadd.f32 %v3653_v38, %v3525_v36  ;;  %v3654_v50 = vld [vmem:[%s7875_s6 + $0x260] sm:$0xff]  ;;  %v3655_v55 = vld [vmem:[%s7875_s6 + $0x268] sm:$0xff]  ;;  %4033 = vst.msk [vmem:[%s4791_s17 + $0x230] sm:$0xff] %vm3962_vm5, %v3904_v43  ;;  %v3907_v57 = vmax.f32 %v3779_v32, 0.0 }
 0x6e6   : > { %4034 = vst.msk [vmem:[%s4791_s17 + $0x238] sm:$0xff] %vm3962_vm5, %v3905_v42  ;;  %v3908_v60 = vmax.f32 %v3780_v34, 0.0  ;;  %v3782_v62 = vadd.f32 %v3654_v50, %v3526_v41  ;;  %v3783_v0 = vadd.f32 %v3655_v55, %v3527_v54  ;;  %v3528_v1 = vld [vmem:[%s4791_s17 + $0x270] sm:$0xff]  ;;  %v3529_v4 = vld [vmem:[%s4791_s17 + $0x278] sm:$0xff]  ;;  %v3530_v8 = vld [vmem:[%s4791_s17 + $0x280] sm:$0xff] }
 0x6e7   : > { %v3656_v3 = vld [vmem:[%s7875_s6 + $0x270] sm:$0xff]  ;;  %4035 = vst.msk [vmem:[%s4791_s17 + $0x240] sm:$0xff] %vm3962_vm5, %v3906_v45  ;;  %v3909_v5 = vmax.f32 %v3781_v48, 0.0  ;;  %v3657_v7 = vld [vmem:[%s7875_s6 + $0x278] sm:$0xff]  ;;  %v3658_v40 = vld [vmem:[%s7875_s6 + $0x280] sm:$0xff] }
 0x6e8   : > { %v3784_v6 = vadd.f32 %v3656_v3, %v3528_v1  ;;  %4036 = vst.msk [vmem:[%s4791_s17 + $0x248] sm:$0xff] %vm3962_vm5, %v3907_v57  ;;  %4037 = vst.msk [vmem:[%s4791_s17 + $0x250] sm:$0xff] %vm3962_vm5, %v3908_v60  ;;  %v3910_v9 = vmax.f32 %v3782_v62, 0.0  ;;  %v3911_v10 = vmax.f32 %v3783_v0, 0.0  ;;  %v3785_v51 = vadd.f32 %v3657_v7, %v3529_v4  ;;  %v3531_v58 = vld [vmem:[%s4791_s17 + $0x288] sm:$0xff]  ;;  %v3532_v12 = vld [vmem:[%s4791_s17 + $0x290] sm:$0xff] }
 0x6e9   : > { %v3786_v53 = vadd.f32 %v3658_v40, %v3530_v8  ;;  %v3659_v11 = vld [vmem:[%s7875_s6 + $0x288] sm:$0xff]  ;;  %4038 = vst.msk [vmem:[%s4791_s17 + $0x258] sm:$0xff] %vm3962_vm5, %v3909_v5  ;;  %v3660_v15 = vld [vmem:[%s7875_s6 + $0x290] sm:$0xff]  ;;  %v3533_v16 = vld [vmem:[%s4791_s17 + $0x298] sm:$0xff] }
 0x6ea   : > { %v3912_v13 = vmax.f32 %v3784_v6, 0.0  ;;  %v3787_v14 = vadd.f32 %v3659_v11, %v3531_v58  ;;  %v3661_v17 = vld [vmem:[%s7875_s6 + $0x298] sm:$0xff]  ;;  %4039 = vst.msk [vmem:[%s4791_s17 + $0x260] sm:$0xff] %vm3962_vm5, %v3910_v9  ;;  %4040 = vst.msk [vmem:[%s4791_s17 + $0x268] sm:$0xff] %vm3962_vm5, %v3911_v10  ;;  %v3913_v18 = vmax.f32 %v3785_v51, 0.0  ;;  %v3788_v20 = vadd.f32 %v3660_v15, %v3532_v12  ;;  %v3534_v47 = vld [vmem:[%s4791_s17 + $0x2a0] sm:$0xff] }
 0x6eb   : > { %v3914_v19 = vmax.f32 %v3786_v53, 0.0  ;;  %v3789_v21 = vadd.f32 %v3661_v17, %v3533_v16  ;;  %v3662_v22 = vld [vmem:[%s7875_s6 + $0x2a0] sm:$0xff]  ;;  %v3535_v23 = vld [vmem:[%s4791_s17 + $0x2a8] sm:$0xff]  ;;  %v3536_v49 = vld [vmem:[%s4791_s17 + $0x2b0] sm:$0xff] }
 0x6ec   : > { %4041 = vst.msk [vmem:[%s4791_s17 + $0x270] sm:$0xff] %vm3962_vm5, %v3912_v13  ;;  %v3915_v24 = vmax.f32 %v3787_v14, 0.0  ;;  %v3790_v25 = vadd.f32 %v3662_v22, %v3534_v47  ;;  %v3663_v26 = vld [vmem:[%s7875_s6 + $0x2a8] sm:$0xff]  ;;  %v3664_v44 = vld [vmem:[%s7875_s6 + $0x2b0] sm:$0xff]  ;;  %4042 = vst.msk [vmem:[%s4791_s17 + $0x278] sm:$0xff] %vm3962_vm5, %v3913_v18  ;;  %v3916_v39 = vmax.f32 %v3788_v20, 0.0 }
 0x6ed   : > { %4043 = vst.msk [vmem:[%s4791_s17 + $0x280] sm:$0xff] %vm3962_vm5, %v3914_v19  ;;  %v3917_v63 = vmax.f32 %v3789_v21, 0.0  ;;  %v3791_v2 = vadd.f32 %v3663_v26, %v3535_v23  ;;  %v3792_v28 = vadd.f32 %v3664_v44, %v3536_v49  ;;  %v3537_v33 = vld [vmem:[%s4791_s17 + $0x2b8] sm:$0xff]  ;;  %v3538_v31 = vld [vmem:[%s4791_s17 + $0x2c0] sm:$0xff]  ;;  %v3539_v29 = vld [vmem:[%s4791_s17 + $0x2c8] sm:$0xff] }
 0x6ee   : > { %v3665_v27 = vld [vmem:[%s7875_s6 + $0x2b8] sm:$0xff]  ;;  %4044 = vst.msk [vmem:[%s4791_s17 + $0x288] sm:$0xff] %vm3962_vm5, %v3915_v24  ;;  %v3918_v61 = vmax.f32 %v3790_v25, 0.0  ;;  %v3666_v35 = vld [vmem:[%s7875_s6 + $0x2c0] sm:$0xff]  ;;  %v3667_v56 = vld [vmem:[%s7875_s6 + $0x2c8] sm:$0xff] }
 0x6ef   : > { %v3793_v59 = vadd.f32 %v3665_v27, %v3537_v33  ;;  %4045 = vst.msk [vmem:[%s4791_s17 + $0x290] sm:$0xff] %vm3962_vm5, %v3916_v39  ;;  %4046 = vst.msk [vmem:[%s4791_s17 + $0x298] sm:$0xff] %vm3962_vm5, %v3917_v63  ;;  %v3919_v37 = vmax.f32 %v3791_v2, 0.0  ;;  %v3920_v52 = vmax.f32 %v3792_v28, 0.0  ;;  %v3794_v30 = vadd.f32 %v3666_v35, %v3538_v31  ;;  %v3540_v43 = vld [vmem:[%s4791_s17 + $0x2d0] sm:$0xff]  ;;  %v3541_v32 = vld [vmem:[%s4791_s17 + $0x2d8] sm:$0xff] }
 0x6f0   : > { %v3795_v46 = vadd.f32 %v3667_v56, %v3539_v29  ;;  %v3668_v42 = vld [vmem:[%s7875_s6 + $0x2d0] sm:$0xff]  ;;  %4047 = vst.msk [vmem:[%s4791_s17 + $0x2a0] sm:$0xff] %vm3962_vm5, %v3918_v61  ;;  %v3669_v38 = vld [vmem:[%s7875_s6 + $0x2d8] sm:$0xff]  ;;  %v3542_v41 = vld [vmem:[%s4791_s17 + $0x2e0] sm:$0xff] }
 0x6f1   : > { %v3921_v34 = vmax.f32 %v3793_v59, 0.0  ;;  %v3796_v36 = vadd.f32 %v3668_v42, %v3540_v43  ;;  %v3670_v45 = vld [vmem:[%s7875_s6 + $0x2e0] sm:$0xff]  ;;  %4048 = vst.msk [vmem:[%s4791_s17 + $0x2a8] sm:$0xff] %vm3962_vm5, %v3919_v37  ;;  %4049 = vst.msk [vmem:[%s4791_s17 + $0x2b0] sm:$0xff] %vm3962_vm5, %v3920_v52  ;;  %v3922_v48 = vmax.f32 %v3794_v30, 0.0  ;;  %v3797_v54 = vadd.f32 %v3669_v38, %v3541_v32  ;;  %v3543_v57 = vld [vmem:[%s4791_s17 + $0x2e8] sm:$0xff] }
 0x6f2   : > { %v3923_v50 = vmax.f32 %v3795_v46, 0.0  ;;  %v3798_v55 = vadd.f32 %v3670_v45, %v3542_v41  ;;  %v3671_v60 = vld [vmem:[%s7875_s6 + $0x2e8] sm:$0xff]  ;;  %v3544_v62 = vld [vmem:[%s4791_s17 + $0x2f0] sm:$0xff]  ;;  %v3545_v4 = vld [vmem:[%s4791_s17 + $0x2f8] sm:$0xff] }
 0x6f3   : > { %4050 = vst.msk [vmem:[%s4791_s17 + $0x2b8] sm:$0xff] %vm3962_vm5, %v3921_v34  ;;  %v3924_v0 = vmax.f32 %v3796_v36, 0.0  ;;  %v3799_v1 = vadd.f32 %v3671_v60, %v3543_v57  ;;  %v3672_v3 = vld [vmem:[%s7875_s6 + $0x2f0] sm:$0xff]  ;;  %v3673_v5 = vld [vmem:[%s7875_s6 + $0x2f8] sm:$0xff]  ;;  %4051 = vst.msk [vmem:[%s4791_s17 + $0x2c0] sm:$0xff] %vm3962_vm5, %v3922_v48  ;;  %v3925_v6 = vmax.f32 %v3797_v54, 0.0 }
 0x6f4   : > { %4052 = vst.msk [vmem:[%s4791_s17 + $0x2c8] sm:$0xff] %vm3962_vm5, %v3923_v50  ;;  %v3926_v7 = vmax.f32 %v3798_v55, 0.0  ;;  %v3800_v8 = vadd.f32 %v3672_v3, %v3544_v62  ;;  %v3801_v40 = vadd.f32 %v3673_v5, %v3545_v4  ;;  %v3546_v9 = vld [vmem:[%s4791_s17 + $0x300] sm:$0xff]  ;;  %v3547_v51 = vld [vmem:[%s4791_s17 + $0x308] sm:$0xff]  ;;  %v3548_v12 = vld [vmem:[%s4791_s17 + $0x310] sm:$0xff] }
 0x6f5   : > { %v3674_v10 = vld [vmem:[%s7875_s6 + $0x300] sm:$0xff]  ;;  %4053 = vst.msk [vmem:[%s4791_s17 + $0x2d0] sm:$0xff] %vm3962_vm5, %v3924_v0  ;;  %v3927_v53 = vmax.f32 %v3799_v1, 0.0  ;;  %v3675_v11 = vld [vmem:[%s7875_s6 + $0x308] sm:$0xff]  ;;  %v3676_v13 = vld [vmem:[%s7875_s6 + $0x310] sm:$0xff] }
 0x6f6   : > { %v3802_v58 = vadd.f32 %v3674_v10, %v3546_v9  ;;  %4054 = vst.msk [vmem:[%s4791_s17 + $0x2d8] sm:$0xff] %vm3962_vm5, %v3925_v6  ;;  %4055 = vst.msk [vmem:[%s4791_s17 + $0x2e0] sm:$0xff] %vm3962_vm5, %v3926_v7  ;;  %v3928_v14 = vmax.f32 %v3800_v8, 0.0  ;;  %v3929_v15 = vmax.f32 %v3801_v40, 0.0  ;;  %v3803_v16 = vadd.f32 %v3675_v11, %v3547_v51  ;;  %v3549_v18 = vld [vmem:[%s4791_s17 + $0x318] sm:$0xff]  ;;  %v3550_v20 = vld [vmem:[%s4791_s17 + $0x320] sm:$0xff] }
 0x6f7   : > { %v3804_v17 = vadd.f32 %v3676_v13, %v3548_v12  ;;  %v3677_v19 = vld [vmem:[%s7875_s6 + $0x318] sm:$0xff]  ;;  %4056 = vst.msk [vmem:[%s4791_s17 + $0x2e8] sm:$0xff] %vm3962_vm5, %v3927_v53  ;;  %v3678_v22 = vld [vmem:[%s7875_s6 + $0x320] sm:$0xff]  ;;  %v3551_v23 = vld [vmem:[%s4791_s17 + $0x328] sm:$0xff] }
 0x6f8   : > { %v3930_v21 = vmax.f32 %v3802_v58, 0.0  ;;  %v3805_v47 = vadd.f32 %v3677_v19, %v3549_v18  ;;  %v3679_v24 = vld [vmem:[%s7875_s6 + $0x328] sm:$0xff]  ;;  %4057 = vst.msk [vmem:[%s4791_s17 + $0x2f0] sm:$0xff] %vm3962_vm5, %v3928_v14  ;;  %4058 = vst.msk [vmem:[%s4791_s17 + $0x2f8] sm:$0xff] %vm3962_vm5, %v3929_v15  ;;  %v3931_v25 = vmax.f32 %v3803_v16, 0.0  ;;  %v3806_v49 = vadd.f32 %v3678_v22, %v3550_v20  ;;  %v3552_v39 = vld [vmem:[%s4791_s17 + $0x330] sm:$0xff] }
 0x6f9   : > { %v3932_v26 = vmax.f32 %v3804_v17, 0.0  ;;  %v3807_v44 = vadd.f32 %v3679_v24, %v3551_v23  ;;  %v3680_v63 = vld [vmem:[%s7875_s6 + $0x330] sm:$0xff]  ;;  %v3553_v2 = vld [vmem:[%s4791_s17 + $0x338] sm:$0xff]  ;;  %v3554_v31 = vld [vmem:[%s4791_s17 + $0x340] sm:$0xff] }
 0x6fa   : > { %4059 = vst.msk [vmem:[%s4791_s17 + $0x300] sm:$0xff] %vm3962_vm5, %v3930_v21  ;;  %v3933_v28 = vmax.f32 %v3805_v47, 0.0  ;;  %v3808_v33 = vadd.f32 %v3680_v63, %v3552_v39  ;;  %v3681_v27 = vld [vmem:[%s7875_s6 + $0x338] sm:$0xff]  ;;  %v3682_v61 = vld [vmem:[%s7875_s6 + $0x340] sm:$0xff]  ;;  %4060 = vst.msk [vmem:[%s4791_s17 + $0x308] sm:$0xff] %vm3962_vm5, %v3931_v25  ;;  %v3934_v59 = vmax.f32 %v3806_v49, 0.0 }
 0x6fb   : > { %4061 = vst.msk [vmem:[%s4791_s17 + $0x310] sm:$0xff] %vm3962_vm5, %v3932_v26  ;;  %v3935_v35 = vmax.f32 %v3807_v44, 0.0  ;;  %v3809_v29 = vadd.f32 %v3681_v27, %v3553_v2  ;;  %v3810_v56 = vadd.f32 %v3682_v61, %v3554_v31  ;;  %v3555_v37 = vld [vmem:[%s4791_s17 + $0x348] sm:$0xff]  ;;  %v3556_v30 = vld [vmem:[%s4791_s17 + $0x350] sm:$0xff]  ;;  %v3557_v32 = vld [vmem:[%s4791_s17 + $0x358] sm:$0xff] }
 0x6fc   : > { %v3683_v52 = vld [vmem:[%s7875_s6 + $0x348] sm:$0xff]  ;;  %4062 = vst.msk [vmem:[%s4791_s17 + $0x318] sm:$0xff] %vm3962_vm5, %v3933_v28  ;;  %v3936_v46 = vmax.f32 %v3808_v33, 0.0  ;;  %v3684_v42 = vld [vmem:[%s7875_s6 + $0x350] sm:$0xff]  ;;  %v3685_v34 = vld [vmem:[%s7875_s6 + $0x358] sm:$0xff] }
 0x6fd   : > { %v3811_v43 = vadd.f32 %v3683_v52, %v3555_v37  ;;  %4063 = vst.msk [vmem:[%s4791_s17 + $0x320] sm:$0xff] %vm3962_vm5, %v3934_v59  ;;  %4064 = vst.msk [vmem:[%s4791_s17 + $0x328] sm:$0xff] %vm3962_vm5, %v3935_v35  ;;  %v3937_v36 = vmax.f32 %v3809_v29, 0.0  ;;  %v3938_v38 = vmax.f32 %v3810_v56, 0.0  ;;  %v3812_v41 = vadd.f32 %v3684_v42, %v3556_v30  ;;  %v3558_v48 = vld [vmem:[%s4791_s17 + $0x360] sm:$0xff]  ;;  %v3559_v54 = vld [vmem:[%s4791_s17 + $0x368] sm:$0xff] }
 0x6fe   : > { %v3813_v45 = vadd.f32 %v3685_v34, %v3557_v32  ;;  %v3686_v50 = vld [vmem:[%s7875_s6 + $0x360] sm:$0xff]  ;;  %4065 = vst.msk [vmem:[%s4791_s17 + $0x330] sm:$0xff] %vm3962_vm5, %v3936_v46  ;;  %v3687_v60 = vld [vmem:[%s7875_s6 + $0x368] sm:$0xff]  ;;  %v3560_v62 = vld [vmem:[%s4791_s17 + $0x370] sm:$0xff] }
 0x6ff   : > { %v3939_v55 = vmax.f32 %v3811_v43, 0.0  ;;  %v3814_v57 = vadd.f32 %v3686_v50, %v3558_v48  ;;  %v3688_v0 = vld [vmem:[%s7875_s6 + $0x370] sm:$0xff]  ;;  %4066 = vst.msk [vmem:[%s4791_s17 + $0x338] sm:$0xff] %vm3962_vm5, %v3937_v36  ;;  %4067 = vst.msk [vmem:[%s4791_s17 + $0x340] sm:$0xff] %vm3962_vm5, %v3938_v38  ;;  %v3940_v1 = vmax.f32 %v3812_v41, 0.0  ;;  %v3815_v4 = vadd.f32 %v3687_v60, %v3559_v54  ;;  %v3561_v6 = vld [vmem:[%s4791_s17 + $0x378] sm:$0xff] }
 0x700   : > { %v3941_v3 = vmax.f32 %v3813_v45, 0.0  ;;  %v3816_v5 = vadd.f32 %v3688_v0, %v3560_v62  ;;  %v3689_v7 = vld [vmem:[%s7875_s6 + $0x378] sm:$0xff]  ;;  %v3562_v8 = vld [vmem:[%s4791_s17 + $0x380] sm:$0xff]  ;;  %v3563_v51 = vld [vmem:[%s4791_s17 + $0x388] sm:$0xff] }
 0x701   : > { %4068 = vst.msk [vmem:[%s4791_s17 + $0x348] sm:$0xff] %vm3962_vm5, %v3939_v55  ;;  %v3942_v40 = vmax.f32 %v3814_v57, 0.0  ;;  %v3817_v9 = vadd.f32 %v3689_v7, %v3561_v6  ;;  %v3690_v10 = vld [vmem:[%s7875_s6 + $0x380] sm:$0xff]  ;;  %v3691_v53 = vld [vmem:[%s7875_s6 + $0x388] sm:$0xff]  ;;  %4069 = vst.msk [vmem:[%s4791_s17 + $0x350] sm:$0xff] %vm3962_vm5, %v3940_v1  ;;  %v3943_v58 = vmax.f32 %v3815_v4, 0.0 }
 0x702   : > { %4070 = vst.msk [vmem:[%s4791_s17 + $0x358] sm:$0xff] %vm3962_vm5, %v3941_v3  ;;  %v3944_v11 = vmax.f32 %v3816_v5, 0.0  ;;  %v3818_v12 = vadd.f32 %v3690_v10, %v3562_v8  ;;  %v3819_v13 = vadd.f32 %v3691_v53, %v3563_v51  ;;  %v3564_v14 = vld [vmem:[%s4791_s17 + $0x390] sm:$0xff]  ;;  %v3565_v16 = vld [vmem:[%s4791_s17 + $0x398] sm:$0xff]  ;;  %v3566_v20 = vld [vmem:[%s4791_s17 + $0x3a0] sm:$0xff] }
 0x703   : > { %v3692_v15 = vld [vmem:[%s7875_s6 + $0x390] sm:$0xff]  ;;  %4071 = vst.msk [vmem:[%s4791_s17 + $0x360] sm:$0xff] %vm3962_vm5, %v3942_v40  ;;  %v3945_v17 = vmax.f32 %v3817_v9, 0.0  ;;  %v3693_v19 = vld [vmem:[%s7875_s6 + $0x398] sm:$0xff]  ;;  %v3694_v21 = vld [vmem:[%s7875_s6 + $0x3a0] sm:$0xff] }
 0x704   : > { %v3820_v18 = vadd.f32 %v3692_v15, %v3564_v14  ;;  %4072 = vst.msk [vmem:[%s4791_s17 + $0x368] sm:$0xff] %vm3962_vm5, %v3943_v58  ;;  %4073 = vst.msk [vmem:[%s4791_s17 + $0x370] sm:$0xff] %vm3962_vm5, %v3944_v11  ;;  %v3946_v47 = vmax.f32 %v3818_v12, 0.0  ;;  %v3947_v22 = vmax.f32 %v3819_v13, 0.0  ;;  %v3821_v23 = vadd.f32 %v3693_v19, %v3565_v16  ;;  %v3567_v25 = vld [vmem:[%s4791_s17 + $0x3a8] sm:$0xff]  ;;  %v3568_v49 = vld [vmem:[%s4791_s17 + $0x3b0] sm:$0xff] }
 0x705   : > { %v3822_v24 = vadd.f32 %v3694_v21, %v3566_v20  ;;  %v3695_v26 = vld [vmem:[%s7875_s6 + $0x3a8] sm:$0xff]  ;;  %4074 = vst.msk [vmem:[%s4791_s17 + $0x378] sm:$0xff] %vm3962_vm5, %v3945_v17  ;;  %v3696_v63 = vld [vmem:[%s7875_s6 + $0x3b0] sm:$0xff]  ;;  %v3569_v2 = vld [vmem:[%s4791_s17 + $0x3b8] sm:$0xff] }
 0x706   : > { %v3948_v44 = vmax.f32 %v3820_v18, 0.0  ;;  %v3823_v39 = vadd.f32 %v3695_v26, %v3567_v25  ;;  %v3697_v28 = vld [vmem:[%s7875_s6 + $0x3b8] sm:$0xff]  ;;  %4075 = vst.msk [vmem:[%s4791_s17 + $0x380] sm:$0xff] %vm3962_vm5, %v3946_v47  ;;  %4076 = vst.msk [vmem:[%s4791_s17 + $0x388] sm:$0xff] %vm3962_vm5, %v3947_v22  ;;  %v3949_v33 = vmax.f32 %v3821_v23, 0.0  ;;  %v3824_v31 = vadd.f32 %v3696_v63, %v3568_v49  ;;  %v3570_v59 = vld [vmem:[%s4791_s17 + $0x3c0] sm:$0xff] }
 0x707   : > { %v3950_v27 = vmax.f32 %v3822_v24, 0.0  ;;  %v3825_v61 = vadd.f32 %v3697_v28, %v3569_v2  ;;  %v3698_v35 = vld [vmem:[%s7875_s6 + $0x3c0] sm:$0xff]  ;;  %v3571_v29 = vld [vmem:[%s4791_s17 + $0x3c8] sm:$0xff]  ;;  %v3572_v30 = vld [vmem:[%s4791_s17 + $0x3d0] sm:$0xff] }
 0x708   : > { %4077 = vst.msk [vmem:[%s4791_s17 + $0x390] sm:$0xff] %vm3962_vm5, %v3948_v44  ;;  %v3951_v56 = vmax.f32 %v3823_v39, 0.0  ;;  %v3826_v37 = vadd.f32 %v3698_v35, %v3570_v59  ;;  %v3699_v52 = vld [vmem:[%s7875_s6 + $0x3c8] sm:$0xff]  ;;  %v3700_v46 = vld [vmem:[%s7875_s6 + $0x3d0] sm:$0xff]  ;;  %4078 = vst.msk [vmem:[%s4791_s17 + $0x398] sm:$0xff] %vm3962_vm5, %v3949_v33  ;;  %v3952_v43 = vmax.f32 %v3824_v31, 0.0 }
 0x709   : > { %4079 = vst.msk [vmem:[%s4791_s17 + $0x3a0] sm:$0xff] %vm3962_vm5, %v3950_v27  ;;  %v3953_v42 = vmax.f32 %v3825_v61, 0.0  ;;  %v3827_v32 = vadd.f32 %v3699_v52, %v3571_v29  ;;  %v3828_v34 = vadd.f32 %v3700_v46, %v3572_v30  ;;  %v3573_v36 = vld [vmem:[%s4791_s17 + $0x3d8] sm:$0xff]  ;;  %v3574_v41 = vld [vmem:[%s4791_s17 + $0x3e0] sm:$0xff]  ;;  %v3575_v54 = vld [vmem:[%s4791_s17 + $0x3e8] sm:$0xff] }
 0x70a   : > { %v3701_v38 = vld [vmem:[%s7875_s6 + $0x3d8] sm:$0xff]  ;;  %4080 = vst.msk [vmem:[%s4791_s17 + $0x3a8] sm:$0xff] %vm3962_vm5, %v3951_v56  ;;  %v3954_v45 = vmax.f32 %v3826_v37, 0.0  ;;  %v3702_v50 = vld [vmem:[%s7875_s6 + $0x3e0] sm:$0xff]  ;;  %v3703_v55 = vld [vmem:[%s7875_s6 + $0x3e8] sm:$0xff] }
 0x70b   : > { %v3829_v48 = vadd.f32 %v3701_v38, %v3573_v36  ;;  %4081 = vst.msk [vmem:[%s4791_s17 + $0x3b0] sm:$0xff] %vm3962_vm5, %v3952_v43  ;;  %4082 = vst.msk [vmem:[%s4791_s17 + $0x3b8] sm:$0xff] %vm3962_vm5, %v3953_v42  ;;  %v3955_v57 = vmax.f32 %v3827_v32, 0.0  ;;  %v3956_v60 = vmax.f32 %v3828_v34, 0.0  ;;  %v3830_v62 = vadd.f32 %v3702_v50, %v3574_v41  ;;  %v3576_v1 = vld [vmem:[%s4791_s17 + $0x3f0] sm:$0xff]  ;;  %v3577_v4 = vld [vmem:[%s4791_s17 + $0x3f8] sm:$0xff] }
 0x70c   : > { %v3831_v0 = vadd.f32 %v3703_v55, %v3575_v54  ;;  %v3704_v3 = vld [vmem:[%s7875_s6 + $0x3f0] sm:$0xff]  ;;  %4083 = vst.msk [vmem:[%s4791_s17 + $0x3c0] sm:$0xff] %vm3962_vm5, %v3954_v45  ;;  %v3705_v7 = vld [vmem:[%s7875_s6 + $0x3f8] sm:$0xff] }
 0x70d   : > { %v3957_v5 = vmax.f32 %v3829_v48, 0.0  ;;  %v3832_v6 = vadd.f32 %v3704_v3, %v3576_v1  ;;  %4084 = vst.msk [vmem:[%s4791_s17 + $0x3c8] sm:$0xff] %vm3962_vm5, %v3955_v57  ;;  %4085 = vst.msk [vmem:[%s4791_s17 + $0x3d0] sm:$0xff] %vm3962_vm5, %v3956_v60  ;;  %v3958_v8 = vmax.f32 %v3830_v62, 0.0  ;;  %v3833_v9 = vadd.f32 %v3705_v7, %v3577_v4 }
 0x70e   : > { %v3959_v40 = vmax.f32 %v3831_v0, 0.0 }
 0x70f   : > { %4086 = vst.msk [vmem:[%s4791_s17 + $0x3d8] sm:$0xff] %vm3962_vm5, %v3957_v5  ;;  %v3960_v10 = vmax.f32 %v3832_v6, 0.0  ;;  %4087 = vst.msk [vmem:[%s4791_s17 + $0x3e0] sm:$0xff] %vm3962_vm5, %v3958_v8  ;;  %v3961_v51 = vmax.f32 %v3833_v9, 0.0 }
 0x710   : > { %4088 = vst.msk [vmem:[%s4791_s17 + $0x3e8] sm:$0xff] %vm3962_vm5, %v3959_v40 }
 0x711   : > { %4089 = vst.msk [vmem:[%s4791_s17 + $0x3f0] sm:$0xff] %vm3962_vm5, %v3960_v10  ;;  %4090 = vst.msk [vmem:[%s4791_s17 + $0x3f8] sm:$0xff] %vm3962_vm5, %v3961_v51 }
 0x712 PF: > { %s17_s28 = sadd.s32 1, %s4696_s28   ;;  %s8119_s24 = smov %s4688_s26 }
 0x713   : > { %p14_p10 = scmp.ge.s32.totalorder %s17_s28, 6   ;;  %s8120_s25 = smov %s4692_s27 }
 0x714   : > { %s8121_s26 = smov %s8124_s29  ;;  %s8122_s27 = smov %s8128_s30 }
 0x715   :  { %16 = sbr.rel (!%p14_p10) target bundleno = 3 (0x3), region = 94 }

// kernel: stn3d_forward.3
= control target key start
LH: loop header
LB: loop body
LE: loop exit
PB: predicated region body
PF: predicated region fallthrough
CT: control target
= control target key end

     0   :  { %v286_v36 = vlaneseq  ;;  %v3531_v37 = vmov 1966171168   ;;  %s4658_s1 = inlined_call_operand.vmem [shape: bf16[1024,512], index: 1, kind: input, shape index: {}]   ;;  %s4659_s0 = inlined_call_operand.vmem [shape: bf16[2,1024], index: 0, kind: input, shape index: {}]   ;;  %s4660_s3 = inlined_call_operand.vmem [shape: bf16[512,256], index: 3, kind: input, shape index: {}]   ;;  %s4661_s2 = inlined_call_operand.vmem [shape: f32[1,512], index: 2, kind: input, shape index: {}]   ;;  %s4662_s5 = inlined_call_operand.vmem [shape: bf16[256,128], index: 5, kind: input, shape index: {}]   ;;  %s4663_s4 = inlined_call_operand.vmem [shape: f32[1,256], index: 4, kind: input, shape index: {}]   ;;  %s4664_s6 = inlined_call_operand.vmem [shape: f32[1,128], index: 6, kind: input, shape index: {}]   ;;  %s4665_s7 = inlined_call_operand.vmem [shape: f32[2,128], index: 7, kind: output, shape index: {}]  }
   0x1   :  { %v3034_v0 = vld [vmem:[%s4658_s1 + $0x4] ss:$16 sps:$4 sm:$0xff]   ;;  %v3038_v2 = vld [vmem:[%s4658_s1] ss:$16 sps:$4 sm:$0xff]   ;;  %v309_v38 = vunpack.c.l.s4 %v3531_v37  ;;  %v3157_v37 = vld [vmem:[%s4658_s1 + $0x88] ss:$16 sps:$4 sm:$0xff]  }
   0x2   :  { %v3036_v1 = vld [vmem:[%s4658_s1 + $0x204] ss:$16 sps:$4 sm:$0xff]   ;;  %1644 = vmatprep.subr.bf16.mxu1 %v3034_v0  ;;  %v3039_v3 = vld [vmem:[%s4658_s1 + $0x200] ss:$16 sps:$4 sm:$0xff]   ;;  %v3689_v42 = vshrl.u32 %v286_v36, 7 }
   0x3   :  { %1685 = vmatprep.subr.bf16.mxu0 %v3036_v1  ;;  %v3040_v4 = vld [vmem:[%s4658_s1 + $0x24] ss:$16 sps:$4 sm:$0xff]   ;;  %1645 = vmatpush1.bf16.msra.mxu1 %v3038_v2  ;;  %v3044_v6 = vld [vmem:[%s4658_s1 + $0x20] ss:$16 sps:$4 sm:$0xff]   ;;  %v310_v43 = vunpack.c.0.s8 %v309_v38 }
   0x4   :  { %1686 = vmatpush1.bf16.msra.mxu0 %v3039_v3  ;;  %v3042_v5 = vld [vmem:[%s4658_s1 + $0x224] ss:$16 sps:$4 sm:$0xff]   ;;  %1646 = vmatprep.subr.bf16.mxu1 %v3040_v4  ;;  %v3045_v7 = vld [vmem:[%s4658_s1 + $0x220] ss:$16 sps:$4 sm:$0xff]  }
   0x5   :  { %1687 = vmatprep.subr.bf16.mxu0 %v3042_v5  ;;  %v3046_v8 = vld [vmem:[%s4658_s1 + $0x44] ss:$16 sps:$4 sm:$0xff]   ;;  %v3050_v10 = vld [vmem:[%s4658_s1 + $0x40] ss:$16 sps:$4 sm:$0xff]   ;;  %v3707_v49 = vsub.s32 %v310_v43, %v3689_v42 }
   0x6   :  { %v3048_v9 = vld [vmem:[%s4658_s1 + $0x244] ss:$16 sps:$4 sm:$0xff]   ;;  %v3051_v11 = vld [vmem:[%s4658_s1 + $0x240] ss:$16 sps:$4 sm:$0xff]  }
   0x7   :  { %1647 = vmatpush1.bf16.msra.mxu1 %v3044_v6  ;;  %v3052_v12 = vld [vmem:[%s4658_s1 + $0x64] ss:$16 sps:$4 sm:$0xff]   ;;  %v3056_v14 = vld [vmem:[%s4658_s1 + $0x60] ss:$16 sps:$4 sm:$0xff]  }
   0x8   :  { %1688 = vmatpush1.bf16.msra.mxu0 %v3045_v7  ;;  %1648 = vmatprep.subr.bf16.mxu1 %v3046_v8  ;;  %v3054_v13 = vld [vmem:[%s4658_s1 + $0x264] ss:$16 sps:$4 sm:$0xff]   ;;  %v3057_v15 = vld [vmem:[%s4658_s1 + $0x260] ss:$16 sps:$4 sm:$0xff]  }
   0x9   :  { %1689 = vmatprep.subr.bf16.mxu0 %v3048_v9  ;;  %v3058_v16 = vld [vmem:[%s4658_s1 + $0x84] ss:$16 sps:$4 sm:$0xff]   ;;  %v3062_v18 = vld [vmem:[%s4658_s1 + $0x80] ss:$16 sps:$4 sm:$0xff]  }
   0xa   :  { %v3060_v17 = vld [vmem:[%s4658_s1 + $0x284] ss:$16 sps:$4 sm:$0xff]   ;;  %v3063_v19 = vld [vmem:[%s4658_s1 + $0x280] ss:$16 sps:$4 sm:$0xff]  }
   0xb   :  { %1649 = vmatpush1.bf16.msra.mxu1 %v3050_v10  ;;  %v3064_v20 = vld [vmem:[%s4658_s1 + $0xa4] ss:$16 sps:$4 sm:$0xff]   ;;  %v3068_v22 = vld [vmem:[%s4658_s1 + $0xa0] ss:$16 sps:$4 sm:$0xff]  }
   0xc   :  { %1690 = vmatpush1.bf16.msra.mxu0 %v3051_v11  ;;  %1650 = vmatprep.subr.bf16.mxu1 %v3052_v12  ;;  %v3066_v21 = vld [vmem:[%s4658_s1 + $0x2a4] ss:$16 sps:$4 sm:$0xff]   ;;  %v3069_v23 = vld [vmem:[%s4658_s1 + $0x2a0] ss:$16 sps:$4 sm:$0xff]  }
   0xd   :  { %1691 = vmatprep.subr.bf16.mxu0 %v3054_v13  ;;  %v3070_v24 = vld [vmem:[%s4658_s1 + $0xc4] ss:$16 sps:$4 sm:$0xff]   ;;  %v3074_v26 = vld [vmem:[%s4658_s1 + $0xc0] ss:$16 sps:$4 sm:$0xff]  }
   0xe   :  { %v3072_v25 = vld [vmem:[%s4658_s1 + $0x2c4] ss:$16 sps:$4 sm:$0xff]   ;;  %v3075_v27 = vld [vmem:[%s4658_s1 + $0x2c0] ss:$16 sps:$4 sm:$0xff]  }
   0xf   :  { %1651 = vmatpush1.bf16.msra.mxu1 %v3056_v14  ;;  %v3076_v28 = vld [vmem:[%s4658_s1 + $0xe4] ss:$16 sps:$4 sm:$0xff]   ;;  %v3080_v30 = vld [vmem:[%s4658_s1 + $0xe0] ss:$16 sps:$4 sm:$0xff]  }
  0x10   :  { %1692 = vmatpush1.bf16.msra.mxu0 %v3057_v15  ;;  %1652 = vmatprep.subr.bf16.mxu1 %v3058_v16  ;;  %v3078_v29 = vld [vmem:[%s4658_s1 + $0x2e4] ss:$16 sps:$4 sm:$0xff]   ;;  %v3081_v31 = vld [vmem:[%s4658_s1 + $0x2e0] ss:$16 sps:$4 sm:$0xff]   ;;  %v3135_v16 = vld [vmem:[%s4658_s1 + $0xc] ss:$16 sps:$4 sm:$0xff]  }
  0x11   :  { %1693 = vmatprep.subr.bf16.mxu0 %v3060_v17  ;;  %v3082_v32 = vld [vmem:[%s4658_s1 + $0x104] ss:$16 sps:$4 sm:$0xff]   ;;  %v3086_v34 = vld [vmem:[%s4658_s1 + $0x100] ss:$16 sps:$4 sm:$0xff]  }
  0x12   :  { %v3084_v33 = vld [vmem:[%s4658_s1 + $0x304] ss:$16 sps:$4 sm:$0xff]   ;;  %v3087_v35 = vld [vmem:[%s4658_s1 + $0x300] ss:$16 sps:$4 sm:$0xff]  }
  0x13   :  { %1653 = vmatpush1.bf16.msra.mxu1 %v3062_v18  ;;  %v3088_v39 = vld [vmem:[%s4658_s1 + $0x124] ss:$16 sps:$4 sm:$0xff]   ;;  %v3092_v41 = vld [vmem:[%s4658_s1 + $0x120] ss:$16 sps:$4 sm:$0xff]  }
  0x14   :  { %1694 = vmatpush1.bf16.msra.mxu0 %v3063_v19  ;;  %1654 = vmatprep.subr.bf16.mxu1 %v3064_v20  ;;  %v3090_v40 = vld [vmem:[%s4658_s1 + $0x324] ss:$16 sps:$4 sm:$0xff]   ;;  %v3093_v44 = vld [vmem:[%s4658_s1 + $0x320] ss:$16 sps:$4 sm:$0xff]   ;;  %v3133_v20 = vld [vmem:[%s4658_s1 + $0x8] ss:$16 sps:$4 sm:$0xff]  }
  0x15   :  { %1695 = vmatprep.subr.bf16.mxu0 %v3066_v21  ;;  %v3094_v45 = vld [vmem:[%s4658_s1 + $0x144] ss:$16 sps:$4 sm:$0xff]   ;;  %v3098_v47 = vld [vmem:[%s4658_s1 + $0x140] ss:$16 sps:$4 sm:$0xff]  }
  0x16   :  { %v3096_v46 = vld [vmem:[%s4658_s1 + $0x344] ss:$16 sps:$4 sm:$0xff]   ;;  %v3099_v48 = vld [vmem:[%s4658_s1 + $0x340] ss:$16 sps:$4 sm:$0xff]  }
  0x17   :  { %1655 = vmatpush1.bf16.msra.mxu1 %v3068_v22  ;;  %v3100_v50 = vld [vmem:[%s4658_s1 + $0x164] ss:$16 sps:$4 sm:$0xff]   ;;  %v3104_v53 = vld [vmem:[%s4658_s1 + $0x160] ss:$16 sps:$4 sm:$0xff]   ;;  %v3141_v22 = vld [vmem:[%s4658_s1 + $0x2c] ss:$16 sps:$4 sm:$0xff]  }
  0x18   :  { %1696 = vmatpush1.bf16.msra.mxu0 %v3069_v23  ;;  %1656 = vmatprep.subr.bf16.mxu1 %v3070_v24  ;;  %v3102_v51 = vld [vmem:[%s4658_s1 + $0x364] ss:$16 sps:$4 sm:$0xff]   ;;  %v3105_v56 = vld [vmem:[%s4658_s1 + $0x360] ss:$16 sps:$4 sm:$0xff]  }
  0x19   :  { %1697 = vmatprep.subr.bf16.mxu0 %v3072_v25  ;;  %v27_v52 = vld [vmem:[%s4659_s0] sm:$0xff]  ;;  %v3139_v25 = vld [vmem:[%s4658_s1 + $0x28] ss:$16 sps:$4 sm:$0xff]  }
  0x1a   :  { %v314_v54 = vrot.slane %v27_v52, %v3707_v49  ;;  %v307_v55 = vcombine.high %v27_v52, %v27_v52  ;;  %v3106_v57 = vld [vmem:[%s4658_s1 + $0x184] ss:$16 sps:$4 sm:$0xff]   ;;  %v3110_v61 = vld [vmem:[%s4658_s1 + $0x180] ss:$16 sps:$4 sm:$0xff]   ;;  %v3183_v52 = vld [vmem:[%s4658_s1 + $0x10c] ss:$16 sps:$4 sm:$0xff]  }
  0x1b   :  { %1657 = vmatpush1.bf16.msra.mxu1 %v3074_v26  ;;  %v3108_v58 = vld [vmem:[%s4658_s1 + $0x384] ss:$16 sps:$4 sm:$0xff]   ;;  %v3111_v0 = vld [vmem:[%s4658_s1 + $0x380] ss:$16 sps:$4 sm:$0xff]  }
  0x1c   :  { %1698 = vmatpush1.bf16.msra.mxu0 %v3075_v27  ;;  %1658 = vmatprep.subr.bf16.mxu1 %v3076_v28  ;;  %v322_v59 = vcombine.high %v314_v54, %v314_v54  ;;  %v321_v60 = vrot.slane %v307_v55, %v3707_v49  ;;  %v3112_v1 = vld [vmem:[%s4658_s1 + $0x1a4] ss:$16 sps:$4 sm:$0xff]   ;;  %v3116_v4 = vld [vmem:[%s4658_s1 + $0x1a0] ss:$16 sps:$4 sm:$0xff]   ;;  %v3779_v13 = vrot.slane %v314_v54, %v3707_v49  ;;  %v3147_v27 = vld [vmem:[%s4658_s1 + $0x4c] ss:$16 sps:$4 sm:$0xff]  }
  0x1d   :  { %1699 = vmatprep.subr.bf16.mxu0 %v3078_v29  ;;  %v3114_v2 = vld [vmem:[%s4658_s1 + $0x3a4] ss:$16 sps:$4 sm:$0xff]   ;;  %v3117_v5 = vld [vmem:[%s4658_s1 + $0x3a0] ss:$16 sps:$4 sm:$0xff]   ;;  %v3145_v29 = vld [vmem:[%s4658_s1 + $0x48] ss:$16 sps:$4 sm:$0xff]  }
  0x1e   :  { %v344_v62 = vrot.slane %v322_v59, %v3707_v49  ;;  %v3737_v63 = vrot.slane %v321_v60, %v3707_v49  ;;  %v3118_v6 = vld [vmem:[%s4658_s1 + $0x1c4] ss:$16 sps:$4 sm:$0xff]   ;;  %v3122_v8 = vld [vmem:[%s4658_s1 + $0x1c0] ss:$16 sps:$4 sm:$0xff]   ;;  %v323_v17 = vcombine.high %v321_v60, %v321_v60  ;;  %v3795_v19 = vcombine.high %v3779_v13, %v3779_v13  ;;  %v3181_v54 = vld [vmem:[%s4658_s1 + $0x108] ss:$16 sps:$4 sm:$0xff]  }
  0x1f   :  { %1659 = vmatpush1.bf16.msra.mxu1 %v3080_v30  ;;  %v3120_v7 = vld [vmem:[%s4658_s1 + $0x3c4] ss:$16 sps:$4 sm:$0xff]   ;;  %v3123_v9 = vld [vmem:[%s4658_s1 + $0x3c0] ss:$16 sps:$4 sm:$0xff]   ;;  %v3195_v60 = vld [vmem:[%s4658_s1 + $0x14c] ss:$16 sps:$4 sm:$0xff]  }
  0x20   :  { %1700 = vmatpush1.bf16.msra.mxu0 %v3081_v31  ;;  %1660 = vmatprep.subr.bf16.mxu1 %v3082_v32  ;;  %v3748_v3 = vcombine.high %v344_v62, %v344_v62  ;;  %v3124_v10 = vld [vmem:[%s4658_s1 + $0x1e4] ss:$16 sps:$4 sm:$0xff]   ;;  %v3128_v12 = vld [vmem:[%s4658_s1 + $0x1e0] ss:$16 sps:$4 sm:$0xff]   ;;  %v3807_v23 = vrot.slane %v323_v17, %v3707_v49  ;;  %v3153_v31 = vld [vmem:[%s4658_s1 + $0x6c] ss:$16 sps:$4 sm:$0xff]  }
  0x21   :  { %1701 = vmatprep.subr.bf16.mxu0 %v3084_v33  ;;  %1676 = vmatprep.mubr.bf16.mxu1 %v344_v62  ;;  %v3126_v11 = vld [vmem:[%s4658_s1 + $0x3e4] ss:$16 sps:$4 sm:$0xff]   ;;  %v3129_v14 = vld [vmem:[%s4658_s1 + $0x3e0] ss:$16 sps:$4 sm:$0xff]   ;;  %v3151_v33 = vld [vmem:[%s4658_s1 + $0x68] ss:$16 sps:$4 sm:$0xff]  }
  0x22   :  { %1717 = vmatprep.mubr.bf16.mxu0 %v3748_v3  ;;  %v3132_v15 = vld [vmem:[%s4658_s1 + $0x404] ss:$16 sps:$4 sm:$0xff]   ;;  %v3130_v18 = vld [vmem:[%s4658_s1 + $0x400] ss:$16 sps:$4 sm:$0xff]   ;;  %v3217_v17 = vld [vmem:[%s4658_s1 + $0x1c8] ss:$16 sps:$4 sm:$0xff]  }
  0x23   :  { %1661 = vmatpush1.bf16.msra.mxu1 %v3086_v34  ;;  %v3138_v21 = vld [vmem:[%s4658_s1 + $0x424] ss:$16 sps:$4 sm:$0xff]   ;;  %v3136_v24 = vld [vmem:[%s4658_s1 + $0x420] ss:$16 sps:$4 sm:$0xff]  }
  0x24   :  { %1702 = vmatpush1.bf16.msra.mxu0 %v3087_v35  ;;  %1662 = vmatprep.subr.bf16.mxu1 %v3088_v39  ;;  %v3144_v26 = vld [vmem:[%s4658_s1 + $0x444] ss:$16 sps:$4 sm:$0xff]   ;;  %v3142_v28 = vld [vmem:[%s4658_s1 + $0x440] ss:$16 sps:$4 sm:$0xff]   ;;  %v3159_v35 = vld [vmem:[%s4658_s1 + $0x8c] ss:$16 sps:$4 sm:$0xff]  }
  0x25   :  { %1703 = vmatprep.subr.bf16.mxu0 %v3090_v40  ;;  %v3150_v30 = vld [vmem:[%s4658_s1 + $0x464] ss:$16 sps:$4 sm:$0xff]   ;;  %v3148_v32 = vld [vmem:[%s4658_s1 + $0x460] ss:$16 sps:$4 sm:$0xff]   ;;  %v3165_v39 = vld [vmem:[%s4658_s1 + $0xac] ss:$16 sps:$4 sm:$0xff]  }
  0x26   :  { %v3156_v34 = vld [vmem:[%s4658_s1 + $0x484] ss:$16 sps:$4 sm:$0xff]   ;;  %v3154_v36 = vld [vmem:[%s4658_s1 + $0x480] ss:$16 sps:$4 sm:$0xff]  }
  0x27   :  { %1663 = vmatpush1.bf16.msra.mxu1 %v3092_v41  ;;  %v3162_v38 = vld [vmem:[%s4658_s1 + $0x4a4] ss:$16 sps:$4 sm:$0xff]   ;;  %v3160_v40 = vld [vmem:[%s4658_s1 + $0x4a0] ss:$16 sps:$4 sm:$0xff]   ;;  %v3163_v41 = vld [vmem:[%s4658_s1 + $0xa8] ss:$16 sps:$4 sm:$0xff]  }
  0x28   :  { %1704 = vmatpush1.bf16.msra.mxu0 %v3093_v44  ;;  %1664 = vmatprep.subr.bf16.mxu1 %v3094_v45  ;;  %v3168_v43 = vld [vmem:[%s4658_s1 + $0x4c4] ss:$16 sps:$4 sm:$0xff]   ;;  %v3171_v44 = vld [vmem:[%s4658_s1 + $0xcc] ss:$16 sps:$4 sm:$0xff]   ;;  %v3166_v45 = vld [vmem:[%s4658_s1 + $0x4c0] ss:$16 sps:$4 sm:$0xff]  }
  0x29   :  { %1705 = vmatprep.subr.bf16.mxu0 %v3096_v46  ;;  %v3169_v46 = vld [vmem:[%s4658_s1 + $0xc8] ss:$16 sps:$4 sm:$0xff]   ;;  %v3172_v49 = vld [vmem:[%s4658_s1 + $0x4e0] ss:$16 sps:$4 sm:$0xff]   ;;  %v3186_v55 = vld [vmem:[%s4658_s1 + $0x524] ss:$16 sps:$4 sm:$0xff]  }
  0x2a   :  { %v3192_v59 = vld [vmem:[%s4658_s1 + $0x544] ss:$16 sps:$4 sm:$0xff]  }
  0x2b   :  { %1665 = vmatpush1.bf16.msra.mxu1 %v3098_v47  ;;  %v3174_v47 = vld [vmem:[%s4658_s1 + $0x4e4] ss:$16 sps:$4 sm:$0xff]  }
  0x2c   :  { %1706 = vmatpush1.bf16.msra.mxu0 %v3099_v48  ;;  %1666 = vmatprep.subr.bf16.mxu1 %v3100_v50  ;;  %v3177_v48 = vld [vmem:[%s4658_s1 + $0xec] ss:$16 sps:$4 sm:$0xff]   ;;  %v3175_v50 = vld [vmem:[%s4658_s1 + $0xe8] ss:$16 sps:$4 sm:$0xff]  }
  0x2d   :  { %1707 = vmatprep.subr.bf16.mxu0 %v3102_v51  ;;  %v3180_v51 = vld [vmem:[%s4658_s1 + $0x504] ss:$16 sps:$4 sm:$0xff]  }
  0x2f   :  { %1667 = vmatpush1.bf16.msra.mxu1 %v3104_v53  ;;  %v3178_v53 = vld [vmem:[%s4658_s1 + $0x500] ss:$16 sps:$4 sm:$0xff]  }
  0x30   :  { %1708 = vmatpush1.bf16.msra.mxu0 %v3105_v56  ;;  %1668 = vmatprep.subr.bf16.mxu1 %v3106_v57  ;;  %v3189_v56 = vld [vmem:[%s4658_s1 + $0x12c] ss:$16 sps:$4 sm:$0xff]   ;;  %v3184_v57 = vld [vmem:[%s4658_s1 + $0x520] ss:$16 sps:$4 sm:$0xff]  }
  0x31   :  { %1709 = vmatprep.subr.bf16.mxu0 %v3108_v58  ;;  %v3187_v58 = vld [vmem:[%s4658_s1 + $0x128] ss:$16 sps:$4 sm:$0xff]  }
  0x33   :  { %1669 = vmatpush1.bf16.msra.mxu1 %v3110_v61  ;;  %v3190_v61 = vld [vmem:[%s4658_s1 + $0x540] ss:$16 sps:$4 sm:$0xff]  }
  0x34   :  { %1710 = vmatpush1.bf16.msra.mxu0 %v3111_v0  ;;  %1670 = vmatprep.subr.bf16.mxu1 %v3112_v1  ;;  %v3198_v0 = vld [vmem:[%s4658_s1 + $0x564] ss:$16 sps:$4 sm:$0xff]   ;;  %v3201_v1 = vld [vmem:[%s4658_s1 + $0x16c] ss:$16 sps:$4 sm:$0xff]  }
  0x35   :  { %1711 = vmatprep.subr.bf16.mxu0 %v3114_v2  ;;  %v3196_v2 = vld [vmem:[%s4658_s1 + $0x560] ss:$16 sps:$4 sm:$0xff]  }
  0x37   :  { %1671 = vmatpush1.bf16.msra.mxu1 %v3116_v4  ;;  %v3199_v4 = vld [vmem:[%s4658_s1 + $0x168] ss:$16 sps:$4 sm:$0xff]  }
  0x38   :  { %1712 = vmatpush1.bf16.msra.mxu0 %v3117_v5  ;;  %1672 = vmatprep.subr.bf16.mxu1 %v3118_v6  ;;  %v3204_v5 = vld [vmem:[%s4658_s1 + $0x584] ss:$16 sps:$4 sm:$0xff]   ;;  %v3207_v6 = vld [vmem:[%s4658_s1 + $0x18c] ss:$16 sps:$4 sm:$0xff]  }
  0x39   :  { %1713 = vmatprep.subr.bf16.mxu0 %v3120_v7  ;;  %v3202_v7 = vld [vmem:[%s4658_s1 + $0x580] ss:$16 sps:$4 sm:$0xff]  }
  0x3b   :  { %1673 = vmatpush1.bf16.msra.mxu1 %v3122_v8  ;;  %v3205_v8 = vld [vmem:[%s4658_s1 + $0x188] ss:$16 sps:$4 sm:$0xff]  }
  0x3c   :  { %1714 = vmatpush1.bf16.msra.mxu0 %v3123_v9  ;;  %1674 = vmatprep.subr.bf16.mxu1 %v3124_v10  ;;  %v3210_v9 = vld [vmem:[%s4658_s1 + $0x5a4] ss:$16 sps:$4 sm:$0xff]   ;;  %v3213_v10 = vld [vmem:[%s4658_s1 + $0x1ac] ss:$16 sps:$4 sm:$0xff]  }
  0x3d   :  { %1715 = vmatprep.subr.bf16.mxu0 %v3126_v11  ;;  %v3208_v11 = vld [vmem:[%s4658_s1 + $0x5a0] ss:$16 sps:$4 sm:$0xff]  }
  0x3f   :  { %1675 = vmatpush1.bf16.msra.mxu1 %v3128_v12  ;;  %v3211_v12 = vld [vmem:[%s4658_s1 + $0x1a8] ss:$16 sps:$4 sm:$0xff]  }
  0x40   :  { %1716 = vmatpush1.bf16.msra.mxu0 %v3129_v14  ;;  %1808 = vmatprep.subr.bf16.mxu1 %v3135_v16  ;;  %v3216_v14 = vld [vmem:[%s4658_s1 + $0x5c4] ss:$16 sps:$4 sm:$0xff]   ;;  %v3214_v16 = vld [vmem:[%s4658_s1 + $0x5c0] ss:$16 sps:$4 sm:$0xff]  }
  0x41   :  { %1726 = vmatprep.subr.bf16.mxu0 %v3132_v15  ;;  %v3219_v15 = vld [vmem:[%s4658_s1 + $0x1cc] ss:$16 sps:$4 sm:$0xff]  }
  0x42   :  { %1677 = vmatmul.mubr.bf16.vlgmr.msra.gmra.mrb[0].mxu1 %v3779_v13 }
  0x43   :  { %1718 = vmatmul.mubr.bf16.vlgmr.msra.gmra.mrb[0].mxu0 %v3795_v19  ;;  %1809 = vmatpush1.bf16.msra.mxu1 %v3133_v20  ;;  %v3225_v20 = vld [vmem:[%s4658_s1 + $0x1ec] ss:$16 sps:$4 sm:$0xff]  }
  0x44   :  { %1727 = vmatpush1.bf16.msra.mxu0 %v3130_v18  ;;  %1810 = vmatprep.subr.bf16.mxu1 %v3141_v22  ;;  %v3222_v18 = vld [vmem:[%s4658_s1 + $0x5e4] ss:$16 sps:$4 sm:$0xff]   ;;  %v3223_v22 = vld [vmem:[%s4658_s1 + $0x1e8] ss:$16 sps:$4 sm:$0xff]  }
  0x45   :  { %1728 = vmatprep.subr.bf16.mxu0 %v3138_v21  ;;  %1758 = vmatprep.mubr.bf16.mxu0 %v3807_v23  ;;  %v3220_v21 = vld [vmem:[%s4658_s1 + $0x5e0] ss:$16 sps:$4 sm:$0xff]  }
  0x46   :  { %1840 = vmatprep.mubr.bf16.mxu1 %v344_v62  ;;  %v3193_v62 = vld [vmem:[%s4658_s1 + $0x148] ss:$16 sps:$4 sm:$0xff]  }
  0x47   :  { %1811 = vmatpush1.bf16.msra.mxu1 %v3139_v25  ;;  %v3232_v25 = vld [vmem:[%s4658_s1 + $0x20c] ss:$16 sps:$4 sm:$0xff]  }
  0x48   :  { %1729 = vmatpush1.bf16.msra.mxu0 %v3136_v24  ;;  %1812 = vmatprep.subr.bf16.mxu1 %v3147_v27  ;;  %v3229_v24 = vld [vmem:[%s4658_s1 + $0x604] ss:$16 sps:$4 sm:$0xff]   ;;  %v3230_v27 = vld [vmem:[%s4658_s1 + $0x208] ss:$16 sps:$4 sm:$0xff]  }
  0x49   :  { %1730 = vmatprep.subr.bf16.mxu0 %v3144_v26  ;;  %v3227_v26 = vld [vmem:[%s4658_s1 + $0x600] ss:$16 sps:$4 sm:$0xff]  }
  0x4b   :  { %1813 = vmatpush1.bf16.msra.mxu1 %v3145_v29  ;;  %v3238_v29 = vld [vmem:[%s4658_s1 + $0x22c] ss:$16 sps:$4 sm:$0xff]  }
  0x4c   :  { %1731 = vmatpush1.bf16.msra.mxu0 %v3142_v28  ;;  %1814 = vmatprep.subr.bf16.mxu1 %v3153_v31  ;;  %v3235_v28 = vld [vmem:[%s4658_s1 + $0x624] ss:$16 sps:$4 sm:$0xff]   ;;  %v3233_v31 = vld [vmem:[%s4658_s1 + $0x620] ss:$16 sps:$4 sm:$0xff]  }
  0x4d   :  { %1732 = vmatprep.subr.bf16.mxu0 %v3150_v30  ;;  %v4006_v30 = vcombine.high %v3807_v23, %v3807_v23 }
  0x4f   :  { %1815 = vmatpush1.bf16.msra.mxu1 %v3151_v33  ;;  %v3241_v33 = vld [vmem:[%s4658_s1 + $0x644] ss:$16 sps:$4 sm:$0xff]  }
  0x50   :  { %1733 = vmatpush1.bf16.msra.mxu0 %v3148_v32  ;;  %1816 = vmatprep.subr.bf16.mxu1 %v3159_v35  ;;  %v3236_v32 = vld [vmem:[%s4658_s1 + $0x228] ss:$16 sps:$4 sm:$0xff]  }
  0x51   :  { %1734 = vmatprep.subr.bf16.mxu0 %v3156_v34  ;;  %v3239_v34 = vld [vmem:[%s4658_s1 + $0x640] ss:$16 sps:$4 sm:$0xff]   ;;  %v3242_v35 = vld [vmem:[%s4658_s1 + $0x248] ss:$16 sps:$4 sm:$0xff]  }
  0x53   :  { %1817 = vmatpush1.bf16.msra.mxu1 %v3157_v37  ;;  %v3245_v37 = vld [vmem:[%s4658_s1 + $0x660] ss:$16 sps:$4 sm:$0xff]  }
  0x54   :  { %1735 = vmatpush1.bf16.msra.mxu0 %v3154_v36  ;;  %1818 = vmatprep.subr.bf16.mxu1 %v3165_v39  ;;  %v3247_v36 = vld [vmem:[%s4658_s1 + $0x664] ss:$16 sps:$4 sm:$0xff]  }
  0x55   :  { %1736 = vmatprep.subr.bf16.mxu0 %v3162_v38  ;;  %v3248_v38 = vld [vmem:[%s4658_s1 + $0x268] ss:$16 sps:$4 sm:$0xff]   ;;  %v3253_v39 = vld [vmem:[%s4658_s1 + $0x684] ss:$16 sps:$4 sm:$0xff]  }
  0x57   :  { %1819 = vmatpush1.bf16.msra.mxu1 %v3163_v41  ;;  %v3251_v41 = vld [vmem:[%s4658_s1 + $0x680] ss:$16 sps:$4 sm:$0xff]  }
  0x58   :  { %1737 = vmatpush1.bf16.msra.mxu0 %v3160_v40  ;;  %1820 = vmatprep.subr.bf16.mxu1 %v3171_v44  ;;  %v3256_v40 = vld [vmem:[%s4658_s1 + $0x28c] ss:$16 sps:$4 sm:$0xff]   ;;  %v3259_v44 = vld [vmem:[%s4658_s1 + $0x6a4] ss:$16 sps:$4 sm:$0xff]  }
  0x59   :  { %1738 = vmatprep.subr.bf16.mxu0 %v3168_v43  ;;  %v3254_v43 = vld [vmem:[%s4658_s1 + $0x288] ss:$16 sps:$4 sm:$0xff]  }
  0x5b   :  { %1821 = vmatpush1.bf16.msra.mxu1 %v3169_v46  ;;  %v3257_v46 = vld [vmem:[%s4658_s1 + $0x6a0] ss:$16 sps:$4 sm:$0xff]  }
  0x5c   :  { %1739 = vmatpush1.bf16.msra.mxu0 %v3166_v45  ;;  %1822 = vmatprep.subr.bf16.mxu1 %v3177_v48  ;;  %v3262_v45 = vld [vmem:[%s4658_s1 + $0x2ac] ss:$16 sps:$4 sm:$0xff]   ;;  %v3265_v48 = vld [vmem:[%s4658_s1 + $0x6c4] ss:$16 sps:$4 sm:$0xff]  }
  0x5d   :  { %1740 = vmatprep.subr.bf16.mxu0 %v3174_v47  ;;  %v3260_v47 = vld [vmem:[%s4658_s1 + $0x2a8] ss:$16 sps:$4 sm:$0xff]  }
  0x5f   :  { %1823 = vmatpush1.bf16.msra.mxu1 %v3175_v50  ;;  %v3263_v50 = vld [vmem:[%s4658_s1 + $0x6c0] ss:$16 sps:$4 sm:$0xff]  }
  0x60   :  { %1741 = vmatpush1.bf16.msra.mxu0 %v3172_v49  ;;  %1824 = vmatprep.subr.bf16.mxu1 %v3183_v52  ;;  %v3268_v49 = vld [vmem:[%s4658_s1 + $0x2cc] ss:$16 sps:$4 sm:$0xff]   ;;  %v3271_v52 = vld [vmem:[%s4658_s1 + $0x6e4] ss:$16 sps:$4 sm:$0xff]  }
  0x61   :  { %1742 = vmatprep.subr.bf16.mxu0 %v3180_v51  ;;  %v3266_v51 = vld [vmem:[%s4658_s1 + $0x2c8] ss:$16 sps:$4 sm:$0xff]  }
  0x63   :  { %1825 = vmatpush1.bf16.msra.mxu1 %v3181_v54  ;;  %v3269_v54 = vld [vmem:[%s4658_s1 + $0x6e0] ss:$16 sps:$4 sm:$0xff]  }
  0x64   :  { %1743 = vmatpush1.bf16.msra.mxu0 %v3178_v53  ;;  %1826 = vmatprep.subr.bf16.mxu1 %v3189_v56  ;;  %v3274_v53 = vld [vmem:[%s4658_s1 + $0x2ec] ss:$16 sps:$4 sm:$0xff]   ;;  %v3277_v56 = vld [vmem:[%s4658_s1 + $0x704] ss:$16 sps:$4 sm:$0xff]  }
  0x65   :  { %1744 = vmatprep.subr.bf16.mxu0 %v3186_v55  ;;  %v3272_v55 = vld [vmem:[%s4658_s1 + $0x2e8] ss:$16 sps:$4 sm:$0xff]  }
  0x67   :  { %1827 = vmatpush1.bf16.msra.mxu1 %v3187_v58  ;;  %v3275_v58 = vld [vmem:[%s4658_s1 + $0x700] ss:$16 sps:$4 sm:$0xff]  }
  0x68   :  { %1745 = vmatpush1.bf16.msra.mxu0 %v3184_v57  ;;  %1828 = vmatprep.subr.bf16.mxu1 %v3195_v60  ;;  %v3280_v57 = vld [vmem:[%s4658_s1 + $0x30c] ss:$16 sps:$4 sm:$0xff]   ;;  %v3283_v60 = vld [vmem:[%s4658_s1 + $0x724] ss:$16 sps:$4 sm:$0xff]  }
  0x69   :  { %1746 = vmatprep.subr.bf16.mxu0 %v3192_v59  ;;  %v3278_v59 = vld [vmem:[%s4658_s1 + $0x308] ss:$16 sps:$4 sm:$0xff]  }
  0x6b   :  { %1829 = vmatpush1.bf16.msra.mxu1 %v3193_v62  ;;  %v3281_v62 = vld [vmem:[%s4658_s1 + $0x720] ss:$16 sps:$4 sm:$0xff]  }
  0x6c   :  { %1747 = vmatpush1.bf16.msra.mxu0 %v3190_v61  ;;  %1830 = vmatprep.subr.bf16.mxu1 %v3201_v1  ;;  %v3286_v61 = vld [vmem:[%s4658_s1 + $0x32c] ss:$16 sps:$4 sm:$0xff]   ;;  %v3289_v1 = vld [vmem:[%s4658_s1 + $0x744] ss:$16 sps:$4 sm:$0xff]  }
  0x6d   :  { %1748 = vmatprep.subr.bf16.mxu0 %v3198_v0  ;;  %v3284_v0 = vld [vmem:[%s4658_s1 + $0x328] ss:$16 sps:$4 sm:$0xff]  }
  0x6f   :  { %1831 = vmatpush1.bf16.msra.mxu1 %v3199_v4  ;;  %v3287_v4 = vld [vmem:[%s4658_s1 + $0x740] ss:$16 sps:$4 sm:$0xff]  }
  0x70   :  { %1749 = vmatpush1.bf16.msra.mxu0 %v3196_v2  ;;  %1832 = vmatprep.subr.bf16.mxu1 %v3207_v6  ;;  %v3292_v2 = vld [vmem:[%s4658_s1 + $0x34c] ss:$16 sps:$4 sm:$0xff]   ;;  %v3295_v6 = vld [vmem:[%s4658_s1 + $0x764] ss:$16 sps:$4 sm:$0xff]  }
  0x71   :  { %1750 = vmatprep.subr.bf16.mxu0 %v3204_v5  ;;  %v3290_v5 = vld [vmem:[%s4658_s1 + $0x348] ss:$16 sps:$4 sm:$0xff]  }
  0x73   :  { %1833 = vmatpush1.bf16.msra.mxu1 %v3205_v8  ;;  %v3293_v8 = vld [vmem:[%s4658_s1 + $0x760] ss:$16 sps:$4 sm:$0xff]  }
  0x74   :  { %1751 = vmatpush1.bf16.msra.mxu0 %v3202_v7  ;;  %1834 = vmatprep.subr.bf16.mxu1 %v3213_v10  ;;  %v3298_v7 = vld [vmem:[%s4658_s1 + $0x36c] ss:$16 sps:$4 sm:$0xff]   ;;  %v3301_v10 = vld [vmem:[%s4658_s1 + $0x784] ss:$16 sps:$4 sm:$0xff]  }
  0x75   :  { %1752 = vmatprep.subr.bf16.mxu0 %v3210_v9  ;;  %v3296_v9 = vld [vmem:[%s4658_s1 + $0x368] ss:$16 sps:$4 sm:$0xff]  }
  0x77   :  { %1835 = vmatpush1.bf16.msra.mxu1 %v3211_v12  ;;  %v3299_v12 = vld [vmem:[%s4658_s1 + $0x780] ss:$16 sps:$4 sm:$0xff]  }
  0x78   :  { %1753 = vmatpush1.bf16.msra.mxu0 %v3208_v11  ;;  %1836 = vmatprep.subr.bf16.mxu1 %v3219_v15  ;;  %v3304_v11 = vld [vmem:[%s4658_s1 + $0x38c] ss:$16 sps:$4 sm:$0xff]   ;;  %v3307_v15 = vld [vmem:[%s4658_s1 + $0x7a4] ss:$16 sps:$4 sm:$0xff]  }
  0x79   :  { %1754 = vmatprep.subr.bf16.mxu0 %v3216_v14  ;;  %v3302_v14 = vld [vmem:[%s4658_s1 + $0x388] ss:$16 sps:$4 sm:$0xff]  }
  0x7b   :  { %1837 = vmatpush1.bf16.msra.mxu1 %v3217_v17  ;;  %v3305_v17 = vld [vmem:[%s4658_s1 + $0x7a0] ss:$16 sps:$4 sm:$0xff]  }
  0x7c   :  { %1755 = vmatpush1.bf16.msra.mxu0 %v3214_v16  ;;  %1838 = vmatprep.subr.bf16.mxu1 %v3225_v20  ;;  %v3310_v16 = vld [vmem:[%s4658_s1 + $0x3ac] ss:$16 sps:$4 sm:$0xff]   ;;  %v3313_v20 = vld [vmem:[%s4658_s1 + $0x7c4] ss:$16 sps:$4 sm:$0xff]  }
  0x7d   :  { %1756 = vmatprep.subr.bf16.mxu0 %v3222_v18  ;;  %v3308_v18 = vld [vmem:[%s4658_s1 + $0x3a8] ss:$16 sps:$4 sm:$0xff]  }
  0x7f   :  { %1839 = vmatpush1.bf16.msra.mxu1 %v3223_v22  ;;  %v3311_v22 = vld [vmem:[%s4658_s1 + $0x7c0] ss:$16 sps:$4 sm:$0xff]  }
  0x80   :  { %1757 = vmatpush1.bf16.msra.mxu0 %v3220_v21  ;;  %1849 = vmatprep.subr.bf16.mxu1 %v3232_v25  ;;  %v3316_v21 = vld [vmem:[%s4658_s1 + $0x3cc] ss:$16 sps:$4 sm:$0xff]   ;;  %v3319_v25 = vld [vmem:[%s4658_s1 + $0x7e4] ss:$16 sps:$4 sm:$0xff]  }
  0x81   :  { %1767 = vmatprep.subr.bf16.mxu0 %v3229_v24  ;;  %v3314_v24 = vld [vmem:[%s4658_s1 + $0x3c8] ss:$16 sps:$4 sm:$0xff]  }
  0x82   :  { %1841 = vmatmul.mubr.bf16.vlgmr.msra.gmra.mrb[4].mxu1 %v3779_v13  ;;  %v3244_v13 = vld [vmem:[%s4658_s1 + $0x24c] ss:$16 sps:$4 sm:$0xff]  }
  0x83   :  { %1759 = vmatmul.mubr.bf16.vlgmr.msra.gmra.mrb[0].mxu0 %v3737_v63  ;;  %1850 = vmatpush1.bf16.msra.mxu1 %v3230_v27  ;;  %v3317_v27 = vld [vmem:[%s4658_s1 + $0x7e0] ss:$16 sps:$4 sm:$0xff]  }
  0x84   :  { %1768 = vmatpush1.bf16.msra.mxu0 %v3227_v26  ;;  %1851 = vmatprep.subr.bf16.mxu1 %v3238_v29  ;;  %v3322_v26 = vld [vmem:[%s4658_s1 + $0x3ec] ss:$16 sps:$4 sm:$0xff]  }
  0x85   :  { %1769 = vmatprep.subr.bf16.mxu0 %v3235_v28  ;;  %1799 = vmatprep.mubr.bf16.mxu0 %v4006_v30  ;;  %v3320_v28 = vld [vmem:[%s4658_s1 + $0x3e8] ss:$16 sps:$4 sm:$0xff]   ;;  %v3325_v29 = vld [vmem:[%s4658_s1 + $0x40c] ss:$16 sps:$4 sm:$0xff]  }
  0x86   :  { %1881 = vmatprep.mubr.bf16.mxu1 %v3748_v3  ;;  %v3250_v3 = vld [vmem:[%s4658_s1 + $0x26c] ss:$16 sps:$4 sm:$0xff]  }
  0x87   :  { %1852 = vmatpush1.bf16.msra.mxu1 %v3236_v32  ;;  %v3323_v32 = vld [vmem:[%s4658_s1 + $0x408] ss:$16 sps:$4 sm:$0xff]  }
  0x88   :  { %1770 = vmatpush1.bf16.msra.mxu0 %v3233_v31  ;;  %1853 = vmatprep.subr.bf16.mxu1 %v3244_v13  ;;  %v4191_v31 = vcombine.high %v3737_v63, %v3737_v63  ;;  %v3326_v13 = vld [vmem:[%s4658_s1 + $0x428] ss:$16 sps:$4 sm:$0xff]  }
  0x89   :  { %1771 = vmatprep.subr.bf16.mxu0 %v3241_v33  ;;  %v3328_v33 = vld [vmem:[%s4658_s1 + $0x42c] ss:$16 sps:$4 sm:$0xff]  }
  0x8b   :  { %1854 = vmatpush1.bf16.msra.mxu1 %v3242_v35  ;;  %v3419_v35 = vld [vmem:[%s4660_s3] ss:$8 sps:$4 sm:$0xff]  }
  0x8c   :  { %1772 = vmatpush1.bf16.msra.mxu0 %v3239_v34  ;;  %1855 = vmatprep.subr.bf16.mxu1 %v3250_v3  ;;  %v3331_v34 = vld [vmem:[%s4658_s1 + $0x44c] ss:$16 sps:$4 sm:$0xff]   ;;  %v3329_v3 = vld [vmem:[%s4658_s1 + $0x448] ss:$16 sps:$4 sm:$0xff]  }
  0x8d   :  { %1773 = vmatprep.subr.bf16.mxu0 %v3247_v36  ;;  %v3424_v36 = vld [vmem:[%s4660_s3 + $0x14] ss:$8 sps:$4 sm:$0xff]  }
  0x8f   :  { %1856 = vmatpush1.bf16.msra.mxu1 %v3248_v38  ;;  %v3427_v38 = vld [vmem:[%s4660_s3 + $0x24] ss:$8 sps:$4 sm:$0xff]  }
  0x90   :  { %1774 = vmatpush1.bf16.msra.mxu0 %v3245_v37  ;;  %1857 = vmatprep.subr.bf16.mxu1 %v3256_v40  ;;  %v3422_v37 = vld [vmem:[%s4660_s3 + $0x10] ss:$8 sps:$4 sm:$0xff]   ;;  %v3337_v40 = vld [vmem:[%s4658_s1 + $0x48c] ss:$16 sps:$4 sm:$0xff]  }
  0x91   :  { %1775 = vmatprep.subr.bf16.mxu0 %v3253_v39  ;;  %v3332_v39 = vld [vmem:[%s4658_s1 + $0x468] ss:$16 sps:$4 sm:$0xff]  }
  0x93   :  { %1858 = vmatpush1.bf16.msra.mxu1 %v3254_v43  ;;  %v3430_v43 = vld [vmem:[%s4660_s3 + $0x34] ss:$8 sps:$4 sm:$0xff]  }
  0x94   :  { %1776 = vmatpush1.bf16.msra.mxu0 %v3251_v41  ;;  %1859 = vmatprep.subr.bf16.mxu1 %v3262_v45  ;;  %v3425_v41 = vld [vmem:[%s4660_s3 + $0x20] ss:$8 sps:$4 sm:$0xff]   ;;  %v3340_v45 = vld [vmem:[%s4658_s1 + $0x4ac] ss:$16 sps:$4 sm:$0xff]  }
  0x95   :  { %1777 = vmatprep.subr.bf16.mxu0 %v3259_v44  ;;  %v3335_v44 = vld [vmem:[%s4658_s1 + $0x488] ss:$16 sps:$4 sm:$0xff]  }
  0x97   :  { %1860 = vmatpush1.bf16.msra.mxu1 %v3260_v47  ;;  %v3433_v47 = vld [vmem:[%s4660_s3 + $0x44] ss:$8 sps:$4 sm:$0xff]  }
  0x98   :  { %1778 = vmatpush1.bf16.msra.mxu0 %v3257_v46  ;;  %1861 = vmatprep.subr.bf16.mxu1 %v3268_v49  ;;  %v3428_v46 = vld [vmem:[%s4660_s3 + $0x30] ss:$8 sps:$4 sm:$0xff]   ;;  %v3343_v49 = vld [vmem:[%s4658_s1 + $0x4cc] ss:$16 sps:$4 sm:$0xff]  }
  0x99   :  { %1779 = vmatprep.subr.bf16.mxu0 %v3265_v48  ;;  %v3338_v48 = vld [vmem:[%s4658_s1 + $0x4a8] ss:$16 sps:$4 sm:$0xff]  }
  0x9b   :  { %1862 = vmatpush1.bf16.msra.mxu1 %v3266_v51  ;;  %v3436_v51 = vld [vmem:[%s4660_s3 + $0x54] ss:$8 sps:$4 sm:$0xff]  }
  0x9c   :  { %1780 = vmatpush1.bf16.msra.mxu0 %v3263_v50  ;;  %1863 = vmatprep.subr.bf16.mxu1 %v3274_v53  ;;  %v3431_v50 = vld [vmem:[%s4660_s3 + $0x40] ss:$8 sps:$4 sm:$0xff]   ;;  %v3434_v53 = vld [vmem:[%s4660_s3 + $0x50] ss:$8 sps:$4 sm:$0xff]  }
  0x9d   :  { %1781 = vmatprep.subr.bf16.mxu0 %v3271_v52  ;;  %v3341_v52 = vld [vmem:[%s4658_s1 + $0x4c8] ss:$16 sps:$4 sm:$0xff]  }
  0x9f   :  { %1864 = vmatpush1.bf16.msra.mxu1 %v3272_v55  ;;  %v3439_v55 = vld [vmem:[%s4660_s3 + $0x64] ss:$8 sps:$4 sm:$0xff]  }
  0xa0   :  { %1782 = vmatpush1.bf16.msra.mxu0 %v3269_v54  ;;  %1865 = vmatprep.subr.bf16.mxu1 %v3280_v57  ;;  %v3346_v54 = vld [vmem:[%s4658_s1 + $0x4ec] ss:$16 sps:$4 sm:$0xff]   ;;  %v3437_v57 = vld [vmem:[%s4660_s3 + $0x60] ss:$8 sps:$4 sm:$0xff]  }
  0xa1   :  { %1783 = vmatprep.subr.bf16.mxu0 %v3277_v56  ;;  %v3344_v56 = vld [vmem:[%s4658_s1 + $0x4e8] ss:$16 sps:$4 sm:$0xff]  }
  0xa3   :  { %1866 = vmatpush1.bf16.msra.mxu1 %v3278_v59  ;;  %v3442_v59 = vld [vmem:[%s4660_s3 + $0x74] ss:$8 sps:$4 sm:$0xff]  }
  0xa4   :  { %1784 = vmatpush1.bf16.msra.mxu0 %v3275_v58  ;;  %1867 = vmatprep.subr.bf16.mxu1 %v3286_v61  ;;  %v3349_v58 = vld [vmem:[%s4658_s1 + $0x50c] ss:$16 sps:$4 sm:$0xff]   ;;  %v3440_v61 = vld [vmem:[%s4660_s3 + $0x70] ss:$8 sps:$4 sm:$0xff]  }
  0xa5   :  { %1785 = vmatprep.subr.bf16.mxu0 %v3283_v60  ;;  %v3347_v60 = vld [vmem:[%s4658_s1 + $0x508] ss:$16 sps:$4 sm:$0xff]  }
  0xa7   :  { %1868 = vmatpush1.bf16.msra.mxu1 %v3284_v0  ;;  %v3445_v0 = vld [vmem:[%s4660_s3 + $0x84] ss:$8 sps:$4 sm:$0xff]  }
  0xa8   :  { %1786 = vmatpush1.bf16.msra.mxu0 %v3281_v62  ;;  %1869 = vmatprep.subr.bf16.mxu1 %v3292_v2  ;;  %v3352_v62 = vld [vmem:[%s4658_s1 + $0x52c] ss:$16 sps:$4 sm:$0xff]   ;;  %v3443_v2 = vld [vmem:[%s4660_s3 + $0x80] ss:$8 sps:$4 sm:$0xff]  }
  0xa9   :  { %1787 = vmatprep.subr.bf16.mxu0 %v3289_v1  ;;  %v3350_v1 = vld [vmem:[%s4658_s1 + $0x528] ss:$16 sps:$4 sm:$0xff]  }
  0xab   :  { %1870 = vmatpush1.bf16.msra.mxu1 %v3290_v5  ;;  %v3448_v5 = vld [vmem:[%s4660_s3 + $0x94] ss:$8 sps:$4 sm:$0xff]  }
  0xac   :  { %1788 = vmatpush1.bf16.msra.mxu0 %v3287_v4  ;;  %1871 = vmatprep.subr.bf16.mxu1 %v3298_v7  ;;  %v3355_v4 = vld [vmem:[%s4658_s1 + $0x54c] ss:$16 sps:$4 sm:$0xff]   ;;  %v3446_v7 = vld [vmem:[%s4660_s3 + $0x90] ss:$8 sps:$4 sm:$0xff]  }
  0xad   :  { %1789 = vmatprep.subr.bf16.mxu0 %v3295_v6  ;;  %v3353_v6 = vld [vmem:[%s4658_s1 + $0x548] ss:$16 sps:$4 sm:$0xff]  }
  0xaf   :  { %1872 = vmatpush1.bf16.msra.mxu1 %v3296_v9  ;;  %v3451_v9 = vld [vmem:[%s4660_s3 + $0xa4] ss:$8 sps:$4 sm:$0xff]  }
  0xb0   :  { %1790 = vmatpush1.bf16.msra.mxu0 %v3293_v8  ;;  %1873 = vmatprep.subr.bf16.mxu1 %v3304_v11  ;;  %v3358_v8 = vld [vmem:[%s4658_s1 + $0x56c] ss:$16 sps:$4 sm:$0xff]   ;;  %v3449_v11 = vld [vmem:[%s4660_s3 + $0xa0] ss:$8 sps:$4 sm:$0xff]  }
  0xb1   :  { %1791 = vmatprep.subr.bf16.mxu0 %v3301_v10  ;;  %v3356_v10 = vld [vmem:[%s4658_s1 + $0x568] ss:$16 sps:$4 sm:$0xff]  }
  0xb3   :  { %1874 = vmatpush1.bf16.msra.mxu1 %v3302_v14  ;;  %v3454_v14 = vld [vmem:[%s4660_s3 + $0xb4] ss:$8 sps:$4 sm:$0xff]  }
  0xb4   :  { %1792 = vmatpush1.bf16.msra.mxu0 %v3299_v12  ;;  %1875 = vmatprep.subr.bf16.mxu1 %v3310_v16  ;;  %v3361_v12 = vld [vmem:[%s4658_s1 + $0x58c] ss:$16 sps:$4 sm:$0xff]   ;;  %v3452_v16 = vld [vmem:[%s4660_s3 + $0xb0] ss:$8 sps:$4 sm:$0xff]  }
  0xb5   :  { %1793 = vmatprep.subr.bf16.mxu0 %v3307_v15  ;;  %v3359_v15 = vld [vmem:[%s4658_s1 + $0x588] ss:$16 sps:$4 sm:$0xff]  }
  0xb7   :  { %1876 = vmatpush1.bf16.msra.mxu1 %v3308_v18  ;;  %v3457_v18 = vld [vmem:[%s4660_s3 + $0xc4] ss:$8 sps:$4 sm:$0xff]  }
  0xb8   :  { %1794 = vmatpush1.bf16.msra.mxu0 %v3305_v17  ;;  %1877 = vmatprep.subr.bf16.mxu1 %v3316_v21  ;;  %v3364_v17 = vld [vmem:[%s4658_s1 + $0x5ac] ss:$16 sps:$4 sm:$0xff]   ;;  %v3455_v21 = vld [vmem:[%s4660_s3 + $0xc0] ss:$8 sps:$4 sm:$0xff]  }
  0xb9   :  { %1795 = vmatprep.subr.bf16.mxu0 %v3313_v20  ;;  %v3362_v20 = vld [vmem:[%s4658_s1 + $0x5a8] ss:$16 sps:$4 sm:$0xff]  }
  0xbb   :  { %1878 = vmatpush1.bf16.msra.mxu1 %v3314_v24  ;;  %v3460_v24 = vld [vmem:[%s4660_s3 + $0xd4] ss:$8 sps:$4 sm:$0xff]  }
  0xbc   :  { %1796 = vmatpush1.bf16.msra.mxu0 %v3311_v22  ;;  %1879 = vmatprep.subr.bf16.mxu1 %v3322_v26  ;;  %v3367_v22 = vld [vmem:[%s4658_s1 + $0x5cc] ss:$16 sps:$4 sm:$0xff]   ;;  %v3458_v26 = vld [vmem:[%s4660_s3 + $0xd0] ss:$8 sps:$4 sm:$0xff]  }
  0xbd   :  { %1797 = vmatprep.subr.bf16.mxu0 %v3319_v25  ;;  %v3365_v25 = vld [vmem:[%s4658_s1 + $0x5c8] ss:$16 sps:$4 sm:$0xff]  }
  0xbf   :  { %1880 = vmatpush1.bf16.msra.mxu1 %v3320_v28  ;;  %v3368_v28 = vld [vmem:[%s4658_s1 + $0x5e8] ss:$16 sps:$4 sm:$0xff]  }
  0xc0   :  { %1798 = vmatpush1.bf16.msra.mxu0 %v3317_v27  ;;  %1890 = vmatprep.subr.bf16.mxu1 %v3325_v29  ;;  %v3370_v27 = vld [vmem:[%s4658_s1 + $0x5ec] ss:$16 sps:$4 sm:$0xff]  }
  0xc1   :  { %v3373_v29 = vld [vmem:[%s4658_s1 + $0x60c] ss:$16 sps:$4 sm:$0xff]  }
  0xc2   :  { %1882 = vmatmul.mubr.bf16.vlgmr.msra.gmra.mrb[4].mxu1 %v3795_v19  ;;  %v3421_v19 = vld [vmem:[%s4660_s3 + $0x4] ss:$8 sps:$4 sm:$0xff]  }
  0xc3   :  { %1800 = vmatmul.mubr.bf16.vlgmr.msra.gmra.mrb[0].mxu0 %v4191_v31  ;;  %1891 = vmatpush1.bf16.msra.mxu1 %v3323_v32  ;;  %v3371_v32 = vld [vmem:[%s4658_s1 + $0x608] ss:$16 sps:$4 sm:$0xff]  }
  0xc4   :  { %1922 = vmatprep.mubr.bf16.mxu1 %v3807_v23  ;;  %1892 = vmatprep.subr.bf16.mxu1 %v3328_v33  ;;  %v3334_v23 = vld [vmem:[%s4658_s1 + $0x46c] ss:$16 sps:$4 sm:$0xff]  }
  0xc5   :  { %2376 = vmatprep.subr.bf16.mxu0 %v3421_v19  ;;  %v3376_v33 = vld [vmem:[%s4658_s1 + $0x62c] ss:$16 sps:$4 sm:$0xff]  }
  0xc6   :  { %2377 = vmatpush1.bf16.msra.mxu0 %v3419_v35  ;;  %v3377_v35 = vld [vmem:[%s4658_s1 + $0x648] ss:$16 sps:$4 sm:$0xff]   ;;  %v3385_v19 = vld [vmem:[%s4658_s1 + $0x68c] ss:$16 sps:$4 sm:$0xff]  }
  0xc7   :  { %1893 = vmatpush1.bf16.msra.mxu1 %v3326_v13  ;;  %2378 = vmatprep.subr.bf16.mxu0 %v3424_v36  ;;  %v3374_v13 = vld [vmem:[%s4658_s1 + $0x628] ss:$16 sps:$4 sm:$0xff]  }
  0xc8   :  { %1894 = vmatprep.subr.bf16.mxu1 %v3331_v34  ;;  %v3379_v34 = vld [vmem:[%s4658_s1 + $0x64c] ss:$16 sps:$4 sm:$0xff]   ;;  %v3383_v36 = vld [vmem:[%s4658_s1 + $0x688] ss:$16 sps:$4 sm:$0xff]  }
  0xca   :  { %2379 = vmatpush1.bf16.msra.mxu0 %v3422_v37  ;;  %v3391_v37 = vld [vmem:[%s4658_s1 + $0x6cc] ss:$16 sps:$4 sm:$0xff]  }
  0xcb   :  { %1895 = vmatpush1.bf16.msra.mxu1 %v3329_v3  ;;  %2380 = vmatprep.subr.bf16.mxu0 %v3427_v38  ;;  %v3388_v3 = vld [vmem:[%s4658_s1 + $0x6ac] ss:$16 sps:$4 sm:$0xff]  }
  0xcc   :  { %1896 = vmatprep.subr.bf16.mxu1 %v3334_v23  ;;  %v3386_v23 = vld [vmem:[%s4658_s1 + $0x6a8] ss:$16 sps:$4 sm:$0xff]   ;;  %v3463_v38 = vld [vmem:[%s4660_s3 + $0xe4] ss:$8 sps:$4 sm:$0xff]  }
  0xce   :  { %2381 = vmatpush1.bf16.msra.mxu0 %v3425_v41 }
  0xcf   :  { %1897 = vmatpush1.bf16.msra.mxu1 %v3332_v39  ;;  %2382 = vmatprep.subr.bf16.mxu0 %v3430_v43 }
  0xd0   :  { %1898 = vmatprep.subr.bf16.mxu1 %v3337_v40  ;;  %v3461_v40 = vld [vmem:[%s4660_s3 + $0xe0] ss:$8 sps:$4 sm:$0xff]  }
  0xd2   :  { %2383 = vmatpush1.bf16.msra.mxu0 %v3428_v46  ;;  %v3394_v46 = vld [vmem:[%s4658_s1 + $0x6ec] ss:$16 sps:$4 sm:$0xff]  }
  0xd3   :  { %1899 = vmatpush1.bf16.msra.mxu1 %v3335_v44  ;;  %2384 = vmatprep.subr.bf16.mxu0 %v3433_v47  ;;  %v3389_v44 = vld [vmem:[%s4658_s1 + $0x6c8] ss:$16 sps:$4 sm:$0xff]   ;;  %v3466_v47 = vld [vmem:[%s4660_s3 + $0xf4] ss:$8 sps:$4 sm:$0xff]  }
  0xd4   :  { %1900 = vmatprep.subr.bf16.mxu1 %v3340_v45 }
  0xd6   :  { %2385 = vmatpush1.bf16.msra.mxu0 %v3431_v50  ;;  %v3397_v50 = vld [vmem:[%s4658_s1 + $0x70c] ss:$16 sps:$4 sm:$0xff]  }
  0xd7   :  { %1901 = vmatpush1.bf16.msra.mxu1 %v3338_v48  ;;  %2386 = vmatprep.subr.bf16.mxu0 %v3436_v51  ;;  %v3464_v48 = vld [vmem:[%s4660_s3 + $0xf0] ss:$8 sps:$4 sm:$0xff]   ;;  %v3469_v51 = vld [vmem:[%s4660_s3 + $0x104] ss:$8 sps:$4 sm:$0xff]  }
  0xd8   :  { %1902 = vmatprep.subr.bf16.mxu1 %v3343_v49  ;;  %v3392_v49 = vld [vmem:[%s4658_s1 + $0x6e8] ss:$16 sps:$4 sm:$0xff]  }
  0xda   :  { %2387 = vmatpush1.bf16.msra.mxu0 %v3434_v53  ;;  %v3400_v53 = vld [vmem:[%s4658_s1 + $0x72c] ss:$16 sps:$4 sm:$0xff]  }
  0xdb   :  { %1903 = vmatpush1.bf16.msra.mxu1 %v3341_v52  ;;  %2388 = vmatprep.subr.bf16.mxu0 %v3439_v55  ;;  %v3395_v52 = vld [vmem:[%s4658_s1 + $0x708] ss:$16 sps:$4 sm:$0xff]   ;;  %v3403_v55 = vld [vmem:[%s4658_s1 + $0x74c] ss:$16 sps:$4 sm:$0xff]  }
  0xdc   :  { %1904 = vmatprep.subr.bf16.mxu1 %v3346_v54  ;;  %v3398_v54 = vld [vmem:[%s4658_s1 + $0x728] ss:$16 sps:$4 sm:$0xff]  }
  0xde   :  { %2389 = vmatpush1.bf16.msra.mxu0 %v3437_v57  ;;  %v3406_v57 = vld [vmem:[%s4658_s1 + $0x76c] ss:$16 sps:$4 sm:$0xff]  }
  0xdf   :  { %1905 = vmatpush1.bf16.msra.mxu1 %v3344_v56  ;;  %2390 = vmatprep.subr.bf16.mxu0 %v3442_v59  ;;  %v3401_v56 = vld [vmem:[%s4658_s1 + $0x748] ss:$16 sps:$4 sm:$0xff]   ;;  %v3409_v59 = vld [vmem:[%s4658_s1 + $0x78c] ss:$16 sps:$4 sm:$0xff]  }
  0xe0   :  { %1906 = vmatprep.subr.bf16.mxu1 %v3349_v58  ;;  %v3404_v58 = vld [vmem:[%s4658_s1 + $0x768] ss:$16 sps:$4 sm:$0xff]  }
  0xe2   :  { %2391 = vmatpush1.bf16.msra.mxu0 %v3440_v61  ;;  %v3412_v61 = vld [vmem:[%s4658_s1 + $0x7ac] ss:$16 sps:$4 sm:$0xff]  }
  0xe3   :  { %1907 = vmatpush1.bf16.msra.mxu1 %v3347_v60  ;;  %2392 = vmatprep.subr.bf16.mxu0 %v3445_v0  ;;  %v3407_v60 = vld [vmem:[%s4658_s1 + $0x788] ss:$16 sps:$4 sm:$0xff]   ;;  %v3415_v0 = vld [vmem:[%s4658_s1 + $0x7cc] ss:$16 sps:$4 sm:$0xff]  }
  0xe4   :  { %1908 = vmatprep.subr.bf16.mxu1 %v3352_v62  ;;  %v3410_v62 = vld [vmem:[%s4658_s1 + $0x7a8] ss:$16 sps:$4 sm:$0xff]  }
  0xe6   :  { %2393 = vmatpush1.bf16.msra.mxu0 %v3443_v2  ;;  %v3418_v2 = vld [vmem:[%s4658_s1 + $0x7ec] ss:$16 sps:$4 sm:$0xff]  }
  0xe7   :  { %1909 = vmatpush1.bf16.msra.mxu1 %v3350_v1  ;;  %2394 = vmatprep.subr.bf16.mxu0 %v3448_v5  ;;  %v3413_v1 = vld [vmem:[%s4658_s1 + $0x7c8] ss:$16 sps:$4 sm:$0xff]   ;;  %v288_v5 = vsub.s32 0, %v3689_v42 }
  0xe8   :  { %1910 = vmatprep.subr.bf16.mxu1 %v3355_v4  ;;  %v3416_v4 = vld [vmem:[%s4658_s1 + $0x7e8] ss:$16 sps:$4 sm:$0xff]  }
  0xea   :  { %2395 = vmatpush1.bf16.msra.mxu0 %v3446_v7  ;;  %v292_v7 = vsub.s32 1, %v3689_v42 }
  0xeb   :  { %1911 = vmatpush1.bf16.msra.mxu1 %v3353_v6  ;;  %2396 = vmatprep.subr.bf16.mxu0 %v3451_v9  ;;  %v4491_v6 = vld [vmem:[%s4661_s2] sm:$0xf] }
  0xec   :  { %1912 = vmatprep.subr.bf16.mxu1 %v3358_v8  ;;  %v289_v8 = vrot.slane %v4491_v6, %v288_v5  ;;  %v293_v9 = vrot.slane %v4491_v6, %v292_v7 }
  0xee   :  { %2397 = vmatpush1.bf16.msra.mxu0 %v3449_v11 }
  0xef   :  { %1913 = vmatpush1.bf16.msra.mxu1 %v3356_v10  ;;  %2398 = vmatprep.subr.bf16.mxu0 %v3454_v14 }
  0xf0   :  { %1914 = vmatprep.subr.bf16.mxu1 %v3361_v12 }
  0xf2   :  { %2399 = vmatpush1.bf16.msra.mxu0 %v3452_v16 }
  0xf3   :  { %1915 = vmatpush1.bf16.msra.mxu1 %v3359_v15  ;;  %2400 = vmatprep.subr.bf16.mxu0 %v3457_v18 }
  0xf4   :  { %1916 = vmatprep.subr.bf16.mxu1 %v3364_v17 }
  0xf6   :  { %2401 = vmatpush1.bf16.msra.mxu0 %v3455_v21 }
  0xf7   :  { %1917 = vmatpush1.bf16.msra.mxu1 %v3362_v20  ;;  %2402 = vmatprep.subr.bf16.mxu0 %v3460_v24 }
  0xf8   :  { %1918 = vmatprep.subr.bf16.mxu1 %v3367_v22  ;;  %v3467_v22 = vld [vmem:[%s4660_s3 + $0x100] ss:$8 sps:$4 sm:$0xff]  }
  0xfa   :  { %2403 = vmatpush1.bf16.msra.mxu0 %v3458_v26  ;;  %v3470_v26 = vld [vmem:[%s4660_s3 + $0x110] ss:$8 sps:$4 sm:$0xff]  }
  0xfb   :  { %1919 = vmatpush1.bf16.msra.mxu1 %v3365_v25  ;;  %2404 = vmatprep.subr.bf16.mxu0 %v3463_v38  ;;  %v3472_v25 = vld [vmem:[%s4660_s3 + $0x114] ss:$8 sps:$4 sm:$0xff]   ;;  %v3523_v38 = vld [vmem:[%s4662_s5 + $0x60] sm:$0xff]  }
  0xfc   :  { %1920 = vmatprep.subr.bf16.mxu1 %v3370_v27  ;;  %v3475_v27 = vld [vmem:[%s4660_s3 + $0x124] ss:$8 sps:$4 sm:$0xff]  }
  0xfe   :  { %2405 = vmatpush1.bf16.msra.mxu0 %v3461_v40  ;;  %v3482_v40 = vld [vmem:[%s4660_s3 + $0x150] ss:$8 sps:$4 sm:$0xff]  }
  0xff   :  { %1921 = vmatpush1.bf16.msra.mxu1 %v3368_v28  ;;  %2406 = vmatprep.subr.bf16.mxu0 %v3466_v47  ;;  %v3515_v28 = vld [vmem:[%s4662_s5 + $0x40] sm:$0xff]   ;;  %v3488_v47 = vld [vmem:[%s4660_s3 + $0x170] ss:$8 sps:$4 sm:$0xff]  }
 0x100   :  { %1931 = vmatprep.subr.bf16.mxu1 %v3373_v29  ;;  %v3516_v29 = vld [vmem:[%s4662_s5] sm:$0xff]  }
 0x102   :  { %1923 = vmatmul.mubr.bf16.vlgmr.msra.gmra.mrb[4].mxu1 %v3737_v63  ;;  %v3382_v63 = vld [vmem:[%s4658_s1 + $0x66c] ss:$16 sps:$4 sm:$0xff]   ;;  %2407 = vmatpush1.bf16.msra.mxu0 %v3464_v48 }
 0x103   :  { %1932 = vmatpush1.bf16.msra.mxu1 %v3371_v32  ;;  %1963 = vmatprep.mubr.bf16.mxu1 %v4006_v30  ;;  %v3380_v30 = vld [vmem:[%s4658_s1 + $0x668] ss:$16 sps:$4 sm:$0xff]   ;;  %v3493_v48 = vld [vmem:[%s4660_s3 + $0x184] ss:$8 sps:$4 sm:$0xff]  }
 0x104   :  { %1933 = vmatprep.subr.bf16.mxu1 %v3376_v33  ;;  %2417 = vmatprep.subr.bf16.mxu0 %v3469_v51  ;;  %v3473_v32 = vld [vmem:[%s4660_s3 + $0x120] ss:$8 sps:$4 sm:$0xff]   ;;  %v3494_v51 = vld [vmem:[%s4660_s3 + $0x190] ss:$8 sps:$4 sm:$0xff]  }
 0x105   :  { %v3517_v33 = vld [vmem:[%s4662_s5 + $0x48] sm:$0xff]  }
 0x107   :  { %1934 = vmatpush1.bf16.msra.mxu1 %v3374_v13  ;;  %v3518_v13 = vld [vmem:[%s4662_s5 + $0x8] sm:$0xff]  }
 0x108   :  { %1935 = vmatprep.subr.bf16.mxu1 %v3379_v34  ;;  %v3519_v34 = vld [vmem:[%s4662_s5 + $0x50] sm:$0xff]  }
 0x10b   :  { %1936 = vmatpush1.bf16.msra.mxu1 %v3377_v35  ;;  %v3478_v35 = vld [vmem:[%s4660_s3 + $0x134] ss:$8 sps:$4 sm:$0xff]  }
 0x10c   :  { %1937 = vmatprep.subr.bf16.mxu1 %v3382_v63  ;;  %v3476_v63 = vld [vmem:[%s4660_s3 + $0x130] ss:$8 sps:$4 sm:$0xff]  }
 0x10f   :  { %1938 = vmatpush1.bf16.msra.mxu1 %v3380_v30  ;;  %v3520_v30 = vld [vmem:[%s4662_s5 + $0x10] sm:$0xff]  }
 0x110   :  { %1939 = vmatprep.subr.bf16.mxu1 %v3385_v19  ;;  %v3521_v19 = vld [vmem:[%s4662_s5 + $0x58] sm:$0xff]  }
 0x113   :  { %1940 = vmatpush1.bf16.msra.mxu1 %v3383_v36  ;;  %v3481_v36 = vld [vmem:[%s4660_s3 + $0x144] ss:$8 sps:$4 sm:$0xff]  }
 0x114   :  { %1941 = vmatprep.subr.bf16.mxu1 %v3388_v3  ;;  %v3479_v3 = vld [vmem:[%s4660_s3 + $0x140] ss:$8 sps:$4 sm:$0xff]  }
 0x115   :  { %v1678_v39 = vpop.f32.mrb[0].mxu1 }
 0x116   :  { %v1680_v41 = vpop.f32.mrb[1].mxu1  ;;  %v1679_v10 = vadd.f32 %v1678_v39, %v289_v8  ;;  %v3524_v39 = vld [vmem:[%s4662_s5 + $0x20] sm:$0xff]  }
 0x117   :  { %v1682_v43 = vpop.f32.mrb[2].mxu1  ;;  %1942 = vmatpush1.bf16.msra.mxu1 %v3386_v23  ;;  %v1681_v11 = vadd.f32 %v1680_v41, %v293_v9  ;;  %v3484_v23 = vld [vmem:[%s4660_s3 + $0x154] ss:$8 sps:$4 sm:$0xff]   ;;  %v3525_v41 = vld [vmem:[%s4662_s5 + $0x68] sm:$0xff]  }
 0x118   :  { %v1683_v45 = vpop.f32.mrb[3].mxu1  ;;  %1943 = vmatprep.subr.bf16.mxu1 %v3391_v37  ;;  %v3522_v37 = vld [vmem:[%s4662_s5 + $0x18] sm:$0xff]   ;;  %v3487_v43 = vld [vmem:[%s4660_s3 + $0x164] ss:$8 sps:$4 sm:$0xff]  }
 0x119   :  { %v3485_v45 = vld [vmem:[%s4660_s3 + $0x160] ss:$8 sps:$4 sm:$0xff]  }
 0x11b   :  { %1944 = vmatpush1.bf16.msra.mxu1 %v3389_v44  ;;  %v3526_v44 = vld [vmem:[%s4662_s5 + $0x28] sm:$0xff]  }
 0x11c   :  { %1945 = vmatprep.subr.bf16.mxu1 %v3394_v46  ;;  %v3490_v46 = vld [vmem:[%s4660_s3 + $0x174] ss:$8 sps:$4 sm:$0xff]  }
 0x11f   :  { %1946 = vmatpush1.bf16.msra.mxu1 %v3392_v49  ;;  %v3491_v49 = vld [vmem:[%s4660_s3 + $0x180] ss:$8 sps:$4 sm:$0xff]  }
 0x120   :  { %1947 = vmatprep.subr.bf16.mxu1 %v3397_v50  ;;  %v3496_v50 = vld [vmem:[%s4660_s3 + $0x194] ss:$8 sps:$4 sm:$0xff]  }
 0x123   :  { %1948 = vmatpush1.bf16.msra.mxu1 %v3395_v52  ;;  %v3499_v52 = vld [vmem:[%s4660_s3 + $0x1a4] ss:$8 sps:$4 sm:$0xff]  }
 0x124   :  { %1949 = vmatprep.subr.bf16.mxu1 %v3400_v53  ;;  %v3497_v53 = vld [vmem:[%s4660_s3 + $0x1a0] ss:$8 sps:$4 sm:$0xff]  }
 0x127   :  { %1950 = vmatpush1.bf16.msra.mxu1 %v3398_v54  ;;  %v3502_v54 = vld [vmem:[%s4660_s3 + $0x1b4] ss:$8 sps:$4 sm:$0xff]  }
 0x128   :  { %1951 = vmatprep.subr.bf16.mxu1 %v3403_v55  ;;  %v3500_v55 = vld [vmem:[%s4660_s3 + $0x1b0] ss:$8 sps:$4 sm:$0xff]  }
 0x12b   :  { %1952 = vmatpush1.bf16.msra.mxu1 %v3401_v56  ;;  %v3505_v56 = vld [vmem:[%s4660_s3 + $0x1c4] ss:$8 sps:$4 sm:$0xff]  }
 0x12c   :  { %1953 = vmatprep.subr.bf16.mxu1 %v3406_v57  ;;  %v3503_v57 = vld [vmem:[%s4660_s3 + $0x1c0] ss:$8 sps:$4 sm:$0xff]  }
 0x12f   :  { %1954 = vmatpush1.bf16.msra.mxu1 %v3404_v58  ;;  %v3508_v58 = vld [vmem:[%s4660_s3 + $0x1d4] ss:$8 sps:$4 sm:$0xff]  }
 0x130   :  { %1955 = vmatprep.subr.bf16.mxu1 %v3409_v59  ;;  %v3506_v59 = vld [vmem:[%s4660_s3 + $0x1d0] ss:$8 sps:$4 sm:$0xff]  }
 0x133   :  { %1956 = vmatpush1.bf16.msra.mxu1 %v3407_v60  ;;  %v3511_v60 = vld [vmem:[%s4660_s3 + $0x1e4] ss:$8 sps:$4 sm:$0xff]  }
 0x134   :  { %1957 = vmatprep.subr.bf16.mxu1 %v3412_v61  ;;  %v3509_v61 = vld [vmem:[%s4660_s3 + $0x1e0] ss:$8 sps:$4 sm:$0xff]  }
 0x137   :  { %1958 = vmatpush1.bf16.msra.mxu1 %v3410_v62  ;;  %v3514_v62 = vld [vmem:[%s4660_s3 + $0x1f4] ss:$8 sps:$4 sm:$0xff]  }
 0x138   :  { %1959 = vmatprep.subr.bf16.mxu1 %v3415_v0  ;;  %v3512_v0 = vld [vmem:[%s4660_s3 + $0x1f0] ss:$8 sps:$4 sm:$0xff]  }
 0x13b   :  { %1960 = vmatpush1.bf16.msra.mxu1 %v3413_v1  ;;  %v296_v1 = vsub.s32 2, %v3689_v42 }
 0x13c   :  { %1961 = vmatprep.subr.bf16.mxu1 %v3418_v2  ;;  %v300_v2 = vsub.s32 3, %v3689_v42 }
 0x13e   :  { %v301_v8 = vrot.slane %v4491_v6, %v300_v2 }
 0x13f   :  { %1962 = vmatpush1.bf16.msra.mxu1 %v3416_v4  ;;  %v297_v4 = vrot.slane %v4491_v6, %v296_v1  ;;  %v3528_v6 = vld [vmem:[%s4662_s5 + $0x30] sm:$0xff]  }
 0x140   :  { %2979 = vmatprep.subr.bf16.mxu1 %v3515_v28 }
 0x142   :  { %1964 = vmatmul.mubr.bf16.vlgmr.msra.gmra.mrb[4].mxu1 %v4191_v31 }
 0x143   :  { %2980 = vmatpush3.bf16.msra.mxu1 %v3516_v29 }
 0x144   :  { %2981 = vmatprep.subr.bf16.mxu1 %v3517_v33 }
 0x147   :  { %2982 = vmatpush3.bf16.msra.mxu1 %v3518_v13 }
 0x148   :  { %2983 = vmatprep.subr.bf16.mxu1 %v3519_v34 }
 0x14b   :  { %2984 = vmatpush3.bf16.msra.mxu1 %v3520_v30 }
 0x14c   :  { %2985 = vmatprep.subr.bf16.mxu1 %v3521_v19 }
 0x14f   :  { %2986 = vmatpush3.bf16.msra.mxu1 %v3522_v37 }
 0x150   :  { %2987 = vmatprep.subr.bf16.mxu1 %v3523_v38 }
 0x153   :  { %2988 = vmatpush3.bf16.msra.mxu1 %v3524_v39 }
 0x154   :  { %2989 = vmatprep.subr.bf16.mxu1 %v3525_v41 }
 0x157   :  { %2990 = vmatpush3.bf16.msra.mxu1 %v3526_v44 }
 0x196   :  { %v1801_v31 = vpop.f32.mrb[0].mxu0 }
 0x197   :  { %v3002_v12 = vadd.f32 %v1801_v31, %v1679_v10  ;;  %v1803_v14 = vpop.f32.mrb[1].mxu0 }
 0x198   :  { %v3004_v15 = vadd.f32 %v1803_v14, %v1681_v11  ;;  %v1805_v16 = vpop.f32.mrb[2].mxu0 }
 0x199   :  { %v1972_v17 = vmax.f32 %v3002_v12, 0.0  ;;  %v1806_v18 = vpop.f32.mrb[3].mxu0 }
 0x19a   :  { %v1973_v20 = vmax.f32 %v3004_v15, 0.0 }
 0x19b   :  { %v1976_v24 = vpack.c.bf16 %v1972_v17, %v1972_v17 }
 0x19c   :  { %v1977_v21 = vpack.c.bf16 %v1973_v20, %v1973_v20  ;;  %v3527_v20 = vld [vmem:[%s4662_s5 + $0x70] sm:$0xff]  }
 0x19d   :  { %2991 = vmatprep.subr.bf16.mxu1 %v3527_v20 }
 0x19e   :  { %2408 = vmatprep.mubr.bf16.mxu0 %v1977_v21  ;;  %2992 = vmatpush3.bf16.msra.mxu1 %v3528_v6  ;;  %v3529_v21 = vld [vmem:[%s4662_s5 + $0x78] sm:$0xff]  }
 0x19f   :  { %2409 = vmatmul.mubr.bf16.vlgmr.msra.gmra.mrb[4].mxu0 %v1976_v24  ;;  %2993 = vmatprep.subr.bf16.mxu1 %v3529_v21  ;;  %v2044_v24 = vld [vmem:[%s4663_s4] sm:$0x3] }
 0x1a0   :  { %2418 = vmatpush1.bf16.msra.mxu0 %v3467_v22  ;;  %v3530_v22 = vld [vmem:[%s4662_s5 + $0x38] sm:$0xff]  }
 0x1a1   :  { %2419 = vmatprep.subr.bf16.mxu0 %v3472_v25  ;;  %v2049_v25 = vrot.slane %v2044_v24, %v288_v5  ;;  %v2962_v5 = vld [vmem:[%s4664_s6] ss:$0 sm:$0xff] }
 0x1a2   :  { %2994 = vmatpush3.bf16.msra.mxu1 %v3530_v22 }
 0x1a4   :  { %2420 = vmatpush1.bf16.msra.mxu0 %v3470_v26  ;;  %v2053_v26 = vrot.slane %v2044_v24, %v292_v7 }
 0x1a5   :  { %2421 = vmatprep.subr.bf16.mxu0 %v3475_v27 }
 0x1a8   :  { %2422 = vmatpush1.bf16.msra.mxu0 %v3473_v32 }
 0x1a9   :  { %2423 = vmatprep.subr.bf16.mxu0 %v3478_v35 }
 0x1ac   :  { %2424 = vmatpush1.bf16.msra.mxu0 %v3476_v63 }
 0x1ad   :  { %2425 = vmatprep.subr.bf16.mxu0 %v3481_v36 }
 0x1b0   :  { %2426 = vmatpush1.bf16.msra.mxu0 %v3479_v3 }
 0x1b1   :  { %2427 = vmatprep.subr.bf16.mxu0 %v3484_v23 }
 0x1b4   :  { %2428 = vmatpush1.bf16.msra.mxu0 %v3482_v40 }
 0x1b5   :  { %2429 = vmatprep.subr.bf16.mxu0 %v3487_v43 }
 0x1b8   :  { %2430 = vmatpush1.bf16.msra.mxu0 %v3485_v45 }
 0x1b9   :  { %2431 = vmatprep.subr.bf16.mxu0 %v3490_v46 }
 0x1bc   :  { %2432 = vmatpush1.bf16.msra.mxu0 %v3488_v47 }
 0x1bd   :  { %2433 = vmatprep.subr.bf16.mxu0 %v3493_v48 }
 0x1c0   :  { %2434 = vmatpush1.bf16.msra.mxu0 %v3491_v49 }
 0x1c1   :  { %2435 = vmatprep.subr.bf16.mxu0 %v3496_v50 }
 0x1c4   :  { %2436 = vmatpush1.bf16.msra.mxu0 %v3494_v51 }
 0x1c5   :  { %2437 = vmatprep.subr.bf16.mxu0 %v3499_v52 }
 0x1c8   :  { %2438 = vmatpush1.bf16.msra.mxu0 %v3497_v53 }
 0x1c9   :  { %2439 = vmatprep.subr.bf16.mxu0 %v3502_v54 }
 0x1cc   :  { %2440 = vmatpush1.bf16.msra.mxu0 %v3500_v55 }
 0x1cd   :  { %2441 = vmatprep.subr.bf16.mxu0 %v3505_v56 }
 0x1d0   :  { %2442 = vmatpush1.bf16.msra.mxu0 %v3503_v57 }
 0x1d1   :  { %2443 = vmatprep.subr.bf16.mxu0 %v3508_v58 }
 0x1d4   :  { %2444 = vmatpush1.bf16.msra.mxu0 %v3506_v59 }
 0x1d5   :  { %2445 = vmatprep.subr.bf16.mxu0 %v3511_v60 }
 0x1d8   :  { %2446 = vmatpush1.bf16.msra.mxu0 %v3509_v61 }
 0x1d9   :  { %2447 = vmatprep.subr.bf16.mxu0 %v3514_v62 }
 0x1dc   :  { %2448 = vmatpush1.bf16.msra.mxu0 %v3512_v0 }
 0x215   :  { %v1965_v9 = vpop.f32.mrb[4].mxu1 }
 0x216   :  { %v3005_v10 = vadd.f32 %v1965_v9, %v297_v4  ;;  %v1967_v11 = vpop.f32.mrb[5].mxu1 }
 0x217   :  { %v3006_v31 = vadd.f32 %v1967_v11, %v301_v8  ;;  %v1969_v12 = vpop.f32.mrb[6].mxu1 }
 0x218   :  { %v1974_v14 = vmax.f32 %v3005_v10, 0.0  ;;  %v1970_v15 = vpop.f32.mrb[7].mxu1 }
 0x219   :  { %v1975_v16 = vmax.f32 %v3006_v31, 0.0 }
 0x21a   :  { %v1978_v18 = vpack.c.bf16 %v1974_v14, %v1974_v14 }
 0x21b   :  { %v1979_v17 = vpack.c.bf16 %v1975_v16, %v1975_v16 }
 0x21d   :  { %2449 = vmatprep.mubr.bf16.mxu0 %v1979_v17 }
 0x21e   :  { %2450 = vmatmul.mubr.bf16.vlgmr.msra.gmra.mrb[4].mxu0 %v1978_v18 }
 0x2f1   :  { %v2451_v27 = vpop.f32.mrb[4].mxu0 }
 0x2f2   :  { %v3007_v28 = vadd.f32 %v2451_v27, %v2049_v25  ;;  %v2453_v29 = vpop.f32.mrb[5].mxu0 }
 0x2f3   :  { %v3008_v32 = vadd.f32 %v2453_v29, %v2053_v26  ;;  %v2455_v33 = vpop.f32.mrb[6].mxu0 }
 0x2f4   :  { %v2458_v13 = vmax.f32 %v3007_v28, 0.0  ;;  %v2456_v34 = vpop.f32.mrb[7].mxu0 }
 0x2f5   :  { %v2459_v35 = vmax.f32 %v3008_v32, 0.0 }
 0x2f6   :  { %v2460_v30 = vpack.c.bf16 %v2458_v13, %v2458_v13 }
 0x2f7   :  { %v2461_v63 = vpack.c.bf16 %v2459_v35, %v2459_v35 }
 0x2f9   :  { %2629 = vmatprep.mubr.bf16.mxu1 %v2461_v63 }
 0x2fa   :  { %2630 = vmatmul.mubr.bf16.vlgmr.msra.gmra.mrb[8].mxu1 %v2460_v30 }
 0x3cd   :  { %v2995_v19 = vpop.f32.mrb[8].mxu1 }
 0x3ce   :  { %v2996_v36 = vpop.f32.mrb[9].mxu1 }
 0x3cf   :  { %v2997_v42 = vadd.f32 %v2996_v36, %v2995_v19  ;;  %v2998_v7 = vpop.f32.mrb[10].mxu1 }
 0x3d0   :  { %v2999_v3 = vpop.f32.mrb[11].mxu1 }
 0x3d1   :  { %v2632_v23 = vadd.f32 %v2997_v42, %v2962_v5 }
 0x3d3   :  { %2637 = vst [vmem:[%s4665_s7] sm:$0x3] %v2632_v23 }

</bundles_post_ra>
